<compile_context>
chip_gen: v7x
topology: tpu7x:2x2x1
jax: 0.10.0
libtpu: 0.0.40
codegen_flags: <defaults>
</compile_context>

<pallas_src>
import functools

import jax
import jax.numpy as jnp
from jax import lax
from jax.experimental import pallas as pl
from jax.experimental.pallas import tpu as pltpu

_DILATIONS = (6, 12, 18)
_HALO = max(_DILATIONS)    # 18: H/W halo needed by the largest dilation
_HALO_W = 24               # left W halo rounded up to a sublane multiple (8)


def _round_up(x, m):
    return (x + m - 1) // m * m


# ------------------------------- Pallas kernel -------------------------------

def _aspp_kernel(x_ref, pool_ref, w1_ref, w2_ref, w3_ref, w4_ref, wc_ref,
                 s_ref, b_ref, sc_ref, bc_ref, o_ref, xp_ref, yb_ref, *,
                 h, w, nchunks, dilations):
    """Grid = (image, cin_chunk).

    x_ref   : (H, W, Ct)            bf16  unpadded image, current Cin chunk
    pool_ref: (1, Cmid_p)           f32   precomputed global-pool branch bias
    w1_ref  : (Ct, Cmid_p)          bf16  1x1 branch weights (chunk)
    w{2,3,4}: (9, Ct, Cmid_p)       bf16  per-tap dilated 3x3 weights (chunk)
    wc_ref  : (4, Cmid_p, Cmid_p)   bf16  fusion 1x1 conv, branches 1..4
    s/b_ref : (4, Cmid_p)           f32   folded BN scale/bias, branches 1..4
    sc/bc   : (1, Cmid_p)           f32   folded BN of the fusion conv
    o_ref   : (H*W, Cmid_p)         f32   output block (resident across chunks)
    xp_ref  : (H+36, 24+W+18, Ct)   bf16  VMEM scratch: zero-halo'd image chunk
    yb_ref  : (4, H*W, Cmid_p)      f32   VMEM scratch: per-branch accumulators
    """
    ct = x_ref.shape[-1]
    rows = h * w
    c = pl.program_id(1)

    # --- build the zero halo (once per image); interior rewritten every chunk.
    if nchunks == 1:
        xp_ref[...] = jnp.zeros(xp_ref.shape, xp_ref.dtype)
    else:
        @pl.when(c == 0)
        def _():
            xp_ref[...] = jnp.zeros(xp_ref.shape, xp_ref.dtype)
    xp_ref[_HALO:_HALO + h, _HALO_W:_HALO_W + w, :] = x_ref[...]

    def accum_first(idx, value):
        # First contribution of this chunk: assign on chunk 0, add afterwards.
        if nchunks == 1:
            yb_ref[idx] = value
            return

        @pl.when(c == 0)
        def _():
            yb_ref[idx] = value

        @pl.when(c != 0)
        def _():
            yb_ref[idx] += value

    # --- branch 1: 1x1 conv == plain matmul on the unpadded block.
    x2d = x_ref[...].reshape(rows, ct)
    accum_first(0, jnp.dot(x2d, w1_ref[...],
                           preferred_element_type=jnp.float32))

    # --- branches 2-4: dilated 3x3 convs.  One W-shifted slab per kw column
    # (the only sublane-misaligned materialisation), then 3 cheap H sub-slices.
    for bi, (d, w_ref) in enumerate(zip(dilations, (w2_ref, w3_ref, w4_ref)),
                                    start=1):
        for kw in range(3):
            ow = _HALO_W + (kw - 1) * d
            slab = xp_ref[_HALO - d:_HALO + h + d, ow:ow + w, :]
            for kh in range(3):
                tap = slab[kh * d:kh * d + h].reshape(rows, ct)
                contrib = jnp.dot(tap, w_ref[3 * kh + kw],
                                  preferred_element_type=jnp.float32)
                if kw == 0 and kh == 0:
                    accum_first(bi, contrib)
                else:
                    yb_ref[bi] += contrib

    # --- last chunk: BN+ReLU each branch, fuse via the 1x1 conv (accumulated
    # straight into the output block), add the hoisted pool-branch bias and
    # apply the final BN+ReLU in place.
    def finalize():
        def fused(idx):
            a = jnp.maximum(yb_ref[idx] * s_ref[idx:idx + 1, :]
                            + b_ref[idx:idx + 1, :], 0.0)
            return jnp.dot(a.astype(jnp.bfloat16), wc_ref[idx],
                           preferred_element_type=jnp.float32)

        o_ref[...] = fused(0) + pool_ref[...]
        o_ref[...] += fused(1)
        o_ref[...] += fused(2)
        o_ref[...] += fused(3)
        # TODO(synk): nn.Dropout(0.5) is identity in eval mode; training-mode
        # random masking is not implemented.
        o_ref[...] = jnp.maximum(o_ref[...] * sc_ref[...] + bc_ref[...], 0.0)

    if nchunks == 1:
        finalize()
    else:
        pl.when(c == nchunks - 1)(finalize)


# ------------------------------- JAX glue ------------------------------------

def _fold_bn(gamma, beta, mean, var, eps=1e-5):
    scale = gamma / jnp.sqrt(var + eps)
    bias = beta - mean * scale
    return scale, bias


def _pad_last(a, target):
    return jnp.pad(a, [(0, 0)] * (a.ndim - 1) + [(0, target - a.shape[-1])])


def _pick_vmem_limit():
    cap = 128 * 1024 * 1024
    try:
        # Capability probe only; a failure here never masks kernel errors.
        cap = int(pltpu.get_tpu_info().vmem_capacity_bytes)
    except Exception:
        pass
    if cap <= 64 * 1024 * 1024:                 # v7x: headroom for Mosaic scratch
        return cap - 8 * 1024 * 1024
    return min(cap - 16 * 1024 * 1024, 112 * 1024 * 1024)


def _build_aspp_call(n, h, w, ct, nchunks, cmid_p, dilations):
    rows = h * w
    kernel = functools.partial(_aspp_kernel, h=h, w=w, nchunks=nchunks,
                               dilations=dilations)
    n_taps = 1 + 9 * len(dilations)
    cin_pad = ct * nchunks
    cost = pl.CostEstimate(
        flops=(2 * n * rows * cin_pad * cmid_p * n_taps
               + 2 * n * rows * cmid_p * cmid_p * (1 + len(dilations))
               + 12 * n * rows * cmid_p),
        transcendentals=0,
        bytes_accessed=(2 * (n * rows * cin_pad
                             + cin_pad * cmid_p * n_taps
                             + 4 * cmid_p * cmid_p)
                        + 4 * (n * rows * cmid_p + (n + 10) * cmid_p)),
    )
    return pl.pallas_call(
        kernel,
        out_shape=jax.ShapeDtypeStruct((n, rows, cmid_p), jnp.float32),
        grid_spec=pltpu.PrefetchScalarGridSpec(
            num_scalar_prefetch=0,
            grid=(n, nchunks),          # images parallel, Cin chunks accumulate
            in_specs=[
                pl.BlockSpec((None, h, w, ct), lambda i, c: (i, 0, 0, c)),  # x
                pl.BlockSpec((None, 1, cmid_p), lambda i, c: (i, 0, 0)),    # pool bias
                pl.BlockSpec((ct, cmid_p), lambda i, c: (c, 0)),            # w1 chunk
                pl.BlockSpec((9, ct, cmid_p), lambda i, c: (0, c, 0)),      # w2 taps
                pl.BlockSpec((9, ct, cmid_p), lambda i, c: (0, c, 0)),      # w3 taps
                pl.BlockSpec((9, ct, cmid_p), lambda i, c: (0, c, 0)),      # w4 taps
                pl.BlockSpec((4, cmid_p, cmid_p), lambda i, c: (0, 0, 0)),  # wc (1-4)
                pl.BlockSpec((4, cmid_p), lambda i, c: (0, 0)),             # bn scales
                pl.BlockSpec((4, cmid_p), lambda i, c: (0, 0)),             # bn biases
                pl.BlockSpec((1, cmid_p), lambda i, c: (0, 0)),             # bnc scale
                pl.BlockSpec((1, cmid_p), lambda i, c: (0, 0)),             # bnc bias
            ],
            out_specs=pl.BlockSpec((None, rows, cmid_p), lambda i, c: (i, 0, 0)),
            scratch_shapes=[
                pltpu.VMEM((h + 2 * _HALO, _HALO_W + w + _HALO, ct),
                           jnp.bfloat16),                    # zero-halo image chunk
                pltpu.VMEM((4, rows, cmid_p), jnp.float32),  # per-branch accumulators
            ],
        ),
        compiler_params=pltpu.CompilerParams(
            dimension_semantics=("parallel", "arbitrary"),
            vmem_limit_bytes=_pick_vmem_limit()),
        cost_estimate=cost,
    )


def init_aspp_params(key, inplanes, mid_channels):
    """Deterministic (kaiming-normal) init matching the PyTorch module shapes."""
    ks = jax.random.split(key, 6)

    def kaiming(k, shape):                            # shape = (Cout, Cin, kh, kw)
        fan_in = shape[1] * shape[2] * shape[3]
        return jax.random.normal(k, shape, jnp.float32) * jnp.sqrt(2.0 / fan_in)

    p = {
        "w1": kaiming(ks[0], (mid_channels, inplanes, 1, 1)),
        "w2": kaiming(ks[1], (mid_channels, inplanes, 3, 3)),
        "w3": kaiming(ks[2], (mid_channels, inplanes, 3, 3)),
        "w4": kaiming(ks[3], (mid_channels, inplanes, 3, 3)),
        "w5": kaiming(ks[4], (mid_channels, inplanes, 1, 1)),
        "wc": kaiming(ks[5], (mid_channels, 5 * mid_channels, 1, 1)),
    }
    # BatchNorm params from _init_weight (gamma=1, beta=0), default running
    # stats (mean=0, var=1); evaluated in inference mode.
    for name in ("bn1", "bn2", "bn3", "bn4", "bn5", "bnc"):
        p[name] = dict(gamma=jnp.ones((mid_channels,), jnp.float32),
                       beta=jnp.zeros((mid_channels,), jnp.float32),
                       mean=jnp.zeros((mid_channels,), jnp.float32),
                       var=jnp.ones((mid_channels,), jnp.float32))
    return p


def aspp_forward_pallas(x_nchw, params, *, cin_tile=512):
    n, cin, h, w = x_nchw.shape
    cmid = params["w1"].shape[0]
    cmid_p = _round_up(cmid, 128)        # lane-dense output / full-width matmuls

    # Cin chunking keeps the per-step resident set inside VMEM at production
    # sizes; degenerates to a single chunk for small Cin.
    if cin <= cin_tile:
        ct = cin
    else:
        ct = _round_up(cin_tile, 128)    # multi-chunk tiles must be lane aligned
    cin_pad = _round_up(cin, ct)
    nchunks = cin_pad // ct

    # bf16 BEFORE the NHWC transpose: halves the host-side repack + input DMA.
    x_nhwc = jnp.transpose(x_nchw.astype(jnp.bfloat16), (0, 2, 3, 1))
    if cin_pad != cin:
        x_nhwc = _pad_last(x_nhwc, cin_pad)

    # Weights as channels-last matmul matrices, zero-padded to (cin_pad, cmid_p).
    def pad2(a):
        return jnp.pad(a, ((0, cin_pad - a.shape[0]), (0, cmid_p - a.shape[1])))

    w1m = pad2(params["w1"][:, :, 0, 0].T).astype(jnp.bfloat16)

    def tap_weights(wk):                 # (Cmid, Cin, 3, 3) -> (9, cin_pad, cmid_p)
        wt = jnp.transpose(wk, (2, 3, 1, 0)).reshape(9, cin, cmid)
        wt = jnp.pad(wt, ((0, 0), (0, cin_pad - cin), (0, cmid_p - cmid)))
        return wt.astype(jnp.bfloat16)

    w2t, w3t, w4t = (tap_weights(params[k]) for k in ("w2", "w3", "w4"))

    wcm = params["wc"][:, :, 0, 0].T                              # (5*Cmid, Cmid)
    wc4 = wcm[:4 * cmid, :].reshape(4, cmid, cmid)
    wc4 = jnp.pad(wc4, ((0, 0), (0, cmid_p - cmid), (0, cmid_p - cmid))
                  ).astype(jnp.bfloat16)

    # Folded inference BatchNorm (f32) for branches 1-4 and the fusion conv.
    scales, biases = zip(*[_fold_bn(**params[k])
                           for k in ("bn1", "bn2", "bn3", "bn4")])
    s_all = _pad_last(jnp.stack(scales, 0), cmid_p)
    b_all = _pad_last(jnp.stack(biases, 0), cmid_p)
    sc, bc = _fold_bn(**params["bnc"])
    sc = _pad_last(sc.reshape(1, cmid), cmid_p)
    bc = _pad_last(bc.reshape(1, cmid), cmid_p)

    # Global-pool branch hoisted out of the kernel: per image it contributes a
    # constant (1, Cmid) bias to the fusion conv (bilinear upsample of a 1x1
    # map with align_corners=True is a broadcast).  Tiny O(N*Cin) f32 compute.
    pooled = jnp.mean(x_nchw.astype(jnp.float32), axis=(2, 3))        # (N, Cin)
    s5, b5 = _fold_bn(**params["bn5"])
    y5 = jnp.maximum(jnp.dot(pooled, params["w5"][:, :, 0, 0].T) * s5 + b5, 0.0)
    pool_bias = _pad_last(jnp.dot(y5, wcm[4 * cmid:, :]), cmid_p)[:, None, :]

    call = _build_aspp_call(n, h, w, ct, nchunks, cmid_p, _DILATIONS)
    out_flat = call(x_nhwc, pool_bias, w1m, w2t, w3t, w4t, wc4,
                    s_all, b_all, sc, bc)

    # TODO(synk): for N=1 deployments add a spatial row-stripe 'parallel' grid
    # axis (stripe + 18-row halo) so both v7x TensorCores stay busy.
    out_nhwc = out_flat.reshape(n, h, w, cmid_p)[..., :cmid]
    return jnp.transpose(out_nhwc, (0, 3, 1, 2))                      # back to NCHW


# --------------------------- pure-JAX reference -------------------------------

def aspp_forward_reference(x_nchw, params):
    def conv(x, w_, pad, dil):
        return lax.conv_general_dilated(
            x, w_, window_strides=(1, 1), padding=[(pad, pad), (pad, pad)],
            rhs_dilation=(dil, dil),
            dimension_numbers=("NCHW", "OIHW", "NCHW"))

    def bn_relu(y, bn):
        s, b = _fold_bn(**bn)
        return jnp.maximum(y * s[None, :, None, None] + b[None, :, None, None], 0.0)

    n, _, h, w = x_nchw.shape
    x1 = bn_relu(conv(x_nchw, params["w1"], 0, 1), params["bn1"])
    x2 = bn_relu(conv(x_nchw, params["w2"], 6, 6), params["bn2"])
    x3 = bn_relu(conv(x_nchw, params["w3"], 12, 12), params["bn3"])
    x4 = bn_relu(conv(x_nchw, params["w4"], 18, 18), params["bn4"])
    pooled = jnp.mean(x_nchw, axis=(2, 3), keepdims=True)
    x5 = bn_relu(conv(pooled, params["w5"], 0, 1), params["bn5"])
    x5 = jnp.broadcast_to(x5, (n, x5.shape[1], h, w))
    cat = jnp.concatenate([x1, x2, x3, x4, x5], axis=1)
    out = bn_relu(conv(cat, params["wc"], 0, 1), params["bnc"])
    return out


# ----------------------------------- main -------------------------------------

if __name__ == "__main__":
    key = jax.random.PRNGKey(0)
    k_x, k_p, k_x2, k_p2 = jax.random.split(key, 4)

    # Small shapes consistent with the module.
    N, CIN, H, W = 2, 4, 16, 16
    MID = 32
    x = jax.random.normal(k_x, (N, CIN, H, W), jnp.float32)
    params = init_aspp_params(k_p, CIN, MID)

    out = jax.block_until_ready(aspp_forward_pallas(x, params))
    ref = jax.block_until_ready(aspp_forward_reference(x, params))
    assert out.shape == (N, MID, H, W), out.shape
    # bf16 MXU inputs -> slightly looser tolerance than the f32 reference.
    assert jnp.allclose(out, ref, rtol=2e-2, atol=5e-2), \
        float(jnp.abs(out - ref).max())

    # Exercise the multi-chunk (Cin-tiled accumulator) path used at production
    # channel counts: 256 input channels split into two 128-channel chunks.
    x2 = jax.random.normal(k_x2, (1, 256, H, W), jnp.float32)
    params2 = init_aspp_params(k_p2, 256, MID)
    out2 = jax.block_until_ready(aspp_forward_pallas(x2, params2, cin_tile=128))
    ref2 = jax.block_until_ready(aspp_forward_reference(x2, params2))
    assert out2.shape == (1, MID, H, W), out2.shape
    assert jnp.allclose(out2, ref2, rtol=2e-2, atol=1e-1), \
        float(jnp.abs(out2 - ref2).max())

    print("KERNEL_OK")
</pallas_src>

<mosaic_0001>
module attributes {stable_mosaic.version = 11 : i64} {
  func.func @_aspp_kernel(%arg0: i32, %arg1: i32, %arg2: memref<1x16x16x4xbf16, #tpu.memory_space<vmem>>, %arg3: memref<1x1x128xf32, #tpu.memory_space<vmem>>, %arg4: memref<4x128xbf16, #tpu.memory_space<vmem>>, %arg5: memref<9x4x128xbf16, #tpu.memory_space<vmem>>, %arg6: memref<9x4x128xbf16, #tpu.memory_space<vmem>>, %arg7: memref<9x4x128xbf16, #tpu.memory_space<vmem>>, %arg8: memref<4x128x128xbf16, #tpu.memory_space<vmem>>, %arg9: memref<4x128xf32, #tpu.memory_space<vmem>>, %arg10: memref<4x128xf32, #tpu.memory_space<vmem>>, %arg11: memref<1x128xf32, #tpu.memory_space<vmem>>, %arg12: memref<1x128xf32, #tpu.memory_space<vmem>>, %arg13: memref<1x256x128xf32, #tpu.memory_space<vmem>>, %arg14: memref<52x58x4xbf16, #tpu.memory_space<vmem>>, %arg15: memref<4x256x128xf32, #tpu.memory_space<vmem>>) attributes {dimension_semantics = [#tpu.dimension_semantics<parallel>, #tpu.dimension_semantics<arbitrary>], iteration_bounds = array<i64: 2, 1>, scalar_prefetch = 0 : i64, scratch_operands = 2 : i64, tpu.core_type = #tpu.core_type<tc>, window_params = [{transform_indices = @transform_0, window_bounds = array<i64: 1, 16, 16, 4>}, {transform_indices = @transform_1, window_bounds = array<i64: 1, 1, 128>}, {transform_indices = @transform_2, window_bounds = array<i64: 4, 128>}, {transform_indices = @transform_3, window_bounds = array<i64: 9, 4, 128>}, {transform_indices = @transform_4, window_bounds = array<i64: 9, 4, 128>}, {transform_indices = @transform_5, window_bounds = array<i64: 9, 4, 128>}, {pipeline_mode = #tpu.pipeline_mode<synchronous>, transform_indices = @transform_6, window_bounds = array<i64: 4, 128, 128>}, {pipeline_mode = #tpu.pipeline_mode<synchronous>, transform_indices = @transform_7, window_bounds = array<i64: 4, 128>}, {pipeline_mode = #tpu.pipeline_mode<synchronous>, transform_indices = @transform_8, window_bounds = array<i64: 4, 128>}, {pipeline_mode = #tpu.pipeline_mode<synchronous>, transform_indices = @transform_9, window_bounds = array<i64: 1, 128>}, {pipeline_mode = #tpu.pipeline_mode<synchronous>, transform_indices = @transform_10, window_bounds = array<i64: 1, 128>}, {transform_indices = @transform_11, window_bounds = array<i64: 1, 256, 128>}]} {
    %cst = arith.constant 0.000000e+00 : bf16
    %0 = vector.broadcast %cst : bf16 to vector<52x58x4xbf16>
    %c0 = arith.constant 0 : index
    %c0_0 = arith.constant 0 : index
    %c0_1 = arith.constant 0 : index
    %1 = vector.load %arg14[%c0, %c0_0, %c0_1] : memref<52x58x4xbf16, #tpu.memory_space<vmem>>, vector<52x58x4xbf16>
    tpu.vector_store %arg14[%c0, %c0_0, %c0_1], %0 {strides = array<i32>} : memref<52x58x4xbf16, #tpu.memory_space<vmem>>, vector<52x58x4xbf16>,
    %c0_2 = arith.constant 0 : index
    %c0_3 = arith.constant 0 : index
    %c0_4 = arith.constant 0 : index
    %c0_5 = arith.constant 0 : index
    %2 = vector.load %arg2[%c0_2, %c0_3, %c0_4, %c0_5] : memref<1x16x16x4xbf16, #tpu.memory_space<vmem>>, vector<1x16x16x4xbf16>
    %3 = vector.shape_cast %2 : vector<1x16x16x4xbf16> to vector<16x16x4xbf16>
    %c18 = arith.constant 18 : index
    %c24 = arith.constant 24 : index
    %c0_6 = arith.constant 0 : index
    %4 = vector.load %arg14[%c18, %c24, %c0_6] : memref<52x58x4xbf16, #tpu.memory_space<vmem>>, vector<16x16x4xbf16>
    tpu.vector_store %arg14[%c18, %c24, %c0_6], %3 {strides = array<i32>} : memref<52x58x4xbf16, #tpu.memory_space<vmem>>, vector<16x16x4xbf16>,
    %c0_7 = arith.constant 0 : index
    %c0_8 = arith.constant 0 : index
    %c0_9 = arith.constant 0 : index
    %c0_10 = arith.constant 0 : index
    %5 = vector.load %arg2[%c0_7, %c0_8, %c0_9, %c0_10] : memref<1x16x16x4xbf16, #tpu.memory_space<vmem>>, vector<1x16x16x4xbf16>
    %6 = vector.shape_cast %5 : vector<1x16x16x4xbf16> to vector<16x16x4xbf16>
    %7 = vector.shape_cast %6 : vector<16x16x4xbf16> to vector<256x4xbf16>
    %c0_11 = arith.constant 0 : index
    %c0_12 = arith.constant 0 : index
    %8 = vector.load %arg4[%c0_11, %c0_12] : memref<4x128xbf16, #tpu.memory_space<vmem>>, vector<4x128xbf16>
    %cst_13 = arith.constant dense<0.000000e+00> : vector<256x128xf32>
    %9 = tpu.matmul %7, %8, %cst_13 {dimension_numbers = #tpu.dot_dimension_numbers<[1], [0], [0], [1], [0, 0, 1, 1], [], []>} : vector<256x4xbf16>, vector<4x128xbf16>, vector<256x128xf32> -> vector<256x128xf32>
    %c0_14 = arith.constant 0 : index
    %c0_15 = arith.constant 0 : index
    %c0_16 = arith.constant 0 : index
    %10 = vector.load %arg15[%c0_14, %c0_15, %c0_16] : memref<4x256x128xf32, #tpu.memory_space<vmem>>, vector<1x256x128xf32>
    %11 = vector.shape_cast %10 : vector<1x256x128xf32> to vector<256x128xf32>
    %12 = vector.shape_cast %9 : vector<256x128xf32> to vector<1x256x128xf32>
    tpu.vector_store %arg15[%c0_14, %c0_15, %c0_16], %12 {strides = array<i32>} : memref<4x256x128xf32, #tpu.memory_space<vmem>>, vector<1x256x128xf32>,
    %c12 = arith.constant 12 : index
    %c18_17 = arith.constant 18 : index
    %c0_18 = arith.constant 0 : index
    %13 = vector.load %arg14[%c12, %c18_17, %c0_18] : memref<52x58x4xbf16, #tpu.memory_space<vmem>>, vector<28x16x4xbf16>
    %14 = vector.extract_strided_slice %13 {offsets = [0, 0, 0], sizes = [16, 16, 4], strides = [1, 1, 1]} : vector<28x16x4xbf16> to vector<16x16x4xbf16>
    %15 = vector.shape_cast %14 : vector<16x16x4xbf16> to vector<256x4xbf16>
    %c0_19 = arith.constant 0 : index
    %c0_20 = arith.constant 0 : index
    %c0_21 = arith.constant 0 : index
    %16 = vector.load %arg5[%c0_19, %c0_20, %c0_21] : memref<9x4x128xbf16, #tpu.memory_space<vmem>>, vector<1x4x128xbf16>
    %17 = vector.shape_cast %16 : vector<1x4x128xbf16> to vector<4x128xbf16>
    %cst_22 = arith.constant dense<0.000000e+00> : vector<256x128xf32>
    %18 = tpu.matmul %15, %17, %cst_22 {dimension_numbers = #tpu.dot_dimension_numbers<[1], [0], [0], [1], [0, 0, 1, 1], [], []>} : vector<256x4xbf16>, vector<4x128xbf16>, vector<256x128xf32> -> vector<256x128xf32>
    %c1 = arith.constant 1 : index
    %c0_23 = arith.constant 0 : index
    %c0_24 = arith.constant 0 : index
    %19 = vector.load %arg15[%c1, %c0_23, %c0_24] : memref<4x256x128xf32, #tpu.memory_space<vmem>>, vector<1x256x128xf32>
    %20 = vector.shape_cast %19 : vector<1x256x128xf32> to vector<256x128xf32>
    %21 = vector.shape_cast %18 : vector<256x128xf32> to vector<1x256x128xf32>
    tpu.vector_store %arg15[%c1, %c0_23, %c0_24], %21 {strides = array<i32>} : memref<4x256x128xf32, #tpu.memory_space<vmem>>, vector<1x256x128xf32>,
    %22 = vector.extract_strided_slice %13 {offsets = [6, 0, 0], sizes = [16, 16, 4], strides = [1, 1, 1]} : vector<28x16x4xbf16> to vector<16x16x4xbf16>
    %23 = vector.shape_cast %22 : vector<16x16x4xbf16> to vector<256x4xbf16>
    %c3 = arith.constant 3 : index
    %c0_25 = arith.constant 0 : index
    %c0_26 = arith.constant 0 : index
    %24 = vector.load %arg5[%c3, %c0_25, %c0_26] : memref<9x4x128xbf16, #tpu.memory_space<vmem>>, vector<1x4x128xbf16>
    %25 = vector.shape_cast %24 : vector<1x4x128xbf16> to vector<4x128xbf16>
    %cst_27 = arith.constant dense<0.000000e+00> : vector<256x128xf32>
    %26 = tpu.matmul %23, %25, %cst_27 {dimension_numbers = #tpu.dot_dimension_numbers<[1], [0], [0], [1], [0, 0, 1, 1], [], []>} : vector<256x4xbf16>, vector<4x128xbf16>, vector<256x128xf32> -> vector<256x128xf32>
    %c1_28 = arith.constant 1 : index
    %c0_29 = arith.constant 0 : index
    %c0_30 = arith.constant 0 : index
    %27 = vector.load %arg15[%c1_28, %c0_29, %c0_30] : memref<4x256x128xf32, #tpu.memory_space<vmem>>, vector<1x256x128xf32>
    %28 = vector.shape_cast %27 : vector<1x256x128xf32> to vector<256x128xf32>
    %29 = arith.addf %28, %26 : vector<256x128xf32>
    %c1_31 = arith.constant 1 : index
    %c0_32 = arith.constant 0 : index
    %c0_33 = arith.constant 0 : index
    %30 = vector.load %arg15[%c1_31, %c0_32, %c0_33] : memref<4x256x128xf32, #tpu.memory_space<vmem>>, vector<1x256x128xf32>
    %31 = vector.shape_cast %30 : vector<1x256x128xf32> to vector<256x128xf32>
    %32 = vector.shape_cast %29 : vector<256x128xf32> to vector<1x256x128xf32>
    tpu.vector_store %arg15[%c1_31, %c0_32, %c0_33], %32 {strides = array<i32>} : memref<4x256x128xf32, #tpu.memory_space<vmem>>, vector<1x256x128xf32>,
    %33 = vector.extract_strided_slice %13 {offsets = [12, 0, 0], sizes = [16, 16, 4], strides = [1, 1, 1]} : vector<28x16x4xbf16> to vector<16x16x4xbf16>
    %34 = vector.shape_cast %33 : vector<16x16x4xbf16> to vector<256x4xbf16>
    %c6 = arith.constant 6 : index
    %c0_34 = arith.constant 0 : index
    %c0_35 = arith.constant 0 : index
    %35 = vector.load %arg5[%c6, %c0_34, %c0_35] : memref<9x4x128xbf16, #tpu.memory_space<vmem>>, vector<1x4x128xbf16>
    %36 = vector.shape_cast %35 : vector<1x4x128xbf16> to vector<4x128xbf16>
    %cst_36 = arith.constant dense<0.000000e+00> : vector<256x128xf32>
    %37 = tpu.matmul %34, %36, %cst_36 {dimension_numbers = #tpu.dot_dimension_numbers<[1], [0], [0], [1], [0, 0, 1, 1], [], []>} : vector<256x4xbf16>, vector<4x128xbf16>, vector<256x128xf32> -> vector<256x128xf32>
    %c1_37 = arith.constant 1 : index
    %c0_38 = arith.constant 0 : index
    %c0_39 = arith.constant 0 : index
    %38 = vector.load %arg15[%c1_37, %c0_38, %c0_39] : memref<4x256x128xf32, #tpu.memory_space<vmem>>, vector<1x256x128xf32>
    %39 = vector.shape_cast %38 : vector<1x256x128xf32> to vector<256x128xf32>
    %40 = arith.addf %39, %37 : vector<256x128xf32>
    %c1_40 = arith.constant 1 : index
    %c0_41 = arith.constant 0 : index
    %c0_42 = arith.constant 0 : index
    %41 = vector.load %arg15[%c1_40, %c0_41, %c0_42] : memref<4x256x128xf32, #tpu.memory_space<vmem>>, vector<1x256x128xf32>
    %42 = vector.shape_cast %41 : vector<1x256x128xf32> to vector<256x128xf32>
    %43 = vector.shape_cast %40 : vector<256x128xf32> to vector<1x256x128xf32>
    tpu.vector_store %arg15[%c1_40, %c0_41, %c0_42], %43 {strides = array<i32>} : memref<4x256x128xf32, #tpu.memory_space<vmem>>, vector<1x256x128xf32>,
    %c12_43 = arith.constant 12 : index
    %c24_44 = arith.constant 24 : index
    %c0_45 = arith.constant 0 : index
    %44 = vector.load %arg14[%c12_43, %c24_44, %c0_45] : memref<52x58x4xbf16, #tpu.memory_space<vmem>>, vector<28x16x4xbf16>
    %45 = vector.extract_strided_slice %44 {offsets = [0, 0, 0], sizes = [16, 16, 4], strides = [1, 1, 1]} : vector<28x16x4xbf16> to vector<16x16x4xbf16>
    %46 = vector.shape_cast %45 : vector<16x16x4xbf16> to vector<256x4xbf16>
    %c1_46 = arith.constant 1 : index
    %c0_47 = arith.constant 0 : index
    %c0_48 = arith.constant 0 : index
    %47 = vector.load %arg5[%c1_46, %c0_47, %c0_48] : memref<9x4x128xbf16, #tpu.memory_space<vmem>>, vector<1x4x128xbf16>
    %48 = vector.shape_cast %47 : vector<1x4x128xbf16> to vector<4x128xbf16>
    %cst_49 = arith.constant dense<0.000000e+00> : vector<256x128xf32>
    %49 = tpu.matmul %46, %48, %cst_49 {dimension_numbers = #tpu.dot_dimension_numbers<[1], [0], [0], [1], [0, 0, 1, 1], [], []>} : vector<256x4xbf16>, vector<4x128xbf16>, vector<256x128xf32> -> vector<256x128xf32>
    %c1_50 = arith.constant 1 : index
    %c0_51 = arith.constant 0 : index
    %c0_52 = arith.constant 0 : index
    %50 = vector.load %arg15[%c1_50, %c0_51, %c0_52] : memref<4x256x128xf32, #tpu.memory_space<vmem>>, vector<1x256x128xf32>
    %51 = vector.shape_cast %50 : vector<1x256x128xf32> to vector<256x128xf32>
    %52 = arith.addf %51, %49 : vector<256x128xf32>
    %c1_53 = arith.constant 1 : index
    %c0_54 = arith.constant 0 : index
    %c0_55 = arith.constant 0 : index
    %53 = vector.load %arg15[%c1_53, %c0_54, %c0_55] : memref<4x256x128xf32, #tpu.memory_space<vmem>>, vector<1x256x128xf32>
    %54 = vector.shape_cast %53 : vector<1x256x128xf32> to vector<256x128xf32>
    %55 = vector.shape_cast %52 : vector<256x128xf32> to vector<1x256x128xf32>
    tpu.vector_store %arg15[%c1_53, %c0_54, %c0_55], %55 {strides = array<i32>} : memref<4x256x128xf32, #tpu.memory_space<vmem>>, vector<1x256x128xf32>,
    %56 = vector.extract_strided_slice %44 {offsets = [6, 0, 0], sizes = [16, 16, 4], strides = [1, 1, 1]} : vector<28x16x4xbf16> to vector<16x16x4xbf16>
    %57 = vector.shape_cast %56 : vector<16x16x4xbf16> to vector<256x4xbf16>
    %c4 = arith.constant 4 : index
    %c0_56 = arith.constant 0 : index
    %c0_57 = arith.constant 0 : index
    %58 = vector.load %arg5[%c4, %c0_56, %c0_57] : memref<9x4x128xbf16, #tpu.memory_space<vmem>>, vector<1x4x128xbf16>
    %59 = vector.shape_cast %58 : vector<1x4x128xbf16> to vector<4x128xbf16>
    %cst_58 = arith.constant dense<0.000000e+00> : vector<256x128xf32>
    %60 = tpu.matmul %57, %59, %cst_58 {dimension_numbers = #tpu.dot_dimension_numbers<[1], [0], [0], [1], [0, 0, 1, 1], [], []>} : vector<256x4xbf16>, vector<4x128xbf16>, vector<256x128xf32> -> vector<256x128xf32>
    %c1_59 = arith.constant 1 : index
    %c0_60 = arith.constant 0 : index
    %c0_61 = arith.constant 0 : index
    %61 = vector.load %arg15[%c1_59, %c0_60, %c0_61] : memref<4x256x128xf32, #tpu.memory_space<vmem>>, vector<1x256x128xf32>
    %62 = vector.shape_cast %61 : vector<1x256x128xf32> to vector<256x128xf32>
    %63 = arith.addf %62, %60 : vector<256x128xf32>
    %c1_62 = arith.constant 1 : index
    %c0_63 = arith.constant 0 : index
    %c0_64 = arith.constant 0 : index
    %64 = vector.load %arg15[%c1_62, %c0_63, %c0_64] : memref<4x256x128xf32, #tpu.memory_space<vmem>>, vector<1x256x128xf32>
    %65 = vector.shape_cast %64 : vector<1x256x128xf32> to vector<256x128xf32>
    %66 = vector.shape_cast %63 : vector<256x128xf32> to vector<1x256x128xf32>
    tpu.vector_store %arg15[%c1_62, %c0_63, %c0_64], %66 {strides = array<i32>} : memref<4x256x128xf32, #tpu.memory_space<vmem>>, vector<1x256x128xf32>,
    %67 = vector.extract_strided_slice %44 {offsets = [12, 0, 0], sizes = [16, 16, 4], strides = [1, 1, 1]} : vector<28x16x4xbf16> to vector<16x16x4xbf16>
    %68 = vector.shape_cast %67 : vector<16x16x4xbf16> to vector<256x4xbf16>
    %c7 = arith.constant 7 : index
    %c0_65 = arith.constant 0 : index
    %c0_66 = arith.constant 0 : index
    %69 = vector.load %arg5[%c7, %c0_65, %c0_66] : memref<9x4x128xbf16, #tpu.memory_space<vmem>>, vector<1x4x128xbf16>
    %70 = vector.shape_cast %69 : vector<1x4x128xbf16> to vector<4x128xbf16>
    %cst_67 = arith.constant dense<0.000000e+00> : vector<256x128xf32>
    %71 = tpu.matmul %68, %70, %cst_67 {dimension_numbers = #tpu.dot_dimension_numbers<[1], [0], [0], [1], [0, 0, 1, 1], [], []>} : vector<256x4xbf16>, vector<4x128xbf16>, vector<256x128xf32> -> vector<256x128xf32>
    %c1_68 = arith.constant 1 : index
    %c0_69 = arith.constant 0 : index
    %c0_70 = arith.constant 0 : index
    %72 = vector.load %arg15[%c1_68, %c0_69, %c0_70] : memref<4x256x128xf32, #tpu.memory_space<vmem>>, vector<1x256x128xf32>
    %73 = vector.shape_cast %72 : vector<1x256x128xf32> to vector<256x128xf32>
    %74 = arith.addf %73, %71 : vector<256x128xf32>
    %c1_71 = arith.constant 1 : index
    %c0_72 = arith.constant 0 : index
    %c0_73 = arith.constant 0 : index
    %75 = vector.load %arg15[%c1_71, %c0_72, %c0_73] : memref<4x256x128xf32, #tpu.memory_space<vmem>>, vector<1x256x128xf32>
    %76 = vector.shape_cast %75 : vector<1x256x128xf32> to vector<256x128xf32>
    %77 = vector.shape_cast %74 : vector<256x128xf32> to vector<1x256x128xf32>
    tpu.vector_store %arg15[%c1_71, %c0_72, %c0_73], %77 {strides = array<i32>} : memref<4x256x128xf32, #tpu.memory_space<vmem>>, vector<1x256x128xf32>,
    %c12_74 = arith.constant 12 : index
    %c30 = arith.constant 30 : index
    %c0_75 = arith.constant 0 : index
    %78 = vector.load %arg14[%c12_74, %c30, %c0_75] : memref<52x58x4xbf16, #tpu.memory_space<vmem>>, vector<28x16x4xbf16>
    %79 = vector.extract_strided_slice %78 {offsets = [0, 0, 0], sizes = [16, 16, 4], strides = [1, 1, 1]} : vector<28x16x4xbf16> to vector<16x16x4xbf16>
    %80 = vector.shape_cast %79 : vector<16x16x4xbf16> to vector<256x4xbf16>
    %c2 = arith.constant 2 : index
    %c0_76 = arith.constant 0 : index
    %c0_77 = arith.constant 0 : index
    %81 = vector.load %arg5[%c2, %c0_76, %c0_77] : memref<9x4x128xbf16, #tpu.memory_space<vmem>>, vector<1x4x128xbf16>
    %82 = vector.shape_cast %81 : vector<1x4x128xbf16> to vector<4x128xbf16>
    %cst_78 = arith.constant dense<0.000000e+00> : vector<256x128xf32>
    %83 = tpu.matmul %80, %82, %cst_78 {dimension_numbers = #tpu.dot_dimension_numbers<[1], [0], [0], [1], [0, 0, 1, 1], [], []>} : vector<256x4xbf16>, vector<4x128xbf16>, vector<256x128xf32> -> vector<256x128xf32>
    %c1_79 = arith.constant 1 : index
    %c0_80 = arith.constant 0 : index
    %c0_81 = arith.constant 0 : index
    %84 = vector.load %arg15[%c1_79, %c0_80, %c0_81] : memref<4x256x128xf32, #tpu.memory_space<vmem>>, vector<1x256x128xf32>
    %85 = vector.shape_cast %84 : vector<1x256x128xf32> to vector<256x128xf32>
    %86 = arith.addf %85, %83 : vector<256x128xf32>
    %c1_82 = arith.constant 1 : index
    %c0_83 = arith.constant 0 : index
    %c0_84 = arith.constant 0 : index
    %87 = vector.load %arg15[%c1_82, %c0_83, %c0_84] : memref<4x256x128xf32, #tpu.memory_space<vmem>>, vector<1x256x128xf32>
    %88 = vector.shape_cast %87 : vector<1x256x128xf32> to vector<256x128xf32>
    %89 = vector.shape_cast %86 : vector<256x128xf32> to vector<1x256x128xf32>
    tpu.vector_store %arg15[%c1_82, %c0_83, %c0_84], %89 {strides = array<i32>} : memref<4x256x128xf32, #tpu.memory_space<vmem>>, vector<1x256x128xf32>,
    %90 = vector.extract_strided_slice %78 {offsets = [6, 0, 0], sizes = [16, 16, 4], strides = [1, 1, 1]} : vector<28x16x4xbf16> to vector<16x16x4xbf16>
    %91 = vector.shape_cast %90 : vector<16x16x4xbf16> to vector<256x4xbf16>
    %c5 = arith.constant 5 : index
    %c0_85 = arith.constant 0 : index
    %c0_86 = arith.constant 0 : index
    %92 = vector.load %arg5[%c5, %c0_85, %c0_86] : memref<9x4x128xbf16, #tpu.memory_space<vmem>>, vector<1x4x128xbf16>
    %93 = vector.shape_cast %92 : vector<1x4x128xbf16> to vector<4x128xbf16>
    %cst_87 = arith.constant dense<0.000000e+00> : vector<256x128xf32>
    %94 = tpu.matmul %91, %93, %cst_87 {dimension_numbers = #tpu.dot_dimension_numbers<[1], [0], [0], [1], [0, 0, 1, 1], [], []>} : vector<256x4xbf16>, vector<4x128xbf16>, vector<256x128xf32> -> vector<256x128xf32>
    %c1_88 = arith.constant 1 : index
    %c0_89 = arith.constant 0 : index
    %c0_90 = arith.constant 0 : index
    %95 = vector.load %arg15[%c1_88, %c0_89, %c0_90] : memref<4x256x128xf32, #tpu.memory_space<vmem>>, vector<1x256x128xf32>
    %96 = vector.shape_cast %95 : vector<1x256x128xf32> to vector<256x128xf32>
    %97 = arith.addf %96, %94 : vector<256x128xf32>
    %c1_91 = arith.constant 1 : index
    %c0_92 = arith.constant 0 : index
    %c0_93 = arith.constant 0 : index
    %98 = vector.load %arg15[%c1_91, %c0_92, %c0_93] : memref<4x256x128xf32, #tpu.memory_space<vmem>>, vector<1x256x128xf32>
    %99 = vector.shape_cast %98 : vector<1x256x128xf32> to vector<256x128xf32>
    %100 = vector.shape_cast %97 : vector<256x128xf32> to vector<1x256x128xf32>
    tpu.vector_store %arg15[%c1_91, %c0_92, %c0_93], %100 {strides = array<i32>} : memref<4x256x128xf32, #tpu.memory_space<vmem>>, vector<1x256x128xf32>,
    %101 = vector.extract_strided_slice %78 {offsets = [12, 0, 0], sizes = [16, 16, 4], strides = [1, 1, 1]} : vector<28x16x4xbf16> to vector<16x16x4xbf16>
    %102 = vector.shape_cast %101 : vector<16x16x4xbf16> to vector<256x4xbf16>
    %c8 = arith.constant 8 : index
    %c0_94 = arith.constant 0 : index
    %c0_95 = arith.constant 0 : index
    %103 = vector.load %arg5[%c8, %c0_94, %c0_95] : memref<9x4x128xbf16, #tpu.memory_space<vmem>>, vector<1x4x128xbf16>
    %104 = vector.shape_cast %103 : vector<1x4x128xbf16> to vector<4x128xbf16>
    %cst_96 = arith.constant dense<0.000000e+00> : vector<256x128xf32>
    %105 = tpu.matmul %102, %104, %cst_96 {dimension_numbers = #tpu.dot_dimension_numbers<[1], [0], [0], [1], [0, 0, 1, 1], [], []>} : vector<256x4xbf16>, vector<4x128xbf16>, vector<256x128xf32> -> vector<256x128xf32>
    %c1_97 = arith.constant 1 : index
    %c0_98 = arith.constant 0 : index
    %c0_99 = arith.constant 0 : index
    %106 = vector.load %arg15[%c1_97, %c0_98, %c0_99] : memref<4x256x128xf32, #tpu.memory_space<vmem>>, vector<1x256x128xf32>
    %107 = vector.shape_cast %106 : vector<1x256x128xf32> to vector<256x128xf32>
    %108 = arith.addf %107, %105 : vector<256x128xf32>
    %c1_100 = arith.constant 1 : index
    %c0_101 = arith.constant 0 : index
    %c0_102 = arith.constant 0 : index
    %109 = vector.load %arg15[%c1_100, %c0_101, %c0_102] : memref<4x256x128xf32, #tpu.memory_space<vmem>>, vector<1x256x128xf32>
    %110 = vector.shape_cast %109 : vector<1x256x128xf32> to vector<256x128xf32>
    %111 = vector.shape_cast %108 : vector<256x128xf32> to vector<1x256x128xf32>
    tpu.vector_store %arg15[%c1_100, %c0_101, %c0_102], %111 {strides = array<i32>} : memref<4x256x128xf32, #tpu.memory_space<vmem>>, vector<1x256x128xf32>,
    %c6_103 = arith.constant 6 : index
    %c12_104 = arith.constant 12 : index
    %c0_105 = arith.constant 0 : index
    %112 = vector.load %arg14[%c6_103, %c12_104, %c0_105] : memref<52x58x4xbf16, #tpu.memory_space<vmem>>, vector<40x16x4xbf16>
    %113 = vector.extract_strided_slice %112 {offsets = [0, 0, 0], sizes = [16, 16, 4], strides = [1, 1, 1]} : vector<40x16x4xbf16> to vector<16x16x4xbf16>
    %114 = vector.shape_cast %113 : vector<16x16x4xbf16> to vector<256x4xbf16>
    %c0_106 = arith.constant 0 : index
    %c0_107 = arith.constant 0 : index
    %c0_108 = arith.constant 0 : index
    %115 = vector.load %arg6[%c0_106, %c0_107, %c0_108] : memref<9x4x128xbf16, #tpu.memory_space<vmem>>, vector<1x4x128xbf16>
    %116 = vector.shape_cast %115 : vector<1x4x128xbf16> to vector<4x128xbf16>
    %cst_109 = arith.constant dense<0.000000e+00> : vector<256x128xf32>
    %117 = tpu.matmul %114, %116, %cst_109 {dimension_numbers = #tpu.dot_dimension_numbers<[1], [0], [0], [1], [0, 0, 1, 1], [], []>} : vector<256x4xbf16>, vector<4x128xbf16>, vector<256x128xf32> -> vector<256x128xf32>
    %c2_110 = arith.constant 2 : index
    %c0_111 = arith.constant 0 : index
    %c0_112 = arith.constant 0 : index
    %118 = vector.load %arg15[%c2_110, %c0_111, %c0_112] : memref<4x256x128xf32, #tpu.memory_space<vmem>>, vector<1x256x128xf32>
    %119 = vector.shape_cast %118 : vector<1x256x128xf32> to vector<256x128xf32>
    %120 = vector.shape_cast %117 : vector<256x128xf32> to vector<1x256x128xf32>
    tpu.vector_store %arg15[%c2_110, %c0_111, %c0_112], %120 {strides = array<i32>} : memref<4x256x128xf32, #tpu.memory_space<vmem>>, vector<1x256x128xf32>,
    %121 = vector.extract_strided_slice %112 {offsets = [12, 0, 0], sizes = [16, 16, 4], strides = [1, 1, 1]} : vector<40x16x4xbf16> to vector<16x16x4xbf16>
    %122 = vector.shape_cast %121 : vector<16x16x4xbf16> to vector<256x4xbf16>
    %c3_113 = arith.constant 3 : index
    %c0_114 = arith.constant 0 : index
    %c0_115 = arith.constant 0 : index
    %123 = vector.load %arg6[%c3_113, %c0_114, %c0_115] : memref<9x4x128xbf16, #tpu.memory_space<vmem>>, vector<1x4x128xbf16>
    %124 = vector.shape_cast %123 : vector<1x4x128xbf16> to vector<4x128xbf16>
    %cst_116 = arith.constant dense<0.000000e+00> : vector<256x128xf32>
    %125 = tpu.matmul %122, %124, %cst_116 {dimension_numbers = #tpu.dot_dimension_numbers<[1], [0], [0], [1], [0, 0, 1, 1], [], []>} : vector<256x4xbf16>, vector<4x128xbf16>, vector<256x128xf32> -> vector<256x128xf32>
    %c2_117 = arith.constant 2 : index
    %c0_118 = arith.constant 0 : index
    %c0_119 = arith.constant 0 : index
    %126 = vector.load %arg15[%c2_117, %c0_118, %c0_119] : memref<4x256x128xf32, #tpu.memory_space<vmem>>, vector<1x256x128xf32>
    %127 = vector.shape_cast %126 : vector<1x256x128xf32> to vector<256x128xf32>
    %128 = arith.addf %127, %125 : vector<256x128xf32>
    %c2_120 = arith.constant 2 : index
    %c0_121 = arith.constant 0 : index
    %c0_122 = arith.constant 0 : index
    %129 = vector.load %arg15[%c2_120, %c0_121, %c0_122] : memref<4x256x128xf32, #tpu.memory_space<vmem>>, vector<1x256x128xf32>
    %130 = vector.shape_cast %129 : vector<1x256x128xf32> to vector<256x128xf32>
    %131 = vector.shape_cast %128 : vector<256x128xf32> to vector<1x256x128xf32>
    tpu.vector_store %arg15[%c2_120, %c0_121, %c0_122], %131 {strides = array<i32>} : memref<4x256x128xf32, #tpu.memory_space<vmem>>, vector<1x256x128xf32>,
    %132 = vector.extract_strided_slice %112 {offsets = [24, 0, 0], sizes = [16, 16, 4], strides = [1, 1, 1]} : vector<40x16x4xbf16> to vector<16x16x4xbf16>
    %133 = vector.shape_cast %132 : vector<16x16x4xbf16> to vector<256x4xbf16>
    %c6_123 = arith.constant 6 : index
    %c0_124 = arith.constant 0 : index
    %c0_125 = arith.constant 0 : index
    %134 = vector.load %arg6[%c6_123, %c0_124, %c0_125] : memref<9x4x128xbf16, #tpu.memory_space<vmem>>, vector<1x4x128xbf16>
    %135 = vector.shape_cast %134 : vector<1x4x128xbf16> to vector<4x128xbf16>
    %cst_126 = arith.constant dense<0.000000e+00> : vector<256x128xf32>
    %136 = tpu.matmul %133, %135, %cst_126 {dimension_numbers = #tpu.dot_dimension_numbers<[1], [0], [0], [1], [0, 0, 1, 1], [], []>} : vector<256x4xbf16>, vector<4x128xbf16>, vector<256x128xf32> -> vector<256x128xf32>
    %c2_127 = arith.constant 2 : index
    %c0_128 = arith.constant 0 : index
    %c0_129 = arith.constant 0 : index
    %137 = vector.load %arg15[%c2_127, %c0_128, %c0_129] : memref<4x256x128xf32, #tpu.memory_space<vmem>>, vector<1x256x128xf32>
    %138 = vector.shape_cast %137 : vector<1x256x128xf32> to vector<256x128xf32>
    %139 = arith.addf %138, %136 : vector<256x128xf32>
    %c2_130 = arith.constant 2 : index
    %c0_131 = arith.constant 0 : index
    %c0_132 = arith.constant 0 : index
    %140 = vector.load %arg15[%c2_130, %c0_131, %c0_132] : memref<4x256x128xf32, #tpu.memory_space<vmem>>, vector<1x256x128xf32>
    %141 = vector.shape_cast %140 : vector<1x256x128xf32> to vector<256x128xf32>
    %142 = vector.shape_cast %139 : vector<256x128xf32> to vector<1x256x128xf32>
    tpu.vector_store %arg15[%c2_130, %c0_131, %c0_132], %142 {strides = array<i32>} : memref<4x256x128xf32, #tpu.memory_space<vmem>>, vector<1x256x128xf32>,
    %c6_133 = arith.constant 6 : index
    %c24_134 = arith.constant 24 : index
    %c0_135 = arith.constant 0 : index
    %143 = vector.load %arg14[%c6_133, %c24_134, %c0_135] : memref<52x58x4xbf16, #tpu.memory_space<vmem>>, vector<40x16x4xbf16>
    %144 = vector.extract_strided_slice %143 {offsets = [0, 0, 0], sizes = [16, 16, 4], strides = [1, 1, 1]} : vector<40x16x4xbf16> to vector<16x16x4xbf16>
    %145 = vector.shape_cast %144 : vector<16x16x4xbf16> to vector<256x4xbf16>
    %c1_136 = arith.constant 1 : index
    %c0_137 = arith.constant 0 : index
    %c0_138 = arith.constant 0 : index
    %146 = vector.load %arg6[%c1_136, %c0_137, %c0_138] : memref<9x4x128xbf16, #tpu.memory_space<vmem>>, vector<1x4x128xbf16>
    %147 = vector.shape_cast %146 : vector<1x4x128xbf16> to vector<4x128xbf16>
    %cst_139 = arith.constant dense<0.000000e+00> : vector<256x128xf32>
    %148 = tpu.matmul %145, %147, %cst_139 {dimension_numbers = #tpu.dot_dimension_numbers<[1], [0], [0], [1], [0, 0, 1, 1], [], []>} : vector<256x4xbf16>, vector<4x128xbf16>, vector<256x128xf32> -> vector<256x128xf32>
    %c2_140 = arith.constant 2 : index
    %c0_141 = arith.constant 0 : index
    %c0_142 = arith.constant 0 : index
    %149 = vector.load %arg15[%c2_140, %c0_141, %c0_142] : memref<4x256x128xf32, #tpu.memory_space<vmem>>, vector<1x256x128xf32>
    %150 = vector.shape_cast %149 : vector<1x256x128xf32> to vector<256x128xf32>
    %151 = arith.addf %150, %148 : vector<256x128xf32>
    %c2_143 = arith.constant 2 : index
    %c0_144 = arith.constant 0 : index
    %c0_145 = arith.constant 0 : index
    %152 = vector.load %arg15[%c2_143, %c0_144, %c0_145] : memref<4x256x128xf32, #tpu.memory_space<vmem>>, vector<1x256x128xf32>
    %153 = vector.shape_cast %152 : vector<1x256x128xf32> to vector<256x128xf32>
    %154 = vector.shape_cast %151 : vector<256x128xf32> to vector<1x256x128xf32>
    tpu.vector_store %arg15[%c2_143, %c0_144, %c0_145], %154 {strides = array<i32>} : memref<4x256x128xf32, #tpu.memory_space<vmem>>, vector<1x256x128xf32>,
    %155 = vector.extract_strided_slice %143 {offsets = [12, 0, 0], sizes = [16, 16, 4], strides = [1, 1, 1]} : vector<40x16x4xbf16> to vector<16x16x4xbf16>
    %156 = vector.shape_cast %155 : vector<16x16x4xbf16> to vector<256x4xbf16>
    %c4_146 = arith.constant 4 : index
    %c0_147 = arith.constant 0 : index
    %c0_148 = arith.constant 0 : index
    %157 = vector.load %arg6[%c4_146, %c0_147, %c0_148] : memref<9x4x128xbf16, #tpu.memory_space<vmem>>, vector<1x4x128xbf16>
    %158 = vector.shape_cast %157 : vector<1x4x128xbf16> to vector<4x128xbf16>
    %cst_149 = arith.constant dense<0.000000e+00> : vector<256x128xf32>
    %159 = tpu.matmul %156, %158, %cst_149 {dimension_numbers = #tpu.dot_dimension_numbers<[1], [0], [0], [1], [0, 0, 1, 1], [], []>} : vector<256x4xbf16>, vector<4x128xbf16>, vector<256x128xf32> -> vector<256x128xf32>
    %c2_150 = arith.constant 2 : index
    %c0_151 = arith.constant 0 : index
    %c0_152 = arith.constant 0 : index
    %160 = vector.load %arg15[%c2_150, %c0_151, %c0_152] : memref<4x256x128xf32, #tpu.memory_space<vmem>>, vector<1x256x128xf32>
    %161 = vector.shape_cast %160 : vector<1x256x128xf32> to vector<256x128xf32>
    %162 = arith.addf %161, %159 : vector<256x128xf32>
    %c2_153 = arith.constant 2 : index
    %c0_154 = arith.constant 0 : index
    %c0_155 = arith.constant 0 : index
    %163 = vector.load %arg15[%c2_153, %c0_154, %c0_155] : memref<4x256x128xf32, #tpu.memory_space<vmem>>, vector<1x256x128xf32>
    %164 = vector.shape_cast %163 : vector<1x256x128xf32> to vector<256x128xf32>
    %165 = vector.shape_cast %162 : vector<256x128xf32> to vector<1x256x128xf32>
    tpu.vector_store %arg15[%c2_153, %c0_154, %c0_155], %165 {strides = array<i32>} : memref<4x256x128xf32, #tpu.memory_space<vmem>>, vector<1x256x128xf32>,
    %166 = vector.extract_strided_slice %143 {offsets = [24, 0, 0], sizes = [16, 16, 4], strides = [1, 1, 1]} : vector<40x16x4xbf16> to vector<16x16x4xbf16>
    %167 = vector.shape_cast %166 : vector<16x16x4xbf16> to vector<256x4xbf16>
    %c7_156 = arith.constant 7 : index
    %c0_157 = arith.constant 0 : index
    %c0_158 = arith.constant 0 : index
    %168 = vector.load %arg6[%c7_156, %c0_157, %c0_158] : memref<9x4x128xbf16, #tpu.memory_space<vmem>>, vector<1x4x128xbf16>
    %169 = vector.shape_cast %168 : vector<1x4x128xbf16> to vector<4x128xbf16>
    %cst_159 = arith.constant dense<0.000000e+00> : vector<256x128xf32>
    %170 = tpu.matmul %167, %169, %cst_159 {dimension_numbers = #tpu.dot_dimension_numbers<[1], [0], [0], [1], [0, 0, 1, 1], [], []>} : vector<256x4xbf16>, vector<4x128xbf16>, vector<256x128xf32> -> vector<256x128xf32>
    %c2_160 = arith.constant 2 : index
    %c0_161 = arith.constant 0 : index
    %c0_162 = arith.constant 0 : index
    %171 = vector.load %arg15[%c2_160, %c0_161, %c0_162] : memref<4x256x128xf32, #tpu.memory_space<vmem>>, vector<1x256x128xf32>
    %172 = vector.shape_cast %171 : vector<1x256x128xf32> to vector<256x128xf32>
    %173 = arith.addf %172, %170 : vector<256x128xf32>
    %c2_163 = arith.constant 2 : index
    %c0_164 = arith.constant 0 : index
    %c0_165 = arith.constant 0 : index
    %174 = vector.load %arg15[%c2_163, %c0_164, %c0_165] : memref<4x256x128xf32, #tpu.memory_space<vmem>>, vector<1x256x128xf32>
    %175 = vector.shape_cast %174 : vector<1x256x128xf32> to vector<256x128xf32>
    %176 = vector.shape_cast %173 : vector<256x128xf32> to vector<1x256x128xf32>
    tpu.vector_store %arg15[%c2_163, %c0_164, %c0_165], %176 {strides = array<i32>} : memref<4x256x128xf32, #tpu.memory_space<vmem>>, vector<1x256x128xf32>,
    %c6_166 = arith.constant 6 : index
    %c36 = arith.constant 36 : index
    %c0_167 = arith.constant 0 : index
    %177 = vector.load %arg14[%c6_166, %c36, %c0_167] : memref<52x58x4xbf16, #tpu.memory_space<vmem>>, vector<40x16x4xbf16>
    %178 = vector.extract_strided_slice %177 {offsets = [0, 0, 0], sizes = [16, 16, 4], strides = [1, 1, 1]} : vector<40x16x4xbf16> to vector<16x16x4xbf16>
    %179 = vector.shape_cast %178 : vector<16x16x4xbf16> to vector<256x4xbf16>
    %c2_168 = arith.constant 2 : index
    %c0_169 = arith.constant 0 : index
    %c0_170 = arith.constant 0 : index
    %180 = vector.load %arg6[%c2_168, %c0_169, %c0_170] : memref<9x4x128xbf16, #tpu.memory_space<vmem>>, vector<1x4x128xbf16>
    %181 = vector.shape_cast %180 : vector<1x4x128xbf16> to vector<4x128xbf16>
    %cst_171 = arith.constant dense<0.000000e+00> : vector<256x128xf32>
    %182 = tpu.matmul %179, %181, %cst_171 {dimension_numbers = #tpu.dot_dimension_numbers<[1], [0], [0], [1], [0, 0, 1, 1], [], []>} : vector<256x4xbf16>, vector<4x128xbf16>, vector<256x128xf32> -> vector<256x128xf32>
    %c2_172 = arith.constant 2 : index
    %c0_173 = arith.constant 0 : index
    %c0_174 = arith.constant 0 : index
    %183 = vector.load %arg15[%c2_172, %c0_173, %c0_174] : memref<4x256x128xf32, #tpu.memory_space<vmem>>, vector<1x256x128xf32>
    %184 = vector.shape_cast %183 : vector<1x256x128xf32> to vector<256x128xf32>
    %185 = arith.addf %184, %182 : vector<256x128xf32>
    %c2_175 = arith.constant 2 : index
    %c0_176 = arith.constant 0 : index
    %c0_177 = arith.constant 0 : index
    %186 = vector.load %arg15[%c2_175, %c0_176, %c0_177] : memref<4x256x128xf32, #tpu.memory_space<vmem>>, vector<1x256x128xf32>
    %187 = vector.shape_cast %186 : vector<1x256x128xf32> to vector<256x128xf32>
    %188 = vector.shape_cast %185 : vector<256x128xf32> to vector<1x256x128xf32>
    tpu.vector_store %arg15[%c2_175, %c0_176, %c0_177], %188 {strides = array<i32>} : memref<4x256x128xf32, #tpu.memory_space<vmem>>, vector<1x256x128xf32>,
    %189 = vector.extract_strided_slice %177 {offsets = [12, 0, 0], sizes = [16, 16, 4], strides = [1, 1, 1]} : vector<40x16x4xbf16> to vector<16x16x4xbf16>
    %190 = vector.shape_cast %189 : vector<16x16x4xbf16> to vector<256x4xbf16>
    %c5_178 = arith.constant 5 : index
    %c0_179 = arith.constant 0 : index
    %c0_180 = arith.constant 0 : index
    %191 = vector.load %arg6[%c5_178, %c0_179, %c0_180] : memref<9x4x128xbf16, #tpu.memory_space<vmem>>, vector<1x4x128xbf16>
    %192 = vector.shape_cast %191 : vector<1x4x128xbf16> to vector<4x128xbf16>
    %cst_181 = arith.constant dense<0.000000e+00> : vector<256x128xf32>
    %193 = tpu.matmul %190, %192, %cst_181 {dimension_numbers = #tpu.dot_dimension_numbers<[1], [0], [0], [1], [0, 0, 1, 1], [], []>} : vector<256x4xbf16>, vector<4x128xbf16>, vector<256x128xf32> -> vector<256x128xf32>
    %c2_182 = arith.constant 2 : index
    %c0_183 = arith.constant 0 : index
    %c0_184 = arith.constant 0 : index
    %194 = vector.load %arg15[%c2_182, %c0_183, %c0_184] : memref<4x256x128xf32, #tpu.memory_space<vmem>>, vector<1x256x128xf32>
    %195 = vector.shape_cast %194 : vector<1x256x128xf32> to vector<256x128xf32>
    %196 = arith.addf %195, %193 : vector<256x128xf32>
    %c2_185 = arith.constant 2 : index
    %c0_186 = arith.constant 0 : index
    %c0_187 = arith.constant 0 : index
    %197 = vector.load %arg15[%c2_185, %c0_186, %c0_187] : memref<4x256x128xf32, #tpu.memory_space<vmem>>, vector<1x256x128xf32>
    %198 = vector.shape_cast %197 : vector<1x256x128xf32> to vector<256x128xf32>
    %199 = vector.shape_cast %196 : vector<256x128xf32> to vector<1x256x128xf32>
    tpu.vector_store %arg15[%c2_185, %c0_186, %c0_187], %199 {strides = array<i32>} : memref<4x256x128xf32, #tpu.memory_space<vmem>>, vector<1x256x128xf32>,
    %200 = vector.extract_strided_slice %177 {offsets = [24, 0, 0], sizes = [16, 16, 4], strides = [1, 1, 1]} : vector<40x16x4xbf16> to vector<16x16x4xbf16>
    %201 = vector.shape_cast %200 : vector<16x16x4xbf16> to vector<256x4xbf16>
    %c8_188 = arith.constant 8 : index
    %c0_189 = arith.constant 0 : index
    %c0_190 = arith.constant 0 : index
    %202 = vector.load %arg6[%c8_188, %c0_189, %c0_190] : memref<9x4x128xbf16, #tpu.memory_space<vmem>>, vector<1x4x128xbf16>
    %203 = vector.shape_cast %202 : vector<1x4x128xbf16> to vector<4x128xbf16>
    %cst_191 = arith.constant dense<0.000000e+00> : vector<256x128xf32>
    %204 = tpu.matmul %201, %203, %cst_191 {dimension_numbers = #tpu.dot_dimension_numbers<[1], [0], [0], [1], [0, 0, 1, 1], [], []>} : vector<256x4xbf16>, vector<4x128xbf16>, vector<256x128xf32> -> vector<256x128xf32>
    %c2_192 = arith.constant 2 : index
    %c0_193 = arith.constant 0 : index
    %c0_194 = arith.constant 0 : index
    %205 = vector.load %arg15[%c2_192, %c0_193, %c0_194] : memref<4x256x128xf32, #tpu.memory_space<vmem>>, vector<1x256x128xf32>
    %206 = vector.shape_cast %205 : vector<1x256x128xf32> to vector<256x128xf32>
    %207 = arith.addf %206, %204 : vector<256x128xf32>
    %c2_195 = arith.constant 2 : index
    %c0_196 = arith.constant 0 : index
    %c0_197 = arith.constant 0 : index
    %208 = vector.load %arg15[%c2_195, %c0_196, %c0_197] : memref<4x256x128xf32, #tpu.memory_space<vmem>>, vector<1x256x128xf32>
    %209 = vector.shape_cast %208 : vector<1x256x128xf32> to vector<256x128xf32>
    %210 = vector.shape_cast %207 : vector<256x128xf32> to vector<1x256x128xf32>
    tpu.vector_store %arg15[%c2_195, %c0_196, %c0_197], %210 {strides = array<i32>} : memref<4x256x128xf32, #tpu.memory_space<vmem>>, vector<1x256x128xf32>,
    %c0_198 = arith.constant 0 : index
    %c6_199 = arith.constant 6 : index
    %c0_200 = arith.constant 0 : index
    %211 = vector.load %arg14[%c0_198, %c6_199, %c0_200] : memref<52x58x4xbf16, #tpu.memory_space<vmem>>, vector<52x16x4xbf16>
    %212 = vector.extract_strided_slice %211 {offsets = [0, 0, 0], sizes = [16, 16, 4], strides = [1, 1, 1]} : vector<52x16x4xbf16> to vector<16x16x4xbf16>
    %213 = vector.shape_cast %212 : vector<16x16x4xbf16> to vector<256x4xbf16>
    %c0_201 = arith.constant 0 : index
    %c0_202 = arith.constant 0 : index
    %c0_203 = arith.constant 0 : index
    %214 = vector.load %arg7[%c0_201, %c0_202, %c0_203] : memref<9x4x128xbf16, #tpu.memory_space<vmem>>, vector<1x4x128xbf16>
    %215 = vector.shape_cast %214 : vector<1x4x128xbf16> to vector<4x128xbf16>
    %cst_204 = arith.constant dense<0.000000e+00> : vector<256x128xf32>
    %216 = tpu.matmul %213, %215, %cst_204 {dimension_numbers = #tpu.dot_dimension_numbers<[1], [0], [0], [1], [0, 0, 1, 1], [], []>} : vector<256x4xbf16>, vector<4x128xbf16>, vector<256x128xf32> -> vector<256x128xf32>
    %c3_205 = arith.constant 3 : index
    %c0_206 = arith.constant 0 : index
    %c0_207 = arith.constant 0 : index
    %217 = vector.load %arg15[%c3_205, %c0_206, %c0_207] : memref<4x256x128xf32, #tpu.memory_space<vmem>>, vector<1x256x128xf32>
    %218 = vector.shape_cast %217 : vector<1x256x128xf32> to vector<256x128xf32>
    %219 = vector.shape_cast %216 : vector<256x128xf32> to vector<1x256x128xf32>
    tpu.vector_store %arg15[%c3_205, %c0_206, %c0_207], %219 {strides = array<i32>} : memref<4x256x128xf32, #tpu.memory_space<vmem>>, vector<1x256x128xf32>,
    %220 = vector.extract_strided_slice %211 {offsets = [18, 0, 0], sizes = [16, 16, 4], strides = [1, 1, 1]} : vector<52x16x4xbf16> to vector<16x16x4xbf16>
    %221 = vector.shape_cast %220 : vector<16x16x4xbf16> to vector<256x4xbf16>
    %c3_208 = arith.constant 3 : index
    %c0_209 = arith.constant 0 : index
    %c0_210 = arith.constant 0 : index
    %222 = vector.load %arg7[%c3_208, %c0_209, %c0_210] : memref<9x4x128xbf16, #tpu.memory_space<vmem>>, vector<1x4x128xbf16>
    %223 = vector.shape_cast %222 : vector<1x4x128xbf16> to vector<4x128xbf16>
    %cst_211 = arith.constant dense<0.000000e+00> : vector<256x128xf32>
    %224 = tpu.matmul %221, %223, %cst_211 {dimension_numbers = #tpu.dot_dimension_numbers<[1], [0], [0], [1], [0, 0, 1, 1], [], []>} : vector<256x4xbf16>, vector<4x128xbf16>, vector<256x128xf32> -> vector<256x128xf32>
    %c3_212 = arith.constant 3 : index
    %c0_213 = arith.constant 0 : index
    %c0_214 = arith.constant 0 : index
    %225 = vector.load %arg15[%c3_212, %c0_213, %c0_214] : memref<4x256x128xf32, #tpu.memory_space<vmem>>, vector<1x256x128xf32>
    %226 = vector.shape_cast %225 : vector<1x256x128xf32> to vector<256x128xf32>
    %227 = arith.addf %226, %224 : vector<256x128xf32>
    %c3_215 = arith.constant 3 : index
    %c0_216 = arith.constant 0 : index
    %c0_217 = arith.constant 0 : index
    %228 = vector.load %arg15[%c3_215, %c0_216, %c0_217] : memref<4x256x128xf32, #tpu.memory_space<vmem>>, vector<1x256x128xf32>
    %229 = vector.shape_cast %228 : vector<1x256x128xf32> to vector<256x128xf32>
    %230 = vector.shape_cast %227 : vector<256x128xf32> to vector<1x256x128xf32>
    tpu.vector_store %arg15[%c3_215, %c0_216, %c0_217], %230 {strides = array<i32>} : memref<4x256x128xf32, #tpu.memory_space<vmem>>, vector<1x256x128xf32>,
    %231 = vector.extract_strided_slice %211 {offsets = [36, 0, 0], sizes = [16, 16, 4], strides = [1, 1, 1]} : vector<52x16x4xbf16> to vector<16x16x4xbf16>
    %232 = vector.shape_cast %231 : vector<16x16x4xbf16> to vector<256x4xbf16>
    %c6_218 = arith.constant 6 : index
    %c0_219 = arith.constant 0 : index
    %c0_220 = arith.constant 0 : index
    %233 = vector.load %arg7[%c6_218, %c0_219, %c0_220] : memref<9x4x128xbf16, #tpu.memory_space<vmem>>, vector<1x4x128xbf16>
    %234 = vector.shape_cast %233 : vector<1x4x128xbf16> to vector<4x128xbf16>
    %cst_221 = arith.constant dense<0.000000e+00> : vector<256x128xf32>
    %235 = tpu.matmul %232, %234, %cst_221 {dimension_numbers = #tpu.dot_dimension_numbers<[1], [0], [0], [1], [0, 0, 1, 1], [], []>} : vector<256x4xbf16>, vector<4x128xbf16>, vector<256x128xf32> -> vector<256x128xf32>
    %c3_222 = arith.constant 3 : index
    %c0_223 = arith.constant 0 : index
    %c0_224 = arith.constant 0 : index
    %236 = vector.load %arg15[%c3_222, %c0_223, %c0_224] : memref<4x256x128xf32, #tpu.memory_space<vmem>>, vector<1x256x128xf32>
    %237 = vector.shape_cast %236 : vector<1x256x128xf32> to vector<256x128xf32>
    %238 = arith.addf %237, %235 : vector<256x128xf32>
    %c3_225 = arith.constant 3 : index
    %c0_226 = arith.constant 0 : index
    %c0_227 = arith.constant 0 : index
    %239 = vector.load %arg15[%c3_225, %c0_226, %c0_227] : memref<4x256x128xf32, #tpu.memory_space<vmem>>, vector<1x256x128xf32>
    %240 = vector.shape_cast %239 : vector<1x256x128xf32> to vector<256x128xf32>
    %241 = vector.shape_cast %238 : vector<256x128xf32> to vector<1x256x128xf32>
    tpu.vector_store %arg15[%c3_225, %c0_226, %c0_227], %241 {strides = array<i32>} : memref<4x256x128xf32, #tpu.memory_space<vmem>>, vector<1x256x128xf32>,
    %c0_228 = arith.constant 0 : index
    %c24_229 = arith.constant 24 : index
    %c0_230 = arith.constant 0 : index
    %242 = vector.load %arg14[%c0_228, %c24_229, %c0_230] : memref<52x58x4xbf16, #tpu.memory_space<vmem>>, vector<52x16x4xbf16>
    %243 = vector.extract_strided_slice %242 {offsets = [0, 0, 0], sizes = [16, 16, 4], strides = [1, 1, 1]} : vector<52x16x4xbf16> to vector<16x16x4xbf16>
    %244 = vector.shape_cast %243 : vector<16x16x4xbf16> to vector<256x4xbf16>
    %c1_231 = arith.constant 1 : index
    %c0_232 = arith.constant 0 : index
    %c0_233 = arith.constant 0 : index
    %245 = vector.load %arg7[%c1_231, %c0_232, %c0_233] : memref<9x4x128xbf16, #tpu.memory_space<vmem>>, vector<1x4x128xbf16>
    %246 = vector.shape_cast %245 : vector<1x4x128xbf16> to vector<4x128xbf16>
    %cst_234 = arith.constant dense<0.000000e+00> : vector<256x128xf32>
    %247 = tpu.matmul %244, %246, %cst_234 {dimension_numbers = #tpu.dot_dimension_numbers<[1], [0], [0], [1], [0, 0, 1, 1], [], []>} : vector<256x4xbf16>, vector<4x128xbf16>, vector<256x128xf32> -> vector<256x128xf32>
    %c3_235 = arith.constant 3 : index
    %c0_236 = arith.constant 0 : index
    %c0_237 = arith.constant 0 : index
    %248 = vector.load %arg15[%c3_235, %c0_236, %c0_237] : memref<4x256x128xf32, #tpu.memory_space<vmem>>, vector<1x256x128xf32>
    %249 = vector.shape_cast %248 : vector<1x256x128xf32> to vector<256x128xf32>
    %250 = arith.addf %249, %247 : vector<256x128xf32>
    %c3_238 = arith.constant 3 : index
    %c0_239 = arith.constant 0 : index
    %c0_240 = arith.constant 0 : index
    %251 = vector.load %arg15[%c3_238, %c0_239, %c0_240] : memref<4x256x128xf32, #tpu.memory_space<vmem>>, vector<1x256x128xf32>
    %252 = vector.shape_cast %251 : vector<1x256x128xf32> to vector<256x128xf32>
    %253 = vector.shape_cast %250 : vector<256x128xf32> to vector<1x256x128xf32>
    tpu.vector_store %arg15[%c3_238, %c0_239, %c0_240], %253 {strides = array<i32>} : memref<4x256x128xf32, #tpu.memory_space<vmem>>, vector<1x256x128xf32>,
    %254 = vector.extract_strided_slice %242 {offsets = [18, 0, 0], sizes = [16, 16, 4], strides = [1, 1, 1]} : vector<52x16x4xbf16> to vector<16x16x4xbf16>
    %255 = vector.shape_cast %254 : vector<16x16x4xbf16> to vector<256x4xbf16>
    %c4_241 = arith.constant 4 : index
    %c0_242 = arith.constant 0 : index
    %c0_243 = arith.constant 0 : index
    %256 = vector.load %arg7[%c4_241, %c0_242, %c0_243] : memref<9x4x128xbf16, #tpu.memory_space<vmem>>, vector<1x4x128xbf16>
    %257 = vector.shape_cast %256 : vector<1x4x128xbf16> to vector<4x128xbf16>
    %cst_244 = arith.constant dense<0.000000e+00> : vector<256x128xf32>
    %258 = tpu.matmul %255, %257, %cst_244 {dimension_numbers = #tpu.dot_dimension_numbers<[1], [0], [0], [1], [0, 0, 1, 1], [], []>} : vector<256x4xbf16>, vector<4x128xbf16>, vector<256x128xf32> -> vector<256x128xf32>
    %c3_245 = arith.constant 3 : index
    %c0_246 = arith.constant 0 : index
    %c0_247 = arith.constant 0 : index
    %259 = vector.load %arg15[%c3_245, %c0_246, %c0_247] : memref<4x256x128xf32, #tpu.memory_space<vmem>>, vector<1x256x128xf32>
    %260 = vector.shape_cast %259 : vector<1x256x128xf32> to vector<256x128xf32>
    %261 = arith.addf %260, %258 : vector<256x128xf32>
    %c3_248 = arith.constant 3 : index
    %c0_249 = arith.constant 0 : index
    %c0_250 = arith.constant 0 : index
    %262 = vector.load %arg15[%c3_248, %c0_249, %c0_250] : memref<4x256x128xf32, #tpu.memory_space<vmem>>, vector<1x256x128xf32>
    %263 = vector.shape_cast %262 : vector<1x256x128xf32> to vector<256x128xf32>
    %264 = vector.shape_cast %261 : vector<256x128xf32> to vector<1x256x128xf32>
    tpu.vector_store %arg15[%c3_248, %c0_249, %c0_250], %264 {strides = array<i32>} : memref<4x256x128xf32, #tpu.memory_space<vmem>>, vector<1x256x128xf32>,
    %265 = vector.extract_strided_slice %242 {offsets = [36, 0, 0], sizes = [16, 16, 4], strides = [1, 1, 1]} : vector<52x16x4xbf16> to vector<16x16x4xbf16>
    %266 = vector.shape_cast %265 : vector<16x16x4xbf16> to vector<256x4xbf16>
    %c7_251 = arith.constant 7 : index
    %c0_252 = arith.constant 0 : index
    %c0_253 = arith.constant 0 : index
    %267 = vector.load %arg7[%c7_251, %c0_252, %c0_253] : memref<9x4x128xbf16, #tpu.memory_space<vmem>>, vector<1x4x128xbf16>
    %268 = vector.shape_cast %267 : vector<1x4x128xbf16> to vector<4x128xbf16>
    %cst_254 = arith.constant dense<0.000000e+00> : vector<256x128xf32>
    %269 = tpu.matmul %266, %268, %cst_254 {dimension_numbers = #tpu.dot_dimension_numbers<[1], [0], [0], [1], [0, 0, 1, 1], [], []>} : vector<256x4xbf16>, vector<4x128xbf16>, vector<256x128xf32> -> vector<256x128xf32>
    %c3_255 = arith.constant 3 : index
    %c0_256 = arith.constant 0 : index
    %c0_257 = arith.constant 0 : index
    %270 = vector.load %arg15[%c3_255, %c0_256, %c0_257] : memref<4x256x128xf32, #tpu.memory_space<vmem>>, vector<1x256x128xf32>
    %271 = vector.shape_cast %270 : vector<1x256x128xf32> to vector<256x128xf32>
    %272 = arith.addf %271, %269 : vector<256x128xf32>
    %c3_258 = arith.constant 3 : index
    %c0_259 = arith.constant 0 : index
    %c0_260 = arith.constant 0 : index
    %273 = vector.load %arg15[%c3_258, %c0_259, %c0_260] : memref<4x256x128xf32, #tpu.memory_space<vmem>>, vector<1x256x128xf32>
    %274 = vector.shape_cast %273 : vector<1x256x128xf32> to vector<256x128xf32>
    %275 = vector.shape_cast %272 : vector<256x128xf32> to vector<1x256x128xf32>
    tpu.vector_store %arg15[%c3_258, %c0_259, %c0_260], %275 {strides = array<i32>} : memref<4x256x128xf32, #tpu.memory_space<vmem>>, vector<1x256x128xf32>,
    %c0_261 = arith.constant 0 : index
    %c42 = arith.constant 42 : index
    %c0_262 = arith.constant 0 : index
    %276 = vector.load %arg14[%c0_261, %c42, %c0_262] : memref<52x58x4xbf16, #tpu.memory_space<vmem>>, vector<52x16x4xbf16>
    %277 = vector.extract_strided_slice %276 {offsets = [0, 0, 0], sizes = [16, 16, 4], strides = [1, 1, 1]} : vector<52x16x4xbf16> to vector<16x16x4xbf16>
    %278 = vector.shape_cast %277 : vector<16x16x4xbf16> to vector<256x4xbf16>
    %c2_263 = arith.constant 2 : index
    %c0_264 = arith.constant 0 : index
    %c0_265 = arith.constant 0 : index
    %279 = vector.load %arg7[%c2_263, %c0_264, %c0_265] : memref<9x4x128xbf16, #tpu.memory_space<vmem>>, vector<1x4x128xbf16>
    %280 = vector.shape_cast %279 : vector<1x4x128xbf16> to vector<4x128xbf16>
    %cst_266 = arith.constant dense<0.000000e+00> : vector<256x128xf32>
    %281 = tpu.matmul %278, %280, %cst_266 {dimension_numbers = #tpu.dot_dimension_numbers<[1], [0], [0], [1], [0, 0, 1, 1], [], []>} : vector<256x4xbf16>, vector<4x128xbf16>, vector<256x128xf32> -> vector<256x128xf32>
    %c3_267 = arith.constant 3 : index
    %c0_268 = arith.constant 0 : index
    %c0_269 = arith.constant 0 : index
    %282 = vector.load %arg15[%c3_267, %c0_268, %c0_269] : memref<4x256x128xf32, #tpu.memory_space<vmem>>, vector<1x256x128xf32>
    %283 = vector.shape_cast %282 : vector<1x256x128xf32> to vector<256x128xf32>
    %284 = arith.addf %283, %281 : vector<256x128xf32>
    %c3_270 = arith.constant 3 : index
    %c0_271 = arith.constant 0 : index
    %c0_272 = arith.constant 0 : index
    %285 = vector.load %arg15[%c3_270, %c0_271, %c0_272] : memref<4x256x128xf32, #tpu.memory_space<vmem>>, vector<1x256x128xf32>
    %286 = vector.shape_cast %285 : vector<1x256x128xf32> to vector<256x128xf32>
    %287 = vector.shape_cast %284 : vector<256x128xf32> to vector<1x256x128xf32>
    tpu.vector_store %arg15[%c3_270, %c0_271, %c0_272], %287 {strides = array<i32>} : memref<4x256x128xf32, #tpu.memory_space<vmem>>, vector<1x256x128xf32>,
    %288 = vector.extract_strided_slice %276 {offsets = [18, 0, 0], sizes = [16, 16, 4], strides = [1, 1, 1]} : vector<52x16x4xbf16> to vector<16x16x4xbf16>
    %289 = vector.shape_cast %288 : vector<16x16x4xbf16> to vector<256x4xbf16>
    %c5_273 = arith.constant 5 : index
    %c0_274 = arith.constant 0 : index
    %c0_275 = arith.constant 0 : index
    %290 = vector.load %arg7[%c5_273, %c0_274, %c0_275] : memref<9x4x128xbf16, #tpu.memory_space<vmem>>, vector<1x4x128xbf16>
    %291 = vector.shape_cast %290 : vector<1x4x128xbf16> to vector<4x128xbf16>
    %cst_276 = arith.constant dense<0.000000e+00> : vector<256x128xf32>
    %292 = tpu.matmul %289, %291, %cst_276 {dimension_numbers = #tpu.dot_dimension_numbers<[1], [0], [0], [1], [0, 0, 1, 1], [], []>} : vector<256x4xbf16>, vector<4x128xbf16>, vector<256x128xf32> -> vector<256x128xf32>
    %c3_277 = arith.constant 3 : index
    %c0_278 = arith.constant 0 : index
    %c0_279 = arith.constant 0 : index
    %293 = vector.load %arg15[%c3_277, %c0_278, %c0_279] : memref<4x256x128xf32, #tpu.memory_space<vmem>>, vector<1x256x128xf32>
    %294 = vector.shape_cast %293 : vector<1x256x128xf32> to vector<256x128xf32>
    %295 = arith.addf %294, %292 : vector<256x128xf32>
    %c3_280 = arith.constant 3 : index
    %c0_281 = arith.constant 0 : index
    %c0_282 = arith.constant 0 : index
    %296 = vector.load %arg15[%c3_280, %c0_281, %c0_282] : memref<4x256x128xf32, #tpu.memory_space<vmem>>, vector<1x256x128xf32>
    %297 = vector.shape_cast %296 : vector<1x256x128xf32> to vector<256x128xf32>
    %298 = vector.shape_cast %295 : vector<256x128xf32> to vector<1x256x128xf32>
    tpu.vector_store %arg15[%c3_280, %c0_281, %c0_282], %298 {strides = array<i32>} : memref<4x256x128xf32, #tpu.memory_space<vmem>>, vector<1x256x128xf32>,
    %299 = vector.extract_strided_slice %276 {offsets = [36, 0, 0], sizes = [16, 16, 4], strides = [1, 1, 1]} : vector<52x16x4xbf16> to vector<16x16x4xbf16>
    %300 = vector.shape_cast %299 : vector<16x16x4xbf16> to vector<256x4xbf16>
    %c8_283 = arith.constant 8 : index
    %c0_284 = arith.constant 0 : index
    %c0_285 = arith.constant 0 : index
    %301 = vector.load %arg7[%c8_283, %c0_284, %c0_285] : memref<9x4x128xbf16, #tpu.memory_space<vmem>>, vector<1x4x128xbf16>
    %302 = vector.shape_cast %301 : vector<1x4x128xbf16> to vector<4x128xbf16>
    %cst_286 = arith.constant dense<0.000000e+00> : vector<256x128xf32>
    %303 = tpu.matmul %300, %302, %cst_286 {dimension_numbers = #tpu.dot_dimension_numbers<[1], [0], [0], [1], [0, 0, 1, 1], [], []>} : vector<256x4xbf16>, vector<4x128xbf16>, vector<256x128xf32> -> vector<256x128xf32>
    %c3_287 = arith.constant 3 : index
    %c0_288 = arith.constant 0 : index
    %c0_289 = arith.constant 0 : index
    %304 = vector.load %arg15[%c3_287, %c0_288, %c0_289] : memref<4x256x128xf32, #tpu.memory_space<vmem>>, vector<1x256x128xf32>
    %305 = vector.shape_cast %304 : vector<1x256x128xf32> to vector<256x128xf32>
    %306 = arith.addf %305, %303 : vector<256x128xf32>
    %c3_290 = arith.constant 3 : index
    %c0_291 = arith.constant 0 : index
    %c0_292 = arith.constant 0 : index
    %307 = vector.load %arg15[%c3_290, %c0_291, %c0_292] : memref<4x256x128xf32, #tpu.memory_space<vmem>>, vector<1x256x128xf32>
    %308 = vector.shape_cast %307 : vector<1x256x128xf32> to vector<256x128xf32>
    %309 = vector.shape_cast %306 : vector<256x128xf32> to vector<1x256x128xf32>
    tpu.vector_store %arg15[%c3_290, %c0_291, %c0_292], %309 {strides = array<i32>} : memref<4x256x128xf32, #tpu.memory_space<vmem>>, vector<1x256x128xf32>,
    %c0_293 = arith.constant 0 : index
    %c0_294 = arith.constant 0 : index
    %c0_295 = arith.constant 0 : index
    %310 = vector.load %arg15[%c0_293, %c0_294, %c0_295] : memref<4x256x128xf32, #tpu.memory_space<vmem>>, vector<1x256x128xf32>
    %311 = vector.shape_cast %310 : vector<1x256x128xf32> to vector<256x128xf32>
    %c0_296 = arith.constant 0 : index
    %c0_297 = arith.constant 0 : index
    %312 = vector.load %arg9[%c0_296, %c0_297] : memref<4x128xf32, #tpu.memory_space<vmem>>, vector<1x128xf32>
    %313 = vector.broadcast %312 : vector<1x128xf32> to vector<256x128xf32>
    %314 = arith.mulf %311, %313 : vector<256x128xf32>
    %c0_298 = arith.constant 0 : index
    %c0_299 = arith.constant 0 : index
    %315 = vector.load %arg10[%c0_298, %c0_299] : memref<4x128xf32, #tpu.memory_space<vmem>>, vector<1x128xf32>
    %316 = vector.broadcast %315 : vector<1x128xf32> to vector<256x128xf32>
    %317 = arith.addf %314, %316 : vector<256x128xf32>
    %cst_300 = arith.constant 0.000000e+00 : f32
    %318 = vector.broadcast %cst_300 : f32 to vector<256x128xf32>
    %319 = arith.maximumf %317, %318 : vector<256x128xf32>
    %320 = arith.truncf %319 : vector<256x128xf32> to vector<256x128xbf16>
    %c0_301 = arith.constant 0 : index
    %c0_302 = arith.constant 0 : index
    %c0_303 = arith.constant 0 : index
    %321 = vector.load %arg8[%c0_301, %c0_302, %c0_303] : memref<4x128x128xbf16, #tpu.memory_space<vmem>>, vector<1x128x128xbf16>
    %322 = vector.shape_cast %321 : vector<1x128x128xbf16> to vector<128x128xbf16>
    %cst_304 = arith.constant dense<0.000000e+00> : vector<256x128xf32>
    %323 = tpu.matmul %320, %322, %cst_304 {dimension_numbers = #tpu.dot_dimension_numbers<[1], [0], [0], [1], [0, 0, 1, 1], [], []>} : vector<256x128xbf16>, vector<128x128xbf16>, vector<256x128xf32> -> vector<256x128xf32>
    %c0_305 = arith.constant 0 : index
    %c0_306 = arith.constant 0 : index
    %c0_307 = arith.constant 0 : index
    %324 = vector.load %arg3[%c0_305, %c0_306, %c0_307] : memref<1x1x128xf32, #tpu.memory_space<vmem>>, vector<1x1x128xf32>
    %325 = vector.shape_cast %324 : vector<1x1x128xf32> to vector<1x128xf32>
    %326 = vector.broadcast %325 : vector<1x128xf32> to vector<256x128xf32>
    %327 = arith.addf %323, %326 : vector<256x128xf32>
    %c0_308 = arith.constant 0 : index
    %c0_309 = arith.constant 0 : index
    %c0_310 = arith.constant 0 : index
    %328 = vector.load %arg13[%c0_308, %c0_309, %c0_310] : memref<1x256x128xf32, #tpu.memory_space<vmem>>, vector<1x256x128xf32>
    %329 = vector.shape_cast %328 : vector<1x256x128xf32> to vector<256x128xf32>
    %330 = vector.shape_cast %327 : vector<256x128xf32> to vector<1x256x128xf32>
    tpu.vector_store %arg13[%c0_308, %c0_309, %c0_310], %330 {strides = array<i32>} : memref<1x256x128xf32, #tpu.memory_space<vmem>>, vector<1x256x128xf32>,
    %c0_311 = arith.constant 0 : index
    %c0_312 = arith.constant 0 : index
    %c0_313 = arith.constant 0 : index
    %331 = vector.load %arg13[%c0_311, %c0_312, %c0_313] : memref<1x256x128xf32, #tpu.memory_space<vmem>>, vector<1x256x128xf32>
    %332 = vector.shape_cast %331 : vector<1x256x128xf32> to vector<256x128xf32>
    %c1_314 = arith.constant 1 : index
    %c0_315 = arith.constant 0 : index
    %c0_316 = arith.constant 0 : index
    %333 = vector.load %arg15[%c1_314, %c0_315, %c0_316] : memref<4x256x128xf32, #tpu.memory_space<vmem>>, vector<1x256x128xf32>
    %334 = vector.shape_cast %333 : vector<1x256x128xf32> to vector<256x128xf32>
    %c1_317 = arith.constant 1 : index
    %c0_318 = arith.constant 0 : index
    %335 = vector.load %arg9[%c1_317, %c0_318] : memref<4x128xf32, #tpu.memory_space<vmem>>, vector<1x128xf32>
    %336 = vector.broadcast %335 : vector<1x128xf32> to vector<256x128xf32>
    %337 = arith.mulf %334, %336 : vector<256x128xf32>
    %c1_319 = arith.constant 1 : index
    %c0_320 = arith.constant 0 : index
    %338 = vector.load %arg10[%c1_319, %c0_320] : memref<4x128xf32, #tpu.memory_space<vmem>>, vector<1x128xf32>
    %339 = vector.broadcast %338 : vector<1x128xf32> to vector<256x128xf32>
    %340 = arith.addf %337, %339 : vector<256x128xf32>
    %cst_321 = arith.constant 0.000000e+00 : f32
    %341 = vector.broadcast %cst_321 : f32 to vector<256x128xf32>
    %342 = arith.maximumf %340, %341 : vector<256x128xf32>
    %343 = arith.truncf %342 : vector<256x128xf32> to vector<256x128xbf16>
    %c1_322 = arith.constant 1 : index
    %c0_323 = arith.constant 0 : index
    %c0_324 = arith.constant 0 : index
    %344 = vector.load %arg8[%c1_322, %c0_323, %c0_324] : memref<4x128x128xbf16, #tpu.memory_space<vmem>>, vector<1x128x128xbf16>
    %345 = vector.shape_cast %344 : vector<1x128x128xbf16> to vector<128x128xbf16>
    %cst_325 = arith.constant dense<0.000000e+00> : vector<256x128xf32>
    %346 = tpu.matmul %343, %345, %cst_325 {dimension_numbers = #tpu.dot_dimension_numbers<[1], [0], [0], [1], [0, 0, 1, 1], [], []>} : vector<256x128xbf16>, vector<128x128xbf16>, vector<256x128xf32> -> vector<256x128xf32>
    %347 = arith.addf %332, %346 : vector<256x128xf32>
    %c0_326 = arith.constant 0 : index
    %c0_327 = arith.constant 0 : index
    %c0_328 = arith.constant 0 : index
    %348 = vector.load %arg13[%c0_326, %c0_327, %c0_328] : memref<1x256x128xf32, #tpu.memory_space<vmem>>, vector<1x256x128xf32>
    %349 = vector.shape_cast %348 : vector<1x256x128xf32> to vector<256x128xf32>
    %350 = vector.shape_cast %347 : vector<256x128xf32> to vector<1x256x128xf32>
    tpu.vector_store %arg13[%c0_326, %c0_327, %c0_328], %350 {strides = array<i32>} : memref<1x256x128xf32, #tpu.memory_space<vmem>>, vector<1x256x128xf32>,
    %c0_329 = arith.constant 0 : index
    %c0_330 = arith.constant 0 : index
    %c0_331 = arith.constant 0 : index
    %351 = vector.load %arg13[%c0_329, %c0_330, %c0_331] : memref<1x256x128xf32, #tpu.memory_space<vmem>>, vector<1x256x128xf32>
    %352 = vector.shape_cast %351 : vector<1x256x128xf32> to vector<256x128xf32>
    %c2_332 = arith.constant 2 : index
    %c0_333 = arith.constant 0 : index
    %c0_334 = arith.constant 0 : index
    %353 = vector.load %arg15[%c2_332, %c0_333, %c0_334] : memref<4x256x128xf32, #tpu.memory_space<vmem>>, vector<1x256x128xf32>
    %354 = vector.shape_cast %353 : vector<1x256x128xf32> to vector<256x128xf32>
    %c2_335 = arith.constant 2 : index
    %c0_336 = arith.constant 0 : index
    %355 = vector.load %arg9[%c2_335, %c0_336] : memref<4x128xf32, #tpu.memory_space<vmem>>, vector<1x128xf32>
    %356 = vector.broadcast %355 : vector<1x128xf32> to vector<256x128xf32>
    %357 = arith.mulf %354, %356 : vector<256x128xf32>
    %c2_337 = arith.constant 2 : index
    %c0_338 = arith.constant 0 : index
    %358 = vector.load %arg10[%c2_337, %c0_338] : memref<4x128xf32, #tpu.memory_space<vmem>>, vector<1x128xf32>
    %359 = vector.broadcast %358 : vector<1x128xf32> to vector<256x128xf32>
    %360 = arith.addf %357, %359 : vector<256x128xf32>
    %cst_339 = arith.constant 0.000000e+00 : f32
    %361 = vector.broadcast %cst_339 : f32 to vector<256x128xf32>
    %362 = arith.maximumf %360, %361 : vector<256x128xf32>
    %363 = arith.truncf %362 : vector<256x128xf32> to vector<256x128xbf16>
    %c2_340 = arith.constant 2 : index
    %c0_341 = arith.constant 0 : index
    %c0_342 = arith.constant 0 : index
    %364 = vector.load %arg8[%c2_340, %c0_341, %c0_342] : memref<4x128x128xbf16, #tpu.memory_space<vmem>>, vector<1x128x128xbf16>
    %365 = vector.shape_cast %364 : vector<1x128x128xbf16> to vector<128x128xbf16>
    %cst_343 = arith.constant dense<0.000000e+00> : vector<256x128xf32>
    %366 = tpu.matmul %363, %365, %cst_343 {dimension_numbers = #tpu.dot_dimension_numbers<[1], [0], [0], [1], [0, 0, 1, 1], [], []>} : vector<256x128xbf16>, vector<128x128xbf16>, vector<256x128xf32> -> vector<256x128xf32>
    %367 = arith.addf %352, %366 : vector<256x128xf32>
    %c0_344 = arith.constant 0 : index
    %c0_345 = arith.constant 0 : index
    %c0_346 = arith.constant 0 : index
    %368 = vector.load %arg13[%c0_344, %c0_345, %c0_346] : memref<1x256x128xf32, #tpu.memory_space<vmem>>, vector<1x256x128xf32>
    %369 = vector.shape_cast %368 : vector<1x256x128xf32> to vector<256x128xf32>
    %370 = vector.shape_cast %367 : vector<256x128xf32> to vector<1x256x128xf32>
    tpu.vector_store %arg13[%c0_344, %c0_345, %c0_346], %370 {strides = array<i32>} : memref<1x256x128xf32, #tpu.memory_space<vmem>>, vector<1x256x128xf32>,
    %c0_347 = arith.constant 0 : index
    %c0_348 = arith.constant 0 : index
    %c0_349 = arith.constant 0 : index
    %371 = vector.load %arg13[%c0_347, %c0_348, %c0_349] : memref<1x256x128xf32, #tpu.memory_space<vmem>>, vector<1x256x128xf32>
    %372 = vector.shape_cast %371 : vector<1x256x128xf32> to vector<256x128xf32>
    %c3_350 = arith.constant 3 : index
    %c0_351 = arith.constant 0 : index
    %c0_352 = arith.constant 0 : index
    %373 = vector.load %arg15[%c3_350, %c0_351, %c0_352] : memref<4x256x128xf32, #tpu.memory_space<vmem>>, vector<1x256x128xf32>
    %374 = vector.shape_cast %373 : vector<1x256x128xf32> to vector<256x128xf32>
    %c3_353 = arith.constant 3 : index
    %c0_354 = arith.constant 0 : index
    %375 = vector.load %arg9[%c3_353, %c0_354] : memref<4x128xf32, #tpu.memory_space<vmem>>, vector<1x128xf32>
    %376 = vector.broadcast %375 : vector<1x128xf32> to vector<256x128xf32>
    %377 = arith.mulf %374, %376 : vector<256x128xf32>
    %c3_355 = arith.constant 3 : index
    %c0_356 = arith.constant 0 : index
    %378 = vector.load %arg10[%c3_355, %c0_356] : memref<4x128xf32, #tpu.memory_space<vmem>>, vector<1x128xf32>
    %379 = vector.broadcast %378 : vector<1x128xf32> to vector<256x128xf32>
    %380 = arith.addf %377, %379 : vector<256x128xf32>
    %cst_357 = arith.constant 0.000000e+00 : f32
    %381 = vector.broadcast %cst_357 : f32 to vector<256x128xf32>
    %382 = arith.maximumf %380, %381 : vector<256x128xf32>
    %383 = arith.truncf %382 : vector<256x128xf32> to vector<256x128xbf16>
    %c3_358 = arith.constant 3 : index
    %c0_359 = arith.constant 0 : index
    %c0_360 = arith.constant 0 : index
    %384 = vector.load %arg8[%c3_358, %c0_359, %c0_360] : memref<4x128x128xbf16, #tpu.memory_space<vmem>>, vector<1x128x128xbf16>
    %385 = vector.shape_cast %384 : vector<1x128x128xbf16> to vector<128x128xbf16>
    %cst_361 = arith.constant dense<0.000000e+00> : vector<256x128xf32>
    %386 = tpu.matmul %383, %385, %cst_361 {dimension_numbers = #tpu.dot_dimension_numbers<[1], [0], [0], [1], [0, 0, 1, 1], [], []>} : vector<256x128xbf16>, vector<128x128xbf16>, vector<256x128xf32> -> vector<256x128xf32>
    %387 = arith.addf %372, %386 : vector<256x128xf32>
    %c0_362 = arith.constant 0 : index
    %c0_363 = arith.constant 0 : index
    %c0_364 = arith.constant 0 : index
    %388 = vector.load %arg13[%c0_362, %c0_363, %c0_364] : memref<1x256x128xf32, #tpu.memory_space<vmem>>, vector<1x256x128xf32>
    %389 = vector.shape_cast %388 : vector<1x256x128xf32> to vector<256x128xf32>
    %390 = vector.shape_cast %387 : vector<256x128xf32> to vector<1x256x128xf32>
    tpu.vector_store %arg13[%c0_362, %c0_363, %c0_364], %390 {strides = array<i32>} : memref<1x256x128xf32, #tpu.memory_space<vmem>>, vector<1x256x128xf32>,
    %c0_365 = arith.constant 0 : index
    %c0_366 = arith.constant 0 : index
    %c0_367 = arith.constant 0 : index
    %391 = vector.load %arg13[%c0_365, %c0_366, %c0_367] : memref<1x256x128xf32, #tpu.memory_space<vmem>>, vector<1x256x128xf32>
    %392 = vector.shape_cast %391 : vector<1x256x128xf32> to vector<256x128xf32>
    %c0_368 = arith.constant 0 : index
    %c0_369 = arith.constant 0 : index
    %393 = vector.load %arg11[%c0_368, %c0_369] : memref<1x128xf32, #tpu.memory_space<vmem>>, vector<1x128xf32>
    %394 = vector.broadcast %393 : vector<1x128xf32> to vector<256x128xf32>
    %395 = arith.mulf %392, %394 : vector<256x128xf32>
    %c0_370 = arith.constant 0 : index
    %c0_371 = arith.constant 0 : index
    %396 = vector.load %arg12[%c0_370, %c0_371] : memref<1x128xf32, #tpu.memory_space<vmem>>, vector<1x128xf32>
    %397 = vector.broadcast %396 : vector<1x128xf32> to vector<256x128xf32>
    %398 = arith.addf %395, %397 : vector<256x128xf32>
    %cst_372 = arith.constant 0.000000e+00 : f32
    %399 = vector.broadcast %cst_372 : f32 to vector<256x128xf32>
    %400 = arith.maximumf %398, %399 : vector<256x128xf32>
    %c0_373 = arith.constant 0 : index
    %c0_374 = arith.constant 0 : index
    %c0_375 = arith.constant 0 : index
    %401 = vector.load %arg13[%c0_373, %c0_374, %c0_375] : memref<1x256x128xf32, #tpu.memory_space<vmem>>, vector<1x256x128xf32>
    %402 = vector.shape_cast %401 : vector<1x256x128xf32> to vector<256x128xf32>
    %403 = vector.shape_cast %400 : vector<256x128xf32> to vector<1x256x128xf32>
    tpu.vector_store %arg13[%c0_373, %c0_374, %c0_375], %403 {strides = array<i32>} : memref<1x256x128xf32, #tpu.memory_space<vmem>>, vector<1x256x128xf32>,
    return
  }
  func.func @transform_0(%arg0: i32, %arg1: i32) -> (i32, i32, i32, i32) {
    %c0_i32 = arith.constant 0 : i32
    %c0_i32_0 = arith.constant 0 : i32
    %c0_i32_1 = arith.constant 0 : i32
    return %arg0, %c0_i32, %c0_i32_0, %arg1 : i32, i32, i32, i32
  }
  func.func @transform_1(%arg0: i32, %arg1: i32) -> (i32, i32, i32) {
    %c0_i32 = arith.constant 0 : i32
    %c0_i32_0 = arith.constant 0 : i32
    %c0_i32_1 = arith.constant 0 : i32
    return %arg0, %c0_i32, %c0_i32_0 : i32, i32, i32
  }
  func.func @transform_2(%arg0: i32, %arg1: i32) -> (i32, i32) {
    %c0_i32 = arith.constant 0 : i32
    %c0_i32_0 = arith.constant 0 : i32
    return %arg1, %c0_i32 : i32, i32
  }
  func.func @transform_3(%arg0: i32, %arg1: i32) -> (i32, i32, i32) {
    %c0_i32 = arith.constant 0 : i32
    %c0_i32_0 = arith.constant 0 : i32
    %c0_i32_1 = arith.constant 0 : i32
    return %c0_i32, %arg1, %c0_i32_0 : i32, i32, i32
  }
  func.func @transform_4(%arg0: i32, %arg1: i32) -> (i32, i32, i32) {
    %c0_i32 = arith.constant 0 : i32
    %c0_i32_0 = arith.constant 0 : i32
    %c0_i32_1 = arith.constant 0 : i32
    return %c0_i32, %arg1, %c0_i32_0 : i32, i32, i32
  }
  func.func @transform_5(%arg0: i32, %arg1: i32) -> (i32, i32, i32) {
    %c0_i32 = arith.constant 0 : i32
    %c0_i32_0 = arith.constant 0 : i32
    %c0_i32_1 = arith.constant 0 : i32
    return %c0_i32, %arg1, %c0_i32_0 : i32, i32, i32
  }
  func.func @transform_6(%arg0: i32, %arg1: i32) -> (i32, i32, i32) {
    %c0_i32 = arith.constant 0 : i32
    %c0_i32_0 = arith.constant 0 : i32
    %c0_i32_1 = arith.constant 0 : i32
    %c0_i32_2 = arith.constant 0 : i32
    return %c0_i32, %c0_i32_0, %c0_i32_1 : i32, i32, i32
  }
  func.func @transform_7(%arg0: i32, %arg1: i32) -> (i32, i32) {
    %c0_i32 = arith.constant 0 : i32
    %c0_i32_0 = arith.constant 0 : i32
    %c0_i32_1 = arith.constant 0 : i32
    return %c0_i32, %c0_i32_0 : i32, i32
  }
  func.func @transform_8(%arg0: i32, %arg1: i32) -> (i32, i32) {
    %c0_i32 = arith.constant 0 : i32
    %c0_i32_0 = arith.constant 0 : i32
    %c0_i32_1 = arith.constant 0 : i32
    return %c0_i32, %c0_i32_0 : i32, i32
  }
  func.func @transform_9(%arg0: i32, %arg1: i32) -> (i32, i32) {
    %c0_i32 = arith.constant 0 : i32
    %c0_i32_0 = arith.constant 0 : i32
    %c0_i32_1 = arith.constant 0 : i32
    return %c0_i32, %c0_i32_0 : i32, i32
  }
  func.func @transform_10(%arg0: i32, %arg1: i32) -> (i32, i32) {
    %c0_i32 = arith.constant 0 : i32
    %c0_i32_0 = arith.constant 0 : i32
    %c0_i32_1 = arith.constant 0 : i32
    return %c0_i32, %c0_i32_0 : i32, i32
  }
  func.func @transform_11(%arg0: i32, %arg1: i32) -> (i32, i32, i32) {
    %c0_i32 = arith.constant 0 : i32
    %c0_i32_0 = arith.constant 0 : i32
    %c0_i32_1 = arith.constant 0 : i32
    return %arg0, %c0_i32, %c0_i32_0 : i32, i32, i32
  }
}

</mosaic_0001>

<bundles_post_ra>
// kernel: tpu_custom_call.1
= control target key start
LH: loop header
LB: loop body
LE: loop exit
PB: predicated region body
PF: predicated region fallthrough
CT: control target
= control target key end

     0   :  { %s25479_s0 = inlined_call_operand.hbm [shape: bf16[2,16,16,4], index: 0, kind: input, shape index: {}]   ;;  %s25480_s1 = inlined_call_operand.hbm [shape: f32[2,1,128], index: 1, kind: input, shape index: {}]   ;;  %s25481_s2 = inlined_call_operand.hbm [shape: bf16[4,128], index: 2, kind: input, shape index: {}]   ;;  %s25482_s3 = inlined_call_operand.hbm [shape: bf16[9,4,128], index: 3, kind: input, shape index: {}]   ;;  %s25483_s4 = inlined_call_operand.hbm [shape: bf16[9,4,128], index: 4, kind: input, shape index: {}]   ;;  %s25484_s5 = inlined_call_operand.hbm [shape: bf16[9,4,128], index: 5, kind: input, shape index: {}]   ;;  %s25485_s6 = inlined_call_operand.hbm [shape: bf16[4,128,128], index: 6, kind: input, shape index: {}]   ;;  %s25486_s7 = inlined_call_operand.hbm [shape: f32[4,128], index: 7, kind: input, shape index: {}]   ;;  %s25487_s8 = inlined_call_operand.hbm [shape: f32[4,128], index: 8, kind: input, shape index: {}]   ;;  %s25488_s9 = inlined_call_operand.hbm [shape: f32[1,128], index: 9, kind: input, shape index: {}]   ;;  %s25489_s10 = inlined_call_operand.hbm [shape: f32[1,128], index: 10, kind: input, shape index: {}]   ;;  %s25490_s11 = inlined_call_operand.hbm [shape: f32[2,256,128], index: 11, kind: output, shape index: {}]  }
   0x1   :  { %25524 = sst [smem:[#allocation63_spill]] %s25479_s0 }
   0x2   :  { %25525 = sst [smem:[#allocation64_spill]] %s25480_s1 }
   0x3   :  { %25526 = sst [smem:[#allocation65_spill]] %s25481_s2 }
   0x4   :  { %25527 = sst [smem:[#allocation66_spill]] %s25482_s3 }
   0x5   :  { %25528 = sst [smem:[#allocation67_spill]] %s25483_s4 }
   0x6   :  { %25529 = sst [smem:[#allocation68_spill]] %s25484_s5 }
   0x7   :  { %25530 = sst [smem:[#allocation69_spill]] %s25485_s6 }
   0x8   :  { %25531 = sst [smem:[#allocation70_spill]] %s25486_s7 }
   0x9   :  { %25532 = sst [smem:[#allocation71_spill]] %s25490_s11 }
   0xa   :  { %16 = vsyncpa [#allocation5], 0 }
   0xb   :  { %18 = vsyncpa [#allocation5 + $0x1], 0 }
   0xc   :  { %19 = vsyncpa [#allocation8], 0 }
   0xd   :  { %21 = vsyncpa [#allocation8 + $0x1], 0 }
   0xe   :  { %22 = vsyncpa [#allocation11], 0 }
   0xf   :  { %23 = vsyncpa [#allocation14], 0 }
  0x10   :  { %24 = vsyncpa [#allocation17], 0 }
  0x11   :  { %25 = vsyncpa [#allocation20], 0 }
  0x12   :  { %26 = vsyncpa [#allocation6], 0 }
  0x13   :  { %28 = vsyncpa [#allocation6 + $0x1], 0  ;;  %s20791_s17 = smov 0   ;;  %s20793_s18 = smov 0  }
  0x14   :  { %s20795_s19 = smov 0   ;;  %s20797_s20 = smov 0  }
  0x15   :  { %s20799_s21 = smov 0   ;;  %s20801_s22 = smov 0  }
  0x16 LB: > { %25533 = sst [smem:[#allocation31_spill]] %s20702_s20  ;;  %s20822_s23 = sadd.s32 4294967295, %s20710_s22   ;;  %s20710_s22 = sphi %s20801_s22, %s34_s22   ;;  %s20706_s21 = sphi %s20799_s21, %s25746_s21   ;;  %s20702_s20 = sphi %s20797_s20, %s25745_s20   ;;  %s20698_s19 = sphi %s20795_s19, %s25744_s19   ;;  %s20694_s18 = sphi %s20793_s18, %s25743_s18   ;;  %s20690_s17 = sphi %s20791_s17, %s25742_s17  }
  0x17   : > { %p16138_p0 = scmp.ge.s32.totalorder %s20710_s22, 1  ;;  %p25492_p1 = scmp.eq.s32.totalorder %s20822_s23, 0 }
  0x18   : > { %p340_p2 = scmp.lt.s32.totalorder %s20710_s22, 3  ;;  %s20712_s25 = smov [#allocation9]  }
  0x19   : > { %s355_s26 = sshll.u32 %s20712_s25, 4  ;;  %s20713_s27 = smov [#allocation10]   ;;  %s356_s26 = int_to_ptr.vmem [resolvable:$true] %s355_s26 }
  0x1a   : > { %p20827_p3 = pnand %p16138_p0, %p340_p2  ;;  %s367_s28 = sshll.u32 %s20713_s27, 4  ;;  %s20840_s28 = int_to_ptr.vmem [resolvable:$true] %s367_s28 }
  0x1b   : > { %s20714_s30 = smov [#allocation13]   ;;  %s25537_s2 = sld [smem:[#allocation65_spill]] }
  0x1c   : > { %s25534_s24 = scalar_select %p20827_p3, 1, 0 }
  0x1d   : > { %p20005_p5 = pneg %p20827_p3  ;;  %s20842_s12 = sshll.u32 %s20714_s30, 4  ;;  %s398_s12 = int_to_ptr.vmem [resolvable:$true] %s20842_s12 }
  0x1e   : > { %25535 = sst [smem:[#allocation32_spill]] %s25534_s24 }
  0x1f   : > { %p20836_p6 = pnand %p20005_p5, %p25492_p1 }
  0x21   : > { %s20292_s15 = scalar_lea.hbm %s25537_s2, 32  ;;  %p20852_p8 = pneg %p20836_p6 }
  0x22   : > { %p20293_p7 = scmp.ne.s32.totalorder %s25537_s2, %s20292_s15  ;;  %p20299_p11 = scmp.lt.u32.totalorder %s20292_s15, %s25537_s2 }
  0x24   : > { %p20295_p9 = pnand %p20852_p8, %p20293_p7 }
  0x26   : > { %p20296_p10 = pneg %p20295_p9 }
  0x28   : > { %p20301_p12 = pnand %p20299_p11, %p20296_p10 }
  0x2a   : > { %20304 = shalt.err (!%p20301_p12)
}
  0x2b   : > { %s20305_s13 = scalar_lea.vmem %s356_s26, 32  ;;  %p20313_p5 = scmp.lt.s32.totalorder %s356_s26, %s356_s26 }
  0x2c   : > { %p20306_p13 = scmp.ne.s32.totalorder %s356_s26, %s20305_s13  ;;  %p20314_p4 = scmp.lt.s32.totalorder %s20305_s13, %s20305_s13 }
  0x2e   : > { %p20308_p0 = pnand %p20306_p13, %p20852_p8  ;;  %p20315_p1 = por %p20314_p4, %p20313_p5 }
  0x30   : > { %p20309_p2 = pneg %p20308_p0 }
  0x32   : > { %p20316_p3 = pnand %p20315_p1, %p20309_p2 }
  0x34   : > { %20319 = shalt.err (!%p20316_p3)
}
  0x35   : > { %20008 = dma.hbm_to_vmem [thread:$0]  (!%p20836_p6), %s25537_s2, 32, %s356_s26, [#allocation8]  }
  0x36   : > { %s25539_s3 = sld [smem:[#allocation66_spill]] }
  0x3c   : > { %s20320_s25 = scalar_lea.hbm %s25539_s3, 288 }
  0x3d   : > { %p20321_p7 = scmp.ne.s32.totalorder %s25539_s3, %s20320_s25  ;;  %p20327_p1 = scmp.lt.u32.totalorder %s20320_s25, %s25539_s3 }
  0x3f   : > { %p20323_p9 = pnand %p20321_p7, %p20852_p8 }
  0x41   : > { %p20324_p4 = pneg %p20323_p9 }
  0x43   : > { %p20329_p3 = pnand %p20327_p1, %p20324_p4 }
  0x45   : > { %20332 = shalt.err (!%p20329_p3)
}
  0x46   : > { %s20333_s26 = scalar_lea.vmem %s20840_s28, 288  ;;  %p20341_p13 = scmp.lt.s32.totalorder %s20840_s28, %s20840_s28 }
  0x47   : > { %p20334_p10 = scmp.ne.s32.totalorder %s20840_s28, %s20333_s26  ;;  %p20342_p0 = scmp.lt.s32.totalorder %s20333_s26, %s20333_s26 }
  0x49   : > { %p20336_p11 = pnand %p20334_p10, %p20852_p8  ;;  %p20343_p2 = por %p20342_p0, %p20341_p13 }
  0x4b   : > { %p20337_p12 = pneg %p20336_p11 }
  0x4d   : > { %p20344_p5 = pnand %p20343_p2, %p20337_p12 }
  0x4f   : > { %20347 = shalt.err (!%p20344_p5)
}
  0x50   : > { %s20715_s20 = smov 32   ;;  %s20716_s24 = smov 2  }
  0x51   : > { %20011 = dma.hbm_to_vmem [thread:$0]  (!%p20836_p6), %s25539_s3, 288, %s20840_s28, [#allocation11], %s20715_s20, %s20715_s20, %s20716_s24  }
  0x52   : > { %s25540_s5 = sld [smem:[#allocation68_spill]] }
  0x58   : > { %s20348_s25 = scalar_lea.hbm %s25540_s5, 288 }
  0x59   : > { %p20349_p7 = scmp.ne.s32.totalorder %s25540_s5, %s20348_s25  ;;  %p20355_p1 = scmp.lt.u32.totalorder %s20348_s25, %s25540_s5 }
  0x5b   : > { %p20351_p9 = pnand %p20349_p7, %p20852_p8 }
  0x5d   : > { %p20352_p4 = pneg %p20351_p9 }
  0x5f   : > { %p20357_p3 = pnand %p20355_p1, %p20352_p4 }
  0x61   : > { %20360 = shalt.err (!%p20357_p3)
}
  0x62   : > { %s20361_s14 = scalar_lea.vmem %s398_s12, 288  ;;  %p20369_p13 = scmp.lt.s32.totalorder %s398_s12, %s398_s12 }
  0x63   : > { %p20362_p10 = scmp.ne.s32.totalorder %s398_s12, %s20361_s14  ;;  %p20370_p0 = scmp.lt.s32.totalorder %s20361_s14, %s20361_s14 }
  0x65   : > { %p20364_p11 = pnand %p20362_p10, %p20852_p8  ;;  %p20371_p2 = por %p20370_p0, %p20369_p13 }
  0x67   : > { %p20365_p12 = pneg %p20364_p11 }
  0x69   : > { %p20372_p5 = pnand %p20371_p2, %p20365_p12 }
  0x6b   : > { %20375 = shalt.err (!%p20372_p5)
}
  0x6c   : > { %20017 = dma.hbm_to_vmem [thread:$0]  (!%p20836_p6), %s25540_s5, 288, %s398_s12, [#allocation14], %s20715_s20, %s20715_s20, %s20716_s24  }
  0x6d   : > { %s20717_s16 = smov [#allocation16]   ;;  %s20718_s15 = smov [#allocation19]  }
  0x6e   : > { %s424_s11 = sshll.u32 %s20717_s16, 4  ;;  %s446_s25 = sshll.u32 %s20718_s15, 4  ;;  %s425_s11 = int_to_ptr.vmem [resolvable:$true] %s424_s11  ;;  %s447_s25 = int_to_ptr.vmem [resolvable:$true] %s446_s25 }
  0x6f   : > { %s25541_s7 = sld [smem:[#allocation70_spill]] }
  0x75   : > { %s20376_s26 = scalar_lea.hbm %s25541_s7, 64 }
  0x76   : > { %p20377_p7 = scmp.ne.s32.totalorder %s25541_s7, %s20376_s26  ;;  %p20383_p1 = scmp.lt.u32.totalorder %s20376_s26, %s25541_s7 }
  0x78   : > { %p20379_p9 = pnand %p20377_p7, %p20852_p8 }
  0x7a   : > { %p20380_p4 = pneg %p20379_p9 }
  0x7c   : > { %p20385_p3 = pnand %p20383_p1, %p20380_p4 }
  0x7e   : > { %20388 = shalt.err (!%p20385_p3)
}
  0x7f   : > { %s20389_s12 = scalar_lea.vmem %s425_s11, 64  ;;  %p20397_p13 = scmp.lt.s32.totalorder %s425_s11, %s425_s11 }
  0x80   : > { %p20390_p10 = scmp.ne.s32.totalorder %s425_s11, %s20389_s12  ;;  %p20398_p0 = scmp.lt.s32.totalorder %s20389_s12, %s20389_s12 }
  0x82   : > { %p20392_p11 = pnand %p20390_p10, %p20852_p8  ;;  %p20399_p2 = por %p20398_p0, %p20397_p13 }
  0x84   : > { %p20393_p12 = pneg %p20392_p11 }
  0x86   : > { %p20400_p5 = pnand %p20399_p2, %p20393_p12 }
  0x88   : > { %20403 = shalt.err (!%p20400_p5)
}
  0x89   : > { %20023 = dma.hbm_to_vmem [thread:$0]  (!%p20836_p6), %s25541_s7, 64, %s425_s11, [#allocation17]  }
  0x8a   : > { %s20404_s15 = scalar_lea.hbm %s25488_s9, 16 }
  0x8b   : > { %p20405_p7 = scmp.ne.s32.totalorder %s25488_s9, %s20404_s15  ;;  %p20411_p1 = scmp.lt.u32.totalorder %s20404_s15, %s25488_s9 }
  0x8d   : > { %p20407_p9 = pnand %p20405_p7, %p20852_p8 }
  0x8f   : > { %p20408_p4 = pneg %p20407_p9 }
  0x91   : > { %p20413_p3 = pnand %p20411_p1, %p20408_p4 }
  0x93   : > { %20416 = shalt.err (!%p20413_p3)
}
  0x94   : > { %s20417_s2 = scalar_lea.vmem %s447_s25, 16  ;;  %s20424_s11 = scalar_lea.vmem %s447_s25, 32 }
  0x95   : > { %p20418_p10 = scmp.ne.s32.totalorder %s447_s25, %s20417_s2  ;;  %p20425_p13 = scmp.lt.s32.totalorder %s447_s25, %s447_s25 }
  0x96   : > { %p20426_p0 = scmp.lt.s32.totalorder %s20424_s11, %s20417_s2 }
  0x97   : > { %p20420_p11 = pnand %p20418_p10, %p20852_p8 }
  0x98   : > { %p20427_p2 = por %p20426_p0, %p20425_p13 }
  0x99   : > { %p20421_p12 = pneg %p20420_p11 }
  0x9b   : > { %p20428_p5 = pnand %p20427_p2, %p20421_p12 }
  0x9d   : > { %20431 = shalt.err (!%p20428_p5)
}
  0x9e   : > { %20029 = dma.hbm_to_vmem [thread:$0]  (!%p20836_p6), %s25488_s9, 16, %s447_s25, [#allocation20]  }
  0x9f   : > { %s20719_s28 = smov [#allocation12]   ;;  %s20720_s16 = smov [#allocation15]  }
  0xa0   : > { %s382_s1 = sshll.u32 %s20719_s28, 4  ;;  %s410_s15 = sshll.u32 %s20720_s16, 4  ;;  %s383_s1 = int_to_ptr.vmem [resolvable:$true] %s382_s1  ;;  %s411_s15 = int_to_ptr.vmem [resolvable:$true] %s410_s15 }
  0xa1   : > { %s25542_s4 = sld [smem:[#allocation67_spill]] }
  0xa7   : > { %s20432_s26 = scalar_lea.hbm %s25542_s4, 288 }
  0xa8   : > { %p20433_p7 = scmp.ne.s32.totalorder %s25542_s4, %s20432_s26  ;;  %p20439_p1 = scmp.lt.u32.totalorder %s20432_s26, %s25542_s4 }
  0xaa   : > { %p20435_p9 = pnand %p20433_p7, %p20852_p8 }
  0xac   : > { %p20436_p4 = pneg %p20435_p9 }
  0xae   : > { %p20441_p3 = pnand %p20439_p1, %p20436_p4 }
  0xb0   : > { %20444 = shalt.err (!%p20441_p3)
}
  0xb1   : > { %s20445_s25 = scalar_lea.vmem %s383_s1, 288  ;;  %p20453_p13 = scmp.lt.s32.totalorder %s383_s1, %s383_s1 }
  0xb2   : > { %p20446_p10 = scmp.ne.s32.totalorder %s383_s1, %s20445_s25  ;;  %p20454_p0 = scmp.lt.s32.totalorder %s20445_s25, %s20445_s25 }
  0xb4   : > { %p20448_p11 = pnand %p20446_p10, %p20852_p8  ;;  %p20455_p2 = por %p20454_p0, %p20453_p13 }
  0xb6   : > { %p20449_p12 = pneg %p20448_p11 }
  0xb8   : > { %p20456_p5 = pnand %p20455_p2, %p20449_p12 }
  0xba   : > { %20459 = shalt.err (!%p20456_p5)
}
  0xbb   : > { %20014 = dma.hbm_to_vmem [thread:$0]  (!%p20836_p6), %s25542_s4, 288, %s383_s1, [#allocation11], %s20715_s20, %s20715_s20, %s20716_s24  }
  0xbc   : > { %s25543_s6 = sld [smem:[#allocation69_spill]] }
  0xc2   : > { %s20460_s13 = scalar_lea.hbm %s25543_s6, 4096 }
  0xc3   : > { %p20461_p7 = scmp.ne.s32.totalorder %s25543_s6, %s20460_s13  ;;  %p20467_p1 = scmp.lt.u32.totalorder %s20460_s13, %s25543_s6 }
  0xc5   : > { %p20463_p9 = pnand %p20461_p7, %p20852_p8 }
  0xc7   : > { %p20464_p4 = pneg %p20463_p9 }
  0xc9   : > { %p20469_p3 = pnand %p20467_p1, %p20464_p4 }
  0xcb   : > { %20472 = shalt.err (!%p20469_p3)
}
  0xcc   : > { %s20473_s12 = scalar_lea.vmem %s411_s15, 4096  ;;  %p20481_p13 = scmp.lt.s32.totalorder %s411_s15, %s411_s15 }
  0xcd   : > { %p20474_p10 = scmp.ne.s32.totalorder %s411_s15, %s20473_s12  ;;  %p20482_p0 = scmp.lt.s32.totalorder %s20473_s12, %s20473_s12 }
  0xcf   : > { %p20476_p11 = pnand %p20474_p10, %p20852_p8  ;;  %p20483_p2 = por %p20482_p0, %p20481_p13 }
  0xd1   : > { %p20477_p12 = pneg %p20476_p11 }
  0xd3   : > { %p20484_p5 = pnand %p20483_p2, %p20477_p12 }
  0xd5   : > { %20487 = shalt.err (!%p20484_p5)
}
  0xd6   : > { %s25496_s20 = smov 64   ;;  %s20722_s24 = smov 4  }
  0xd7   : > { %20020 = dma.hbm_to_vmem [thread:$0]  (!%p20836_p6), %s25543_s6, 4096, %s411_s15, [#allocation14], %s25496_s20, %s25496_s20, %s20722_s24  }
  0xd8   : > { %s20723_s3 = smov [#allocation18]   ;;  %s20724_s16 = smov [#allocation21]  }
  0xd9   : > { %s435_s28 = sshll.u32 %s20723_s3, 4  ;;  %s457_s30 = sshll.u32 %s20724_s16, 4  ;;  %s436_s28 = int_to_ptr.vmem [resolvable:$true] %s435_s28  ;;  %s458_s30 = int_to_ptr.vmem [resolvable:$true] %s457_s30 }
  0xda   : > { %s20488_s14 = scalar_lea.hbm %s25487_s8, 64 }
  0xdb   : > { %p20489_p7 = scmp.ne.s32.totalorder %s25487_s8, %s20488_s14  ;;  %p20495_p1 = scmp.lt.u32.totalorder %s20488_s14, %s25487_s8 }
  0xdd   : > { %p20491_p9 = pnand %p20489_p7, %p20852_p8 }
  0xdf   : > { %p20492_p4 = pneg %p20491_p9 }
  0xe1   : > { %p20497_p3 = pnand %p20495_p1, %p20492_p4 }
  0xe3   : > { %20500 = shalt.err (!%p20497_p3)
}
  0xe4   : > { %s20501_s15 = scalar_lea.vmem %s436_s28, 64  ;;  %p20509_p13 = scmp.lt.s32.totalorder %s436_s28, %s436_s28 }
  0xe5   : > { %p20502_p10 = scmp.ne.s32.totalorder %s436_s28, %s20501_s15  ;;  %p20510_p0 = scmp.lt.s32.totalorder %s20501_s15, %s20501_s15 }
  0xe7   : > { %p20504_p11 = pnand %p20502_p10, %p20852_p8  ;;  %p20511_p2 = por %p20510_p0, %p20509_p13 }
  0xe9   : > { %p20505_p12 = pneg %p20504_p11 }
  0xeb   : > { %p20512_p5 = pnand %p20511_p2, %p20505_p12 }
  0xed   : > { %20515 = shalt.err (!%p20512_p5)
}
  0xee   : > { %20026 = dma.hbm_to_vmem [thread:$0]  (!%p20836_p6), %s25487_s8, 64, %s436_s28, [#allocation17]  }
  0xef   : > { %s20516_s16 = scalar_lea.hbm %s25489_s10, 16 }
  0xf0   : > { %p20517_p7 = scmp.ne.s32.totalorder %s25489_s10, %s20516_s16  ;;  %p20523_p1 = scmp.lt.u32.totalorder %s20516_s16, %s25489_s10 }
  0xf2   : > { %p20519_p9 = pnand %p20517_p7, %p20852_p8 }
  0xf4   : > { %p20520_p4 = pneg %p20519_p9 }
  0xf6   : > { %p20525_p3 = pnand %p20523_p1, %p20520_p4 }
  0xf8   : > { %20528 = shalt.err (!%p20525_p3)
}
  0xf9   : > { %s20529_s11 = scalar_lea.vmem %s458_s30, 16  ;;  %s20536_s28 = scalar_lea.vmem %s458_s30, 32 }
  0xfa   : > { %p20530_p10 = scmp.ne.s32.totalorder %s458_s30, %s20529_s11  ;;  %p20537_p13 = scmp.lt.s32.totalorder %s458_s30, %s458_s30 }
  0xfb   : > { %p20538_p0 = scmp.lt.s32.totalorder %s20536_s28, %s20529_s11 }
  0xfc   : > { %p20532_p11 = pnand %p20530_p10, %p20852_p8 }
  0xfd   : > { %p20539_p2 = por %p20538_p0, %p20537_p13 }
  0xfe   : > { %p20533_p12 = pneg %p20532_p11 }
 0x100   : > { %p20540_p5 = pnand %p20539_p2, %p20533_p12 }
 0x102   : > { %20543 = shalt.err (!%p20540_p5)
}
 0x103   : > { %20032 = dma.hbm_to_vmem [thread:$0]  (!%p20836_p6), %s25489_s10, 16, %s458_s30, [#allocation20]  }
 0x104   : > { %s16137_s27 = sadd.s32 4294967294, %s20710_s22   ;;  %s46_s1 = sadd.s32 1, %s20706_s21 }
 0x105   : > { %s55_s29 = sadd.s32 1, %s20698_s19  ;;  %p48_p8 = scmp.ge.s32.totalorder %s46_s1, 2 }
 0x106   : > { %p62_p7 = scmp.ne.s32.totalorder %s20698_s19, %s20694_s18  ;;  %p63_p9 = scmp.eq.s32.totalorder %s20710_s22, 0 }
 0x107   : > { %p68_p4 = scmp.ne.s32.totalorder %s20694_s18, %s20690_s17  ;;  %s25748_s1 = smov (%p48_p8, %s46_s1), 0 }
 0x108   : > { %p21040_p1 = por %p63_p9, %p62_p7  ;;  %p25545_p3 = scmp.eq.s32.totalorder %s20822_s23, 0 }
 0x109   : > { %s50_s4 = ssub.s32 %s20706_s21, %s25748_s1  ;;  %p327_p10 = scmp.eq.s32.totalorder %s20822_s23, 1 }
 0x10a   : > { %p21046_p6 = por %p25545_p3, %p68_p4  ;;  %p53_p11 = scmp.eq.s32.totalorder %s50_s4, 0 }
 0x10b   : > { %p333_p12 = scmp.eq.s32.totalorder %s16137_s27, 1  ;;  %p21053_p13 = por %p327_p10, %p62_p7 }
 0x10c   : > { %s25546_s30 = scalar_select %p21046_p6, 1, 0 }
 0x10d   : > { %s25547_s3 = scalar_select %p21053_p13, 1, 0 }
 0x10e   : > { %p20053_p0 = scmp.lt.s32.totalorder %s20710_s22, 2  ;;  %p21061_p2 = por %p333_p12, %p68_p4 }
 0x10f   : > { %s21059_s16 = scalar_select %p53_p11, %s20698_s19, %s55_s29  }
 0x110   : > { %s25548_s13 = scalar_select %p21061_p2, 1, 0 }
 0x111   : > { %s21066_s26 = sand.u32 1, %s20698_s19   ;;  %s17257_s2 = sshll.u32 %s20706_s21, 11 }
 0x112   : > { %s16149_s14 = sshll.u32 %s21066_s26, 7  ;;  %s25549_s0 = sld [smem:[#allocation63_spill]] }
 0x113   : > { %s472_s15 = scalar_lea.vmem [#allocation4], %s16149_s14  ;;  %p21079_p5 = pnand %p20053_p0, %p21040_p1 }
 0x114   : > { %s480_s27 = sshll.u32 %s472_s15, 4  ;;  %s469_s20 = scalar_lea.sflag [#allocation5], %s21066_s26  ;;  %s21075_s27 = int_to_ptr.vmem [resolvable:$true] %s480_s27 }
 0x115   : > { %p20546_p7 = pneg %p21079_p5 }
 0x118   : > { %s21073_s12 = scalar_lea.hbm %s25549_s0, %s17257_s2  ;;  %s20549_s25 = scalar_lea.hbm %s25549_s0, 4096 }
 0x119   : > { %s20544_s11 = scalar_lea.hbm %s21073_s12, 2048  ;;  %p20550_p1 = scmp.lt.u32.totalorder %s21073_s12, %s25549_s0 }
 0x11a   : > { %p20545_p8 = scmp.ne.s32.totalorder %s21073_s12, %s20544_s11  ;;  %p20551_p3 = scmp.lt.u32.totalorder %s20549_s25, %s20544_s11 }
 0x11b   : > { %p20553_p11 = scmp.lt.u32.totalorder %s20544_s11, %s21073_s12 }
 0x11c   : > { %p20547_p9 = pnand %p20546_p7, %p20545_p8  ;;  %p20552_p10 = por %p20551_p3, %p20550_p1 }
 0x11e   : > { %p20548_p4 = pneg %p20547_p9  ;;  %p20554_p12 = por %p20553_p11, %p20552_p10 }
 0x120   : > { %p20555_p0 = pnand %p20554_p12, %p20548_p4 }
 0x122   : > { %20558 = shalt.err (!%p20555_p0)
}
 0x123   : > { %s20559_s4 = scalar_lea.vmem %s21075_s27, 2048  ;;  %s20725_s14 = smov [#allocation4]  }
 0x124   : > { %p20560_p8 = scmp.ne.s32.totalorder %s21075_s27, %s20559_s4  ;;  %s20564_s2 = sshll.u32 %s20725_s14, 4  ;;  %s20565_s2 = int_to_ptr.vmem [resolvable:$false] %s20564_s2 }
 0x125   : > { %s20566_s28 = scalar_lea.vmem %s20565_s2, 4096  ;;  %p20567_p13 = scmp.lt.s32.totalorder %s21075_s27, %s20565_s2 }
 0x126   : > { %p20562_p9 = pnand %p20560_p8, %p20546_p7  ;;  %p20568_p1 = scmp.lt.s32.totalorder %s20566_s28, %s20559_s4 }
 0x128   : > { %p20563_p2 = pneg %p20562_p9  ;;  %p20569_p3 = por %p20568_p1, %p20567_p13 }
 0x12a   : > { %p20570_p10 = pnand %p20569_p3, %p20563_p2 }
 0x12c   : > { %20573 = shalt.err (!%p20570_p10)
}
 0x12d   : > { %s25551_s11 = smov 64   ;;  %s16152_s25 = sshll.u32 %s20706_s21, 4 }
 0x12e   : > { %20036 = dma.hbm_to_vmem [thread:$0]  (!%p21079_p5), %s21073_s12, 2048, %s21075_s27, %s469_s20, %s25551_s11, %s25551_s11, %s20722_s24  }
 0x12f   : > { %s493_s15 = scalar_lea.vmem [#allocation7], %s21066_s26  ;;  %s25552_s28 = sld [smem:[#allocation64_spill]] }
 0x130   : > { %s500_s4 = sshll.u32 %s493_s15, 4  ;;  %s25553_s5 = sand.u32 1, %s20710_s22   ;;  %s501_s4 = int_to_ptr.vmem [resolvable:$true] %s500_s4 }
 0x131   : > { %s491_s6 = scalar_lea.sflag [#allocation8], %s25553_s5 }
 0x135   : > { %s21120_s0 = scalar_lea.hbm %s25552_s28, %s16152_s25  ;;  %s20579_s26 = scalar_lea.hbm %s25552_s28, 32 }
 0x136   : > { %s20574_s7 = scalar_lea.hbm %s21120_s0, 16  ;;  %p20580_p11 = scmp.lt.u32.totalorder %s21120_s0, %s25552_s28 }
 0x137   : > { %p20575_p13 = scmp.ne.s32.totalorder %s21120_s0, %s20574_s7  ;;  %p20581_p12 = scmp.lt.u32.totalorder %s20579_s26, %s20574_s7 }
 0x138   : > { %p20583_p8 = scmp.lt.u32.totalorder %s20574_s7, %s21120_s0 }
 0x139   : > { %p20577_p2 = pnand %p20575_p13, %p20546_p7  ;;  %p20582_p0 = por %p20581_p12, %p20580_p11 }
 0x13b   : > { %p20578_p4 = pneg %p20577_p2  ;;  %p20584_p9 = por %p20583_p8, %p20582_p0 }
 0x13d   : > { %p20585_p1 = pnand %p20584_p9, %p20578_p4 }
 0x13f   : > { %20588 = shalt.err (!%p20585_p1)
}
 0x140   : > { %s20589_s5 = scalar_lea.vmem %s501_s4, 16  ;;  %s20726_s11 = smov [#allocation7]  }
 0x141   : > { %p20590_p3 = scmp.ne.s32.totalorder %s501_s4, %s20589_s5  ;;  %s20594_s25 = sshll.u32 %s20726_s11, 4  ;;  %s20595_s25 = int_to_ptr.vmem [resolvable:$false] %s20594_s25 }
 0x142   : > { %s20596_s15 = scalar_lea.vmem %s20595_s25, 32  ;;  %p20597_p2 = scmp.lt.s32.totalorder %s501_s4, %s20595_s25 }
 0x143   : > { %p20592_p10 = pnand %p20590_p3, %p20546_p7  ;;  %p20598_p6 = scmp.lt.s32.totalorder %s20596_s15, %s20589_s5 }
 0x145   : > { %p20593_p13 = pneg %p20592_p10  ;;  %p20599_p11 = por %p20598_p6, %p20597_p2 }
 0x147   : > { %p20600_p12 = pnand %p20599_p11, %p20593_p13 }
 0x149   : > { %20603 = shalt.err (!%p20600_p12)
}
 0x14a   : > { %20039 = dma.hbm_to_vmem [thread:$0]  (!%p21079_p5), %s21120_s0, 16, %s501_s4, %s491_s6  }
 0x14b   : > { %s25554_s7 = sld [smem:[#allocation32_spill]] }
 0x151   : > { %p25555_p4 = scmp.ne.s32.totalorder %s25554_s7, 0 }
 0x153   : > { %509 = sbr.rel (%p25555_p4) target bundleno = 2067 (0x813), region = 64 }
 0x15a   : > { %s21146_s14 = sand.u32 1, %s20694_s18   ;;  %p25556_p6 = scmp.ne.s32.totalorder %s25546_s30, 0 }
 0x15b   : > { %s16154_s2 = sshll.u32 %s21146_s14, 7  ;;  %s512_s20 = scalar_lea.sflag [#allocation5], %s21146_s14 }
 0x15c   : > { %s21150_s24 = scalar_lea.vmem [#allocation4], %s16154_s2 }
 0x15d   : > { %20657 = dma.done.wait (%p25556_p6), %s512_s20, 2048  }
 0x15e   : > { %20659 = vsyncadd (%p25556_p6), %s512_s20, 4294965248  ;;  %s520_s0 = sand.u32 1, %s20822_s23   ;;  %s523_s29 = scalar_lea.vmem [#allocation7], %s21146_s14 }
 0x15f   : > { %s521_s6 = scalar_lea.sflag [#allocation8], %s520_s0 }
 0x160   : > { %20661 = dma.done.wait (%p25556_p6), %s521_s6, 16  }
 0x161   : > { %20663 = vsyncadd (%p25556_p6), %s521_s6, 4294967280  ;;  %p25557_p5 = scmp.eq.s32.totalorder %s20822_s23, 0 }
 0x163   : > { %20665 = dma.done.wait (%p25557_p5), [#allocation8], 32   ;;  %p25558_p7 = pmov %p25557_p5 }
 0x164   : > { %p25559_p0 = pmov %p25557_p5 }
 0x165   : > { %20667 = vsyncadd (%p25558_p7), [#allocation8], 4294967264 }
 0x166   : > { %20669 = dma.done.wait (%p25559_p0), [#allocation11], 576   ;;  %p25560_p8 = pmov %p25559_p0 }
 0x167   : > { %p25561_p9 = pmov %p25559_p0 }
 0x168   : > { %20671 = vsyncadd (%p25560_p8), [#allocation11], 4294966720 }
 0x169   : > { %20673 = dma.done.wait (%p25561_p9), [#allocation14], 4384   ;;  %p25562_p1 = pmov %p25559_p0 }
 0x16a   : > { %p25563_p3 = pmov %p25559_p0 }
 0x16b   : > { %20675 = vsyncadd (%p25562_p1), [#allocation14], 4294962912 }
 0x16c   : > { %20677 = dma.done.wait (%p25563_p3), [#allocation17], 128   ;;  %p25564_p10 = pmov %p25559_p0 }
 0x16d   : > { %p25565_p13 = pmov %p25559_p0 }
 0x16e   : > { %20679 = vsyncadd (%p25564_p10), [#allocation17], 4294967168 }
 0x16f   : > { %20681 = dma.done.wait (%p25565_p13), [#allocation20], 32   ;;  %p25566_p2 = pmov %p25559_p0 }
 0x170   : > { %vm603_vm0 = vcmask 27648   ;;  %vm611_vm1 = vcmask 24576   ;;  %v20727_v0 = vmov 0   ;;  %vm1248_vm2 = vcmask 1041408   ;;  %v1118_v1 = vld [vmem:[#allocation9] sm:$0x3] }
 0x171   : > { %20683 = vsyncadd (%p25566_p2), [#allocation20], 4294967264  ;;  %604 = vst.msk [vmem:[#allocation2] sm:$0xf] %vm603_vm0, %v20727_v0  ;;  %vm1199_vm3 = vcmask 31744   ;;  %19935 = vmatprep.subr.msk.bf16.mxu0 %vm1248_vm2, %v1118_v1  ;;  %v1250_v2 = vsel %vm1248_vm2, %v1118_v1, 0 }
 0x172   : > { %605 = vst.msk [vmem:[#allocation2 + $0x4] sm:$0xf] %vm603_vm0, %v20727_v0  ;;  %606 = vst.msk [vmem:[#allocation2 + $0x8] sm:$0xf] %vm603_vm0, %v20727_v0  ;;  %v20128_v3 = vld [vmem:[%s21150_s24] sm:$0xff]   ;;  %17832 = vmatpush3.bf16.msra.mxu0 %v1250_v2  ;;  %v20129_v4 = vld [vmem:[%s21150_s24 + $0x8] sm:$0xff]  }
 0x173   : > { %607 = vst.msk [vmem:[#allocation2 + $0xc] sm:$0xf] %vm603_vm0, %v20727_v0  ;;  %608 = vst.msk [vmem:[#allocation2 + $0x10] sm:$0xf] %vm603_vm0, %v20727_v0  ;;  %17833 = vmatprep.mubr.msk.bf16.mxu0 %vm1199_vm3, %v20128_v3  ;;  %v20130_v5 = vld [vmem:[%s21150_s24 + $0x10] sm:$0xff]   ;;  %vm1578_vm4 = vcmask 1042432  }
 0x174   : > { %609 = vst.msk [vmem:[#allocation2 + $0x14] sm:$0xf] %vm603_vm0, %v20727_v0  ;;  %610 = vst.msk [vmem:[#allocation2 + $0x18] sm:$0xf] %vm603_vm0, %v20727_v0  ;;  %v2406_v6 = vld [vmem:[#allocation10 + $0xc] sm:$0x3] }
 0x175   : > { %612 = vst.msk [vmem:[#allocation2 + $0x1c] sm:$0x1] %vm611_vm1, %v20727_v0  ;;  %620 = vst.msk [vmem:[#allocation2 + $0x3c] sm:$0x1] %vm611_vm1, %v20727_v0  ;;  %19938 = vmatprep.subr.msk.bf16.mxu1 %vm1248_vm2, %v2406_v6  ;;  %v2444_v7 = vsel %vm1248_vm2, %v2406_v6, 0  ;;  %17834 = vmatmul.mubr.msk.bf16.vlgmr.msra.gmra.mrb[0].mxu0 %vm1199_vm3, %v20129_v4  ;;  %v20131_v13 = vld [vmem:[%s21150_s24 + $0x18] sm:$0xff]  }
 0x176   : > { %613 = vst.msk [vmem:[#allocation2 + $0x20] sm:$0xf] %vm603_vm0, %v20727_v0  ;;  %614 = vst.msk [vmem:[#allocation2 + $0x24] sm:$0xf] %vm603_vm0, %v20727_v0  ;;  %v1033_v8 = vld [vmem:[%s21150_s24 + $0x30] sm:$0xf]  ;;  %17934 = vmatpush3.bf16.msra.mxu1 %v2444_v7  ;;  %17837 = vmatprep.mubr.msk.bf16.mxu0 %vm1199_vm3, %v20130_v5 }
 0x177   : > { %615 = vst.msk [vmem:[#allocation2 + $0x28] sm:$0xf] %vm603_vm0, %v20727_v0  ;;  %616 = vst.msk [vmem:[#allocation2 + $0x2c] sm:$0xf] %vm603_vm0, %v20727_v0  ;;  %v1034_v9 = vld [vmem:[%s21150_s24 + $0x34] sm:$0xf] }
 0x178   : > { %617 = vst.msk [vmem:[#allocation2 + $0x30] sm:$0xf] %vm603_vm0, %v20727_v0  ;;  %618 = vst.msk [vmem:[#allocation2 + $0x34] sm:$0xf] %vm603_vm0, %v20727_v0  ;;  %v22010_v10 = vld [vmem:[#allocation10 + $0x2] sm:$0x3] }
 0x179   : > { %619 = vst.msk [vmem:[#allocation2 + $0x38] sm:$0xf] %vm603_vm0, %v20727_v0  ;;  %621 = vst.msk [vmem:[#allocation2 + $0x40] sm:$0xf] %vm603_vm0, %v20727_v0  ;;  %19939 = vmatprep.subr.msk.bf16.mxu1 %vm1248_vm2, %v22010_v10  ;;  %v1035_v11 = vld [vmem:[%s21150_s24 + $0x38] sm:$0xf] }
 0x17a   : > { %622 = vst.msk [vmem:[#allocation2 + $0x44] sm:$0xf] %vm603_vm0, %v20727_v0  ;;  %623 = vst.msk [vmem:[#allocation2 + $0x48] sm:$0xf] %vm603_vm0, %v20727_v0  ;;  %v1036_v12 = vld [vmem:[%s21150_s24 + $0x3c] sm:$0xf] }
 0x17b   : > { %624 = vst.msk [vmem:[#allocation2 + $0x4c] sm:$0xf] %vm603_vm0, %v20727_v0  ;;  %625 = vst.msk [vmem:[#allocation2 + $0x50] sm:$0xf] %vm603_vm0, %v20727_v0  ;;  %vm1579_vm5 = vcmask 1046532   ;;  %v20132_v18 = vld [vmem:[%s21150_s24 + $0x20] sm:$0xff]  }
 0x17c   : > { %626 = vst.msk [vmem:[#allocation2 + $0x54] sm:$0xf] %vm603_vm0, %v20727_v0  ;;  %627 = vst.msk [vmem:[#allocation2 + $0x58] sm:$0xf] %vm603_vm0, %v20727_v0  ;;  %v1037_v16 = vld [vmem:[%s21150_s24 + $0x40] sm:$0xf] }
 0x17d   : > { %628 = vst.msk [vmem:[#allocation2 + $0x5c] sm:$0x1] %vm611_vm1, %v20727_v0  ;;  %636 = vst.msk [vmem:[#allocation2 + $0x7c] sm:$0x1] %vm611_vm1, %v20727_v0  ;;  %v1038_v17 = vld [vmem:[%s21150_s24 + $0x44] sm:$0xf]  ;;  %17838 = vmatmul.mubr.msk.bf16.gmra.mrb[4].mxu0 %vm1199_vm3, %v20131_v13 }
 0x17e   : > { %629 = vst.msk [vmem:[#allocation2 + $0x60] sm:$0xf] %vm603_vm0, %v20727_v0  ;;  %630 = vst.msk [vmem:[#allocation2 + $0x64] sm:$0xf] %vm603_vm0, %v20727_v0  ;;  %v1039_v19 = vld [vmem:[%s21150_s24 + $0x48] sm:$0xf]  ;;  %17841 = vmatprep.mubr.msk.bf16.mxu0 %vm1199_vm3, %v20132_v18 }
 0x17f   : > { %631 = vst.msk [vmem:[#allocation2 + $0x68] sm:$0xf] %vm603_vm0, %v20727_v0  ;;  %632 = vst.msk [vmem:[#allocation2 + $0x6c] sm:$0xf] %vm603_vm0, %v20727_v0  ;;  %v1040_v20 = vld [vmem:[%s21150_s24 + $0x4c] sm:$0xf] }
 0x180   : > { %633 = vst.msk [vmem:[#allocation2 + $0x70] sm:$0xf] %vm603_vm0, %v20727_v0  ;;  %634 = vst.msk [vmem:[#allocation2 + $0x74] sm:$0xf] %vm603_vm0, %v20727_v0  ;;  %v25567_v21 = vmov 0  ;;  %v20133_v36 = vld [vmem:[%s21150_s24 + $0x28] sm:$0xff]  }
 0x181   : > { %635 = vst.msk [vmem:[#allocation2 + $0x78] sm:$0xf] %vm603_vm0, %v20727_v0  ;;  %637 = vst.msk [vmem:[#allocation2 + $0x80] sm:$0xf] %vm603_vm0, %v20727_v0  ;;  %v20134_v38 = vld [vmem:[%s21150_s24 + $0x30] sm:$0xff]   ;;  %v2890_v58 = vsel %vm1248_vm2, %v22010_v10, 0 }
 0x182   : > { %638 = vst.msk [vmem:[#allocation2 + $0x84] sm:$0xf] %vm603_vm0, %v20727_v0  ;;  %639 = vst.msk [vmem:[#allocation2 + $0x88] sm:$0xf] %vm603_vm0, %v20727_v0  ;;  %v1041_v39 = vld [vmem:[%s21150_s24 + $0x50] sm:$0xf] }
 0x183   : > { %640 = vst.msk [vmem:[#allocation2 + $0x8c] sm:$0xf] %vm603_vm0, %v20727_v0  ;;  %641 = vst.msk [vmem:[#allocation2 + $0x90] sm:$0xf] %vm603_vm0, %v20727_v0  ;;  %v1042_v40 = vld [vmem:[%s21150_s24 + $0x54] sm:$0xf] }
 0x184   : > { %642 = vst.msk [vmem:[#allocation2 + $0x94] sm:$0xf] %vm603_vm0, %v20727_v0  ;;  %643 = vst.msk [vmem:[#allocation2 + $0x98] sm:$0xf] %vm603_vm0, %v20727_v0  ;;  %v1043_v55 = vld [vmem:[%s21150_s24 + $0x58] sm:$0xf] }
 0x185   : > { %644 = vst.msk [vmem:[#allocation2 + $0x9c] sm:$0x1] %vm611_vm1, %v20727_v0  ;;  %652 = vst.msk [vmem:[#allocation2 + $0xbc] sm:$0x1] %vm611_vm1, %v20727_v0  ;;  %v1044_v56 = vld [vmem:[%s21150_s24 + $0x5c] sm:$0xf]  ;;  %17842 = vmatmul.mubr.msk.bf16.gmra.mrb[8].mxu0 %vm1199_vm3, %v20133_v36 }
 0x186   : > { %645 = vst.msk [vmem:[#allocation2 + $0xa0] sm:$0xf] %vm603_vm0, %v20727_v0  ;;  %646 = vst.msk [vmem:[#allocation2 + $0xa4] sm:$0xf] %vm603_vm0, %v20727_v0  ;;  %17845 = vmatprep.mubr.msk.bf16.mxu0 %vm1199_vm3, %v20134_v38  ;;  %v1046_v1 = vld [vmem:[%s21150_s24 + $0x64] sm:$0xf] }
 0x187   : > { %647 = vst.msk [vmem:[#allocation2 + $0xa8] sm:$0xf] %vm603_vm0, %v20727_v0  ;;  %648 = vst.msk [vmem:[#allocation2 + $0xac] sm:$0xf] %vm603_vm0, %v20727_v0  ;;  %v1047_v6 = vld [vmem:[%s21150_s24 + $0x68] sm:$0xf] }
 0x188   : > { %649 = vst.msk [vmem:[#allocation2 + $0xb0] sm:$0xf] %vm603_vm0, %v20727_v0  ;;  %650 = vst.msk [vmem:[#allocation2 + $0xb4] sm:$0xf] %vm603_vm0, %v20727_v0  ;;  %v1048_v7 = vld [vmem:[%s21150_s24 + $0x6c] sm:$0xf] }
 0x189   : > { %651 = vst.msk [vmem:[#allocation2 + $0xb8] sm:$0xf] %vm603_vm0, %v20727_v0  ;;  %653 = vst.msk [vmem:[#allocation2 + $0xc0] sm:$0xf] %vm603_vm0, %v20727_v0  ;;  %vm5260_vm7 = vcmask 1045508   ;;  %vm3901_vm9 = vcmask 1040384  }
 0x18a   : > { %654 = vst.msk [vmem:[#allocation2 + $0xc4] sm:$0xf] %vm603_vm0, %v20727_v0  ;;  %655 = vst.msk [vmem:[#allocation2 + $0xc8] sm:$0xf] %vm603_vm0, %v20727_v0  ;;  %vm3902_vm10 = vcmask 1044484   ;;  %s16164_s23 = sshll.u32 %s21146_s14, 8 }
 0x18b   : > { %656 = vst.msk [vmem:[#allocation2 + $0xcc] sm:$0xf] %vm603_vm0, %v20727_v0  ;;  %657 = vst.msk [vmem:[#allocation2 + $0xd0] sm:$0xf] %vm603_vm0, %v20727_v0  ;;  %s25305_s30 = scalar_lea.vmem [#allocation22], %s16164_s23  ;;  %s25737_s4 = sld [smem:[#allocation31_spill]] }
 0x18c   : > { %658 = vst.msk [vmem:[#allocation2 + $0xd4] sm:$0xf] %vm603_vm0, %v20727_v0  ;;  %659 = vst.msk [vmem:[#allocation2 + $0xd8] sm:$0xf] %vm603_vm0, %v20727_v0  ;;  %s15940_s12 = sshll.u32 %s25305_s30, 4  ;;  %s25738_s11 = sld [smem:[#allocation71_spill]]  ;;  %s25427_s12 = int_to_ptr.vmem [resolvable:$true] %s15940_s12 }
 0x18d   : > { %660 = vst.msk [vmem:[#allocation2 + $0xdc] sm:$0x1] %vm611_vm1, %v20727_v0  ;;  %668 = vst.msk [vmem:[#allocation2 + $0xfc] sm:$0x1] %vm611_vm1, %v20727_v0  ;;  %s15927_s15 = scalar_lea.sflag [#allocation6], %s21146_s14  ;;  %s20604_s7 = scalar_lea.vmem %s25427_s12, 4096 }
 0x18e   : > { %661 = vst.msk [vmem:[#allocation2 + $0xe0] sm:$0xf] %vm603_vm0, %v20727_v0  ;;  %662 = vst.msk [vmem:[#allocation2 + $0xe4] sm:$0xf] %vm603_vm0, %v20727_v0  ;;  %p20605_p11 = scmp.ne.s32.totalorder %s25427_s12, %s20604_s7  ;;  %p25739_p12 = scmp.ne.s32.totalorder %s25547_s3, 0 }
 0x18f   : > { %663 = vst.msk [vmem:[#allocation2 + $0xe8] sm:$0xf] %vm603_vm0, %v20727_v0  ;;  %664 = vst.msk [vmem:[#allocation2 + $0xec] sm:$0xf] %vm603_vm0, %v20727_v0  ;;  %s20728_s2 = smov [#allocation22]  }
 0x190   : > { %665 = vst.msk [vmem:[#allocation2 + $0xf0] sm:$0xf] %vm603_vm0, %v20727_v0  ;;  %666 = vst.msk [vmem:[#allocation2 + $0xf4] sm:$0xf] %vm603_vm0, %v20727_v0  ;;  %p20606_p4 = pnand %p20605_p11, %p25739_p12  ;;  %s20608_s20 = sshll.u32 %s20728_s2, 4  ;;  %s20609_s20 = int_to_ptr.vmem [resolvable:$false] %s20608_s20 }
 0x191   : > { %667 = vst.msk [vmem:[#allocation2 + $0xf8] sm:$0xf] %vm603_vm0, %v20727_v0  ;;  %669 = vst.msk [vmem:[#allocation2 + $0x100] sm:$0xf] %vm603_vm0, %v20727_v0  ;;  %s17258_s26 = sshll.u32 %s25737_s4, 12  ;;  %p20611_p5 = scmp.lt.s32.totalorder %s25427_s12, %s20609_s20 }
 0x192   : > { %670 = vst.msk [vmem:[#allocation2 + $0x104] sm:$0xf] %vm603_vm0, %v20727_v0  ;;  %671 = vst.msk [vmem:[#allocation2 + $0x108] sm:$0xf] %vm603_vm0, %v20727_v0  ;;  %s25425_s25 = scalar_lea.hbm %s25738_s11, %s17258_s26  ;;  %p20607_p6 = pneg %p20606_p4 }
 0x193   : > { %672 = vst.msk [vmem:[#allocation2 + $0x10c] sm:$0xf] %vm603_vm0, %v20727_v0  ;;  %673 = vst.msk [vmem:[#allocation2 + $0x110] sm:$0xf] %vm603_vm0, %v20727_v0 }
 0x194   : > { %674 = vst.msk [vmem:[#allocation2 + $0x114] sm:$0xf] %vm603_vm0, %v20727_v0  ;;  %675 = vst.msk [vmem:[#allocation2 + $0x118] sm:$0xf] %vm603_vm0, %v20727_v0 }
 0x195   : > { %676 = vst.msk [vmem:[#allocation2 + $0x11c] sm:$0x1] %vm611_vm1, %v20727_v0  ;;  %684 = vst.msk [vmem:[#allocation2 + $0x13c] sm:$0x1] %vm611_vm1, %v20727_v0 }
 0x196   : > { %677 = vst.msk [vmem:[#allocation2 + $0x120] sm:$0xf] %vm603_vm0, %v20727_v0  ;;  %678 = vst.msk [vmem:[#allocation2 + $0x124] sm:$0xf] %vm603_vm0, %v20727_v0 }
 0x197   : > { %679 = vst.msk [vmem:[#allocation2 + $0x128] sm:$0xf] %vm603_vm0, %v20727_v0  ;;  %680 = vst.msk [vmem:[#allocation2 + $0x12c] sm:$0xf] %vm603_vm0, %v20727_v0 }
 0x198   : > { %681 = vst.msk [vmem:[#allocation2 + $0x130] sm:$0xf] %vm603_vm0, %v20727_v0  ;;  %682 = vst.msk [vmem:[#allocation2 + $0x134] sm:$0xf] %vm603_vm0, %v20727_v0 }
 0x199   : > { %683 = vst.msk [vmem:[#allocation2 + $0x138] sm:$0xf] %vm603_vm0, %v20727_v0  ;;  %685 = vst.msk [vmem:[#allocation2 + $0x140] sm:$0xf] %vm603_vm0, %v20727_v0 }
 0x19a   : > { %686 = vst.msk [vmem:[#allocation2 + $0x144] sm:$0xf] %vm603_vm0, %v20727_v0  ;;  %687 = vst.msk [vmem:[#allocation2 + $0x148] sm:$0xf] %vm603_vm0, %v20727_v0 }
 0x19b   : > { %688 = vst.msk [vmem:[#allocation2 + $0x14c] sm:$0xf] %vm603_vm0, %v20727_v0  ;;  %689 = vst.msk [vmem:[#allocation2 + $0x150] sm:$0xf] %vm603_vm0, %v20727_v0 }
 0x19c   : > { %690 = vst.msk [vmem:[#allocation2 + $0x154] sm:$0xf] %vm603_vm0, %v20727_v0  ;;  %691 = vst.msk [vmem:[#allocation2 + $0x158] sm:$0xf] %vm603_vm0, %v20727_v0 }
 0x19d   : > { %692 = vst.msk [vmem:[#allocation2 + $0x15c] sm:$0x1] %vm611_vm1, %v20727_v0  ;;  %700 = vst.msk [vmem:[#allocation2 + $0x17c] sm:$0x1] %vm611_vm1, %v20727_v0 }
 0x19e   : > { %693 = vst.msk [vmem:[#allocation2 + $0x160] sm:$0xf] %vm603_vm0, %v20727_v0  ;;  %694 = vst.msk [vmem:[#allocation2 + $0x164] sm:$0xf] %vm603_vm0, %v20727_v0 }
 0x19f   : > { %695 = vst.msk [vmem:[#allocation2 + $0x168] sm:$0xf] %vm603_vm0, %v20727_v0  ;;  %696 = vst.msk [vmem:[#allocation2 + $0x16c] sm:$0xf] %vm603_vm0, %v20727_v0 }
 0x1a0   : > { %697 = vst.msk [vmem:[#allocation2 + $0x170] sm:$0xf] %vm603_vm0, %v20727_v0  ;;  %698 = vst.msk [vmem:[#allocation2 + $0x174] sm:$0xf] %vm603_vm0, %v20727_v0 }
 0x1a1   : > { %699 = vst.msk [vmem:[#allocation2 + $0x178] sm:$0xf] %vm603_vm0, %v20727_v0  ;;  %701 = vst.msk [vmem:[#allocation2 + $0x180] sm:$0xf] %vm603_vm0, %v20727_v0 }
 0x1a2   : > { %702 = vst.msk [vmem:[#allocation2 + $0x184] sm:$0xf] %vm603_vm0, %v20727_v0  ;;  %703 = vst.msk [vmem:[#allocation2 + $0x188] sm:$0xf] %vm603_vm0, %v20727_v0 }
 0x1a3   : > { %704 = vst.msk [vmem:[#allocation2 + $0x18c] sm:$0xf] %vm603_vm0, %v20727_v0  ;;  %705 = vst.msk [vmem:[#allocation2 + $0x190] sm:$0xf] %vm603_vm0, %v20727_v0 }
 0x1a4   : > { %706 = vst.msk [vmem:[#allocation2 + $0x194] sm:$0xf] %vm603_vm0, %v20727_v0  ;;  %707 = vst.msk [vmem:[#allocation2 + $0x198] sm:$0xf] %vm603_vm0, %v20727_v0 }
 0x1a5   : > { %708 = vst.msk [vmem:[#allocation2 + $0x19c] sm:$0x1] %vm611_vm1, %v20727_v0  ;;  %716 = vst.msk [vmem:[#allocation2 + $0x1bc] sm:$0x1] %vm611_vm1, %v20727_v0 }
 0x1a6   : > { %709 = vst.msk [vmem:[#allocation2 + $0x1a0] sm:$0xf] %vm603_vm0, %v20727_v0  ;;  %710 = vst.msk [vmem:[#allocation2 + $0x1a4] sm:$0xf] %vm603_vm0, %v20727_v0 }
 0x1a7   : > { %711 = vst.msk [vmem:[#allocation2 + $0x1a8] sm:$0xf] %vm603_vm0, %v20727_v0  ;;  %712 = vst.msk [vmem:[#allocation2 + $0x1ac] sm:$0xf] %vm603_vm0, %v20727_v0 }
 0x1a8   : > { %713 = vst.msk [vmem:[#allocation2 + $0x1b0] sm:$0xf] %vm603_vm0, %v20727_v0  ;;  %714 = vst.msk [vmem:[#allocation2 + $0x1b4] sm:$0xf] %vm603_vm0, %v20727_v0 }
 0x1a9   : > { %715 = vst.msk [vmem:[#allocation2 + $0x1b8] sm:$0xf] %vm603_vm0, %v20727_v0  ;;  %717 = vst.msk [vmem:[#allocation2 + $0x1c0] sm:$0xf] %vm603_vm0, %v20727_v0 }
 0x1aa   : > { %718 = vst.msk [vmem:[#allocation2 + $0x1c4] sm:$0xf] %vm603_vm0, %v20727_v0  ;;  %719 = vst.msk [vmem:[#allocation2 + $0x1c8] sm:$0xf] %vm603_vm0, %v20727_v0 }
 0x1ab   : > { %720 = vst.msk [vmem:[#allocation2 + $0x1cc] sm:$0xf] %vm603_vm0, %v20727_v0  ;;  %721 = vst.msk [vmem:[#allocation2 + $0x1d0] sm:$0xf] %vm603_vm0, %v20727_v0 }
 0x1ac   : > { %722 = vst.msk [vmem:[#allocation2 + $0x1d4] sm:$0xf] %vm603_vm0, %v20727_v0  ;;  %723 = vst.msk [vmem:[#allocation2 + $0x1d8] sm:$0xf] %vm603_vm0, %v20727_v0 }
 0x1ad   : > { %724 = vst.msk [vmem:[#allocation2 + $0x1dc] sm:$0x1] %vm611_vm1, %v20727_v0  ;;  %732 = vst.msk [vmem:[#allocation2 + $0x1fc] sm:$0x1] %vm611_vm1, %v20727_v0 }
 0x1ae   : > { %725 = vst.msk [vmem:[#allocation2 + $0x1e0] sm:$0xf] %vm603_vm0, %v20727_v0  ;;  %726 = vst.msk [vmem:[#allocation2 + $0x1e4] sm:$0xf] %vm603_vm0, %v20727_v0 }
 0x1af   : > { %727 = vst.msk [vmem:[#allocation2 + $0x1e8] sm:$0xf] %vm603_vm0, %v20727_v0  ;;  %728 = vst.msk [vmem:[#allocation2 + $0x1ec] sm:$0xf] %vm603_vm0, %v20727_v0 }
 0x1b0   : > { %729 = vst.msk [vmem:[#allocation2 + $0x1f0] sm:$0xf] %vm603_vm0, %v20727_v0  ;;  %730 = vst.msk [vmem:[#allocation2 + $0x1f4] sm:$0xf] %vm603_vm0, %v20727_v0 }
 0x1b1   : > { %731 = vst.msk [vmem:[#allocation2 + $0x1f8] sm:$0xf] %vm603_vm0, %v20727_v0  ;;  %734 = vst.msk [vmem:[#allocation2 + $0x204] sm:$0xf] %vm603_vm0, %v20727_v0 }
 0x1b2   : > { %735 = vst.msk [vmem:[#allocation2 + $0x208] sm:$0xf] %vm603_vm0, %v20727_v0  ;;  %736 = vst.msk [vmem:[#allocation2 + $0x20c] sm:$0xf] %vm603_vm0, %v20727_v0 }
 0x1b3   : > { %737 = vst.msk [vmem:[#allocation2 + $0x210] sm:$0xf] %vm603_vm0, %v20727_v0  ;;  %738 = vst.msk [vmem:[#allocation2 + $0x214] sm:$0xf] %vm603_vm0, %v20727_v0 }
 0x1b4   : > { %739 = vst.msk [vmem:[#allocation2 + $0x218] sm:$0xf] %vm603_vm0, %v20727_v0  ;;  %742 = vst.msk [vmem:[#allocation2 + $0x224] sm:$0xf] %vm603_vm0, %v20727_v0 }
 0x1b5   : > { %743 = vst.msk [vmem:[#allocation2 + $0x228] sm:$0xf] %vm603_vm0, %v20727_v0  ;;  %744 = vst.msk [vmem:[#allocation2 + $0x22c] sm:$0xf] %vm603_vm0, %v20727_v0 }
 0x1b6   : > { %745 = vst.msk [vmem:[#allocation2 + $0x230] sm:$0xf] %vm603_vm0, %v20727_v0  ;;  %746 = vst.msk [vmem:[#allocation2 + $0x234] sm:$0xf] %vm603_vm0, %v20727_v0 }
 0x1b7   : > { %747 = vst.msk [vmem:[#allocation2 + $0x238] sm:$0xf] %vm603_vm0, %v20727_v0  ;;  %749 = vst.msk [vmem:[#allocation2 + $0x240] sm:$0xf] %vm603_vm0, %v20727_v0 }
 0x1b8   : > { %750 = vst.msk [vmem:[#allocation2 + $0x244] sm:$0xf] %vm603_vm0, %v20727_v0  ;;  %751 = vst.msk [vmem:[#allocation2 + $0x248] sm:$0xf] %vm603_vm0, %v20727_v0 }
 0x1b9   : > { %752 = vst.msk [vmem:[#allocation2 + $0x24c] sm:$0xf] %vm603_vm0, %v20727_v0  ;;  %753 = vst.msk [vmem:[#allocation2 + $0x250] sm:$0xf] %vm603_vm0, %v20727_v0 }
 0x1ba   : > { %754 = vst.msk [vmem:[#allocation2 + $0x254] sm:$0xf] %vm603_vm0, %v20727_v0  ;;  %755 = vst.msk [vmem:[#allocation2 + $0x258] sm:$0xf] %vm603_vm0, %v20727_v0 }
 0x1bb   : > { %756 = vst.msk [vmem:[#allocation2 + $0x25c] sm:$0x1] %vm611_vm1, %v20727_v0  ;;  %764 = vst.msk [vmem:[#allocation2 + $0x27c] sm:$0x1] %vm611_vm1, %v20727_v0 }
 0x1bc   : > { %757 = vst.msk [vmem:[#allocation2 + $0x260] sm:$0xf] %vm603_vm0, %v20727_v0  ;;  %758 = vst.msk [vmem:[#allocation2 + $0x264] sm:$0xf] %vm603_vm0, %v20727_v0 }
 0x1bd   : > { %759 = vst.msk [vmem:[#allocation2 + $0x268] sm:$0xf] %vm603_vm0, %v20727_v0  ;;  %760 = vst.msk [vmem:[#allocation2 + $0x26c] sm:$0xf] %vm603_vm0, %v20727_v0 }
 0x1be   : > { %761 = vst.msk [vmem:[#allocation2 + $0x270] sm:$0xf] %vm603_vm0, %v20727_v0  ;;  %762 = vst.msk [vmem:[#allocation2 + $0x274] sm:$0xf] %vm603_vm0, %v20727_v0 }
 0x1bf   : > { %763 = vst.msk [vmem:[#allocation2 + $0x278] sm:$0xf] %vm603_vm0, %v20727_v0  ;;  %765 = vst.msk [vmem:[#allocation2 + $0x280] sm:$0xf] %vm603_vm0, %v20727_v0 }
 0x1c0   : > { %766 = vst.msk [vmem:[#allocation2 + $0x284] sm:$0xf] %vm603_vm0, %v20727_v0  ;;  %767 = vst.msk [vmem:[#allocation2 + $0x288] sm:$0xf] %vm603_vm0, %v20727_v0 }
 0x1c1   : > { %768 = vst.msk [vmem:[#allocation2 + $0x28c] sm:$0xf] %vm603_vm0, %v20727_v0  ;;  %769 = vst.msk [vmem:[#allocation2 + $0x290] sm:$0xf] %vm603_vm0, %v20727_v0 }
 0x1c2   : > { %770 = vst.msk [vmem:[#allocation2 + $0x294] sm:$0xf] %vm603_vm0, %v20727_v0  ;;  %771 = vst.msk [vmem:[#allocation2 + $0x298] sm:$0xf] %vm603_vm0, %v20727_v0 }
 0x1c3   : > { %772 = vst.msk [vmem:[#allocation2 + $0x29c] sm:$0x1] %vm611_vm1, %v20727_v0  ;;  %780 = vst.msk [vmem:[#allocation2 + $0x2bc] sm:$0x1] %vm611_vm1, %v20727_v0 }
 0x1c4   : > { %773 = vst.msk [vmem:[#allocation2 + $0x2a0] sm:$0xf] %vm603_vm0, %v20727_v0  ;;  %774 = vst.msk [vmem:[#allocation2 + $0x2a4] sm:$0xf] %vm603_vm0, %v20727_v0 }
 0x1c5   : > { %775 = vst.msk [vmem:[#allocation2 + $0x2a8] sm:$0xf] %vm603_vm0, %v20727_v0  ;;  %776 = vst.msk [vmem:[#allocation2 + $0x2ac] sm:$0xf] %vm603_vm0, %v20727_v0 }
 0x1c6   : > { %777 = vst.msk [vmem:[#allocation2 + $0x2b0] sm:$0xf] %vm603_vm0, %v20727_v0  ;;  %778 = vst.msk [vmem:[#allocation2 + $0x2b4] sm:$0xf] %vm603_vm0, %v20727_v0 }
 0x1c7   : > { %779 = vst.msk [vmem:[#allocation2 + $0x2b8] sm:$0xf] %vm603_vm0, %v20727_v0  ;;  %781 = vst.msk [vmem:[#allocation2 + $0x2c0] sm:$0xf] %vm603_vm0, %v20727_v0 }
 0x1c8   : > { %782 = vst.msk [vmem:[#allocation2 + $0x2c4] sm:$0xf] %vm603_vm0, %v20727_v0  ;;  %783 = vst.msk [vmem:[#allocation2 + $0x2c8] sm:$0xf] %vm603_vm0, %v20727_v0 }
 0x1c9   : > { %784 = vst.msk [vmem:[#allocation2 + $0x2cc] sm:$0xf] %vm603_vm0, %v20727_v0  ;;  %785 = vst.msk [vmem:[#allocation2 + $0x2d0] sm:$0xf] %vm603_vm0, %v20727_v0 }
 0x1ca   : > { %786 = vst.msk [vmem:[#allocation2 + $0x2d4] sm:$0xf] %vm603_vm0, %v20727_v0  ;;  %787 = vst.msk [vmem:[#allocation2 + $0x2d8] sm:$0xf] %vm603_vm0, %v20727_v0 }
 0x1cb   : > { %788 = vst.msk [vmem:[#allocation2 + $0x2dc] sm:$0x1] %vm611_vm1, %v20727_v0  ;;  %796 = vst.msk [vmem:[#allocation2 + $0x2fc] sm:$0x1] %vm611_vm1, %v20727_v0 }
 0x1cc   : > { %789 = vst.msk [vmem:[#allocation2 + $0x2e0] sm:$0xf] %vm603_vm0, %v20727_v0  ;;  %790 = vst.msk [vmem:[#allocation2 + $0x2e4] sm:$0xf] %vm603_vm0, %v20727_v0 }
 0x1cd   : > { %791 = vst.msk [vmem:[#allocation2 + $0x2e8] sm:$0xf] %vm603_vm0, %v20727_v0  ;;  %792 = vst.msk [vmem:[#allocation2 + $0x2ec] sm:$0xf] %vm603_vm0, %v20727_v0 }
 0x1ce   : > { %793 = vst.msk [vmem:[#allocation2 + $0x2f0] sm:$0xf] %vm603_vm0, %v20727_v0  ;;  %794 = vst.msk [vmem:[#allocation2 + $0x2f4] sm:$0xf] %vm603_vm0, %v20727_v0 }
 0x1cf   : > { %795 = vst.msk [vmem:[#allocation2 + $0x2f8] sm:$0xf] %vm603_vm0, %v20727_v0  ;;  %797 = vst.msk [vmem:[#allocation2 + $0x300] sm:$0xf] %vm603_vm0, %v20727_v0 }
 0x1d0   : > { %798 = vst.msk [vmem:[#allocation2 + $0x304] sm:$0xf] %vm603_vm0, %v20727_v0  ;;  %799 = vst.msk [vmem:[#allocation2 + $0x308] sm:$0xf] %vm603_vm0, %v20727_v0 }
 0x1d1   : > { %800 = vst.msk [vmem:[#allocation2 + $0x30c] sm:$0xf] %vm603_vm0, %v20727_v0  ;;  %801 = vst.msk [vmem:[#allocation2 + $0x310] sm:$0xf] %vm603_vm0, %v20727_v0 }
 0x1d2   : > { %802 = vst.msk [vmem:[#allocation2 + $0x314] sm:$0xf] %vm603_vm0, %v20727_v0  ;;  %803 = vst.msk [vmem:[#allocation2 + $0x318] sm:$0xf] %vm603_vm0, %v20727_v0 }
 0x1d3   : > { %804 = vst.msk [vmem:[#allocation2 + $0x31c] sm:$0x1] %vm611_vm1, %v20727_v0  ;;  %812 = vst.msk [vmem:[#allocation2 + $0x33c] sm:$0x1] %vm611_vm1, %v20727_v0 }
 0x1d4   : > { %805 = vst.msk [vmem:[#allocation2 + $0x320] sm:$0xf] %vm603_vm0, %v20727_v0  ;;  %806 = vst.msk [vmem:[#allocation2 + $0x324] sm:$0xf] %vm603_vm0, %v20727_v0 }
 0x1d5   : > { %807 = vst.msk [vmem:[#allocation2 + $0x328] sm:$0xf] %vm603_vm0, %v20727_v0  ;;  %808 = vst.msk [vmem:[#allocation2 + $0x32c] sm:$0xf] %vm603_vm0, %v20727_v0 }
 0x1d6   : > { %809 = vst.msk [vmem:[#allocation2 + $0x330] sm:$0xf] %vm603_vm0, %v20727_v0  ;;  %810 = vst.msk [vmem:[#allocation2 + $0x334] sm:$0xf] %vm603_vm0, %v20727_v0 }
 0x1d7   : > { %811 = vst.msk [vmem:[#allocation2 + $0x338] sm:$0xf] %vm603_vm0, %v20727_v0  ;;  %813 = vst.msk [vmem:[#allocation2 + $0x340] sm:$0xf] %vm603_vm0, %v20727_v0  ;;  %v1482_v14 = vld [vmem:[#allocation2 + $0x308] sm:$0xe] }
 0x1d8   : > { %814 = vst.msk [vmem:[#allocation2 + $0x344] sm:$0xf] %vm603_vm0, %v20727_v0  ;;  %815 = vst.msk [vmem:[#allocation2 + $0x348] sm:$0xf] %vm603_vm0, %v20727_v0  ;;  %v16209_v22 = vrot.slane %v1482_v14, 9  ;;  %v20136_v14 = vld [vmem:[%s21150_s24 + $0x40] sm:$0xff]  }
 0x1d9   : > { %816 = vst.msk [vmem:[#allocation2 + $0x34c] sm:$0xf] %vm603_vm0, %v20727_v0  ;;  %817 = vst.msk [vmem:[#allocation2 + $0x350] sm:$0xf] %vm603_vm0, %v20727_v0 }
 0x1da   : > { %818 = vst.msk [vmem:[#allocation2 + $0x354] sm:$0xf] %vm603_vm0, %v20727_v0  ;;  %819 = vst.msk [vmem:[#allocation2 + $0x358] sm:$0xf] %vm603_vm0, %v20727_v0 }
 0x1db   : > { %820 = vst.msk [vmem:[#allocation2 + $0x35c] sm:$0x1] %vm611_vm1, %v20727_v0  ;;  %828 = vst.msk [vmem:[#allocation2 + $0x37c] sm:$0x1] %vm611_vm1, %v20727_v0 }
 0x1dc   : > { %821 = vst.msk [vmem:[#allocation2 + $0x360] sm:$0xf] %vm603_vm0, %v20727_v0  ;;  %822 = vst.msk [vmem:[#allocation2 + $0x364] sm:$0xf] %vm603_vm0, %v20727_v0  ;;  %v1485_v15 = vld [vmem:[#allocation2 + $0x328] sm:$0xe] }
 0x1dd   : > { %823 = vst.msk [vmem:[#allocation2 + $0x368] sm:$0xf] %vm603_vm0, %v20727_v0  ;;  %824 = vst.msk [vmem:[#allocation2 + $0x36c] sm:$0xf] %vm603_vm0, %v20727_v0  ;;  %v16210_v28 = vrot.slane %v1485_v15, 9 }
 0x1de   : > { %825 = vst.msk [vmem:[#allocation2 + $0x370] sm:$0xf] %vm603_vm0, %v20727_v0  ;;  %826 = vst.msk [vmem:[#allocation2 + $0x374] sm:$0xf] %vm603_vm0, %v20727_v0 }
 0x1df   : > { %827 = vst.msk [vmem:[#allocation2 + $0x378] sm:$0xf] %vm603_vm0, %v20727_v0  ;;  %829 = vst.msk [vmem:[#allocation2 + $0x380] sm:$0xf] %vm603_vm0, %v20727_v0  ;;  %v1488_v23 = vld [vmem:[#allocation2 + $0x348] sm:$0xe] }
 0x1e0   : > { %830 = vst.msk [vmem:[#allocation2 + $0x384] sm:$0xf] %vm603_vm0, %v20727_v0  ;;  %831 = vst.msk [vmem:[#allocation2 + $0x388] sm:$0xf] %vm603_vm0, %v20727_v0  ;;  %v16211_v37 = vrot.slane %v1488_v23, 9 }
 0x1e1   : > { %832 = vst.msk [vmem:[#allocation2 + $0x38c] sm:$0xf] %vm603_vm0, %v20727_v0  ;;  %833 = vst.msk [vmem:[#allocation2 + $0x390] sm:$0xf] %vm603_vm0, %v20727_v0 }
 0x1e2   : > { %834 = vst.msk [vmem:[#allocation2 + $0x394] sm:$0xf] %vm603_vm0, %v20727_v0  ;;  %835 = vst.msk [vmem:[#allocation2 + $0x398] sm:$0xf] %vm603_vm0, %v20727_v0 }
 0x1e3   : > { %836 = vst.msk [vmem:[#allocation2 + $0x39c] sm:$0x1] %vm611_vm1, %v20727_v0  ;;  %844 = vst.msk [vmem:[#allocation2 + $0x3bc] sm:$0x1] %vm611_vm1, %v20727_v0 }
 0x1e4   : > { %837 = vst.msk [vmem:[#allocation2 + $0x3a0] sm:$0xf] %vm603_vm0, %v20727_v0  ;;  %838 = vst.msk [vmem:[#allocation2 + $0x3a4] sm:$0xf] %vm603_vm0, %v20727_v0  ;;  %v1491_v25 = vld [vmem:[#allocation2 + $0x368] sm:$0xe] }
 0x1e5   : > { %839 = vst.msk [vmem:[#allocation2 + $0x3a8] sm:$0xf] %vm603_vm0, %v20727_v0  ;;  %840 = vst.msk [vmem:[#allocation2 + $0x3ac] sm:$0xf] %vm603_vm0, %v20727_v0  ;;  %v16212_v46 = vrot.slane %v1491_v25, 9 }
 0x1e6   : > { %841 = vst.msk [vmem:[#allocation2 + $0x3b0] sm:$0xf] %vm603_vm0, %v20727_v0  ;;  %842 = vst.msk [vmem:[#allocation2 + $0x3b4] sm:$0xf] %vm603_vm0, %v20727_v0  ;;  %v1049_v25 = vld [vmem:[%s21150_s24 + $0x70] sm:$0xf] }
 0x1e7   : > { %843 = vst.msk [vmem:[#allocation2 + $0x3b8] sm:$0xf] %vm603_vm0, %v20727_v0  ;;  %845 = vst.msk [vmem:[#allocation2 + $0x3c0] sm:$0xf] %vm603_vm0, %v20727_v0  ;;  %v1494_v61 = vld [vmem:[#allocation2 + $0x388] sm:$0xe] }
 0x1e8   : > { %846 = vst.msk [vmem:[#allocation2 + $0x3c4] sm:$0xf] %vm603_vm0, %v20727_v0  ;;  %847 = vst.msk [vmem:[#allocation2 + $0x3c8] sm:$0xf] %vm603_vm0, %v20727_v0  ;;  %v16245_v5 = vrot.slane %v1494_v61, 9 }
 0x1e9   : > { %848 = vst.msk [vmem:[#allocation2 + $0x3cc] sm:$0xf] %vm603_vm0, %v20727_v0  ;;  %849 = vst.msk [vmem:[#allocation2 + $0x3d0] sm:$0xf] %vm603_vm0, %v20727_v0 }
 0x1ea   : > { %850 = vst.msk [vmem:[#allocation2 + $0x3d4] sm:$0xf] %vm603_vm0, %v20727_v0  ;;  %851 = vst.msk [vmem:[#allocation2 + $0x3d8] sm:$0xf] %vm603_vm0, %v20727_v0 }
 0x1eb   : > { %852 = vst.msk [vmem:[#allocation2 + $0x3dc] sm:$0x1] %vm611_vm1, %v20727_v0  ;;  %860 = vst.msk [vmem:[#allocation2 + $0x3fc] sm:$0x1] %vm611_vm1, %v20727_v0 }
 0x1ec   : > { %853 = vst.msk [vmem:[#allocation2 + $0x3e0] sm:$0xf] %vm603_vm0, %v20727_v0  ;;  %854 = vst.msk [vmem:[#allocation2 + $0x3e4] sm:$0xf] %vm603_vm0, %v20727_v0  ;;  %v1497_v10 = vld [vmem:[#allocation2 + $0x3a8] sm:$0xe] }
 0x1ed   : > { %855 = vst.msk [vmem:[#allocation2 + $0x3e8] sm:$0xf] %vm603_vm0, %v20727_v0  ;;  %856 = vst.msk [vmem:[#allocation2 + $0x3ec] sm:$0xf] %vm603_vm0, %v20727_v0 }
 0x1ee   : > { %857 = vst.msk [vmem:[#allocation2 + $0x3f0] sm:$0xf] %vm603_vm0, %v20727_v0  ;;  %858 = vst.msk [vmem:[#allocation2 + $0x3f4] sm:$0xf] %vm603_vm0, %v20727_v0 }
 0x1ef   : > { %859 = vst.msk [vmem:[#allocation2 + $0x3f8] sm:$0xf] %vm603_vm0, %v20727_v0  ;;  %861 = vst.msk [vmem:[#allocation2 + $0x400] sm:$0xf] %vm603_vm0, %v20727_v0 }
 0x1f0   : > { %862 = vst.msk [vmem:[#allocation2 + $0x404] sm:$0xf] %vm603_vm0, %v20727_v0  ;;  %863 = vst.msk [vmem:[#allocation2 + $0x408] sm:$0xf] %vm603_vm0, %v20727_v0 }
 0x1f1   : > { %864 = vst.msk [vmem:[#allocation2 + $0x40c] sm:$0xf] %vm603_vm0, %v20727_v0  ;;  %865 = vst.msk [vmem:[#allocation2 + $0x410] sm:$0xf] %vm603_vm0, %v20727_v0 }
 0x1f2   : > { %866 = vst.msk [vmem:[#allocation2 + $0x414] sm:$0xf] %vm603_vm0, %v20727_v0  ;;  %867 = vst.msk [vmem:[#allocation2 + $0x418] sm:$0xf] %vm603_vm0, %v20727_v0 }
 0x1f3   : > { %868 = vst.msk [vmem:[#allocation2 + $0x41c] sm:$0x1] %vm611_vm1, %v20727_v0  ;;  %876 = vst.msk [vmem:[#allocation2 + $0x43c] sm:$0x1] %vm611_vm1, %v20727_v0 }
 0x1f4   : > { %869 = vst.msk [vmem:[#allocation2 + $0x420] sm:$0xf] %vm603_vm0, %v20727_v0  ;;  %870 = vst.msk [vmem:[#allocation2 + $0x424] sm:$0xf] %vm603_vm0, %v20727_v0 }
 0x1f5   : > { %871 = vst.msk [vmem:[#allocation2 + $0x428] sm:$0xf] %vm603_vm0, %v20727_v0  ;;  %872 = vst.msk [vmem:[#allocation2 + $0x42c] sm:$0xf] %vm603_vm0, %v20727_v0 }
 0x1f6   : > { %873 = vst.msk [vmem:[#allocation2 + $0x430] sm:$0xf] %vm603_vm0, %v20727_v0  ;;  %874 = vst.msk [vmem:[#allocation2 + $0x434] sm:$0xf] %vm603_vm0, %v20727_v0 }
 0x1f7   : > { %875 = vst.msk [vmem:[#allocation2 + $0x438] sm:$0xf] %vm603_vm0, %v20727_v0  ;;  %878 = vst.msk [vmem:[#allocation2 + $0x444] sm:$0xf] %vm603_vm0, %v20727_v0 }
 0x1f8   : > { %879 = vst.msk [vmem:[#allocation2 + $0x448] sm:$0xf] %vm603_vm0, %v20727_v0  ;;  %880 = vst.msk [vmem:[#allocation2 + $0x44c] sm:$0xf] %vm603_vm0, %v20727_v0 }
 0x1f9   : > { %881 = vst.msk [vmem:[#allocation2 + $0x450] sm:$0xf] %vm603_vm0, %v20727_v0  ;;  %882 = vst.msk [vmem:[#allocation2 + $0x454] sm:$0xf] %vm603_vm0, %v20727_v0 }
 0x1fa   : > { %883 = vst.msk [vmem:[#allocation2 + $0x458] sm:$0xf] %vm603_vm0, %v20727_v0  ;;  %886 = vst.msk [vmem:[#allocation2 + $0x464] sm:$0xf] %vm603_vm0, %v20727_v0 }
 0x1fb   : > { %887 = vst.msk [vmem:[#allocation2 + $0x468] sm:$0xf] %vm603_vm0, %v20727_v0  ;;  %888 = vst.msk [vmem:[#allocation2 + $0x46c] sm:$0xf] %vm603_vm0, %v20727_v0 }
 0x1fc   : > { %889 = vst.msk [vmem:[#allocation2 + $0x470] sm:$0xf] %vm603_vm0, %v20727_v0  ;;  %890 = vst.msk [vmem:[#allocation2 + $0x474] sm:$0xf] %vm603_vm0, %v20727_v0 }
 0x1fd   : > { %891 = vst.msk [vmem:[#allocation2 + $0x478] sm:$0xf] %vm603_vm0, %v20727_v0  ;;  %893 = vst.msk [vmem:[#allocation2 + $0x480] sm:$0xf] %vm603_vm0, %v20727_v0 }
 0x1fe   : > { %894 = vst.msk [vmem:[#allocation2 + $0x484] sm:$0xf] %vm603_vm0, %v20727_v0  ;;  %895 = vst.msk [vmem:[#allocation2 + $0x488] sm:$0xf] %vm603_vm0, %v20727_v0 }
 0x1ff   : > { %896 = vst.msk [vmem:[#allocation2 + $0x48c] sm:$0xf] %vm603_vm0, %v20727_v0  ;;  %897 = vst.msk [vmem:[#allocation2 + $0x490] sm:$0xf] %vm603_vm0, %v20727_v0 }
 0x200   : > { %898 = vst.msk [vmem:[#allocation2 + $0x494] sm:$0xf] %vm603_vm0, %v20727_v0  ;;  %899 = vst.msk [vmem:[#allocation2 + $0x498] sm:$0xf] %vm603_vm0, %v20727_v0 }
 0x201   : > { %900 = vst.msk [vmem:[#allocation2 + $0x49c] sm:$0x1] %vm611_vm1, %v20727_v0  ;;  %908 = vst.msk [vmem:[#allocation2 + $0x4bc] sm:$0x1] %vm611_vm1, %v20727_v0 }
 0x202   : > { %901 = vst.msk [vmem:[#allocation2 + $0x4a0] sm:$0xf] %vm603_vm0, %v20727_v0  ;;  %902 = vst.msk [vmem:[#allocation2 + $0x4a4] sm:$0xf] %vm603_vm0, %v20727_v0 }
 0x203   : > { %903 = vst.msk [vmem:[#allocation2 + $0x4a8] sm:$0xf] %vm603_vm0, %v20727_v0  ;;  %904 = vst.msk [vmem:[#allocation2 + $0x4ac] sm:$0xf] %vm603_vm0, %v20727_v0 }
 0x204   : > { %905 = vst.msk [vmem:[#allocation2 + $0x4b0] sm:$0xf] %vm603_vm0, %v20727_v0  ;;  %906 = vst.msk [vmem:[#allocation2 + $0x4b4] sm:$0xf] %vm603_vm0, %v20727_v0 }
 0x205   : > { %907 = vst.msk [vmem:[#allocation2 + $0x4b8] sm:$0xf] %vm603_vm0, %v20727_v0  ;;  %909 = vst.msk [vmem:[#allocation2 + $0x4c0] sm:$0xf] %vm603_vm0, %v20727_v0 }
 0x206   : > { %910 = vst.msk [vmem:[#allocation2 + $0x4c4] sm:$0xf] %vm603_vm0, %v20727_v0  ;;  %911 = vst.msk [vmem:[#allocation2 + $0x4c8] sm:$0xf] %vm603_vm0, %v20727_v0 }
 0x207   : > { %912 = vst.msk [vmem:[#allocation2 + $0x4cc] sm:$0xf] %vm603_vm0, %v20727_v0  ;;  %913 = vst.msk [vmem:[#allocation2 + $0x4d0] sm:$0xf] %vm603_vm0, %v20727_v0 }
 0x208   : > { %914 = vst.msk [vmem:[#allocation2 + $0x4d4] sm:$0xf] %vm603_vm0, %v20727_v0  ;;  %915 = vst.msk [vmem:[#allocation2 + $0x4d8] sm:$0xf] %vm603_vm0, %v20727_v0 }
 0x209   : > { %916 = vst.msk [vmem:[#allocation2 + $0x4dc] sm:$0x1] %vm611_vm1, %v20727_v0  ;;  %924 = vst.msk [vmem:[#allocation2 + $0x4fc] sm:$0x1] %vm611_vm1, %v20727_v0 }
 0x20a   : > { %917 = vst.msk [vmem:[#allocation2 + $0x4e0] sm:$0xf] %vm603_vm0, %v20727_v0  ;;  %918 = vst.msk [vmem:[#allocation2 + $0x4e4] sm:$0xf] %vm603_vm0, %v20727_v0 }
 0x20b   : > { %919 = vst.msk [vmem:[#allocation2 + $0x4e8] sm:$0xf] %vm603_vm0, %v20727_v0  ;;  %920 = vst.msk [vmem:[#allocation2 + $0x4ec] sm:$0xf] %vm603_vm0, %v20727_v0 }
 0x20c   : > { %921 = vst.msk [vmem:[#allocation2 + $0x4f0] sm:$0xf] %vm603_vm0, %v20727_v0  ;;  %922 = vst.msk [vmem:[#allocation2 + $0x4f4] sm:$0xf] %vm603_vm0, %v20727_v0 }
 0x20d   : > { %923 = vst.msk [vmem:[#allocation2 + $0x4f8] sm:$0xf] %vm603_vm0, %v20727_v0  ;;  %925 = vst.msk [vmem:[#allocation2 + $0x500] sm:$0xf] %vm603_vm0, %v20727_v0 }
 0x20e   : > { %926 = vst.msk [vmem:[#allocation2 + $0x504] sm:$0xf] %vm603_vm0, %v20727_v0  ;;  %927 = vst.msk [vmem:[#allocation2 + $0x508] sm:$0xf] %vm603_vm0, %v20727_v0 }
 0x20f   : > { %928 = vst.msk [vmem:[#allocation2 + $0x50c] sm:$0xf] %vm603_vm0, %v20727_v0  ;;  %929 = vst.msk [vmem:[#allocation2 + $0x510] sm:$0xf] %vm603_vm0, %v20727_v0 }
 0x210   : > { %930 = vst.msk [vmem:[#allocation2 + $0x514] sm:$0xf] %vm603_vm0, %v20727_v0  ;;  %931 = vst.msk [vmem:[#allocation2 + $0x518] sm:$0xf] %vm603_vm0, %v20727_v0 }
 0x211   : > { %932 = vst.msk [vmem:[#allocation2 + $0x51c] sm:$0x1] %vm611_vm1, %v20727_v0  ;;  %940 = vst.msk [vmem:[#allocation2 + $0x53c] sm:$0x1] %vm611_vm1, %v20727_v0 }
 0x212   : > { %933 = vst.msk [vmem:[#allocation2 + $0x520] sm:$0xf] %vm603_vm0, %v20727_v0  ;;  %934 = vst.msk [vmem:[#allocation2 + $0x524] sm:$0xf] %vm603_vm0, %v20727_v0 }
 0x213   : > { %935 = vst.msk [vmem:[#allocation2 + $0x528] sm:$0xf] %vm603_vm0, %v20727_v0  ;;  %936 = vst.msk [vmem:[#allocation2 + $0x52c] sm:$0xf] %vm603_vm0, %v20727_v0 }
 0x214   : > { %937 = vst.msk [vmem:[#allocation2 + $0x530] sm:$0xf] %vm603_vm0, %v20727_v0  ;;  %938 = vst.msk [vmem:[#allocation2 + $0x534] sm:$0xf] %vm603_vm0, %v20727_v0 }
 0x215   : > { %939 = vst.msk [vmem:[#allocation2 + $0x538] sm:$0xf] %vm603_vm0, %v20727_v0  ;;  %941 = vst.msk [vmem:[#allocation2 + $0x540] sm:$0xf] %vm603_vm0, %v20727_v0 }
 0x216   : > { %942 = vst.msk [vmem:[#allocation2 + $0x544] sm:$0xf] %vm603_vm0, %v20727_v0  ;;  %943 = vst.msk [vmem:[#allocation2 + $0x548] sm:$0xf] %vm603_vm0, %v20727_v0 }
 0x217   : > { %944 = vst.msk [vmem:[#allocation2 + $0x54c] sm:$0xf] %vm603_vm0, %v20727_v0  ;;  %945 = vst.msk [vmem:[#allocation2 + $0x550] sm:$0xf] %vm603_vm0, %v20727_v0 }
 0x218   : > { %946 = vst.msk [vmem:[#allocation2 + $0x554] sm:$0xf] %vm603_vm0, %v20727_v0  ;;  %947 = vst.msk [vmem:[#allocation2 + $0x558] sm:$0xf] %vm603_vm0, %v20727_v0 }
 0x219   : > { %948 = vst.msk [vmem:[#allocation2 + $0x55c] sm:$0x1] %vm611_vm1, %v20727_v0  ;;  %956 = vst.msk [vmem:[#allocation2 + $0x57c] sm:$0x1] %vm611_vm1, %v20727_v0 }
 0x21a   : > { %949 = vst.msk [vmem:[#allocation2 + $0x560] sm:$0xf] %vm603_vm0, %v20727_v0  ;;  %950 = vst.msk [vmem:[#allocation2 + $0x564] sm:$0xf] %vm603_vm0, %v20727_v0 }
 0x21b   : > { %951 = vst.msk [vmem:[#allocation2 + $0x568] sm:$0xf] %vm603_vm0, %v20727_v0  ;;  %952 = vst.msk [vmem:[#allocation2 + $0x56c] sm:$0xf] %vm603_vm0, %v20727_v0 }
 0x21c   : > { %953 = vst.msk [vmem:[#allocation2 + $0x570] sm:$0xf] %vm603_vm0, %v20727_v0  ;;  %954 = vst.msk [vmem:[#allocation2 + $0x574] sm:$0xf] %vm603_vm0, %v20727_v0 }
 0x21d   : > { %955 = vst.msk [vmem:[#allocation2 + $0x578] sm:$0xf] %vm603_vm0, %v20727_v0  ;;  %957 = vst.msk [vmem:[#allocation2 + $0x580] sm:$0xf] %vm603_vm0, %v20727_v0 }
 0x21e   : > { %958 = vst.msk [vmem:[#allocation2 + $0x584] sm:$0xf] %vm603_vm0, %v20727_v0  ;;  %959 = vst.msk [vmem:[#allocation2 + $0x588] sm:$0xf] %vm603_vm0, %v20727_v0 }
 0x21f   : > { %960 = vst.msk [vmem:[#allocation2 + $0x58c] sm:$0xf] %vm603_vm0, %v20727_v0  ;;  %961 = vst.msk [vmem:[#allocation2 + $0x590] sm:$0xf] %vm603_vm0, %v20727_v0 }
 0x220   : > { %962 = vst.msk [vmem:[#allocation2 + $0x594] sm:$0xf] %vm603_vm0, %v20727_v0  ;;  %963 = vst.msk [vmem:[#allocation2 + $0x598] sm:$0xf] %vm603_vm0, %v20727_v0 }
 0x221   : > { %964 = vst.msk [vmem:[#allocation2 + $0x59c] sm:$0x1] %vm611_vm1, %v20727_v0  ;;  %972 = vst.msk [vmem:[#allocation2 + $0x5bc] sm:$0x1] %vm611_vm1, %v20727_v0 }
 0x222   : > { %965 = vst.msk [vmem:[#allocation2 + $0x5a0] sm:$0xf] %vm603_vm0, %v20727_v0  ;;  %966 = vst.msk [vmem:[#allocation2 + $0x5a4] sm:$0xf] %vm603_vm0, %v20727_v0 }
 0x223   : > { %967 = vst.msk [vmem:[#allocation2 + $0x5a8] sm:$0xf] %vm603_vm0, %v20727_v0  ;;  %968 = vst.msk [vmem:[#allocation2 + $0x5ac] sm:$0xf] %vm603_vm0, %v20727_v0 }
 0x224   : > { %969 = vst.msk [vmem:[#allocation2 + $0x5b0] sm:$0xf] %vm603_vm0, %v20727_v0  ;;  %970 = vst.msk [vmem:[#allocation2 + $0x5b4] sm:$0xf] %vm603_vm0, %v20727_v0 }
 0x225   : > { %971 = vst.msk [vmem:[#allocation2 + $0x5b8] sm:$0xf] %vm603_vm0, %v20727_v0  ;;  %973 = vst.msk [vmem:[#allocation2 + $0x5c0] sm:$0xf] %vm603_vm0, %v20727_v0 }
 0x226   : > { %974 = vst.msk [vmem:[#allocation2 + $0x5c4] sm:$0xf] %vm603_vm0, %v20727_v0  ;;  %975 = vst.msk [vmem:[#allocation2 + $0x5c8] sm:$0xf] %vm603_vm0, %v20727_v0 }
 0x227   : > { %976 = vst.msk [vmem:[#allocation2 + $0x5cc] sm:$0xf] %vm603_vm0, %v20727_v0  ;;  %977 = vst.msk [vmem:[#allocation2 + $0x5d0] sm:$0xf] %vm603_vm0, %v20727_v0 }
 0x228   : > { %978 = vst.msk [vmem:[#allocation2 + $0x5d4] sm:$0xf] %vm603_vm0, %v20727_v0  ;;  %979 = vst.msk [vmem:[#allocation2 + $0x5d8] sm:$0xf] %vm603_vm0, %v20727_v0 }
 0x229   : > { %980 = vst.msk [vmem:[#allocation2 + $0x5dc] sm:$0x1] %vm611_vm1, %v20727_v0  ;;  %988 = vst.msk [vmem:[#allocation2 + $0x5fc] sm:$0x1] %vm611_vm1, %v20727_v0 }
 0x22a   : > { %981 = vst.msk [vmem:[#allocation2 + $0x5e0] sm:$0xf] %vm603_vm0, %v20727_v0  ;;  %982 = vst.msk [vmem:[#allocation2 + $0x5e4] sm:$0xf] %vm603_vm0, %v20727_v0 }
 0x22b   : > { %983 = vst.msk [vmem:[#allocation2 + $0x5e8] sm:$0xf] %vm603_vm0, %v20727_v0  ;;  %984 = vst.msk [vmem:[#allocation2 + $0x5ec] sm:$0xf] %vm603_vm0, %v20727_v0 }
 0x22c   : > { %985 = vst.msk [vmem:[#allocation2 + $0x5f0] sm:$0xf] %vm603_vm0, %v20727_v0  ;;  %986 = vst.msk [vmem:[#allocation2 + $0x5f4] sm:$0xf] %vm603_vm0, %v20727_v0 }
 0x22d   : > { %987 = vst.msk [vmem:[#allocation2 + $0x5f8] sm:$0xf] %vm603_vm0, %v20727_v0  ;;  %989 = vst.msk [vmem:[#allocation2 + $0x600] sm:$0xf] %vm603_vm0, %v20727_v0 }
 0x22e   : > { %990 = vst.msk [vmem:[#allocation2 + $0x604] sm:$0xf] %vm603_vm0, %v20727_v0  ;;  %991 = vst.msk [vmem:[#allocation2 + $0x608] sm:$0xf] %vm603_vm0, %v20727_v0 }
 0x22f   : > { %992 = vst.msk [vmem:[#allocation2 + $0x60c] sm:$0xf] %vm603_vm0, %v20727_v0  ;;  %993 = vst.msk [vmem:[#allocation2 + $0x610] sm:$0xf] %vm603_vm0, %v20727_v0 }
 0x230   : > { %994 = vst.msk [vmem:[#allocation2 + $0x614] sm:$0xf] %vm603_vm0, %v20727_v0  ;;  %995 = vst.msk [vmem:[#allocation2 + $0x618] sm:$0xf] %vm603_vm0, %v20727_v0 }
 0x231   : > { %996 = vst.msk [vmem:[#allocation2 + $0x61c] sm:$0x1] %vm611_vm1, %v20727_v0  ;;  %1004 = vst.msk [vmem:[#allocation2 + $0x63c] sm:$0x1] %vm611_vm1, %v20727_v0 }
 0x232   : > { %997 = vst.msk [vmem:[#allocation2 + $0x620] sm:$0xf] %vm603_vm0, %v20727_v0  ;;  %998 = vst.msk [vmem:[#allocation2 + $0x624] sm:$0xf] %vm603_vm0, %v20727_v0 }
 0x233   : > { %999 = vst.msk [vmem:[#allocation2 + $0x628] sm:$0xf] %vm603_vm0, %v20727_v0  ;;  %1000 = vst.msk [vmem:[#allocation2 + $0x62c] sm:$0xf] %vm603_vm0, %v20727_v0 }
 0x234   : > { %1001 = vst.msk [vmem:[#allocation2 + $0x630] sm:$0xf] %vm603_vm0, %v20727_v0  ;;  %1002 = vst.msk [vmem:[#allocation2 + $0x634] sm:$0xf] %vm603_vm0, %v20727_v0 }
 0x235   : > { %1003 = vst.msk [vmem:[#allocation2 + $0x638] sm:$0xf] %vm603_vm0, %v20727_v0  ;;  %1005 = vst.msk [vmem:[#allocation2 + $0x640] sm:$0xf] %vm603_vm0, %v20727_v0 }
 0x236   : > { %1006 = vst.msk [vmem:[#allocation2 + $0x644] sm:$0xf] %vm603_vm0, %v20727_v0  ;;  %1007 = vst.msk [vmem:[#allocation2 + $0x648] sm:$0xf] %vm603_vm0, %v20727_v0 }
 0x237   : > { %1008 = vst.msk [vmem:[#allocation2 + $0x64c] sm:$0xf] %vm603_vm0, %v20727_v0  ;;  %1009 = vst.msk [vmem:[#allocation2 + $0x650] sm:$0xf] %vm603_vm0, %v20727_v0 }
 0x238   : > { %1010 = vst.msk [vmem:[#allocation2 + $0x654] sm:$0xf] %vm603_vm0, %v20727_v0  ;;  %1011 = vst.msk [vmem:[#allocation2 + $0x658] sm:$0xf] %vm603_vm0, %v20727_v0 }
 0x239   : > { %1012 = vst.msk [vmem:[#allocation2 + $0x65c] sm:$0x1] %vm611_vm1, %v20727_v0  ;;  %1020 = vst.msk [vmem:[#allocation2 + $0x67c] sm:$0x1] %vm611_vm1, %v20727_v0 }
 0x23a   : > { %1013 = vst.msk [vmem:[#allocation2 + $0x660] sm:$0xf] %vm603_vm0, %v20727_v0  ;;  %1014 = vst.msk [vmem:[#allocation2 + $0x664] sm:$0xf] %vm603_vm0, %v20727_v0 }
 0x23b   : > { %1015 = vst.msk [vmem:[#allocation2 + $0x668] sm:$0xf] %vm603_vm0, %v20727_v0  ;;  %1016 = vst.msk [vmem:[#allocation2 + $0x66c] sm:$0xf] %vm603_vm0, %v20727_v0 }
 0x23c   : > { %1017 = vst.msk [vmem:[#allocation2 + $0x670] sm:$0xf] %vm603_vm0, %v20727_v0  ;;  %1018 = vst.msk [vmem:[#allocation2 + $0x674] sm:$0xf] %vm603_vm0, %v20727_v0 }
 0x23d   : > { %1019 = vst.msk [vmem:[#allocation2 + $0x678] sm:$0xf] %vm603_vm0, %v20727_v0  ;;  %1066 = vst.msk [vmem:[#allocation2 + $0x30c] sm:$0xf] %vm603_vm0, %v1033_v8  ;;  %v1045_v0 = vld [vmem:[%s21150_s24 + $0x60] sm:$0xf] }
 0x23e   : > { %1067 = vst.msk [vmem:[#allocation2 + $0x310] sm:$0xf] %vm603_vm0, %v1034_v9  ;;  %1068 = vst.msk [vmem:[#allocation2 + $0x32c] sm:$0xf] %vm603_vm0, %v1035_v11  ;;  %v20135_v11 = vld [vmem:[%s21150_s24 + $0x38] sm:$0xff]  }
 0x23f   : > { %1069 = vst.msk [vmem:[#allocation2 + $0x330] sm:$0xf] %vm603_vm0, %v1036_v12  ;;  %1070 = vst.msk [vmem:[#allocation2 + $0x34c] sm:$0xf] %vm603_vm0, %v1037_v16  ;;  %v1500_v16 = vld [vmem:[#allocation2 + $0x3c8] sm:$0xe]  ;;  %17846 = vmatmul.mubr.msk.bf16.gmra.mrb[12].mxu0 %vm1199_vm3, %v20135_v11 }
 0x240   : > { %1071 = vst.msk [vmem:[#allocation2 + $0x350] sm:$0xf] %vm603_vm0, %v1038_v17  ;;  %vm22029_vm6 = vmor %vm1578_vm4, %vm1579_vm5  ;;  %17849 = vmatprep.mubr.msk.bf16.mxu0 %vm1199_vm3, %v20136_v14 }
 0x241   : > { %v25568_v21 = vsel %vm22029_vm6, 4294967295, %v25567_v21  ;;  %1072 = vst.msk [vmem:[#allocation2 + $0x36c] sm:$0xf] %vm603_vm0, %v1039_v19  ;;  %1073 = vst.msk [vmem:[#allocation2 + $0x370] sm:$0xf] %vm603_vm0, %v1040_v20 }
 0x242   : > { %25569 = vst [vmem:[#allocation33_spill] sm:$0xff] %v25568_v21  ;;  %1074 = vst.msk [vmem:[#allocation2 + $0x38c] sm:$0xf] %vm603_vm0, %v1041_v39  ;;  %v1506_v39 = vld [vmem:[#allocation2 + $0x408] sm:$0xe] }
 0x243   : > { %1075 = vst.msk [vmem:[#allocation2 + $0x390] sm:$0xf] %vm603_vm0, %v1042_v40  ;;  %1076 = vst.msk [vmem:[#allocation2 + $0x3ac] sm:$0xf] %vm603_vm0, %v1043_v55 }
 0x244   : > { %v1483_v24 = vld [vmem:[#allocation2 + $0x30c] sm:$0xf]  ;;  %1077 = vst.msk [vmem:[#allocation2 + $0x3b0] sm:$0xf] %vm603_vm0, %v1044_v56  ;;  %1078 = vst.msk [vmem:[#allocation2 + $0x3cc] sm:$0xf] %vm603_vm0, %v1045_v0 }
 0x245   : > { %v1484_v26 = vld [vmem:[#allocation2 + $0x310] sm:$0x1]  ;;  %v1667_v27 = vrot.slane %v1483_v24, 5  ;;  %v1486_v30 = vld [vmem:[#allocation2 + $0x32c] sm:$0xf]  ;;  %v16249_v56 = vrot.slane %v1506_v39, 9  ;;  %vm22399_vm8 = vmor %vm1248_vm2, %vm5260_vm7 }
 0x246   : > { %v1670_v29 = vrot.slane %v1484_v26, 5  ;;  %v1487_v31 = vld [vmem:[#allocation2 + $0x330] sm:$0x1]  ;;  %v1674_v34 = vrot.slane %v1486_v30, 5  ;;  %v1489_v44 = vld [vmem:[#allocation2 + $0x34c] sm:$0xf]  ;;  %vm22895_vm11 = vmor %vm3901_vm9, %vm3902_vm10 }
 0x247   : > { %v1668_v32 = vsel %vm22029_vm6, %v16209_v22, %v1667_v27  ;;  %v1669_v33 = vrot.slane %v1667_v27, 4  ;;  %v1677_v35 = vrot.slane %v1487_v31, 5  ;;  %v1490_v45 = vld [vmem:[#allocation2 + $0x350] sm:$0x1]  ;;  %v1681_v48 = vrot.slane %v1489_v44, 5  ;;  %v20137_v44 = vld [vmem:[%s21150_s24 + $0x48] sm:$0xff]  }
 0x248   : > { %v1675_v42 = vsel %vm22029_vm6, %v16210_v28, %v1674_v34  ;;  %v1676_v43 = vrot.slane %v1674_v34, 4  ;;  %v1684_v49 = vrot.slane %v1490_v45, 5  ;;  %v1492_v50 = vld [vmem:[#allocation2 + $0x36c] sm:$0xf]  ;;  %v1493_v51 = vld [vmem:[#allocation2 + $0x370] sm:$0x1]  ;;  %17850 = vmatmul.mubr.msk.bf16.gmra.mrb[16].mxu0 %vm1199_vm3, %v20137_v44 }
 0x249   : > { %v1671_v41 = vsel %vm22029_vm6, %v1669_v33, %v1670_v29  ;;  %v1688_v53 = vrot.slane %v1492_v50, 5  ;;  %v1691_v54 = vrot.slane %v1493_v51, 5  ;;  %v1682_v59 = vsel %vm22029_vm6, %v16211_v37, %v1681_v48  ;;  %1079 = vst.msk [vmem:[#allocation2 + $0x3d0] sm:$0xf] %vm603_vm0, %v1046_v1  ;;  %v1495_v8 = vld [vmem:[#allocation2 + $0x38c] sm:$0xf] }
 0x24a   : > { %v22049_v47 = vcombine.low %v1668_v32, %v1671_v41  ;;  %v1678_v52 = vsel %vm22029_vm6, %v1676_v43, %v1677_v35  ;;  %v1683_v60 = vrot.slane %v1681_v48, 4  ;;  %v1496_v9 = vld [vmem:[#allocation2 + $0x390] sm:$0x1]  ;;  %1080 = vst.msk [vmem:[#allocation2 + $0x3ec] sm:$0xf] %vm603_vm0, %v1047_v6  ;;  %v2007_v12 = vrot.slane %v1495_v8, 5 }
 0x24b   : > { %v22057_v57 = vcombine.low %v1675_v42, %v1678_v52  ;;  %v1690_v62 = vrot.slane %v1688_v53, 4  ;;  %v1689_v3 = vsel %vm22029_vm6, %v16212_v46, %v1688_v53  ;;  %1081 = vst.msk [vmem:[#allocation2 + $0x3f0] sm:$0xf] %vm603_vm0, %v1048_v7  ;;  %v2010_v13 = vrot.slane %v1496_v9, 5  ;;  %v1498_v19 = vld [vmem:[#allocation2 + $0x3ac] sm:$0xf] }
 0x24c   : > { %17935 = vmatprep.mubr.msk.bf16.mxu1 %vm1199_vm3, %v22049_v47  ;;  %v1685_v63 = vsel %vm22029_vm6, %v1683_v60, %v1684_v49  ;;  %v2008_v17 = vsel %vm22029_vm6, %v16245_v5, %v2007_v12  ;;  %v2009_v18 = vrot.slane %v2007_v12, 4  ;;  %v1499_v20 = vld [vmem:[#allocation2 + $0x3b0] sm:$0x1]  ;;  %v16246_v22 = vrot.slane %v1497_v10, 9  ;;  %v1050_v28 = vld [vmem:[%s21150_s24 + $0x74] sm:$0xf] }
 0x24d   : > { %17936 = vmatmul.mubr.msk.bf16.vlgmr.msra.gmra.mrb[0].mxu1 %vm1199_vm3, %v22057_v57  ;;  %v22073_v2 = vcombine.low %v1682_v59, %v1685_v63  ;;  %v1692_v4 = vsel %vm22029_vm6, %v1690_v62, %v1691_v54  ;;  %v2014_v23 = vrot.slane %v1498_v19, 5  ;;  %v2017_v24 = vrot.slane %v1499_v20, 5  ;;  %1082 = vst.msk [vmem:[#allocation2 + $0x40c] sm:$0xf] %vm603_vm0, %v1049_v25  ;;  %v1051_v29 = vld [vmem:[%s21150_s24 + $0x78] sm:$0xf] }
 0x24e   : > { %17968 = vmatpush3.bf16.msra.mxu1 %v2890_v58  ;;  %v22089_v15 = vcombine.low %v1689_v3, %v1692_v4  ;;  %v2011_v26 = vsel %vm22029_vm6, %v2009_v18, %v2010_v13  ;;  %v16247_v27 = vrot.slane %v1500_v16, 9  ;;  %v1501_v32 = vld [vmem:[#allocation2 + $0x3cc] sm:$0xf]  ;;  %v1503_v34 = vld [vmem:[#allocation2 + $0x3e8] sm:$0xe]  ;;  %v20138_v49 = vld [vmem:[%s21150_s24 + $0x50] sm:$0xff]  }
 0x24f   : > { %17939 = vmatprep.mubr.msk.bf16.mxu1 %vm1199_vm3, %v22073_v2  ;;  %v22102_v30 = vcombine.low %v2008_v17, %v2011_v26  ;;  %v2016_v31 = vrot.slane %v2014_v23, 4  ;;  %1083 = vst.msk [vmem:[#allocation2 + $0x410] sm:$0xf] %vm603_vm0, %v1050_v28  ;;  %1084 = vst.msk [vmem:[#allocation2 + $0x42c] sm:$0xf] %vm603_vm0, %v1051_v29  ;;  %v2015_v35 = vsel %vm22029_vm6, %v16246_v22, %v2014_v23  ;;  %v2021_v36 = vrot.slane %v1501_v32, 5 }
 0x250   : > { %v1502_v33 = vld [vmem:[#allocation2 + $0x3d0] sm:$0x1]  ;;  %v1052_v43 = vld [vmem:[%s21150_s24 + $0x7c] sm:$0xf]  ;;  %v16248_v51 = vrot.slane %v1503_v34, 9  ;;  %17853 = vmatprep.mubr.msk.bf16.mxu0 %vm1199_vm3, %v20138_v49  ;;  %v20140_v16 = vld [vmem:[%s21150_s24 + $0x60] sm:$0xff]  }
 0x251   : > { %v2024_v37 = vrot.slane %v1502_v33, 5  ;;  %v1504_v38 = vld [vmem:[#allocation2 + $0x3ec] sm:$0xf]  ;;  %v2018_v40 = vsel %vm22029_vm6, %v2016_v31, %v2017_v24  ;;  %v2022_v45 = vsel %vm22029_vm6, %v16247_v27, %v2021_v36  ;;  %v2023_v46 = vrot.slane %v2021_v36, 4  ;;  %1085 = vst.msk [vmem:[#allocation2 + $0x430] sm:$0xf] %vm603_vm0, %v1052_v43 }
 0x252   : > { %v1505_v41 = vld [vmem:[#allocation2 + $0x3f0] sm:$0x1]  ;;  %v2028_v42 = vrot.slane %v1504_v38, 5  ;;  %v22118_v48 = vcombine.low %v2015_v35, %v2018_v40  ;;  %v1513_v58 = vld [vmem:[#allocation2 + $0x44c] sm:$0xf]  ;;  %v20139_v7 = vld [vmem:[%s21150_s24 + $0x58] sm:$0xff]  }
 0x253   : > { %v2025_v50 = vsel %vm22029_vm6, %v2023_v46, %v2024_v37  ;;  %v2031_v53 = vrot.slane %v1505_v41, 5  ;;  %v1509_v63 = vld [vmem:[#allocation2 + $0x428] sm:$0xe]  ;;  %v1514_v6 = vld [vmem:[#allocation2 + $0x450] sm:$0x1]  ;;  %v2365_v10 = vrot.slane %v1513_v58, 5  ;;  %17854 = vmatmul.mubr.msk.bf16.gmra.mrb[20].mxu0 %vm1199_vm3, %v20139_v7 }
 0x254   : > { %v2030_v52 = vrot.slane %v2028_v42, 4  ;;  %v22123_v54 = vcombine.low %v2022_v45, %v2025_v50  ;;  %v1507_v55 = vld [vmem:[#allocation2 + $0x40c] sm:$0xf]  ;;  %v2029_v0 = vsel %vm22029_vm6, %v16248_v51, %v2028_v42  ;;  %v1512_v5 = vld [vmem:[#allocation2 + $0x448] sm:$0xe]  ;;  %v16250_v14 = vrot.slane %v1509_v63, 9  ;;  %17857 = vmatprep.mubr.msk.bf16.mxu0 %vm1199_vm3, %v20140_v16 }
 0x255   : > { %17940 = vmatmul.mubr.msk.bf16.gmra.mrb[4].mxu1 %vm1199_vm3, %v22089_v15  ;;  %v2035_v60 = vrot.slane %v1507_v55, 5  ;;  %v1516_v12 = vld [vmem:[#allocation2 + $0x46c] sm:$0xf]  ;;  %v1515_v17 = vld [vmem:[#allocation2 + $0x468] sm:$0xe]  ;;  %v16273_v24 = vrot.slane %v1512_v5, 9 }
 0x256   : > { %17943 = vmatprep.mubr.msk.bf16.mxu1 %vm1199_vm3, %v22102_v30  ;;  %v1508_v59 = vld [vmem:[#allocation2 + $0x410] sm:$0x1]  ;;  %v1510_v61 = vld [vmem:[#allocation2 + $0x42c] sm:$0xf]  ;;  %v2032_v1 = vsel %vm22029_vm6, %v2030_v52, %v2031_v53  ;;  %v2367_v25 = vrot.slane %v2365_v10, 4  ;;  %v2368_v26 = vrot.slane %v1514_v6, 5 }
 0x257   : > { %v2038_v62 = vrot.slane %v1508_v59, 5  ;;  %v2037_v3 = vrot.slane %v2035_v60, 4  ;;  %v2042_v4 = vrot.slane %v1510_v61, 5  ;;  %v2036_v8 = vsel %vm22029_vm6, %v16249_v56, %v2035_v60  ;;  %v1517_v22 = vld [vmem:[#allocation2 + $0x470] sm:$0x1]  ;;  %v20141_v38 = vld [vmem:[%s21150_s24 + $0x68] sm:$0xff]  }
 0x258   : > { %v1511_v9 = vld [vmem:[#allocation2 + $0x430] sm:$0x1]  ;;  %v22140_v13 = vcombine.low %v2029_v0, %v2032_v1  ;;  %v1519_v23 = vld [vmem:[#allocation2 + $0x48c] sm:$0xf]  ;;  %v2372_v27 = vrot.slane %v1516_v12, 5  ;;  %v16274_v32 = vrot.slane %v1515_v17, 9  ;;  %v2366_v42 = vsel %vm22029_vm6, %v16273_v24, %v2365_v10 }
 0x259   : > { %v2039_v11 = vsel %vm22029_vm6, %v2037_v3, %v2038_v62  ;;  %v2044_v19 = vrot.slane %v2042_v4, 4  ;;  %v2045_v20 = vrot.slane %v1511_v9, 5  ;;  %v1693_v28 = vld [vmem:[#allocation10] sm:$0x3]  ;;  %v2379_v29 = vrot.slane %v1519_v23, 5  ;;  %v20142_v50 = vld [vmem:[%s21150_s24 + $0x70] sm:$0xff]  }
 0x25a   : > { %v22143_v18 = vcombine.low %v2036_v8, %v2039_v11  ;;  %19936 = vmatprep.subr.msk.bf16.mxu0 %vm1248_vm2, %v1693_v28  ;;  %v1791_v31 = vsel %vm1248_vm2, %v1693_v28, 0  ;;  %v2375_v33 = vrot.slane %v1517_v22, 5  ;;  %v1518_v34 = vld [vmem:[#allocation2 + $0x488] sm:$0xe]  ;;  %v1520_v35 = vld [vmem:[#allocation2 + $0x490] sm:$0x1]  ;;  %v2043_v36 = vsel %vm22029_vm6, %v16250_v14, %v2042_v4 }
 0x25b   : > { %v2046_v37 = vsel %vm22029_vm6, %v2044_v19, %v2045_v20  ;;  %v22158_v39 = vld [vmem:[#allocation2 + $0x4ac] sm:$0xf]  ;;  %17866 = vmatpush3.bf16.msra.mxu0 %v1791_v31  ;;  %v1446_v40 = vld [vmem:[#allocation2 + $0x188] sm:$0xe]  ;;  %v2369_v43 = vsel %vm22029_vm6, %v2367_v25, %v2368_v26  ;;  %v2374_v44 = vrot.slane %v2372_v27, 4  ;;  %v16275_v51 = vrot.slane %v1518_v34, 9 }
 0x25c   : > { %v1447_v41 = vld [vmem:[#allocation2 + $0x18c] sm:$0xf]  ;;  %v1448_v45 = vld [vmem:[#allocation2 + $0x190] sm:$0x1]  ;;  %v2381_v52 = vrot.slane %v2379_v29, 4  ;;  %v2382_v53 = vrot.slane %v1520_v35, 5  ;;  %v22167_v56 = vcombine.low %v2043_v36, %v2046_v37  ;;  %v16279_v62 = vcombine.low %v2366_v42, %v2369_v43  ;;  %17858 = vmatmul.mubr.msk.bf16.gmra.mrb[24].mxu0 %vm1199_vm3, %v20141_v38 }
 0x25d   : > { %17944 = vmatmul.mubr.msk.bf16.gmra.mrb[8].mxu1 %vm1199_vm3, %v22118_v48  ;;  %v1583_v46 = vrot.slane %v1447_v41, 5  ;;  %v22164_v49 = vld [vmem:[#allocation2 + $0x1ac] sm:$0xf]  ;;  %v1521_v55 = vld [vmem:[#allocation2 + $0x4a8] sm:$0xe]  ;;  %v2386_v59 = vrot.slane %v22158_v39, 5  ;;  %v2373_v4 = vsel %vm22029_vm6, %v16274_v32, %v2372_v27  ;;  %v2376_v5 = vsel %vm22029_vm6, %v2374_v44, %v2375_v33  ;;  %17861 = vmatprep.mubr.msk.bf16.mxu0 %vm1199_vm3, %v20142_v50 }
 0x25e   : > { %17947 = vmatprep.mubr.msk.bf16.mxu1 %vm1199_vm3, %v22123_v54  ;;  %v1523_v58 = vld [vmem:[#allocation2 + $0x4b0] sm:$0x1]  ;;  %v16197_v60 = vrot.slane %v1446_v40, 9  ;;  %v1449_v61 = vld [vmem:[#allocation2 + $0x1a8] sm:$0xe]  ;;  %v1586_v0 = vrot.slane %v1448_v45, 5  ;;  %v2380_v7 = vsel %vm22029_vm6, %v16275_v51, %v2379_v29  ;;  %v2383_v8 = vsel %vm22029_vm6, %v2381_v52, %v2382_v53 }
 0x25f   : > { %v1585_v63 = vrot.slane %v1583_v46, 4  ;;  %v1451_v1 = vld [vmem:[#allocation2 + $0x1b0] sm:$0x1]  ;;  %v1590_v3 = vrot.slane %v22164_v49, 5  ;;  %v1525_v6 = vld [vmem:[#allocation2 + $0x4cc] sm:$0xf]  ;;  %v16280_v33 = vcombine.low %v2373_v4, %v2376_v5  ;;  %v16281_v34 = vcombine.low %v2380_v7, %v2383_v8 }
 0x260   : > { %v16276_v9 = vrot.slane %v1521_v55, 9  ;;  %v2389_v10 = vrot.slane %v1523_v58, 5  ;;  %v1453_v11 = vld [vmem:[#allocation2 + $0x1cc] sm:$0xf]  ;;  %v2388_v12 = vrot.slane %v2386_v59, 4  ;;  %v1584_v14 = vsel %vm22029_vm6, %v16197_v60, %v1583_v46  ;;  %v20143_v19 = vld [vmem:[%s21150_s24 + $0x78] sm:$0xff]  }
 0x261   : > { %v16198_v16 = vrot.slane %v1449_v61, 9  ;;  %v1593_v17 = vrot.slane %v1451_v1, 5  ;;  %v1587_v20 = vsel %vm22029_vm6, %v1585_v63, %v1586_v0  ;;  %v1592_v22 = vrot.slane %v1590_v3, 4  ;;  %v1524_v23 = vld [vmem:[#allocation2 + $0x4c8] sm:$0xe] }
 0x262   : > { %v1526_v24 = vld [vmem:[#allocation2 + $0x4d0] sm:$0x1]  ;;  %v2393_v25 = vrot.slane %v1525_v6, 5  ;;  %v1597_v26 = vrot.slane %v1453_v11, 5  ;;  %v22189_v27 = vld [vmem:[#allocation2 + $0x4e8] sm:$0xe]  ;;  %v16213_v35 = vcombine.low %v1584_v14, %v1587_v20  ;;  %v2387_v46 = vsel %vm22029_vm6, %v16276_v9, %v2386_v59 }
 0x263   : > { %v22191_v28 = vld [vmem:[#allocation2 + $0x4ec] sm:$0xf]  ;;  %v1452_v29 = vld [vmem:[#allocation2 + $0x1c8] sm:$0xe]  ;;  %v1454_v31 = vld [vmem:[#allocation2 + $0x1d0] sm:$0x1]  ;;  %v2390_v53 = vsel %vm22029_vm6, %v2388_v12, %v2389_v10  ;;  %v1591_v55 = vsel %vm22029_vm6, %v16198_v16, %v1590_v3  ;;  %v1594_v58 = vsel %vm22029_vm6, %v1592_v22, %v1593_v17 }
 0x264   : > { %v22193_v32 = vld [vmem:[#allocation2 + $0x4f0] sm:$0x1]  ;;  %v1456_v36 = vld [vmem:[#allocation2 + $0x1ec] sm:$0xf]  ;;  %v2400_v38 = vrot.slane %v22191_v28, 5  ;;  %v16199_v39 = vrot.slane %v1452_v29, 9  ;;  %17862 = vmatmul.mubr.msk.bf16.gmra.mrb[28].mxu0 %vm1199_vm3, %v20143_v19  ;;  %v16214_v6 = vcombine.low %v1591_v55, %v1594_v58  ;;  %v16282_v11 = vcombine.low %v2387_v46, %v2390_v53 }
 0x265   : > { %17948 = vmatmul.mubr.msk.bf16.gmra.mrb[12].mxu1 %vm1199_vm3, %v22140_v13  ;;  %v22195_v37 = vld [vmem:[#allocation10 + $0x8] sm:$0x3]  ;;  %v1599_v40 = vrot.slane %v1597_v26, 4  ;;  %v1600_v41 = vrot.slane %v1454_v31, 5  ;;  %v16277_v42 = vrot.slane %v1524_v23, 9  ;;  %v2395_v43 = vrot.slane %v2393_v25, 4  ;;  %17867 = vmatprep.mubr.msk.bf16.mxu0 %vm1199_vm3, %v16213_v35 }
 0x266   : > { %17951 = vmatprep.mubr.msk.bf16.mxu1 %vm1199_vm3, %v22143_v18  ;;  %19940 = vmatprep.subr.msk.bf16.mxu1 %vm1248_vm2, %v22195_v37  ;;  %v2396_v44 = vrot.slane %v1526_v24, 5  ;;  %v1459_v45 = vld [vmem:[#allocation2 + $0x20c] sm:$0xf]  ;;  %v16278_v49 = vrot.slane %v22189_v27, 9  ;;  %v2403_v50 = vrot.slane %v22193_v32, 5  ;;  %v1604_v52 = vrot.slane %v1456_v36, 5 }
 0x267   : > { %v1455_v51 = vld [vmem:[#allocation2 + $0x1e8] sm:$0xe]  ;;  %v1457_v59 = vld [vmem:[#allocation2 + $0x1f0] sm:$0x1]  ;;  %v2402_v61 = vrot.slane %v2400_v38, 4  ;;  %v1601_v63 = vsel %vm22029_vm6, %v1599_v40, %v1600_v41  ;;  %v1611_v0 = vrot.slane %v1459_v45, 5  ;;  %v2394_v1 = vsel %vm22029_vm6, %v16277_v42, %v2393_v25 }
 0x268   : > { %v1458_v60 = vld [vmem:[#allocation2 + $0x208] sm:$0xe]  ;;  %v2397_v3 = vsel %vm22029_vm6, %v2395_v43, %v2396_v44  ;;  %v1460_v4 = vld [vmem:[#allocation2 + $0x210] sm:$0x1]  ;;  %v1021_v5 = vld [vmem:[%s21150_s24] sm:$0xf]  ;;  %v2401_v35 = vsel %vm22029_vm6, %v16278_v49, %v2400_v38 }
 0x269   : > { %v16200_v7 = vrot.slane %v1455_v51, 9  ;;  %v1606_v8 = vrot.slane %v1604_v52, 4  ;;  %v1022_v9 = vld [vmem:[%s21150_s24 + $0x4] sm:$0xf]  ;;  %1054 = vst.msk [vmem:[#allocation2 + $0x24c] sm:$0xf] %vm603_vm0, %v1021_v5  ;;  %v16283_v20 = vcombine.low %v2394_v1, %v2397_v3  ;;  %v2404_v36 = vsel %vm22029_vm6, %v2402_v61, %v2403_v50 }
 0x26a   : > { %v1023_v10 = vld [vmem:[%s21150_s24 + $0x8] sm:$0xf]  ;;  %v1607_v14 = vrot.slane %v1457_v59, 5  ;;  %v16201_v16 = vrot.slane %v1458_v60, 9  ;;  %v1462_v17 = vld [vmem:[#allocation2 + $0x22c] sm:$0xf]  ;;  %v16284_v51 = vcombine.low %v2401_v35, %v2404_v36 }
 0x26b   : > { %1055 = vst.msk [vmem:[#allocation2 + $0x250] sm:$0xf] %vm603_vm0, %v1022_v9  ;;  %v1024_v19 = vld [vmem:[%s21150_s24 + $0xc] sm:$0xf]  ;;  %1056 = vst.msk [vmem:[#allocation2 + $0x26c] sm:$0xf] %vm603_vm0, %v1023_v10  ;;  %v1605_v29 = vsel %vm22029_vm6, %v16200_v7, %v1604_v52 }
 0x26c   : > { %v1613_v22 = vrot.slane %v1611_v0, 4  ;;  %v1614_v23 = vrot.slane %v1460_v4, 5  ;;  %1057 = vst.msk [vmem:[#allocation2 + $0x270] sm:$0xf] %vm603_vm0, %v1024_v19  ;;  %v1025_v24 = vld [vmem:[%s21150_s24 + $0x10] sm:$0xf]  ;;  %17868 = vmatmul.mubr.msk.bf16.vlgmr.msra.gmra.mrb[32].mxu0 %vm1199_vm3, %v16214_v6  ;;  %v1608_v31 = vsel %vm22029_vm6, %v1606_v8, %v1607_v14 }
 0x26d   : > { %17952 = vmatmul.mubr.msk.bf16.gmra.mrb[16].mxu1 %vm1199_vm3, %v22167_v56  ;;  %v1461_v25 = vld [vmem:[#allocation2 + $0x228] sm:$0xe]  ;;  %1058 = vst.msk [vmem:[#allocation2 + $0x28c] sm:$0xf] %vm603_vm0, %v1025_v24  ;;  %v1027_v27 = vld [vmem:[%s21150_s24 + $0x18] sm:$0xf]  ;;  %v16216_v28 = vcombine.low %v1605_v29, %v1608_v31 }
 0x26e   : > { %17955 = vmatprep.mubr.msk.bf16.mxu1 %vm1199_vm3, %v16279_v62  ;;  %v1598_v62 = vsel %vm22029_vm6, %v16199_v39, %v1597_v26  ;;  %v1026_v26 = vld [vmem:[%s21150_s24 + $0x14] sm:$0xf]  ;;  %v1463_v32 = vld [vmem:[#allocation2 + $0x230] sm:$0x1]  ;;  %1060 = vst.msk [vmem:[#allocation2 + $0x2ac] sm:$0xf] %vm603_vm0, %v1027_v27  ;;  %v1612_v39 = vsel %vm22029_vm6, %v16201_v16, %v1611_v0  ;;  %v1615_v40 = vsel %vm22029_vm6, %v1613_v22, %v1614_v23 }
 0x26f   : > { %v16215_v12 = vcombine.low %v1598_v62, %v1601_v63  ;;  %1059 = vst.msk [vmem:[#allocation2 + $0x290] sm:$0xf] %vm603_vm0, %v1026_v26  ;;  %v1464_v41 = vld [vmem:[#allocation2 + $0x248] sm:$0xe]  ;;  %v1029_v42 = vld [vmem:[%s21150_s24 + $0x20] sm:$0xf]  ;;  %v16217_v52 = vcombine.low %v1612_v39, %v1615_v40 }
 0x270   : > { %v1030_v43 = vld [vmem:[%s21150_s24 + $0x24] sm:$0xf]  ;;  %v1465_v44 = vld [vmem:[#allocation2 + $0x24c] sm:$0xf]  ;;  %1062 = vst.msk [vmem:[#allocation2 + $0x2cc] sm:$0xf] %vm603_vm0, %v1029_v42 }
 0x271   : > { %17871 = vmatprep.mubr.msk.bf16.mxu0 %vm1199_vm3, %v16215_v12  ;;  %1063 = vst.msk [vmem:[#allocation2 + $0x2d0] sm:$0xf] %vm603_vm0, %v1030_v43  ;;  %v20144_v38 = vld [vmem:[#allocation2 + $0x18c] sm:$0xff]   ;;  %v16202_v45 = vrot.slane %v1461_v25, 9  ;;  %v1621_v46 = vrot.slane %v1463_v32, 5  ;;  %v1625_v50 = vrot.slane %v1465_v44, 5 }
 0x272   : > { %v1466_v49 = vld [vmem:[#allocation2 + $0x250] sm:$0x1]  ;;  %v16203_v55 = vrot.slane %v1464_v41, 9  ;;  %v1468_v58 = vld [vmem:[#allocation2 + $0x26c] sm:$0xf]  ;;  %v3200_v3 = vsel %vm1248_vm2, %v22195_v37, 0 }
 0x273   : > { %v1627_v59 = vrot.slane %v1625_v50, 4  ;;  %v1628_v60 = vrot.slane %v1466_v49, 5  ;;  %v1467_v61 = vld [vmem:[#allocation2 + $0x268] sm:$0xe]  ;;  %v1469_v63 = vld [vmem:[#allocation2 + $0x270] sm:$0x1] }
 0x274   : > { %v1471_v62 = vld [vmem:[#allocation2 + $0x28c] sm:$0xf]  ;;  %17872 = vmatmul.mubr.msk.bf16.gmra.mrb[36].mxu0 %vm1199_vm3, %v16216_v28  ;;  %v1632_v0 = vrot.slane %v1468_v58, 5  ;;  %v1470_v1 = vld [vmem:[#allocation2 + $0x288] sm:$0xe]  ;;  %v1626_v8 = vsel %vm22029_vm6, %v16203_v55, %v1625_v50  ;;  %v16204_v37 = vrot.slane %v1467_v61, 9 }
 0x275   : > { %17956 = vmatmul.mubr.msk.bf16.gmra.mrb[20].mxu1 %vm1199_vm3, %v16280_v33  ;;  %v1618_v33 = vrot.slane %v1462_v17, 5  ;;  %17875 = vmatprep.mubr.msk.bf16.mxu0 %vm1199_vm3, %v16217_v52  ;;  %v1031_v7 = vld [vmem:[%s21150_s24 + $0x28] sm:$0xf]  ;;  %v1629_v9 = vsel %vm22029_vm6, %v1627_v59, %v1628_v60  ;;  %v1639_v10 = vrot.slane %v1471_v62, 5  ;;  %v1635_v12 = vrot.slane %v1469_v63, 5  ;;  %v20147_v43 = vld [vmem:[#allocation2 + $0x1ec] sm:$0xff]  }
 0x276   : > { %17959 = vmatprep.mubr.msk.bf16.mxu1 %vm1199_vm3, %v16281_v34  ;;  %v1028_v34 = vld [vmem:[%s21150_s24 + $0x1c] sm:$0xf]  ;;  %v1472_v6 = vld [vmem:[#allocation2 + $0x290] sm:$0x1]  ;;  %1064 = vst.msk [vmem:[#allocation2 + $0x2ec] sm:$0xf] %vm603_vm0, %v1031_v7  ;;  %v22280_v24 = vcombine.low %v1626_v8, %v1629_v9  ;;  %v1633_v36 = vsel %vm22029_vm6, %v16204_v37, %v1632_v0 }
 0x277   : > { %1061 = vst.msk [vmem:[#allocation2 + $0x2b0] sm:$0xf] %vm603_vm0, %v1028_v34  ;;  %v1620_v53 = vrot.slane %v1618_v33, 4  ;;  %v1619_v4 = vsel %vm22029_vm6, %v16202_v45, %v1618_v33  ;;  %v16205_v14 = vrot.slane %v1470_v1, 9  ;;  %v1474_v16 = vld [vmem:[#allocation2 + $0x2ac] sm:$0xf] }
 0x278   : > { %v1032_v17 = vld [vmem:[%s21150_s24 + $0x2c] sm:$0xf]  ;;  %v1634_v22 = vrot.slane %v1632_v0, 4  ;;  %v1642_v23 = vrot.slane %v1472_v6, 5  ;;  %v1641_v26 = vrot.slane %v1639_v10, 4  ;;  %v1646_v31 = vrot.slane %v1474_v16, 5 }
 0x279   : > { %v1622_v5 = vsel %vm22029_vm6, %v1620_v53, %v1621_v46  ;;  %1065 = vst.msk [vmem:[#allocation2 + $0x2f0] sm:$0xf] %vm603_vm0, %v1032_v17  ;;  %v1477_v25 = vld [vmem:[#allocation2 + $0x2cc] sm:$0xf]  ;;  %v1473_v27 = vld [vmem:[#allocation2 + $0x2a8] sm:$0xe]  ;;  %v1640_v41 = vsel %vm22029_vm6, %v16205_v14, %v1639_v10 }
 0x27a   : > { %v16218_v19 = vcombine.low %v1619_v4, %v1622_v5  ;;  %v1476_v32 = vld [vmem:[#allocation2 + $0x2c8] sm:$0xe]  ;;  %v1653_v34 = vrot.slane %v1477_v25, 5  ;;  %v1636_v39 = vsel %vm22029_vm6, %v1634_v22, %v1635_v12  ;;  %v1478_v40 = vld [vmem:[#allocation2 + $0x2d0] sm:$0x1]  ;;  %v1643_v42 = vsel %vm22029_vm6, %v1641_v26, %v1642_v23  ;;  %s20610_s24 = scalar_lea.vmem %s20609_s20, 8192 }
 0x27b   : > { %v2048_v33 = vld [vmem:[#allocation10 + $0x6] sm:$0x3]  ;;  %v16206_v44 = vrot.slane %v1473_v27, 9  ;;  %v1648_v28 = vrot.slane %v1646_v31, 4  ;;  %v16207_v45 = vrot.slane %v1476_v32, 9  ;;  %v16220_v46 = vcombine.low %v1633_v36, %v1636_v39  ;;  %v20148_v49 = vld [vmem:[#allocation2 + $0x20c] sm:$0xff]   ;;  %p20612_p7 = scmp.lt.s32.totalorder %s20610_s24, %s20604_s7 }
 0x27c   : > { %17876 = vmatmul.mubr.msk.bf16.gmra.mrb[40].mxu0 %vm1199_vm3, %v16218_v19  ;;  %19937 = vmatprep.subr.msk.bf16.mxu0 %vm1248_vm2, %v2048_v33  ;;  %v2086_v35 = vsel %vm1248_vm2, %v2048_v33, 0  ;;  %v1655_v50 = vrot.slane %v1653_v34, 4  ;;  %v22297_v52 = vld [vmem:[#allocation10 + $0xe] sm:$0x3]  ;;  %v16221_v53 = vcombine.low %v1640_v41, %v1643_v42  ;;  %v5374_v58 = vld [vmem:[#allocation12] sm:$0x3] }
 0x27d   : > { %17960 = vmatmul.mubr.msk.bf16.gmra.mrb[24].mxu1 %vm1199_vm3, %v16282_v11  ;;  %v20145_v11 = vld [vmem:[#allocation2 + $0x1ac] sm:$0xff]   ;;  %17879 = vmatprep.mubr.msk.bf16.mxu0 %vm1199_vm3, %v22280_v24  ;;  %v1647_v59 = vsel %vm22029_vm6, %v16206_v44, %v1646_v31  ;;  %v1479_v61 = vld [vmem:[#allocation2 + $0x2e8] sm:$0xe]  ;;  %v1654_v63 = vsel %vm22029_vm6, %v16207_v45, %v1653_v34  ;;  %v5472_v23 = vsel %vm1248_vm2, %v5374_v58, 0  ;;  %v22348_v26 = vld [vmem:[#allocation12 + $0x6] sm:$0x3]  ;;  %p20613_p0 = por %p20612_p7, %p20611_p5 }
 0x27e   : > { %17963 = vmatprep.mubr.msk.bf16.mxu1 %vm1199_vm3, %v16283_v20  ;;  %v20146_v20 = vld [vmem:[#allocation2 + $0x1cc] sm:$0xff]   ;;  %17900 = vmatpush3.bf16.msra.mxu0 %v2086_v35  ;;  %v16208_v5 = vrot.slane %v1479_v61, 9  ;;  %v3510_v27 = vsel %vm1248_vm2, %v22297_v52, 0  ;;  %v5095_v34 = vld [vmem:[#allocation2 + $0xe8] sm:$0xf] }
 0x27f   : > { %v1475_v29 = vld [vmem:[#allocation2 + $0x2b0] sm:$0x1]  ;;  %v1480_v55 = vld [vmem:[#allocation2 + $0x2ec] sm:$0xf]  ;;  %19945 = vmatprep.subr.msk.bf16.mxu0 %vm1248_vm2, %v5374_v58  ;;  %v5098_v35 = vld [vmem:[#allocation2 + $0x108] sm:$0xf]  ;;  %p20614_p8 = pnand %p20613_p0, %p20607_p6 }
 0x280   : > { %v1660_v62 = vrot.slane %v1480_v55, 5  ;;  %v1481_v1 = vld [vmem:[#allocation2 + $0x2f0] sm:$0x1]  ;;  %v5096_v36 = vld [vmem:[#allocation2 + $0xec] sm:$0x3]  ;;  %v5271_v39 = vrot.slane %v5095_v34, 6 }
 0x281   : > { %v1663_v8 = vrot.slane %v1481_v1, 5  ;;  %v20150_v9 = vld [vmem:[#allocation2 + $0x24c] sm:$0xff]   ;;  %v5097_v42 = vld [vmem:[#allocation2 + $0x104] sm:$0xc]  ;;  %v5104_v45 = vld [vmem:[#allocation2 + $0x148] sm:$0xf] }
 0x282   : > { %v1662_v7 = vrot.slane %v1660_v62, 4  ;;  %v1661_v37 = vsel %vm22029_vm6, %v16208_v5, %v1660_v62  ;;  %v20151_v12 = vld [vmem:[#allocation2 + $0x26c] sm:$0xff]   ;;  %v5100_v55 = vld [vmem:[#allocation2 + $0x124] sm:$0xc]  ;;  %v5292_v61 = vrot.slane %v5104_v45, 6 }
 0x283   : > { %v20152_v14 = vld [vmem:[#allocation2 + $0x28c] sm:$0xff]   ;;  %v22425_v1 = vld [vmem:[#allocation2 + $0x188] sm:$0xf]  ;;  %v22459_v34 = vld [vmem:[#allocation2 + $0x1c4] sm:$0xc] }
 0x284   : > { %17880 = vmatmul.mubr.msk.bf16.gmra.mrb[44].mxu0 %vm1199_vm3, %v16220_v46  ;;  %v1664_v10 = vsel %vm22029_vm6, %v1662_v7, %v1663_v8  ;;  %v20153_v16 = vld [vmem:[#allocation2 + $0x2ac] sm:$0xff]  }
 0x285   : > { %17964 = vmatmul.mubr.msk.bf16.gmra.mrb[28].mxu1 %vm1199_vm3, %v16284_v51  ;;  %v1656_v51 = vrot.slane %v1478_v40, 5  ;;  %17883 = vmatprep.mubr.msk.bf16.mxu0 %vm1199_vm3, %v16221_v53  ;;  %v20154_v17 = vld [vmem:[#allocation2 + $0x2cc] sm:$0xff]  }
 0x286   : > { %17969 = vmatprep.mubr.msk.bf16.mxu1 %vm1199_vm3, %v20144_v38  ;;  %v1649_v38 = vrot.slane %v1475_v29, 5  ;;  %v20155_v19 = vld [vmem:[#allocation2 + $0x2ec] sm:$0xff]   ;;  %v22367_v29 = vld [vmem:[#allocation10 + $0x4] sm:$0x3] }
 0x287   : > { %v1657_v0 = vsel %vm22029_vm6, %v1655_v50, %v1656_v51  ;;  %v22342_v22 = vld [vmem:[#allocation2 + $0x32c] sm:$0xff]   ;;  %v5273_v50 = vrot.slane %v5271_v39, 4  ;;  %v16483_v51 = vrot.slane %v5097_v42, 10  ;;  %v22440_v8 = vsel %vm1248_vm2, %v22367_v29, 0 }
 0x288   : > { %v1650_v60 = vsel %vm22029_vm6, %v1648_v28, %v1649_v38  ;;  %v16223_v6 = vcombine.low %v1654_v63, %v1657_v0  ;;  %v22345_v25 = vld [vmem:[#allocation2 + $0x34c] sm:$0xff]   ;;  %v5101_v28 = vld [vmem:[#allocation2 + $0x128] sm:$0xf] }
 0x289   : > { %v16222_v4 = vcombine.low %v1647_v59, %v1650_v60  ;;  %v22415_v44 = vld [vmem:[#allocation2 + $0x3ac] sm:$0xff]   ;;  %v5285_v59 = vrot.slane %v5101_v28, 6  ;;  %v5103_v60 = vld [vmem:[#allocation2 + $0x144] sm:$0xc]  ;;  %v22423_v0 = vld [vmem:[#allocation2 + $0x168] sm:$0xf] }
 0x28a   : > { %v5102_v58 = vld [vmem:[#allocation2 + $0x12c] sm:$0x3]  ;;  %v22476_v28 = vld [vmem:[#allocation2 + $0x1e4] sm:$0xc]  ;;  %v22854_v21 = vld [vmem:[#allocation2 + $0x26c] sm:$0x8] }
 0x28b   : > { %v5105_v63 = vld [vmem:[#allocation2 + $0x14c] sm:$0x3]  ;;  %v5288_v5 = vrot.slane %v5102_v58, 6  ;;  %v5287_v7 = vrot.slane %v5285_v59, 4  ;;  %25583 = vst [vmem:[#allocation45_spill] sm:$0xff] %v22854_v21 }
 0x28c   : > { %17884 = vmatmul.mubr.msk.bf16.gmra.mrb[48].mxu0 %vm1199_vm3, %v16222_v4 }
 0x28d   : > { %17970 = vmatmul.mubr.msk.bf16.vlgmr.msra.gmra.mrb[0].mxu1 %vm1199_vm3, %v20145_v11  ;;  %17887 = vmatprep.mubr.msk.bf16.mxu0 %vm1199_vm3, %v16223_v6  ;;  %v16224_v11 = vcombine.low %v1661_v37, %v1664_v10  ;;  %v22442_v37 = vld [vmem:[#allocation2 + $0x1a8] sm:$0xf]  ;;  %v22444_v10 = vld [vmem:[#allocation2 + $0x3ec] sm:$0xff]  }
 0x28e   : > { %18002 = vmatpush3.bf16.msra.mxu1 %v3200_v3  ;;  %17973 = vmatprep.mubr.msk.bf16.mxu1 %vm1199_vm3, %v20146_v20  ;;  %v20149_v3 = vld [vmem:[#allocation2 + $0x22c] sm:$0xff]  }
 0x28f   : > { %19941 = vmatprep.subr.msk.bf16.mxu1 %vm1248_vm2, %v22297_v52  ;;  %v22333_v20 = vld [vmem:[#allocation2 + $0x30c] sm:$0xff]  }
 0x294   : > { %17888 = vmatmul.mubr.msk.bf16.gmra.mrb[52].mxu0 %vm1199_vm3, %v16224_v11 }
 0x295   : > { %17974 = vmatmul.mubr.msk.bf16.gmra.mrb[4].mxu1 %vm1199_vm3, %v20147_v43  ;;  %17891 = vmatprep.mubr.msk.bf16.mxu0 %vm1199_vm3, %v22049_v47  ;;  %v5278_v43 = vrot.slane %v5098_v35, 6  ;;  %v22461_v35 = vld [vmem:[#allocation2 + $0x1cc] sm:$0x3] }
 0x296   : > { %17977 = vmatprep.mubr.msk.bf16.mxu1 %vm1199_vm3, %v20148_v49 }
 0x29c   : > { %17892 = vmatmul.mubr.msk.bf16.gmra.mrb[56].mxu0 %vm1199_vm3, %v22057_v57 }
 0x29d   : > { %17978 = vmatmul.mubr.msk.bf16.gmra.mrb[8].mxu1 %vm1199_vm3, %v20149_v3  ;;  %17895 = vmatprep.mubr.msk.bf16.mxu0 %vm1199_vm3, %v22073_v2 }
 0x29e   : > { %17981 = vmatprep.mubr.msk.bf16.mxu1 %vm1199_vm3, %v20150_v9 }
 0x2a4   : > { %17896 = vmatmul.mubr.msk.bf16.gmra.mrb[60].mxu0 %vm1199_vm3, %v22089_v15 }
 0x2a5   : > { %17982 = vmatmul.mubr.msk.bf16.gmra.mrb[12].mxu1 %vm1199_vm3, %v20151_v12  ;;  %17901 = vmatprep.mubr.msk.bf16.mxu0 %vm1199_vm3, %v22280_v24  ;;  %v22355_v24 = vld [vmem:[#allocation2 + $0x36c] sm:$0xff]  }
 0x2a6   : > { %17985 = vmatprep.mubr.msk.bf16.mxu1 %vm1199_vm3, %v20152_v14 }
 0x2ac   : > { %17902 = vmatmul.mubr.msk.bf16.vlgmr.msra.gmra.mrb[32].mxu0 %vm1199_vm3, %v16220_v46  ;;  %v22417_v46 = vld [vmem:[#allocation2 + $0x3cc] sm:$0xff]  }
 0x2ad   : > { %17986 = vmatmul.mubr.msk.bf16.gmra.mrb[16].mxu1 %vm1199_vm3, %v20153_v16  ;;  %17905 = vmatprep.mubr.msk.bf16.mxu0 %vm1199_vm3, %v16221_v53  ;;  %v5280_v53 = vrot.slane %v5278_v43, 4 }
 0x2ae   : > { %17989 = vmatprep.mubr.msk.bf16.mxu1 %vm1199_vm3, %v20154_v17  ;;  %18172 = vmatpush3.bf16.msra.mxu0 %v5472_v23  ;;  %v22448_v23 = vld [vmem:[#allocation2 + $0x40c] sm:$0xff]  }
 0x2af   : > { %19946 = vmatprep.subr.msk.bf16.mxu0 %vm1248_vm2, %v22348_v26 }
 0x2b4   : > { %17906 = vmatmul.mubr.msk.bf16.gmra.mrb[36].mxu0 %vm1199_vm3, %v16222_v4  ;;  %v5279_v4 = vsel %vm22399_vm8, %v16483_v51, %v5278_v43 }
 0x2b5   : > { %17990 = vmatmul.mubr.msk.bf16.gmra.mrb[20].mxu1 %vm1199_vm3, %v20155_v19  ;;  %17909 = vmatprep.mubr.msk.bf16.mxu0 %vm1199_vm3, %v16223_v6 }
 0x2b6   : > { %17993 = vmatprep.mubr.msk.bf16.mxu1 %vm1199_vm3, %v22333_v20 }
 0x2bc   : > { %17910 = vmatmul.mubr.msk.bf16.gmra.mrb[40].mxu0 %vm1199_vm3, %v16224_v11  ;;  %v5294_v11 = vrot.slane %v5292_v61, 4 }
 0x2bd   : > { %17994 = vmatmul.mubr.msk.bf16.gmra.mrb[24].mxu1 %vm1199_vm3, %v22342_v22  ;;  %17913 = vmatprep.mubr.msk.bf16.mxu0 %vm1199_vm3, %v22049_v47  ;;  %v5092_v47 = vld [vmem:[#allocation2 + $0xc8] sm:$0xf] }
 0x2be   : > { %17997 = vmatprep.mubr.msk.bf16.mxu1 %vm1199_vm3, %v22345_v25 }
 0x2c4   : > { %17914 = vmatmul.mubr.msk.bf16.gmra.mrb[44].mxu0 %vm1199_vm3, %v22057_v57  ;;  %v5264_v57 = vrot.slane %v5092_v47, 6  ;;  %v5109_v47 = vld [vmem:[#allocation2 + $0x184] sm:$0xc] }
 0x2c5   : > { %17998 = vmatmul.mubr.msk.bf16.gmra.mrb[28].mxu1 %vm1199_vm3, %v22355_v24  ;;  %17917 = vmatprep.mubr.msk.bf16.mxu0 %vm1199_vm3, %v22073_v2  ;;  %v5091_v2 = vld [vmem:[#allocation2 + $0xc4] sm:$0xc]  ;;  %v16487_v43 = vrot.slane %v5109_v47, 10  ;;  %v22531_v47 = vld [vmem:[#allocation2 + $0x268] sm:$0xf] }
 0x2c6   : > { %18003 = vmatprep.mubr.msk.bf16.mxu1 %vm1199_vm3, %v20150_v9  ;;  %v16481_v31 = vrot.slane %v5091_v2, 10  ;;  %v5266_v32 = vrot.slane %v5264_v57, 4  ;;  %v16485_v9 = vrot.slane %v5103_v60, 10  ;;  %v5111_v2 = vld [vmem:[#allocation2 + $0x18c] sm:$0x3]  ;;  %v16490_v60 = vrot.slane %v22476_v28, 10 }
 0x2c7   : > { %v5309_v45 = vrot.slane %v5111_v2, 6 }
 0x2c8   : > { %v5265_v40 = vsel %vm22399_vm8, %v16481_v31, %v5264_v57  ;;  %v22450_v57 = vld [vmem:[#allocation2 + $0x1c8] sm:$0xf]  ;;  %v5313_v31 = vrot.slane %v22442_v37, 6 }
 0x2ca   : > { %v5315_v51 = vrot.slane %v5313_v31, 4 }
 0x2cc   : > { %17918 = vmatmul.mubr.msk.bf16.gmra.mrb[48].mxu0 %vm1199_vm3, %v22089_v15  ;;  %v5093_v15 = vld [vmem:[#allocation2 + $0xcc] sm:$0x3] }
 0x2cd   : > { %18004 = vmatmul.mubr.msk.bf16.vlgmr.msra.gmra.mrb[0].mxu1 %vm1199_vm3, %v20151_v12  ;;  %17921 = vmatprep.mubr.msk.bf16.mxu0 %vm1199_vm3, %v22102_v30  ;;  %v22396_v30 = vld [vmem:[#allocation2 + $0x38c] sm:$0xff]   ;;  %v5267_v33 = vrot.slane %v5093_v15, 6  ;;  %v5295_v12 = vrot.slane %v5105_v63, 6  ;;  %v22452_v15 = vld [vmem:[#allocation2 + $0x1a4] sm:$0xc] }
 0x2ce   : > { %18036 = vmatpush3.bf16.msra.mxu1 %v3510_v27  ;;  %18007 = vmatprep.mubr.msk.bf16.mxu1 %vm1199_vm3, %v20152_v14  ;;  %v5106_v14 = vld [vmem:[#allocation2 + $0x164] sm:$0xc]  ;;  %v5108_v27 = vld [vmem:[#allocation2 + $0x16c] sm:$0x3]  ;;  %v22497_v63 = vld [vmem:[#allocation2 + $0x208] sm:$0xf] }
 0x2cf   : > { %19942 = vmatprep.subr.msk.bf16.mxu1 %vm1248_vm2, %v22367_v29  ;;  %v5268_v41 = vsel %vm22399_vm8, %v5266_v32, %v5267_v33  ;;  %v5863_v32 = vsel %vm1248_vm2, %v22348_v26, 0  ;;  %v22457_v33 = vld [vmem:[#allocation2 + $0x1ac] sm:$0x3]  ;;  %v5293_v26 = vsel %vm22399_vm8, %v16485_v9, %v5292_v61  ;;  %v5334_v9 = vrot.slane %v22497_v63, 6 }
 0x2d0   : > { %v16497_v49 = vcombine.low %v5265_v40, %v5268_v41  ;;  %v5320_v40 = vrot.slane %v22450_v57, 6  ;;  %v22469_v41 = vld [vmem:[#allocation12 + $0xc] sm:$0x3]  ;;  %v22572_v57 = vld [vmem:[#allocation2 + $0x288] sm:$0xf] }
 0x2d1   : > { %v5336_v2 = vrot.slane %v5334_v9, 4 }
 0x2d4   : > { %17922 = vmatmul.mubr.msk.bf16.gmra.mrb[52].mxu0 %vm1199_vm3, %v22118_v48 }
 0x2d5   : > { %18008 = vmatmul.mubr.msk.bf16.gmra.mrb[4].mxu1 %vm1199_vm3, %v20153_v16  ;;  %17925 = vmatprep.mubr.msk.bf16.mxu0 %vm1199_vm3, %v22123_v54  ;;  %v5094_v54 = vld [vmem:[#allocation2 + $0xe4] sm:$0xc]  ;;  %v5299_v16 = vrot.slane %v22423_v0, 6 }
 0x2d6   : > { %18011 = vmatprep.mubr.msk.bf16.mxu1 %vm1199_vm3, %v20154_v17  ;;  %v16482_v38 = vrot.slane %v5094_v54, 10  ;;  %v5306_v17 = vrot.slane %v22425_v1, 6 }
 0x2d7   : > { %v5301_v42 = vrot.slane %v5299_v16, 4 }
 0x2d8   : > { %v5272_v62 = vsel %vm22399_vm8, %v16482_v38, %v5271_v39  ;;  %v16486_v39 = vrot.slane %v5106_v14, 10  ;;  %v5296_v38 = vsel %vm22399_vm8, %v5294_v11, %v5295_v12  ;;  %v22521_v12 = vld [vmem:[#allocation2 + $0x224] sm:$0xc] }
 0x2d9   : > { %v16501_v61 = vcombine.low %v5293_v26, %v5296_v38  ;;  %v22570_v38 = vld [vmem:[#allocation2 + $0x284] sm:$0xc] }
 0x2da   : > { %v5300_v0 = vsel %vm22399_vm8, %v16486_v39, %v5299_v16  ;;  %v22523_v16 = vld [vmem:[#allocation2 + $0x228] sm:$0xf]  ;;  %v22549_v39 = vld [vmem:[#allocation2 + $0x244] sm:$0xc] }
 0x2dc   : > { %17926 = vmatmul.mubr.msk.bf16.gmra.mrb[56].mxu0 %vm1199_vm3, %v22140_v13  ;;  %v5099_v13 = vld [vmem:[#allocation2 + $0x10c] sm:$0x3] }
 0x2dd   : > { %18012 = vmatmul.mubr.msk.bf16.gmra.mrb[8].mxu1 %vm1199_vm3, %v20155_v19  ;;  %17929 = vmatprep.mubr.msk.bf16.mxu0 %vm1199_vm3, %v22143_v18  ;;  %v5274_v18 = vrot.slane %v5096_v36, 6  ;;  %v5281_v52 = vrot.slane %v5099_v13, 6  ;;  %v5289_v36 = vsel %vm22399_vm8, %v5287_v7, %v5288_v5  ;;  %v5302_v13 = vrot.slane %v5108_v27, 6  ;;  %v22518_v7 = vld [vmem:[#allocation2 + $0x20c] sm:$0x3] }
 0x2de   : > { %18015 = vmatprep.mubr.msk.bf16.mxu1 %vm1199_vm3, %v22333_v20  ;;  %v22529_v27 = vld [vmem:[#allocation2 + $0x248] sm:$0xf] }
 0x2df   : > { %v5275_v3 = vsel %vm22399_vm8, %v5273_v50, %v5274_v18  ;;  %v5282_v6 = vsel %vm22399_vm8, %v5280_v53, %v5281_v52  ;;  %v5308_v18 = vrot.slane %v5306_v17, 4  ;;  %v22483_v50 = vld [vmem:[#allocation2 + $0x42c] sm:$0xff]   ;;  %v5316_v52 = vrot.slane %v22457_v33, 6 }
 0x2e0   : > { %v16498_v19 = vcombine.low %v5272_v62, %v5275_v3  ;;  %v16499_v29 = vcombine.low %v5279_v4, %v5282_v6  ;;  %v16489_v53 = vrot.slane %v22459_v34, 10  ;;  %v22495_v62 = vld [vmem:[#allocation2 + $0x1e8] sm:$0xf]  ;;  %v5303_v1 = vsel %vm22399_vm8, %v5301_v42, %v5302_v13  ;;  %v22507_v3 = vld [vmem:[#allocation2 + $0x1ec] sm:$0x3] }
 0x2e1   : > { %v22509_v4 = vld [vmem:[#allocation2 + $0x204] sm:$0xc]  ;;  %v5310_v5 = vsel %vm22399_vm8, %v5308_v18, %v5309_v45  ;;  %v5327_v6 = vrot.slane %v22495_v62, 6  ;;  %v16502_v11 = vcombine.low %v5300_v0, %v5303_v1  ;;  %v5341_v33 = vrot.slane %v22523_v16, 6  ;;  %v22574_v18 = vld [vmem:[#allocation2 + $0x28c] sm:$0x3] }
 0x2e2   : > { %v5348_v26 = vrot.slane %v22529_v27, 6  ;;  %v5355_v42 = vrot.slane %v22531_v47, 6  ;;  %v22564_v13 = vld [vmem:[#allocation2 + $0x264] sm:$0xc]  ;;  %v16493_v45 = vrot.slane %v22549_v39, 10  ;;  %v5362_v62 = vrot.slane %v22572_v57, 6 }
 0x2e3   : > { %v5365_v63 = vrot.slane %v22574_v18, 6  ;;  %v5328_v0 = vsel %vm22399_vm8, %v16490_v60, %v5327_v6  ;;  %v22617_v60 = vld [vmem:[#allocation2 + $0x18c] sm:$0x8]  ;;  %v22761_v57 = vld [vmem:[#allocation2 + $0x210] sm:$0xf] }
 0x2e4   : > { %17930 = vmatmul.mubr.msk.bf16.gmra.mrb[60].mxu0 %vm1199_vm3, %v22167_v56  ;;  %v16484_v56 = vrot.slane %v5100_v55, 10  ;;  %v5323_v55 = vrot.slane %v22461_v35, 6  ;;  %v22538_v35 = vld [vmem:[#allocation10 + $0xa] sm:$0x3]  ;;  %v22768_v18 = vld [vmem:[#allocation2 + $0x324] sm:$0xc] }
 0x2e5   : > { %18016 = vmatmul.mubr.msk.bf16.gmra.mrb[12].mxu1 %vm1199_vm3, %v22342_v22  ;;  %18173 = vmatprep.mubr.msk.bf16.mxu0 %vm1199_vm3, %v16497_v49  ;;  %v16488_v49 = vrot.slane %v22452_v15, 10  ;;  %v5337_v15 = vrot.slane %v22518_v7, 6  ;;  %v22621_v7 = vld [vmem:[#allocation2 + $0x1ac] sm:$0x8] }
 0x2e6   : > { %18019 = vmatprep.mubr.msk.bf16.mxu1 %vm1199_vm3, %v22345_v25  ;;  %v5286_v54 = vsel %vm22399_vm8, %v16484_v56, %v5285_v59  ;;  %v5322_v59 = vrot.slane %v5320_v40, 4  ;;  %v5307_v56 = vsel %vm22399_vm8, %v16487_v43, %v5306_v17  ;;  %v16491_v17 = vrot.slane %v22509_v4, 10  ;;  %v22566_v43 = vld [vmem:[#allocation2 + $0x26c] sm:$0x3] }
 0x2e7   : > { %v16500_v58 = vcombine.low %v5286_v54, %v5289_v36  ;;  %v16503_v14 = vcombine.low %v5307_v56, %v5310_v5  ;;  %v5314_v54 = vsel %vm22399_vm8, %v16488_v49, %v5313_v31  ;;  %v5317_v36 = vsel %vm22399_vm8, %v5315_v51, %v5316_v52  ;;  %v22562_v31 = vld [vmem:[#allocation2 + $0x24c] sm:$0x3]  ;;  %v22579_v49 = vld [vmem:[#allocation2 + $0x2a8] sm:$0xf]  ;;  %v22581_v51 = vld [vmem:[#allocation2 + $0x190] sm:$0xf] }
 0x2e8   : > { %v5324_v37 = vsel %vm22399_vm8, %v5322_v59, %v5323_v55  ;;  %v5350_v52 = vrot.slane %v5348_v26, 4  ;;  %v16494_v55 = vrot.slane %v22564_v13, 10  ;;  %v22591_v59 = vrot.slane %v5355_v42, 4  ;;  %v22607_v4 = vld [vmem:[#allocation2 + $0x2ac] sm:$0x3] }
 0x2e9   : > { %v5369_v56 = vrot.slane %v22579_v49, 6  ;;  %v25507_v5 = vrot.slane %v22581_v51, 7  ;;  %v5338_v28 = vsel %vm22399_vm8, %v5336_v2, %v5337_v15  ;;  %v5372_v15 = vrot.slane %v22607_v4, 6  ;;  %v22808_v4 = vld [vmem:[#allocation2 + $0x22c] sm:$0x8] }
 0x2ea   : > { %25575 = vst [vmem:[#allocation37_spill] sm:$0xff] %v22808_v4  ;;  %v20167_v49 = vld [vmem:[#allocation2 + $0x46c] sm:$0xff]   ;;  %v25591_v21 = vrot.slane %v22581_v51, 7 }
 0x2eb   : > { %v22636_v2 = vrot.slane %v5369_v56, 4  ;;  %v22642_v39 = vrot.slane %v25507_v5, 4  ;;  %v22850_v5 = vld [vmem:[#allocation2 + $0x24c] sm:$0x8] }
 0x2ec   : > { %18174 = vmatmul.mubr.msk.bf16.vlgmr.msra.gmra.mrb[64].mxu0 %vm1199_vm3, %v16498_v19  ;;  %v22525_v19 = vld [vmem:[#allocation2 + $0x22c] sm:$0x3]  ;;  %25581 = vst [vmem:[#allocation43_spill] sm:$0xff] %v22850_v5  ;;  %v22925_v5 = vld [vmem:[#allocation2 + $0x294] sm:$0x7] }
 0x2ed   : > { %18020 = vmatmul.mubr.msk.bf16.gmra.mrb[16].mxu1 %vm1199_vm3, %v22355_v24  ;;  %18177 = vmatprep.mubr.msk.bf16.mxu0 %vm1199_vm3, %v16499_v29  ;;  %v5329_v29 = vrot.slane %v5327_v6, 4  ;;  %v5344_v34 = vrot.slane %v22525_v19, 6  ;;  %v22619_v6 = vld [vmem:[#allocation2 + $0x194] sm:$0x7]  ;;  %v22680_v19 = vld [vmem:[#allocation2 + $0x2ec] sm:$0x3] }
 0x2ee   : > { %18023 = vmatprep.mubr.msk.bf16.mxu1 %vm1199_vm3, %v22396_v30  ;;  %18206 = vmatpush3.bf16.msra.mxu0 %v5863_v32  ;;  %v16492_v32 = vrot.slane %v22521_v12, 10  ;;  %v5349_v12 = vsel %vm22399_vm8, %v16493_v45, %v5348_v26  ;;  %v22695_v26 = vld [vmem:[#allocation2 + $0x308] sm:$0xf]  ;;  %v20168_v45 = vld [vmem:[#allocation2 + $0x48c] sm:$0xff]  }
 0x2ef   : > { %19947 = vmatprep.subr.msk.bf16.mxu0 %vm1248_vm2, %v22469_v41 }
 0x2f4   : > { %18178 = vmatmul.mubr.msk.bf16.gmra.mrb[68].mxu0 %vm1199_vm3, %v16500_v58  ;;  %v5358_v58 = vrot.slane %v22566_v43, 6  ;;  %v20166_v43 = vld [vmem:[#allocation2 + $0x44c] sm:$0xff]  }
 0x2f5   : > { %18024 = vmatmul.mubr.msk.bf16.gmra.mrb[20].mxu1 %vm1199_vm3, %v22415_v44  ;;  %18181 = vmatprep.mubr.msk.bf16.mxu0 %vm1199_vm3, %v16501_v61  ;;  %v16495_v61 = vrot.slane %v22570_v38, 10  ;;  %v22763_v38 = vld [vmem:[#allocation2 + $0x230] sm:$0xf] }
 0x2f6   : > { %18027 = vmatprep.mubr.msk.bf16.mxu1 %vm1199_vm3, %v22417_v46  ;;  %25572 = vst [vmem:[#allocation34_spill] sm:$0xff] %v22763_v38 }
 0x2fc   : > { %18182 = vmatmul.mubr.msk.bf16.gmra.mrb[72].mxu0 %vm1199_vm3, %v16502_v11  ;;  %v22623_v11 = vld [vmem:[#allocation2 + $0x1b0] sm:$0xf] }
 0x2fd   : > { %18028 = vmatmul.mubr.msk.bf16.gmra.mrb[24].mxu1 %vm1199_vm3, %v22444_v10  ;;  %18185 = vmatprep.mubr.msk.bf16.mxu0 %vm1199_vm3, %v16503_v14 }
 0x2fe   : > { %18031 = vmatprep.mubr.msk.bf16.mxu1 %vm1199_vm3, %v22448_v23 }
 0x305   : > { %18032 = vmatmul.mubr.msk.bf16.gmra.mrb[28].mxu1 %vm1199_vm3, %v22483_v50 }
 0x306   : > { %18037 = vmatprep.mubr.msk.bf16.mxu1 %vm1199_vm3, %v22333_v20  ;;  %v5330_v20 = vrot.slane %v22507_v3, 6  ;;  %v22605_v3 = vld [vmem:[#allocation2 + $0x2a4] sm:$0xc] }
 0x308   : > { %v5331_v1 = vsel %vm22399_vm8, %v5329_v29, %v5330_v20  ;;  %v22625_v20 = vld [vmem:[#allocation2 + $0x1b4] sm:$0x7] }
 0x309   : > { %v16506_v14 = vcombine.low %v5328_v0, %v5331_v1  ;;  %v5342_v1 = vsel %vm22399_vm8, %v16492_v32, %v5341_v33  ;;  %v22682_v32 = vld [vmem:[#allocation2 + $0x1cc] sm:$0x8] }
 0x30d   : > { %18038 = vmatmul.mubr.msk.bf16.vlgmr.msra.gmra.mrb[0].mxu1 %vm1199_vm3, %v22342_v22  ;;  %v5321_v22 = vsel %vm22399_vm8, %v16489_v53, %v5320_v40  ;;  %v5343_v40 = vrot.slane %v5341_v33, 4  ;;  %v5351_v53 = vrot.slane %v22562_v31, 6  ;;  %v25499_v31 = vrot.slane %v22623_v11, 7  ;;  %v22684_v33 = vld [vmem:[#allocation2 + $0x1f0] sm:$0xf] }
 0x30e   : > { %18070 = vmatpush3.bf16.msra.mxu1 %v22440_v8  ;;  %18041 = vmatprep.mubr.msk.bf16.mxu1 %vm1199_vm3, %v22345_v25  ;;  %v16504_v8 = vcombine.low %v5314_v54, %v5317_v36  ;;  %v16505_v25 = vcombine.low %v5321_v22, %v5324_v37  ;;  %v22627_v54 = vld [vmem:[#allocation2 + $0x2c8] sm:$0xf]  ;;  %v22737_v37 = vld [vmem:[#allocation2 + $0x1ec] sm:$0x8]  ;;  %v22845_v36 = vld [vmem:[#allocation2 + $0x364] sm:$0xc] }
 0x30f   : > { %19943 = vmatprep.subr.msk.bf16.mxu1 %vm1248_vm2, %v22538_v35  ;;  %v5352_v16 = vsel %vm22399_vm8, %v5350_v52, %v5351_v53  ;;  %v25501_v53 = vrot.slane %v22684_v33, 7  ;;  %v22862_v22 = vld [vmem:[#allocation2 + $0x388] sm:$0xf]  ;;  %v25594_v51 = vrot.slane %v22627_v54, 6 }
 0x310   : > { %18186 = vmatmul.mubr.msk.bf16.gmra.mrb[76].mxu0 %vm1199_vm3, %v16504_v8  ;;  %v22668_v8 = vld [vmem:[#allocation2 + $0x2e4] sm:$0xc]  ;;  %v22691_v27 = vcombine.low %v5349_v12, %v5352_v16 }
 0x311   : > { %18189 = vmatprep.mubr.msk.bf16.mxu0 %vm1199_vm3, %v16505_v25  ;;  %v25505_v25 = vrot.slane %v22627_v54, 6  ;;  %v22950_v54 = vld [vmem:[#allocation2 + $0x2b0] sm:$0xf] }
 0x313   : > { %v22700_v52 = vrot.slane %v25505_v25, 4 }
 0x315   : > { %18042 = vmatmul.mubr.msk.bf16.gmra.mrb[4].mxu1 %vm1199_vm3, %v22355_v24  ;;  %v5335_v24 = vsel %vm22399_vm8, %v16491_v17, %v5334_v9  ;;  %v5364_v9 = vrot.slane %v5362_v62, 4  ;;  %v16496_v17 = vrot.slane %v22605_v3, 10 }
 0x316   : > { %18045 = vmatprep.mubr.msk.bf16.mxu1 %vm1199_vm3, %v22396_v30  ;;  %v16507_v29 = vcombine.low %v5335_v24, %v5338_v28  ;;  %v22629_v30 = vld [vmem:[#allocation2 + $0x2e8] sm:$0xf]  ;;  %v5345_v24 = vsel %vm22399_vm8, %v5343_v40, %v5344_v34  ;;  %v22664_v28 = vld [vmem:[#allocation2 + $0x2c4] sm:$0xc]  ;;  %v22688_v40 = vrot.slane %v25499_v31, 4 }
 0x317   : > { %v25503_v0 = vrot.slane %v22629_v30, 6  ;;  %v16508_v34 = vcombine.low %v5342_v1, %v5345_v24  ;;  %v22706_v24 = vsel %vm1248_vm2, %v22538_v35, 0  ;;  %v25502_v35 = vrot.slane %v22695_v26, 6 }
 0x318   : > { %18190 = vmatmul.mubr.msk.bf16.gmra.mrb[80].mxu0 %vm1199_vm3, %v16506_v14  ;;  %v22666_v14 = vld [vmem:[#allocation2 + $0x2cc] sm:$0x3]  ;;  %v5359_v1 = vsel %vm22399_vm8, %v22591_v59, %v5358_v58  ;;  %v5366_v47 = vsel %vm22399_vm8, %v5364_v9, %v5365_v63  ;;  %v22796_v63 = vld [vmem:[#allocation2 + $0x20c] sm:$0x8]  ;;  %v22798_v58 = vld [vmem:[#allocation2 + $0x214] sm:$0x7] }
 0x319   : > { %18193 = vmatprep.mubr.msk.bf16.mxu0 %vm1199_vm3, %v16507_v29  ;;  %v22693_v29 = vld [vmem:[#allocation2 + $0x1d4] sm:$0x7]  ;;  %v22710_v12 = vrot.slane %v25503_v0, 4  ;;  %v22766_v59 = vld [vmem:[#allocation2 + $0x30c] sm:$0x3]  ;;  %25573 = vst [vmem:[#allocation35_spill] sm:$0xff] %v22796_v63 }
 0x31a   : > { %25574 = vst [vmem:[#allocation36_spill] sm:$0xff] %v22798_v58  ;;  %v25508_v9 = vrot.slane %v22763_v38, 7  ;;  %v22828_v0 = vld [vmem:[#allocation2 + $0x250] sm:$0xf]  ;;  %v22885_v63 = vld [vmem:[#allocation2 + $0x3a8] sm:$0xf] }
 0x31b   : > { %25577 = vst [vmem:[#allocation39_spill] sm:$0xff] %v22828_v0 }
 0x31c   : > { %v22837_v25 = vrot.slane %v25508_v9, 4  ;;  %v22852_v9 = vld [vmem:[#allocation2 + $0x254] sm:$0x7] }
 0x31d   : > { %18046 = vmatmul.mubr.msk.bf16.gmra.mrb[8].mxu1 %vm1199_vm3, %v22415_v44  ;;  %v22670_v44 = vld [vmem:[#allocation2 + $0x1d0] sm:$0xf]  ;;  %25582 = vst [vmem:[#allocation44_spill] sm:$0xff] %v22852_v9 }
 0x31e   : > { %18049 = vmatprep.mubr.msk.bf16.mxu1 %vm1199_vm3, %v22417_v46  ;;  %v25500_v46 = vrot.slane %v22670_v44, 7  ;;  %25579 = vst [vmem:[#allocation41_spill] sm:$0xff] %v22837_v25  ;;  %v20169_v25 = vld [vmem:[#allocation2 + $0x4ac] sm:$0xff]  }
 0x320   : > { %18194 = vmatmul.mubr.msk.bf16.gmra.mrb[84].mxu0 %vm1199_vm3, %v16508_v34  ;;  %v22717_v31 = vrot.slane %v25500_v46, 4  ;;  %v5356_v34 = vsel %vm22399_vm8, %v16494_v55, %v5355_v42  ;;  %v22739_v46 = vld [vmem:[#allocation2 + $0x328] sm:$0xf]  ;;  %v22753_v42 = vld [vmem:[#allocation2 + $0x1f4] sm:$0x7] }
 0x321   : > { %18197 = vmatprep.mubr.msk.bf16.mxu0 %vm1199_vm3, %v22691_v27  ;;  %v22755_v13 = vcombine.low %v5356_v34, %v5359_v1  ;;  %v22757_v55 = vld [vmem:[#allocation2 + $0x304] sm:$0xc]  ;;  %v22779_v1 = vrot.slane %v25502_v35, 4  ;;  %v22781_v34 = vld [vmem:[#allocation2 + $0x32c] sm:$0x3] }
 0x322   : > { %v22860_v35 = vld [vmem:[#allocation2 + $0x274] sm:$0x7] }
 0x323   : > { %25584 = vst [vmem:[#allocation46_spill] sm:$0xff] %v22860_v35  ;;  %v22910_v35 = vld [vmem:[#allocation2 + $0x290] sm:$0xf] }
 0x325   : > { %18050 = vmatmul.mubr.msk.bf16.gmra.mrb[12].mxu1 %vm1199_vm3, %v22444_v10  ;;  %v5363_v10 = vsel %vm22399_vm8, %v16495_v61, %v5362_v62  ;;  %v25504_v61 = vrot.slane %v22739_v46, 6  ;;  %v22773_v62 = vrot.slane %v25501_v53, 4  ;;  %v25506_v53 = vrot.slane %v22761_v57, 7 }
 0x326   : > { %18053 = vmatprep.mubr.msk.bf16.mxu1 %vm1199_vm3, %v22448_v23  ;;  %v22759_v23 = vcombine.low %v5363_v10, %v5366_v47  ;;  %v5370_v10 = vsel %vm22399_vm8, %v16496_v17, %v5369_v56  ;;  %v5373_v47 = vsel %vm22399_vm8, %v22636_v2, %v5372_v15  ;;  %v22810_v56 = vld [vmem:[#allocation2 + $0x234] sm:$0x7]  ;;  %v22818_v2 = vld [vmem:[#allocation2 + $0x348] sm:$0xf] }
 0x327   : > { %25576 = vst [vmem:[#allocation38_spill] sm:$0xff] %v22810_v56  ;;  %v22815_v17 = vrot.slane %v25504_v61, 4  ;;  %v22820_v15 = vld [vmem:[#allocation2 + $0x368] sm:$0xf]  ;;  %v22822_v3 = vcombine.low %v5370_v10, %v5373_v47  ;;  %v22832_v61 = vrot.slane %v25506_v53, 4  ;;  %v25515_v16 = vrot.slane %v22818_v2, 6 }
 0x328   : > { %18198 = vmatmul.mubr.msk.bf16.gmra.mrb[88].mxu0 %vm1199_vm3, %v22755_v13  ;;  %v22840_v47 = vld [vmem:[#allocation2 + $0x34c] sm:$0x3]  ;;  %v22858_v10 = vld [vmem:[#allocation2 + $0x270] sm:$0xf]  ;;  %v25585_v4 = vrot.slane %v22820_v15, 6  ;;  %v25593_v56 = vrot.slane %v22619_v6, 7 }
 0x329   : > { %18201 = vmatprep.mubr.msk.bf16.mxu0 %vm1199_vm3, %v22759_v23  ;;  %25578 = vst [vmem:[#allocation40_spill] sm:$0xff] %v22832_v61  ;;  %v22847_v53 = vld [vmem:[#allocation2 + $0x36c] sm:$0x3]  ;;  %v25596_v6 = vrot.slane %v22666_v14, 6  ;;  %v22973_v14 = vld [vmem:[#allocation2 + $0x3c8] sm:$0xf] }
 0x32a   : > { %25580 = vst [vmem:[#allocation42_spill] sm:$0xff] %v22847_v53  ;;  %v22875_v38 = vrot.slane %v25585_v4, 4  ;;  %v20170_v61 = vld [vmem:[#allocation2 + $0x4cc] sm:$0xff]   ;;  %v22891_v53 = vld [vmem:[#allocation2 + $0x384] sm:$0xc] }
 0x32b   : > { %v22906_v4 = vld [vmem:[#allocation2 + $0x3ac] sm:$0x3] }
 0x32c   : > { %25586 = vst [vmem:[#allocation47_spill] sm:$0xff] %v22875_v38  ;;  %v6317_v38 = vsel %vm1248_vm2, %v22469_v41, 0  ;;  %v3910_v41 = vsel %vm22895_vm11, %v22642_v39, %v25593_v56  ;;  %v5710_v39 = vsel %vm22399_vm8, %v22700_v52, %v25596_v6  ;;  %v20171_v6 = vld [vmem:[#allocation2 + $0x4ec] sm:$0xff]  }
 0x32d   : > { %18054 = vmatmul.mubr.msk.bf16.gmra.mrb[16].mxu1 %vm1199_vm3, %v22483_v50  ;;  %v22869_v50 = vrot.slane %v25515_v16, 4  ;;  %v22899_v16 = vld [vmem:[#allocation2 + $0x38c] sm:$0x3] }
 0x32e   : > { %18057 = vmatprep.mubr.msk.bf16.mxu1 %vm1199_vm3, %v20166_v43  ;;  %v22826_v43 = vld [vmem:[#allocation2 + $0x344] sm:$0xc] }
 0x330   : > { %18202 = vmatmul.mubr.msk.bf16.gmra.mrb[92].mxu0 %vm1199_vm3, %v22822_v3 }
 0x331   : > { %18207 = vmatprep.mubr.msk.bf16.mxu0 %vm1199_vm3, %v22691_v27  ;;  %v25587_v27 = vrot.slane %v22828_v0, 7  ;;  %v22927_v0 = vld [vmem:[#allocation12 + $0x2] sm:$0x3] }
 0x333   : > { %v22882_v58 = vrot.slane %v25587_v27, 4 }
 0x335   : > { %18058 = vmatmul.mubr.msk.bf16.gmra.mrb[20].mxu1 %vm1199_vm3, %v20167_v49  ;;  %25588 = vst [vmem:[#allocation48_spill] sm:$0xff] %v22882_v58  ;;  %v22901_v49 = vld [vmem:[#allocation2 + $0x3a4] sm:$0xc]  ;;  %v25592_v58 = vrot.slane %v22617_v60, 11  ;;  %v25595_v60 = vrot.slane %v22664_v28, 10  ;;  %v25599_v28 = vrot.slane %v22862_v22, 6 }
 0x336   : > { %18061 = vmatprep.mubr.msk.bf16.mxu1 %vm1199_vm3, %v20168_v45  ;;  %v22908_v45 = vld [vmem:[#allocation2 + $0x28c] sm:$0x8] }
 0x337   : > { %v3907_v9 = vsel %vm22895_vm11, %v25592_v58, %v25591_v21  ;;  %v5707_v21 = vsel %vm22399_vm8, %v25595_v60, %v25594_v51  ;;  %v22955_v56 = vrot.slane %v25599_v28, 4  ;;  %v25600_v51 = vrot.slane %v22885_v63, 6  ;;  %v22969_v28 = vld [vmem:[#allocation2 + $0x2b4] sm:$0x7] }
 0x338   : > { %18208 = vmatmul.mubr.msk.bf16.vlgmr.msra.gmra.mrb[64].mxu0 %vm1199_vm3, %v22755_v13  ;;  %v25597_v13 = vrot.slane %v22858_v10, 7 }
 0x339   : > { %18211 = vmatprep.mubr.msk.bf16.mxu0 %vm1199_vm3, %v22759_v23  ;;  %v22948_v23 = vld [vmem:[#allocation2 + $0x2ac] sm:$0x8]  ;;  %v22961_v60 = vrot.slane %v25600_v51, 4  ;;  %18240 = vmatpush3.bf16.msra.mxu0 %v6317_v38  ;;  %v16541_v38 = vcombine.low %v5707_v21, %v5710_v39  ;;  %v25604_v51 = vrot.slane %v22625_v20, 7  ;;  %v25608_v20 = vrot.slane %v22910_v35, 7 }
 0x33a   : > { %v22945_v58 = vrot.slane %v25597_v13, 4  ;;  %19948 = vmatprep.subr.msk.bf16.mxu0 %vm1248_vm2, %v22927_v0  ;;  %v16393_v13 = vcombine.low %v3907_v9, %v3910_v41  ;;  %v25605_v9 = vrot.slane %v22629_v30, 6  ;;  %v25606_v41 = vrot.slane %v22668_v8, 10 }
 0x33b   : > { %25601 = vst [vmem:[#allocation50_spill] sm:$0xff] %v22961_v60  ;;  %v22975_v60 = vld [vmem:[#allocation2 + $0x3e8] sm:$0xf]  ;;  %v3917_v21 = vsel %vm22895_vm11, %v22688_v40, %v25604_v51  ;;  %v23007_v40 = vrot.slane %v25608_v20, 4  ;;  %v25609_v30 = vrot.slane %v22950_v54, 7  ;;  %v3972_v39 = vrot.slane %v22969_v28, 7 }
 0x33c   : > { %25598 = vst [vmem:[#allocation49_spill] sm:$0xff] %v22945_v58  ;;  %v25602_v58 = vrot.slane %v22623_v11, 7  ;;  %v25607_v11 = vrot.slane %v22680_v19, 6  ;;  %v5762_v19 = vrot.slane %v22973_v14, 6  ;;  %v23040_v20 = vld [vmem:[#allocation2 + $0x3cc] sm:$0x3] }
 0x33d   : > { %18062 = vmatmul.mubr.msk.bf16.gmra.mrb[24].mxu1 %vm1199_vm3, %v20169_v25  ;;  %v22977_v25 = vld [vmem:[#allocation2 + $0x3c4] sm:$0xc]  ;;  %v23011_v8 = vrot.slane %v25609_v30, 4  ;;  %v25666_v14 = vrot.slane %v22950_v54, 7 }
 0x33e   : > { %18065 = vmatprep.mubr.msk.bf16.mxu1 %vm1199_vm3, %v20170_v61  ;;  %v25603_v61 = vrot.slane %v22621_v7, 11  ;;  %v5717_v7 = vsel %vm22399_vm8, %v22710_v12, %v25607_v11  ;;  %v25610_v12 = vrot.slane %v22695_v26, 6 }
 0x340   : > { %18212 = vmatmul.mubr.msk.bf16.gmra.mrb[68].mxu0 %vm1199_vm3, %v22822_v3  ;;  %v3914_v52 = vsel %vm22895_vm11, %v25603_v61, %v25602_v58  ;;  %v5714_v3 = vsel %vm22399_vm8, %v25606_v41, %v25605_v9  ;;  %v25611_v58 = vrot.slane %v22757_v55, 10  ;;  %v25612_v61 = vrot.slane %v22766_v59, 6 }
 0x341   : > { %18215 = vmatprep.mubr.msk.bf16.mxu0 %vm1199_vm3, %v16541_v38  ;;  %v16537_v38 = vrot.slane %v22977_v25, 10  ;;  %v5769_v9 = vrot.slane %v22975_v60, 6  ;;  %v25613_v41 = vrot.slane %v22670_v44, 7  ;;  %v25615_v55 = vrot.slane %v22693_v29, 7  ;;  %v23046_v44 = vld [vmem:[#allocation2 + $0x2d0] sm:$0xf] }
 0x342   : > { %v5724_v51 = vsel %vm22399_vm8, %v22779_v1, %v25612_v61  ;;  %v16542_v11 = vcombine.low %v5714_v3, %v5717_v7  ;;  %v16394_v1 = vcombine.low %v3914_v52, %v3917_v21  ;;  %v23048_v61 = vld [vmem:[#allocation10 + $0x10] sm:$0x3]  ;;  %v25616_v29 = vrot.slane %v22684_v33, 7 }
 0x343   : > { %v3924_v59 = vsel %vm22895_vm11, %v22717_v31, %v25615_v55  ;;  %v25617_v31 = vrot.slane %v22737_v37, 11  ;;  %v25618_v52 = vrot.slane %v22753_v42, 7  ;;  %v25619_v7 = vrot.slane %v22739_v46, 6 }
 0x344   : > { %v25621_v33 = vrot.slane %v22781_v34, 6  ;;  %v25622_v42 = vrot.slane %v22818_v2, 6 }
 0x345   : > { %18066 = vmatmul.mubr.msk.bf16.gmra.mrb[28].mxu1 %vm1199_vm3, %v20171_v6  ;;  %v5721_v6 = vsel %vm22399_vm8, %v25611_v58, %v25610_v12  ;;  %v23042_v12 = vld [vmem:[#allocation2 + $0x3e4] sm:$0xc]  ;;  %v23044_v58 = vld [vmem:[#allocation2 + $0x3ec] sm:$0x3]  ;;  %v3928_v3 = vsel %vm22895_vm11, %v25617_v31, %v25616_v29  ;;  %v3931_v21 = vsel %vm22895_vm11, %v22773_v62, %v25618_v52  ;;  %v25623_v62 = vrot.slane %v22826_v43, 10 }
 0x346   : > { %18071 = vmatprep.mubr.msk.bf16.mxu1 %vm1199_vm3, %v16393_v13  ;;  %v25614_v13 = vrot.slane %v22682_v32, 11  ;;  %v16543_v30 = vcombine.low %v5721_v6, %v5724_v51  ;;  %v25620_v6 = vrot.slane %v22768_v18, 10  ;;  %v5731_v37 = vsel %vm22399_vm8, %v22815_v17, %v25621_v33  ;;  %v23113_v29 = vld [vmem:[#allocation2 + $0x2cc] sm:$0x8]  ;;  %v23115_v31 = vld [vmem:[#allocation2 + $0x2d4] sm:$0x7] }
 0x347   : > { %v5735_v46 = vsel %vm22399_vm8, %v25623_v62, %v25622_v42  ;;  %v25624_v18 = vrot.slane %v22840_v47, 6  ;;  %v23088_v17 = vrot.slane %v5762_v19, 4  ;;  %v16538_v2 = vrot.slane %v23042_v12, 10  ;;  %v23121_v33 = vld [vmem:[#allocation2 + $0x2f4] sm:$0x7] }
 0x348   : > { %v3921_v26 = vsel %vm22895_vm11, %v25614_v13, %v25613_v41  ;;  %18216 = vmatmul.mubr.msk.bf16.gmra.mrb[72].mxu0 %vm1199_vm3, %v16542_v11  ;;  %v5728_v51 = vsel %vm22399_vm8, %v25620_v6, %v25619_v7  ;;  %v5765_v41 = vrot.slane %v23040_v20, 6  ;;  %v23096_v43 = vrot.slane %v5769_v9, 4  ;;  %v23119_v6 = vld [vmem:[#allocation2 + $0x2f0] sm:$0xf]  ;;  %v23123_v42 = vld [vmem:[#allocation2 + $0x408] sm:$0xf] }
 0x349   : > { %v16395_v32 = vcombine.low %v3921_v26, %v3924_v59  ;;  %18219 = vmatprep.mubr.msk.bf16.mxu0 %vm1199_vm3, %v16543_v30  ;;  %v5738_v34 = vsel %vm22399_vm8, %v22869_v50, %v25624_v18  ;;  %v25523_v50 = vrot.slane %v23046_v44, 7  ;;  %v25625_v13 = vrot.slane %v22761_v57, 7  ;;  %v25626_v26 = vld [vmem:[#allocation35_spill] sm:$0xff]  ;;  %v23117_v57 = vld [vmem:[#allocation2 + $0x2ec] sm:$0x8] }
 0x34a   : > { %v25627_v55 = vrot.slane %v25626_v26, 11  ;;  %v16396_v52 = vcombine.low %v3928_v3, %v3931_v21  ;;  %v16545_v7 = vcombine.low %v5735_v46, %v5738_v34  ;;  %v25631_v18 = vld [vmem:[#allocation34_spill] sm:$0xff]  ;;  %v25633_v26 = vld [vmem:[#allocation37_spill] sm:$0xff]  ;;  %v25638_v46 = vrot.slane %v22820_v15, 6 }
 0x34b   : > { %v25637_v3 = vld [vmem:[#allocation41_spill] sm:$0xff]  ;;  %v25639_v34 = vrot.slane %v22845_v36, 10  ;;  %v23159_v15 = vrot.slane %v25523_v50, 4  ;;  %v25668_v28 = vrot.slane %v23044_v58, 6 }
 0x34c   : > { %v3935_v59 = vsel %vm22895_vm11, %v25627_v55, %v25625_v13  ;;  %v25632_v13 = vrot.slane %v25631_v18, 7  ;;  %v25634_v55 = vrot.slane %v25633_v26, 11  ;;  %v25654_v36 = vld [vmem:[#allocation45_spill] sm:$0xff] }
 0x34d   : > { %18072 = vmatmul.mubr.msk.bf16.vlgmr.msra.gmra.mrb[0].mxu1 %vm1199_vm3, %v16394_v1  ;;  %v25630_v1 = vld [vmem:[#allocation40_spill] sm:$0xff]  ;;  %v25655_v50 = vrot.slane %v25654_v36, 11  ;;  %v25662_v36 = vld [vmem:[#allocation50_spill] sm:$0xff] }
 0x34e   : > { %18104 = vmatpush3.bf16.msra.mxu1 %v22706_v24  ;;  %18075 = vmatprep.mubr.msk.bf16.mxu1 %vm1199_vm3, %v16395_v32  ;;  %v25628_v24 = vld [vmem:[#allocation36_spill] sm:$0xff]  ;;  %v16544_v32 = vcombine.low %v5728_v51, %v5731_v37  ;;  %v3942_v51 = vsel %vm22895_vm11, %v25634_v55, %v25632_v13  ;;  %v25635_v37 = vld [vmem:[#allocation38_spill] sm:$0xff]  ;;  %v25644_v13 = vrot.slane %v22891_v53, 10  ;;  %v25653_v55 = vrot.slane %v22858_v10, 7 }
 0x34f   : > { %v25629_v11 = vrot.slane %v25628_v24, 7  ;;  %19944 = vmatprep.subr.msk.bf16.mxu1 %vm1248_vm2, %v23048_v61  ;;  %v25636_v24 = vrot.slane %v25635_v37, 7  ;;  %v25659_v10 = vrot.slane %v22885_v63, 6 }
 0x350   : > { %18220 = vmatmul.mubr.msk.bf16.gmra.mrb[76].mxu0 %vm1199_vm3, %v16544_v32  ;;  %v25643_v32 = vrot.slane %v22862_v22, 6  ;;  %v25645_v22 = vrot.slane %v22899_v16, 6 }
 0x351   : > { %v3938_v30 = vsel %vm22895_vm11, %v25630_v1, %v25629_v11  ;;  %v3945_v21 = vsel %vm22895_vm11, %v25637_v3, %v25636_v24  ;;  %v25640_v11 = vld [vmem:[#allocation42_spill] sm:$0xff]  ;;  %18223 = vmatprep.mubr.msk.bf16.mxu0 %vm1199_vm3, %v16545_v7  ;;  %v5776_v24 = vrot.slane %v23123_v42, 6  ;;  %v17835_v3 = vpop.f32.mrb[0].mxu0  ;;  %v25674_v42 = vrot.slane %v23117_v57, 11 }
 0x352   : > { %v16397_v62 = vcombine.low %v3935_v59, %v3938_v30  ;;  %v5742_v59 = vsel %vm22399_vm8, %v25639_v34, %v25638_v46  ;;  %v25641_v1 = vrot.slane %v25640_v11, 6  ;;  %v25642_v30 = vld [vmem:[#allocation47_spill] sm:$0xff]  ;;  %v5749_v26 = vsel %vm22399_vm8, %v25644_v13, %v25643_v32  ;;  %v25652_v13 = vld [vmem:[#allocation48_spill] sm:$0xff] }
 0x353   : > { %v5752_v53 = vsel %vm22399_vm8, %v22955_v56, %v25645_v22  ;;  %v23172_v46 = vld [vmem:[#allocation16] ss:$0 sm:$0xff]  ;;  %v23185_v22 = vld [vmem:[#allocation18] ss:$0 sm:$0xff]  ;;  %v16398_v7 = vcombine.low %v3942_v51, %v3945_v21 }
 0x354   : > { %v5745_v18 = vsel %vm22399_vm8, %v25642_v30, %v25641_v1  ;;  %v25646_v34 = vld [vmem:[#allocation39_spill] sm:$0xff]  ;;  %v16547_v21 = vcombine.low %v5749_v26, %v5752_v53 }
 0x355   : > { %18076 = vmatmul.mubr.msk.bf16.gmra.mrb[4].mxu1 %vm1199_vm3, %v16396_v52  ;;  %v3983_v52 = vrot.slane %v23119_v6, 7  ;;  %v25647_v11 = vrot.slane %v25646_v34, 7  ;;  %v25648_v1 = vld [vmem:[#allocation43_spill] sm:$0xff]  ;;  %v16546_v37 = vcombine.low %v5742_v59, %v5745_v18  ;;  %v3956_v34 = vsel %vm22895_vm11, %v25655_v50, %v25653_v55 }
 0x356   : > { %18079 = vmatprep.mubr.msk.bf16.mxu1 %vm1199_vm3, %v16397_v62  ;;  %v25649_v30 = vrot.slane %v25648_v1, 11  ;;  %v25650_v62 = vld [vmem:[#allocation44_spill] sm:$0xff]  ;;  %v23193_v1 = vld [vmem:[#allocation2 + $0x404] sm:$0xc]  ;;  %v25660_v59 = vrot.slane %v22901_v49, 10  ;;  %v25661_v18 = vrot.slane %v22906_v4, 6 }
 0x357   : > { %v25651_v32 = vrot.slane %v25650_v62, 7  ;;  %v25656_v62 = vld [vmem:[#allocation46_spill] sm:$0xff]  ;;  %v25663_v49 = vrot.slane %v22910_v35, 7  ;;  %v25664_v4 = vrot.slane %v22908_v45, 11  ;;  %v5763_v35 = vsel %vm22399_vm8, %v16537_v38, %v5762_v19 }
 0x358   : > { %v3949_v16 = vsel %vm22895_vm11, %v25649_v30, %v25647_v11  ;;  %v23195_v11 = vld [vmem:[#allocation2 + $0x428] sm:$0xf]  ;;  %v13945_v30 = vmul.f32 %v17835_v3, %v23172_v46  ;;  %v25657_v47 = vrot.slane %v25656_v62, 7  ;;  %v5756_v50 = vsel %vm22399_vm8, %v25660_v59, %v25659_v10  ;;  %18224 = vmatmul.mubr.msk.bf16.gmra.mrb[80].mxu0 %vm1199_vm3, %v16546_v37 }
 0x359   : > { %v3952_v56 = vsel %vm22895_vm11, %v25652_v13, %v25651_v32  ;;  %v25658_v32 = vld [vmem:[#allocation49_spill] sm:$0xff]  ;;  %v5759_v55 = vsel %vm22399_vm8, %v25662_v36, %v25661_v18  ;;  %18227 = vmatprep.mubr.msk.bf16.mxu0 %vm1199_vm3, %v16547_v21  ;;  %v3963_v53 = vsel %vm22895_vm11, %v25664_v4, %v25663_v49  ;;  %v16539_v37 = vrot.slane %v23193_v1, 10  ;;  %v3806_v18 = vld [vmem:[#allocation2 + $0x310] sm:$0xf] }
 0x35a   : > { %v3959_v51 = vsel %vm22895_vm11, %v25658_v32, %v25657_v47  ;;  %v23214_v3 = vcombine.low %v3949_v16, %v3952_v56  ;;  %v5171_v13 = vld [vmem:[#allocation2 + $0x40c] sm:$0x3]  ;;  %v16548_v26 = vcombine.low %v5756_v50, %v5759_v55  ;;  %v13982_v63 = vadd.f32 %v23185_v22, %v13945_v30 }
 0x35b   : > { %v23217_v47 = vcombine.low %v3956_v34, %v3959_v51  ;;  %v23230_v16 = vrot.slane %v3983_v52, 4  ;;  %v5783_v56 = vrot.slane %v23195_v11, 6  ;;  %v1286_v34 = vpop.f32.mrb[1].mxu0  ;;  %v5766_v45 = vsel %vm22399_vm8, %v23088_v17, %v5765_v41  ;;  %v5172_v17 = vld [vmem:[#allocation2 + $0x424] sm:$0xc] }
 0x35c   : > { %v13943_v1 = vmul.f32 %v23172_v46, %v1286_v34  ;;  %v17836_v30 = vpop.f32.mrb[2].mxu0  ;;  %v25665_v62 = vrot.slane %v22925_v5, 7  ;;  %v25667_v19 = vrot.slane %v22948_v23, 11  ;;  %v5779_v20 = vrot.slane %v5171_v13, 6  ;;  %v3805_v34 = vld [vmem:[#allocation2 + $0x30c] sm:$0x8] }
 0x35d   : > { %18080 = vmatmul.mubr.msk.bf16.gmra.mrb[8].mxu1 %vm1199_vm3, %v16398_v7  ;;  %v5778_v7 = vrot.slane %v5776_v24, 4  ;;  %v13946_v41 = vmul.f32 %v17836_v30, %v23172_v46  ;;  %v1289_v32 = vpop.f32.mrb[3].mxu0  ;;  %v3973_v5 = vsel %vm22895_vm11, %v23011_v8, %v3972_v39  ;;  %v14014_v51 = vmax.f32 %v13982_v63, 0.0  ;;  %v5174_v39 = vld [vmem:[#allocation2 + $0x42c] sm:$0x3] }
 0x35e   : > { %18083 = vmatprep.mubr.msk.bf16.mxu1 %vm1199_vm3, %v23214_v3  ;;  %v3966_v25 = vsel %vm22895_vm11, %v23007_v40, %v25665_v62  ;;  %v3970_v38 = vsel %vm22895_vm11, %v25667_v19, %v25666_v14  ;;  %v13980_v40 = vadd.f32 %v23185_v22, %v13943_v1  ;;  %v13944_v54 = vmul.f32 %v23172_v46, %v1289_v32  ;;  %v17839_v23 = vpop.f32.mrb[4].mxu0  ;;  %v3812_v11 = vld [vmem:[#allocation2 + $0x350] sm:$0xf] }
 0x35f   : > { %v23269_v21 = vcombine.low %v5763_v35, %v5766_v45  ;;  %v5770_v10 = vsel %vm22399_vm8, %v16538_v2, %v5769_v9  ;;  %v5773_v8 = vsel %vm22399_vm8, %v23096_v43, %v25668_v28  ;;  %v13983_v59 = vadd.f32 %v23185_v22, %v13946_v41  ;;  %v3807_v35 = vld [vmem:[#allocation2 + $0x314] sm:$0x7]  ;;  %v1302_v1 = vpop.f32.mrb[5].mxu0 }
 0x360   : > { %v23283_v50 = vcombine.low %v3963_v53, %v3966_v25  ;;  %v13981_v36 = vadd.f32 %v23185_v22, %v13944_v54  ;;  %v14012_v60 = vmax.f32 %v13980_v40, 0.0  ;;  %v13949_v12 = vmul.f32 %v17839_v23, %v23172_v46  ;;  %18228 = vmatmul.mubr.msk.bf16.gmra.mrb[84].mxu0 %vm1199_vm3, %v16548_v26  ;;  %v17840_v30 = vpop.f32.mrb[6].mxu0  ;;  %v3809_v54 = vld [vmem:[#allocation2 + $0x330] sm:$0xf] }
 0x361   : > { %v14015_v55 = vmax.f32 %v13983_v59, 0.0  ;;  %v23288_v9 = vcombine.low %v3970_v38, %v3973_v5  ;;  %v23290_v58 = vcombine.low %v5770_v10, %v5773_v8  ;;  %v16540_v2 = vrot.slane %v5172_v17, 10  ;;  %18231 = vmatprep.mubr.msk.bf16.mxu0 %vm1199_vm3, %v23269_v21  ;;  %v1305_v19 = vpop.f32.mrb[7].mxu0  ;;  %v3808_v10 = vld [vmem:[#allocation2 + $0x32c] sm:$0x8] }
 0x362   : > { %v14013_v43 = vmax.f32 %v13981_v36, 0.0  ;;  %v25669_v13 = vrot.slane %v23046_v44, 7  ;;  %v25670_v63 = vrot.slane %v23113_v29, 11  ;;  %v25671_v26 = vrot.slane %v23115_v31, 7  ;;  %v3810_v59 = vld [vmem:[#allocation2 + $0x334] sm:$0x7] }
 0x363   : > { %v5785_v53 = vrot.slane %v5783_v56, 4  ;;  %v23309_v45 = vpack.c.bf16 %v14015_v55, %v14014_v51  ;;  %v5777_v44 = vsel %vm22399_vm8, %v16539_v37, %v5776_v24  ;;  %v5780_v29 = vsel %vm22399_vm8, %v5778_v7, %v5779_v20  ;;  %v17843_v20 = vpop.f32.mrb[8].mxu0 }
 0x364   : > { %v3977_v49 = vsel %vm22895_vm11, %v25670_v63, %v25669_v13  ;;  %v3980_v4 = vsel %vm22895_vm11, %v23159_v15, %v25671_v26  ;;  %v5786_v31 = vrot.slane %v5174_v39, 6  ;;  %v13947_v15 = vmul.f32 %v23172_v46, %v1302_v1  ;;  %v1318_v36 = vpop.f32.mrb[9].mxu0  ;;  %v3813_v26 = vld [vmem:[#allocation2 + $0x354] sm:$0x7] }
 0x365   : > { %18084 = vmatmul.mubr.msk.bf16.gmra.mrb[12].mxu1 %vm1199_vm3, %v23217_v47  ;;  %25672 = vst [vmem:[#allocation35_spill] sm:$0xff] %v23309_v45  ;;  %v3990_v62 = vrot.slane %v3806_v18, 7  ;;  %v13986_v25 = vadd.f32 %v23185_v22, %v13949_v12  ;;  %v13950_v14 = vmul.f32 %v17840_v30, %v23172_v46  ;;  %v23322_v38 = vpack.c.bf16 %v14013_v43, %v14012_v60  ;;  %v3815_v43 = vld [vmem:[#allocation2 + $0x370] sm:$0xf]  ;;  %v17844_v63 = vpop.f32.mrb[10].mxu0 }
 0x366   : > { %18087 = vmatprep.mubr.msk.bf16.mxu1 %vm1199_vm3, %v23283_v50  ;;  %v23324_v17 = vcombine.low %v3977_v49, %v3980_v4  ;;  %v3984_v24 = vsel %vm22895_vm11, %v25674_v42, %v3983_v52  ;;  %v13984_v37 = vadd.f32 %v23185_v22, %v13947_v15  ;;  %v13948_v7 = vmul.f32 %v23172_v46, %v1305_v19 }
 0x367   : > { %25673 = vst [vmem:[#allocation36_spill] sm:$0xff] %v23322_v38  ;;  %v25675_v41 = vrot.slane %v23121_v33, 7  ;;  %v23339_v5 = vcombine.low %v5777_v44, %v5780_v29  ;;  %v5784_v57 = vsel %vm22399_vm8, %v16540_v2, %v5783_v56  ;;  %v13987_v6 = vadd.f32 %v23185_v22, %v13950_v14  ;;  %v3811_v2 = vld [vmem:[#allocation2 + $0x34c] sm:$0x8]  ;;  %v3851_v38 = vld [vmem:[#allocation2 + $0x4f0] sm:$0xf] }
 0x368   : > { %v5787_v52 = vsel %vm22399_vm8, %v5785_v53, %v5786_v31  ;;  %v16389_v51 = vrot.slane %v3805_v34, 11  ;;  %v3993_v40 = vrot.slane %v3807_v35, 7  ;;  %v13985_v33 = vadd.f32 %v23185_v22, %v13948_v7  ;;  %18232 = vmatmul.mubr.msk.bf16.gmra.mrb[88].mxu0 %vm1199_vm3, %v23290_v58  ;;  %v5176_v53 = vld [vmem:[#allocation2 + $0x448] sm:$0xf]  ;;  %v1321_v34 = vpop.f32.mrb[11].mxu0 }
 0x369   : > { %v3987_v32 = vsel %vm22895_vm11, %v23230_v16, %v25675_v41  ;;  %v3992_v23 = vrot.slane %v3990_v62, 4  ;;  %v14018_v16 = vmax.f32 %v13986_v25, 0.0  ;;  %v14016_v28 = vmax.f32 %v13984_v37, 0.0  ;;  %18235 = vmatprep.mubr.msk.bf16.mxu0 %vm1199_vm3, %v23339_v5  ;;  %v17847_v30 = vpop.f32.mrb[12].mxu0  ;;  %v3814_v37 = vld [vmem:[#allocation2 + $0x36c] sm:$0x8] }
 0x36a   : > { %v14019_v8 = vmax.f32 %v13987_v6, 0.0  ;;  %v14017_v56 = vmax.f32 %v13985_v33, 0.0  ;;  %v23353_v39 = vcombine.low %v3984_v24, %v3987_v32  ;;  %v3997_v18 = vrot.slane %v3809_v54, 7  ;;  %v3816_v7 = vld [vmem:[#allocation2 + $0x374] sm:$0x7] }
 0x36b   : > { %v23359_v60 = vcombine.low %v5784_v57, %v5787_v52  ;;  %v3991_v55 = vsel %vm22895_vm11, %v16389_v51, %v3990_v62  ;;  %v16390_v12 = vrot.slane %v3808_v10, 11  ;;  %v13951_v13 = vmul.f32 %v23172_v46, %v1318_v36  ;;  %v5175_v57 = vld [vmem:[#allocation2 + $0x444] sm:$0xc]  ;;  %v5177_v6 = vld [vmem:[#allocation2 + $0x44c] sm:$0x3] }
 0x36c   : > { %v3994_v49 = vsel %vm22895_vm11, %v3992_v23, %v3993_v40  ;;  %v4004_v4 = vrot.slane %v3812_v11, 7  ;;  %v23366_v35 = vpack.c.bf16 %v14017_v56, %v14016_v28  ;;  %v23368_v1 = vpack.c.bf16 %v14019_v8, %v14018_v16  ;;  %v1334_v8 = vpop.f32.mrb[13].mxu0  ;;  %v23393_v36 = vld [vmem:[#allocation2 + $0x468] sm:$0xf] }
 0x36d   : > { %18088 = vmatmul.mubr.msk.bf16.gmra.mrb[16].mxu1 %vm1199_vm3, %v23288_v9  ;;  %v13953_v44 = vmul.f32 %v17843_v20, %v23172_v46  ;;  %v13988_v29 = vadd.f32 %v23185_v22, %v13951_v13  ;;  %v13954_v31 = vmul.f32 %v17844_v63, %v23172_v46  ;;  %v13952_v15 = vmul.f32 %v23172_v46, %v1321_v34 }
 0x36e   : > { %18091 = vmatprep.mubr.msk.bf16.mxu1 %vm1199_vm3, %v23324_v17  ;;  %25676 = vst [vmem:[#allocation40_spill] sm:$0xff] %v23366_v35  ;;  %25677 = vst [vmem:[#allocation34_spill] sm:$0xff] %v23368_v1  ;;  %v3999_v62 = vrot.slane %v3997_v18, 4  ;;  %v4000_v25 = vrot.slane %v3810_v59, 7  ;;  %v16391_v14 = vrot.slane %v3811_v2, 11  ;;  %v4011_v19 = vrot.slane %v3815_v43, 7 }
 0x36f   : > { %v23374_v42 = vcombine.low %v3991_v55, %v3994_v49  ;;  %v4007_v24 = vrot.slane %v3813_v26, 7  ;;  %v6160_v41 = vrot.slane %v5176_v53, 6  ;;  %v13989_v32 = vadd.f32 %v23185_v22, %v13952_v15  ;;  %v17848_v55 = vpop.f32.mrb[14].mxu0  ;;  %v3845_v1 = vld [vmem:[#allocation2 + $0x4b0] sm:$0xf] }
 0x370   : > { %v4006_v20 = vrot.slane %v4004_v4, 4  ;;  %v14020_v52 = vmax.f32 %v13988_v29, 0.0  ;;  %18236 = vmatmul.mubr.msk.bf16.gmra.mrb[92].mxu0 %vm1199_vm3, %v23359_v60  ;;  %v3998_v51 = vsel %vm22895_vm11, %v16390_v12, %v3997_v18  ;;  %v13990_v40 = vadd.f32 %v23185_v22, %v13953_v44  ;;  %v1337_v43 = vpop.f32.mrb[15].mxu0 }
 0x371   : > { %v13991_v54 = vadd.f32 %v23185_v22, %v13954_v31  ;;  %v14021_v33 = vmax.f32 %v13989_v32, 0.0  ;;  %v4001_v23 = vsel %vm22895_vm11, %v3999_v62, %v4000_v25  ;;  %18241 = vmatprep.mubr.msk.bf16.mxu0 %vm1199_vm3, %v23269_v21  ;;  %v16392_v10 = vrot.slane %v3814_v37, 11  ;;  %v17851_v53 = vpop.f32.mrb[16].mxu0  ;;  %v5178_v25 = vld [vmem:[#allocation2 + $0x464] sm:$0xc] }
 0x372   : > { %v4013_v16 = vrot.slane %v4011_v19, 4  ;;  %v4014_v28 = vrot.slane %v3816_v7, 7  ;;  %v4005_v11 = vsel %vm22895_vm11, %v16391_v14, %v4004_v4  ;;  %v16569_v56 = vrot.slane %v5175_v57, 10  ;;  %v5180_v14 = vld [vmem:[#allocation2 + $0x46c] sm:$0x3] }
 0x373   : > { %v6162_v59 = vrot.slane %v6160_v41, 4  ;;  %v6163_v18 = vrot.slane %v5177_v6, 6  ;;  %v4008_v12 = vsel %vm22895_vm11, %v4006_v20, %v4007_v24  ;;  %v13957_v21 = vmul.f32 %v17847_v30, %v23172_v46  ;;  %v23420_v24 = vld [vmem:[#allocation2 + $0x488] sm:$0xf]  ;;  %v23433_v6 = vld [vmem:[#allocation12 + $0x8] sm:$0x3] }
 0x374   : > { %v13955_v2 = vmul.f32 %v23172_v46, %v1334_v8  ;;  %v23399_v13 = vpack.c.bf16 %v14021_v33, %v14020_v52  ;;  %v14022_v63 = vmax.f32 %v13990_v40, 0.0  ;;  %v14023_v49 = vmax.f32 %v13991_v54, 0.0 }
 0x375   : > { %18092 = vmatmul.mubr.msk.bf16.gmra.mrb[20].mxu1 %vm1199_vm3, %v23353_v39  ;;  %v13958_v26 = vmul.f32 %v17848_v55, %v23172_v46  ;;  %v13956_v4 = vmul.f32 %v23172_v46, %v1337_v43  ;;  %v23403_v34 = vcombine.low %v3998_v51, %v4001_v23  ;;  %v4012_v44 = vsel %vm22895_vm11, %v16392_v10, %v4011_v19  ;;  %v23422_v19 = vld [vmem:[#allocation2 + $0x4a8] sm:$0xf]  ;;  %v5181_v10 = vld [vmem:[#allocation2 + $0x484] sm:$0xc]  ;;  %v25722_v48 = vld [vmem:[#allocation40_spill] sm:$0xff] }
 0x376   : > { %18095 = vmatprep.mubr.msk.bf16.mxu1 %vm1199_vm3, %v23374_v42  ;;  %25678 = vst [vmem:[#allocation37_spill] sm:$0xff] %v23399_v13  ;;  %v6167_v29 = vrot.slane %v23393_v36, 6  ;;  %v23408_v31 = vcombine.low %v4005_v11, %v4008_v12  ;;  %v4015_v15 = vsel %vm22895_vm11, %v4013_v16, %v4014_v28  ;;  %v23414_v30 = vsel %vm22399_vm8, %v16569_v56, %v6160_v41  ;;  %v5183_v16 = vld [vmem:[#allocation2 + $0x48c] sm:$0x3]  ;;  %v23450_v11 = vld [vmem:[#allocation2 + $0x4c8] sm:$0xf] }
 0x377   : > { %v23418_v62 = vsel %vm22399_vm8, %v6162_v59, %v6163_v18  ;;  %v6787_v37 = vsel %vm1248_vm2, %v22927_v0, 0  ;;  %v13994_v7 = vadd.f32 %v23185_v22, %v13957_v21  ;;  %v13992_v32 = vadd.f32 %v23185_v22, %v13955_v2 }
 0x378   : > { %v13961_v41 = vmul.f32 %v17851_v53, %v23172_v46  ;;  %18242 = vmatmul.mubr.msk.bf16.vlgmr.msra.gmra.mrb[64].mxu0 %vm1199_vm3, %v23290_v58  ;;  %v13995_v20 = vadd.f32 %v23185_v22, %v13958_v26  ;;  %v13993_v57 = vadd.f32 %v23185_v22, %v13956_v4  ;;  %v23435_v52 = vpack.c.bf16 %v14023_v49, %v14022_v63  ;;  %v1350_v58 = vpop.f32.mrb[17].mxu0 }
 0x379   : > { %18245 = vmatprep.mubr.msk.bf16.mxu0 %vm1199_vm3, %v23339_v5  ;;  %v16570_v0 = vrot.slane %v5178_v25, 10  ;;  %v6169_v51 = vrot.slane %v6167_v29, 4  ;;  %v6170_v40 = vrot.slane %v5180_v14, 6  ;;  %v6174_v54 = vrot.slane %v23420_v24, 6  ;;  %18274 = vmatpush3.bf16.msra.mxu0 %v6787_v37  ;;  %v17852_v8 = vpop.f32.mrb[18].mxu0 }
 0x37a   : > { %25679 = vst [vmem:[#allocation38_spill] sm:$0xff] %v23435_v52  ;;  %v23444_v33 = vcombine.low %v4012_v44, %v4015_v15  ;;  %v16581_v23 = vcombine.low %v23414_v30, %v23418_v62  ;;  %v6181_v28 = vrot.slane %v23422_v19, 6  ;;  %v13959_v5 = vmul.f32 %v23172_v46, %v1350_v58  ;;  %19949 = vmatprep.subr.msk.bf16.mxu0 %vm1248_vm2, %v23433_v6  ;;  %v1353_v55 = vpop.f32.mrb[19].mxu0  ;;  %v5184_v15 = vld [vmem:[#allocation2 + $0x4a4] sm:$0xc] }
 0x37b   : > { %v14026_v56 = vmax.f32 %v13994_v7, 0.0  ;;  %v14024_v59 = vmax.f32 %v13992_v32, 0.0  ;;  %v13998_v18 = vadd.f32 %v23185_v22, %v13961_v41  ;;  %v13962_v36 = vmul.f32 %v17852_v8, %v23172_v46  ;;  %v17855_v63 = vpop.f32.mrb[20].mxu0  ;;  %v5186_v30 = vld [vmem:[#allocation2 + $0x4ac] sm:$0x3] }
 0x37c   : > { %v14027_v12 = vmax.f32 %v13995_v20, 0.0  ;;  %v14025_v21 = vmax.f32 %v13993_v57, 0.0  ;;  %v13996_v2 = vadd.f32 %v23185_v22, %v13959_v5  ;;  %v13960_v43 = vmul.f32 %v23172_v46, %v1353_v55  ;;  %v5187_v24 = vld [vmem:[#allocation2 + $0x4c4] sm:$0xc]  ;;  %v5189_v41 = vld [vmem:[#allocation2 + $0x4cc] sm:$0x3] }
 0x37d   : > { %18096 = vmatmul.mubr.msk.bf16.gmra.mrb[24].mxu1 %vm1199_vm3, %v23403_v34  ;;  %v16571_v49 = vrot.slane %v5181_v10, 10  ;;  %v6176_v26 = vrot.slane %v6174_v54, 4  ;;  %v6177_v4 = vrot.slane %v5183_v16, 6  ;;  %v13999_v53 = vadd.f32 %v23185_v22, %v13962_v36  ;;  %v1366_v10 = vpop.f32.mrb[21].mxu0  ;;  %v23507_v19 = vld [vmem:[#allocation13] sm:$0x3] }
 0x37e   : > { %18099 = vmatprep.mubr.msk.bf16.mxu1 %vm1199_vm3, %v23408_v31  ;;  %v6168_v44 = vsel %vm22399_vm8, %v16570_v0, %v6167_v29  ;;  %v6188_v62 = vrot.slane %v23450_v11, 6  ;;  %v13997_v25 = vadd.f32 %v23185_v22, %v13960_v43  ;;  %v6171_v14 = vsel %vm22399_vm8, %v6169_v51, %v6170_v40 }
 0x37f   : > { %v14030_v37 = vmax.f32 %v13998_v18, 0.0  ;;  %v14028_v7 = vmax.f32 %v13996_v2, 0.0  ;;  %v14031_v32 = vmax.f32 %v13999_v53, 0.0  ;;  %v13965_v29 = vmul.f32 %v17855_v63, %v23172_v46  ;;  %v5194_v53 = vld [vmem:[#allocation2 + $0x508] sm:$0xf] }
 0x380   : > { %18246 = vmatmul.mubr.msk.bf16.gmra.mrb[68].mxu0 %vm1199_vm3, %v23359_v60  ;;  %v14029_v20 = vmax.f32 %v13997_v25, 0.0  ;;  %v23468_v57 = vpack.c.bf16 %v14025_v21, %v14024_v59  ;;  %v23470_v0 = vpack.c.bf16 %v14027_v12, %v14026_v56  ;;  %v6175_v51 = vsel %vm22399_vm8, %v16571_v49, %v6174_v54  ;;  %v5191_v12 = vld [vmem:[#allocation2 + $0x4e8] sm:$0xf] }
 0x381   : > { %18249 = vmatprep.mubr.msk.bf16.mxu0 %vm1199_vm3, %v16581_v23  ;;  %v6178_v40 = vsel %vm22399_vm8, %v6176_v26, %v6177_v4  ;;  %v16572_v60 = vrot.slane %v5184_v15, 10  ;;  %v6183_v58 = vrot.slane %v6181_v28, 4  ;;  %v6184_v16 = vrot.slane %v5186_v30, 6  ;;  %v17856_v23 = vpop.f32.mrb[22].mxu0 }
 0x382   : > { %25680 = vst [vmem:[#allocation41_spill] sm:$0xff] %v23468_v57  ;;  %25681 = vst [vmem:[#allocation42_spill] sm:$0xff] %v23470_v0  ;;  %v16573_v5 = vrot.slane %v5187_v24, 10  ;;  %v6190_v8 = vrot.slane %v6188_v62, 4  ;;  %v13963_v11 = vmul.f32 %v23172_v46, %v1366_v10  ;;  %v6191_v56 = vrot.slane %v5189_v41, 6  ;;  %v1369_v59 = vpop.f32.mrb[23].mxu0 }
 0x383   : > { %v13966_v54 = vmul.f32 %v17856_v23, %v23172_v46  ;;  %v23485_v18 = vpack.c.bf16 %v14029_v20, %v14028_v7  ;;  %v23487_v36 = vpack.c.bf16 %v14031_v32, %v14030_v37  ;;  %v16582_v55 = vcombine.low %v6168_v44, %v6171_v14  ;;  %v17859_v43 = vpop.f32.mrb[24].mxu0  ;;  %v5190_v14 = vld [vmem:[#allocation2 + $0x4e4] sm:$0xc]  ;;  %v5192_v24 = vld [vmem:[#allocation2 + $0x4ec] sm:$0x3] }
 0x384   : > { %v14002_v21 = vadd.f32 %v23185_v22, %v13965_v29  ;;  %v13964_v2 = vmul.f32 %v23172_v46, %v1369_v59  ;;  %v16583_v63 = vcombine.low %v6175_v51, %v6178_v40  ;;  %v4831_v26 = vsel %vm1248_vm2, %v23048_v61, 0  ;;  %v5195_v51 = vld [vmem:[#allocation2 + $0x50c] sm:$0x3] }
 0x385   : > { %18100 = vmatmul.mubr.msk.bf16.gmra.mrb[28].mxu1 %vm1199_vm3, %v23444_v33  ;;  %25682 = vst [vmem:[#allocation47_spill] sm:$0xff] %v23485_v18  ;;  %25683 = vst [vmem:[#allocation39_spill] sm:$0xff] %v23487_v36  ;;  %v14003_v49 = vadd.f32 %v23185_v22, %v13966_v54  ;;  %v6182_v4 = vsel %vm22399_vm8, %v16572_v60, %v6181_v28  ;;  %v6185_v15 = vsel %vm22399_vm8, %v6183_v58, %v6184_v16  ;;  %v1382_v60 = vpop.f32.mrb[25].mxu0  ;;  %v3843_v36 = vld [vmem:[#allocation2 + $0x494] sm:$0x7]  ;;  %v23757_v18 = vld [vmem:[#allocation2 + $0x28c] sm:$0xff]  }
 0x386   : > { %18105 = vmatprep.mubr.msk.bf16.mxu1 %vm1199_vm3, %v23214_v3  ;;  %v14000_v3 = vadd.f32 %v23185_v22, %v13963_v11  ;;  %v14001_v44 = vadd.f32 %v23185_v22, %v13964_v2  ;;  %v6189_v30 = vsel %vm22399_vm8, %v16573_v5, %v6188_v62  ;;  %v6192_v25 = vsel %vm22399_vm8, %v6190_v8, %v6191_v56  ;;  %v5193_v62 = vld [vmem:[#allocation2 + $0x504] sm:$0xc]  ;;  %v17860_v5 = vpop.f32.mrb[26].mxu0  ;;  %v23518_v11 = vld [vmem:[#allocation2 + $0x528] sm:$0xf] }
 0x387   : > { %v6195_v61 = vrot.slane %v5191_v12, 6  ;;  %v14034_v28 = vmax.f32 %v14002_v21, 0.0  ;;  %v14035_v7 = vmax.f32 %v14003_v49, 0.0  ;;  %v6202_v41 = vrot.slane %v5194_v53, 6  ;;  %v1385_v23 = vpop.f32.mrb[27].mxu0 }
 0x388   : > { %18250 = vmatmul.mubr.msk.bf16.gmra.mrb[72].mxu0 %vm1199_vm3, %v16582_v55  ;;  %v14032_v37 = vmax.f32 %v14000_v3, 0.0  ;;  %v14033_v32 = vmax.f32 %v14001_v44, 0.0  ;;  %v16584_v20 = vcombine.low %v6182_v4, %v6185_v15  ;;  %v16574_v29 = vrot.slane %v5190_v14, 10  ;;  %v17863_v3 = vpop.f32.mrb[28].mxu0  ;;  %v5200_v49 = vld [vmem:[#allocation2 + $0x548] sm:$0xf] }
 0x389   : > { %18253 = vmatprep.mubr.msk.bf16.mxu0 %vm1199_vm3, %v16583_v63  ;;  %v13969_v40 = vmul.f32 %v17859_v43, %v23172_v46  ;;  %v16585_v58 = vcombine.low %v6189_v30, %v6192_v25  ;;  %v6197_v10 = vrot.slane %v6195_v61, 4  ;;  %v6198_v16 = vrot.slane %v5192_v24, 6  ;;  %v5196_v44 = vld [vmem:[#allocation2 + $0x524] sm:$0xc]  ;;  %v5198_v24 = vld [vmem:[#allocation2 + $0x52c] sm:$0x3] }
 0x38a   : > { %v16575_v8 = vrot.slane %v5193_v62, 10  ;;  %v23521_v56 = vpack.c.bf16 %v14033_v32, %v14032_v37  ;;  %v23523_v54 = vpack.c.bf16 %v14035_v7, %v14034_v28  ;;  %v6204_v59 = vrot.slane %v6202_v41, 4  ;;  %v1398_v28 = vpop.f32.mrb[29].mxu0  ;;  %v5199_v37 = vld [vmem:[#allocation2 + $0x544] sm:$0xc] }
 0x38b   : > { %v6205_v55 = vrot.slane %v5195_v51, 6  ;;  %v13968_v21 = vmul.f32 %v23172_v46, %v1385_v23  ;;  %v14006_v2 = vadd.f32 %v23185_v22, %v13969_v40  ;;  %v6209_v63 = vrot.slane %v23518_v11, 6 }
 0x38c   : > { %25684 = vst [vmem:[#allocation43_spill] sm:$0xff] %v23521_v56  ;;  %25685 = vst [vmem:[#allocation44_spill] sm:$0xff] %v23523_v54  ;;  %v6196_v4 = vsel %vm22399_vm8, %v16574_v29, %v6195_v61  ;;  %v6199_v53 = vsel %vm22399_vm8, %v6197_v10, %v6198_v16  ;;  %v13973_v30 = vmul.f32 %v17863_v3, %v23172_v46  ;;  %v6216_v7 = vrot.slane %v5200_v49, 6  ;;  %v3839_v54 = vld [vmem:[#allocation2 + $0x470] sm:$0xf] }
 0x38d   : > { %18106 = vmatmul.mubr.msk.bf16.vlgmr.msra.gmra.mrb[0].mxu1 %vm1199_vm3, %v23217_v47  ;;  %v13967_v47 = vmul.f32 %v23172_v46, %v1382_v60  ;;  %v6203_v25 = vsel %vm22399_vm8, %v16575_v8, %v6202_v41  ;;  %v6206_v14 = vsel %vm22399_vm8, %v6204_v59, %v6205_v55  ;;  %v14038_v32 = vmax.f32 %v14006_v2, 0.0  ;;  %v5201_v41 = vld [vmem:[#allocation2 + $0x54c] sm:$0x3]  ;;  %v5206_v2 = vld [vmem:[#allocation2 + $0x588] sm:$0xf] }
 0x38e   : > { %18138 = vmatpush3.bf16.msra.mxu1 %v4831_v26  ;;  %18109 = vmatprep.mubr.msk.bf16.mxu1 %vm1199_vm3, %v23283_v50  ;;  %v13970_v50 = vmul.f32 %v17860_v5, %v23172_v46  ;;  %v14005_v26 = vadd.f32 %v23185_v22, %v13968_v21  ;;  %v16586_v29 = vcombine.low %v6196_v4, %v6199_v53  ;;  %v16576_v51 = vrot.slane %v5196_v44, 10  ;;  %v3841_v56 = vld [vmem:[#allocation2 + $0x48c] sm:$0x8] }
 0x38f   : > { %19954 = vmatprep.subr.msk.bf16.mxu1 %vm1248_vm2, %v23507_v19  ;;  %v14004_v12 = vadd.f32 %v23185_v22, %v13967_v47  ;;  %v6211_v40 = vrot.slane %v6209_v63, 4  ;;  %v14010_v10 = vadd.f32 %v23185_v22, %v13973_v30  ;;  %v16587_v8 = vcombine.low %v6203_v25, %v6206_v14  ;;  %v5202_v25 = vld [vmem:[#allocation2 + $0x564] sm:$0xc]  ;;  %v5204_v14 = vld [vmem:[#allocation2 + $0x56c] sm:$0x3] }
 0x390   : > { %v14007_v43 = vadd.f32 %v23185_v22, %v13970_v50  ;;  %18254 = vmatmul.mubr.msk.bf16.gmra.mrb[76].mxu0 %vm1199_vm3, %v16584_v20  ;;  %v14037_v61 = vmax.f32 %v14005_v26, 0.0  ;;  %v17864_v20 = vpop.f32.mrb[30].mxu0  ;;  %v6212_v11 = vrot.slane %v5198_v24, 6  ;;  %v16577_v50 = vrot.slane %v5199_v37, 10  ;;  %v5207_v37 = vld [vmem:[#allocation2 + $0x58c] sm:$0x3] }
 0x391   : > { %v14036_v15 = vmax.f32 %v14004_v12, 0.0  ;;  %18257 = vmatprep.mubr.msk.bf16.mxu0 %vm1199_vm3, %v16585_v58  ;;  %v13974_v60 = vmul.f32 %v17864_v20, %v23172_v46  ;;  %v1401_v58 = vpop.f32.mrb[31].mxu0  ;;  %v6218_v59 = vrot.slane %v6216_v7, 4  ;;  %v6219_v55 = vrot.slane %v5201_v41, 6  ;;  %v5203_v12 = vld [vmem:[#allocation2 + $0x568] sm:$0xf] }
 0x392   : > { %v14039_v62 = vmax.f32 %v14007_v43, 0.0  ;;  %v23551_v47 = vpop.f32.mrb[32].mxu0  ;;  %v14042_v49 = vmax.f32 %v14010_v10, 0.0  ;;  %v6210_v53 = vsel %vm22399_vm8, %v16576_v51, %v6209_v63  ;;  %v6223_v44 = vrot.slane %v5203_v12, 6  ;;  %v3817_v20 = vld [vmem:[#allocation2 + $0x38c] sm:$0x8] }
 0x393   : > { %v23553_v5 = vpack.c.bf16 %v14037_v61, %v14036_v15  ;;  %v14011_v23 = vadd.f32 %v23185_v22, %v13974_v60  ;;  %v23567_v15 = vpop.f32.mrb[33].mxu0  ;;  %v6217_v30 = vsel %vm22399_vm8, %v16577_v50, %v6216_v7  ;;  %v6230_v24 = vrot.slane %v5206_v2, 6 }
 0x394   : > { %v23557_v3 = vpack.c.bf16 %v14039_v62, %v14038_v32  ;;  %v23575_v61 = vpop.f32.mrb[34].mxu0  ;;  %v16578_v41 = vrot.slane %v5202_v25, 10  ;;  %v6225_v60 = vrot.slane %v6223_v44, 4  ;;  %v3822_v25 = vld [vmem:[#allocation2 + $0x3b4] sm:$0x7]  ;;  %v4769_v13 = vrot.slane %v3843_v36, 7 }
 0x395   : > { %18110 = vmatmul.mubr.msk.bf16.gmra.mrb[4].mxu1 %vm1199_vm3, %v23288_v9  ;;  %v13971_v9 = vmul.f32 %v23172_v46, %v1398_v28  ;;  %25686 = vst [vmem:[#allocation48_spill] sm:$0xff] %v23553_v5  ;;  %v14043_v26 = vmax.f32 %v14011_v23, 0.0  ;;  %v5205_v28 = vld [vmem:[#allocation2 + $0x584] sm:$0xc]  ;;  %v23577_v32 = vpop.f32.mrb[35].mxu0 }
 0x396   : > { %18113 = vmatprep.mubr.msk.bf16.mxu1 %vm1199_vm3, %v23324_v17  ;;  %v13972_v17 = vmul.f32 %v23172_v46, %v1401_v58  ;;  %25687 = vst [vmem:[#allocation45_spill] sm:$0xff] %v23557_v3  ;;  %v3818_v46 = vld [vmem:[#allocation2 + $0x390] sm:$0xf]  ;;  %v23581_v51 = vpop.f32.mrb[36].mxu0  ;;  %v6226_v58 = vrot.slane %v5204_v14, 6  ;;  %v16579_v10 = vrot.slane %v5205_v28, 10  ;;  %v6224_v12 = vsel %vm22399_vm8, %v16578_v41, %v6223_v44 }
 0x397   : > { %v14008_v16 = vadd.f32 %v23185_v22, %v13971_v9  ;;  %v4394_v63 = vrot.slane %v3818_v46, 7  ;;  %v23583_v7 = vpack.c.bf16 %v14043_v26, %v14042_v49 }
 0x398   : > { %v14009_v21 = vadd.f32 %v23185_v22, %v13972_v17  ;;  %18258 = vmatmul.mubr.msk.bf16.gmra.mrb[80].mxu0 %vm1199_vm3, %v16586_v29  ;;  %v6213_v22 = vsel %vm22399_vm8, %v6211_v40, %v6212_v11  ;;  %v3819_v29 = vld [vmem:[#allocation2 + $0x394] sm:$0x7]  ;;  %v6233_v17 = vrot.slane %v5207_v37, 6  ;;  %v16425_v11 = vrot.slane %v3817_v20, 11 }
 0x399   : > { %v14040_v43 = vmax.f32 %v14008_v16, 0.0  ;;  %18261 = vmatprep.mubr.msk.bf16.mxu0 %vm1199_vm3, %v16587_v8  ;;  %v16588_v9 = vcombine.low %v6210_v53, %v6213_v22  ;;  %25689 = vst [vmem:[#allocation49_spill] sm:$0xff] %v23583_v7  ;;  %v6232_v16 = vrot.slane %v6230_v24, 4  ;;  %v5209_v8 = vld [vmem:[#allocation2 + $0x5a8] sm:$0xf]  ;;  %v4396_v50 = vrot.slane %v4394_v63, 4 }
 0x39a   : > { %v14041_v4 = vmax.f32 %v14009_v21, 0.0  ;;  %v4397_v23 = vrot.slane %v3819_v29, 7  ;;  %v6227_v21 = vsel %vm22399_vm8, %v6225_v60, %v6226_v58  ;;  %v6237_v2 = vrot.slane %v5209_v8, 6  ;;  %v5210_v53 = vld [vmem:[#allocation2 + $0x5ac] sm:$0x3] }
 0x39b   : > { %v6231_v49 = vsel %vm22399_vm8, %v16579_v10, %v6230_v24  ;;  %v6234_v26 = vsel %vm22399_vm8, %v6232_v16, %v6233_v17  ;;  %v4395_v44 = vsel %vm22895_vm11, %v16425_v11, %v4394_v63  ;;  %v16590_v37 = vcombine.low %v6224_v12, %v6227_v21  ;;  %v3823_v24 = vld [vmem:[#allocation2 + $0x3cc] sm:$0x8] }
 0x39c   : > { %v23579_v62 = vpack.c.bf16 %v14041_v4, %v14040_v43  ;;  %v23593_v43 = vpop.f32.mrb[37].mxu0  ;;  %v5208_v4 = vld [vmem:[#allocation2 + $0x5a4] sm:$0xc]  ;;  %v16591_v29 = vcombine.low %v6231_v49, %v6234_v26  ;;  %v6239_v41 = vrot.slane %v6237_v2, 4  ;;  %v6240_v60 = vrot.slane %v5210_v53, 6  ;;  %v20184_v7 = vld [vmem:[#allocation2 + $0x24c] sm:$0xff]  }
 0x39d   : > { %18114 = vmatmul.mubr.msk.bf16.gmra.mrb[8].mxu1 %vm1199_vm3, %v23353_v39  ;;  %v6220_v39 = vsel %vm22399_vm8, %v6218_v59, %v6219_v55  ;;  %v3821_v59 = vld [vmem:[#allocation2 + $0x3b0] sm:$0xf]  ;;  %v23601_v22 = vpop.f32.mrb[38].mxu0  ;;  %v4404_v16 = vrot.slane %v3822_v25, 7  ;;  %v16427_v17 = vrot.slane %v3823_v24, 11 }
 0x39e   : > { %18117 = vmatprep.mubr.msk.bf16.mxu1 %vm1199_vm3, %v23374_v42  ;;  %25688 = vst [vmem:[#allocation46_spill] sm:$0xff] %v23579_v62  ;;  %v16589_v40 = vcombine.low %v6217_v30, %v6220_v39  ;;  %v3824_v55 = vld [vmem:[#allocation2 + $0x3d0] sm:$0xf]  ;;  %v4401_v46 = vrot.slane %v3821_v59, 7  ;;  %v4398_v30 = vsel %vm22895_vm11, %v4396_v50, %v4397_v23  ;;  %v3820_v39 = vld [vmem:[#allocation2 + $0x3ac] sm:$0x8] }
 0x39f   : > { %v4408_v14 = vrot.slane %v3824_v55, 7  ;;  %v23607_v28 = vpop.f32.mrb[39].mxu0  ;;  %v23611_v58 = vcombine.low %v4395_v44, %v4398_v30  ;;  %v16426_v63 = vrot.slane %v3820_v39, 11  ;;  %v3827_v50 = vld [vmem:[#allocation2 + $0x3f0] sm:$0xf]  ;;  %v6241_v55 = vsel %vm22399_vm8, %v6239_v41, %v6240_v60 }
 0x3a0   : > { %18262 = vmatmul.mubr.msk.bf16.gmra.mrb[84].mxu0 %vm1199_vm3, %v16588_v9  ;;  %v3825_v9 = vld [vmem:[#allocation2 + $0x3d4] sm:$0x7]  ;;  %v23609_v20 = vpop.f32.mrb[40].mxu0  ;;  %v4403_v10 = vrot.slane %v4401_v46, 4  ;;  %v3830_v23 = vld [vmem:[#allocation2 + $0x410] sm:$0xf] }
 0x3a1   : > { %18265 = vmatprep.mubr.msk.bf16.mxu0 %vm1199_vm3, %v16589_v40  ;;  %v16580_v40 = vrot.slane %v5208_v4, 10  ;;  %v4410_v8 = vrot.slane %v4408_v14, 4  ;;  %v4411_v11 = vrot.slane %v3825_v9, 7  ;;  %v23621_v12 = vpop.f32.mrb[41].mxu0  ;;  %v4402_v21 = vsel %vm22895_vm11, %v16426_v63, %v4401_v46  ;;  %v3826_v44 = vld [vmem:[#allocation2 + $0x3ec] sm:$0x8] }
 0x3a2   : > { %v4405_v49 = vsel %vm22895_vm11, %v4403_v10, %v4404_v16  ;;  %v4415_v26 = vrot.slane %v3827_v50, 7  ;;  %v23629_v4 = vpop.f32.mrb[42].mxu0  ;;  %v3828_v30 = vld [vmem:[#allocation2 + $0x3f4] sm:$0x7]  ;;  %v4422_v39 = vrot.slane %v3830_v23, 7  ;;  %v16428_v60 = vrot.slane %v3826_v44, 11 }
 0x3a3   : > { %v6238_v59 = vsel %vm22399_vm8, %v16580_v40, %v6237_v2  ;;  %v4409_v2 = vsel %vm22895_vm11, %v16427_v17, %v4408_v14  ;;  %v4412_v53 = vsel %vm22895_vm11, %v4410_v8, %v4411_v11  ;;  %v23635_v25 = vpop.f32.mrb[43].mxu0  ;;  %v3829_v24 = vld [vmem:[#allocation2 + $0x40c] sm:$0x8]  ;;  %v3831_v46 = vld [vmem:[#allocation2 + $0x414] sm:$0x7]  ;;  %v4418_v63 = vrot.slane %v3828_v30, 7 }
 0x3a4   : > { %v23637_v9 = vpop.f32.mrb[44].mxu0  ;;  %v20172_v40 = vld [vmem:[#allocation2 + $0xcc] sm:$0xff]   ;;  %v23641_v41 = vcombine.low %v4409_v2, %v4412_v53  ;;  %v4417_v14 = vrot.slane %v4415_v26, 4  ;;  %v16429_v10 = vrot.slane %v3829_v24, 11  ;;  %v4424_v16 = vrot.slane %v4422_v39, 4 }
 0x3a5   : > { %18118 = vmatmul.mubr.msk.bf16.gmra.mrb[12].mxu1 %vm1199_vm3, %v23403_v34  ;;  %v4425_v17 = vrot.slane %v3831_v46, 7  ;;  %v3833_v8 = vld [vmem:[#allocation2 + $0x430] sm:$0xf]  ;;  %v23647_v11 = vpop.f32.mrb[45].mxu0  ;;  %v4416_v50 = vsel %vm22895_vm11, %v16428_v60, %v4415_v26  ;;  %v3832_v2 = vld [vmem:[#allocation2 + $0x42c] sm:$0x8] }
 0x3a6   : > { %18121 = vmatprep.mubr.msk.bf16.mxu1 %vm1199_vm3, %v23408_v31  ;;  %v4419_v23 = vsel %vm22895_vm11, %v4417_v14, %v4418_v63  ;;  %v3834_v53 = vld [vmem:[#allocation2 + $0x434] sm:$0x7]  ;;  %v20173_v30 = vld [vmem:[#allocation2 + $0xec] sm:$0xff]   ;;  %v23672_v63 = vld [vmem:[#allocation12 + $0xe] sm:$0x3] }
 0x3a7   : > { %v23665_v26 = vcombine.low %v4416_v50, %v4419_v23  ;;  %v20174_v24 = vld [vmem:[#allocation2 + $0x10c] sm:$0xff]   ;;  %v4432_v14 = vrot.slane %v3834_v53, 7 }
 0x3a8   : > { %18266 = vmatmul.mubr.msk.bf16.gmra.mrb[88].mxu0 %vm1199_vm3, %v16590_v37  ;;  %v16592_v37 = vcombine.low %v6238_v59, %v6241_v55  ;;  %v4429_v59 = vrot.slane %v3833_v8, 7  ;;  %v23655_v55 = vpop.f32.mrb[46].mxu0  ;;  %v20175_v50 = vld [vmem:[#allocation2 + $0x12c] sm:$0xff]  }
 0x3a9   : > { %18269 = vmatprep.mubr.msk.bf16.mxu0 %vm1199_vm3, %v16591_v29  ;;  %v23639_v29 = vcombine.low %v4402_v21, %v4405_v49  ;;  %v4423_v21 = vsel %vm22895_vm11, %v16429_v10, %v4422_v39  ;;  %v4426_v49 = vsel %vm22895_vm11, %v4424_v16, %v4425_v17  ;;  %v23661_v44 = vpop.f32.mrb[47].mxu0  ;;  %v7145_v39 = vsel %vm1248_vm2, %v23433_v6, 0 }
 0x3aa   : > { %v23667_v46 = vcombine.low %v4423_v21, %v4426_v49  ;;  %v4431_v60 = vrot.slane %v4429_v59, 4  ;;  %v20176_v49 = vld [vmem:[#allocation2 + $0x14c] sm:$0xff]  }
 0x3ac   : > { %v4433_v6 = vsel %vm22895_vm11, %v4431_v60, %v4432_v14  ;;  %v9710_v60 = vsel %vm1248_vm2, %v23507_v19, 0  ;;  %v23712_v14 = vld [vmem:[#allocation13 + $0x6] sm:$0x3] }
 0x3ad   : > { %18122 = vmatmul.mubr.msk.bf16.gmra.mrb[16].mxu1 %vm1199_vm3, %v23444_v33  ;;  %v20179_v19 = vld [vmem:[#allocation2 + $0x1ac] sm:$0xff]  }
 0x3ae   : > { %18125 = vmatprep.mubr.msk.bf16.mxu1 %vm1199_vm3, %v23611_v58 }
 0x3b0   : > { %18270 = vmatmul.mubr.msk.bf16.gmra.mrb[92].mxu0 %vm1199_vm3, %v16592_v37  ;;  %v23663_v37 = vpop.f32.mrb[48].mxu0 }
 0x3b1   : > { %18275 = vmatprep.mubr.msk.bf16.mxu0 %vm1199_vm3, %v20172_v40  ;;  %v16430_v40 = vrot.slane %v3832_v2, 11  ;;  %v23677_v10 = vpop.f32.mrb[49].mxu0 }
 0x3b2   : > { %v23685_v17 = vpop.f32.mrb[50].mxu0 }
 0x3b3   : > { %v4430_v16 = vsel %vm22895_vm11, %v16430_v40, %v4429_v59  ;;  %v23689_v8 = vpop.f32.mrb[51].mxu0  ;;  %v20178_v40 = vld [vmem:[#allocation2 + $0x18c] sm:$0xff]  }
 0x3b4   : > { %25690 = vst [vmem:[#allocation50_spill] sm:$0xff] %v23689_v8  ;;  %v23691_v23 = vpop.f32.mrb[52].mxu0  ;;  %v23693_v21 = vcombine.low %v4430_v16, %v4433_v6  ;;  %v20180_v6 = vld [vmem:[#allocation2 + $0x1cc] sm:$0xff]  }
 0x3b5   : > { %18126 = vmatmul.mubr.msk.bf16.gmra.mrb[20].mxu1 %vm1199_vm3, %v23639_v29  ;;  %25691 = vst [vmem:[#allocation51_spill] sm:$0xff] %v23691_v23  ;;  %v23699_v59 = vpop.f32.mrb[53].mxu0  ;;  %v9425_v23 = vld [vmem:[#allocation2 + $0x560] sm:$0x8] }
 0x3b6   : > { %18129 = vmatprep.mubr.msk.bf16.mxu1 %vm1199_vm3, %v23641_v41  ;;  %25692 = vst [vmem:[#allocation52_spill] sm:$0xff] %v23699_v59  ;;  %v23703_v2 = vpop.f32.mrb[54].mxu0 }
 0x3b7   : > { %25693 = vst [vmem:[#allocation53_spill] sm:$0xff] %v23703_v2  ;;  %v23705_v53 = vpop.f32.mrb[55].mxu0  ;;  %v7775_v2 = vld [vmem:[#allocation2 + $0x154] sm:$0xf] }
 0x3b8   : > { %18276 = vmatmul.mubr.msk.bf16.vlgmr.msra.gmra.mrb[64].mxu0 %vm1199_vm3, %v20173_v30  ;;  %25694 = vst [vmem:[#allocation54_spill] sm:$0xff] %v23705_v53  ;;  %v20177_v30 = vld [vmem:[#allocation2 + $0x16c] sm:$0xff]  }
 0x3b9   : > { %18279 = vmatprep.mubr.msk.bf16.mxu0 %vm1199_vm3, %v20174_v24  ;;  %18308 = vmatpush3.bf16.msra.mxu0 %v7145_v39  ;;  %v23707_v24 = vpop.f32.mrb[56].mxu0 }
 0x3ba   : > { %19950 = vmatprep.subr.msk.bf16.mxu0 %vm1248_vm2, %v23672_v63  ;;  %25695 = vst [vmem:[#allocation55_spill] sm:$0xff] %v23707_v24 }
 0x3bd   : > { %18130 = vmatmul.mubr.msk.bf16.gmra.mrb[24].mxu1 %vm1199_vm3, %v23665_v26 }
 0x3be   : > { %18133 = vmatprep.mubr.msk.bf16.mxu1 %vm1199_vm3, %v23667_v46 }
 0x3c0   : > { %18280 = vmatmul.mubr.msk.bf16.gmra.mrb[68].mxu0 %vm1199_vm3, %v20175_v50 }
 0x3c1   : > { %18283 = vmatprep.mubr.msk.bf16.mxu0 %vm1199_vm3, %v20176_v49 }
 0x3c5   : > { %18134 = vmatmul.mubr.msk.bf16.gmra.mrb[28].mxu1 %vm1199_vm3, %v23693_v21 }
 0x3c6   : > { %18139 = vmatprep.mubr.msk.bf16.mxu1 %vm1199_vm3, %v23374_v42  ;;  %v23719_v42 = vpop.f32.mrb[57].mxu0 }
 0x3c7   : > { %25696 = vst [vmem:[#allocation56_spill] sm:$0xff] %v23719_v42  ;;  %v23723_v39 = vpop.f32.mrb[58].mxu0 }
 0x3c8   : > { %18284 = vmatmul.mubr.msk.bf16.gmra.mrb[72].mxu0 %vm1199_vm3, %v20177_v30  ;;  %25697 = vst [vmem:[#allocation57_spill] sm:$0xff] %v23723_v39  ;;  %v23725_v16 = vpop.f32.mrb[59].mxu0  ;;  %v20181_v30 = vld [vmem:[#allocation2 + $0x1ec] sm:$0xff]   ;;  %v9405_v39 = vld [vmem:[#allocation2 + $0x484] sm:$0xf] }
 0x3c9   : > { %18287 = vmatprep.mubr.msk.bf16.mxu0 %vm1199_vm3, %v20178_v40  ;;  %25698 = vst [vmem:[#allocation58_spill] sm:$0xff] %v23725_v16  ;;  %v23727_v50 = vpop.f32.mrb[60].mxu0  ;;  %v20182_v40 = vld [vmem:[#allocation2 + $0x20c] sm:$0xff]   ;;  %v24024_v16 = vld [vmem:[#allocation2 + $0x134] sm:$0xf] }
 0x3ca   : > { %25699 = vst [vmem:[#allocation59_spill] sm:$0xff] %v23727_v50 }
 0x3cd   : > { %18140 = vmatmul.mubr.msk.bf16.vlgmr.msra.gmra.mrb[0].mxu1 %vm1199_vm3, %v23403_v34  ;;  %v23733_v34 = vpop.f32.mrb[61].mxu0 }
 0x3ce   : > { %18478 = vmatpush3.bf16.msra.mxu1 %v9710_v60  ;;  %18143 = vmatprep.mubr.msk.bf16.mxu1 %vm1199_vm3, %v23408_v31  ;;  %25700 = vst [vmem:[#allocation60_spill] sm:$0xff] %v23733_v34  ;;  %v23737_v31 = vpop.f32.mrb[62].mxu0  ;;  %v3836_v60 = vld [vmem:[#allocation2 + $0x450] sm:$0xf] }
 0x3cf   : > { %19955 = vmatprep.subr.msk.bf16.mxu1 %vm1248_vm2, %v23712_v14  ;;  %25701 = vst [vmem:[#allocation61_spill] sm:$0xff] %v23737_v31  ;;  %v23739_v49 = vpop.f32.mrb[63].mxu0  ;;  %v7763_v31 = vld [vmem:[#allocation2 + $0xd4] sm:$0xf] }
 0x3d0   : > { %18288 = vmatmul.mubr.msk.bf16.gmra.mrb[76].mxu0 %vm1199_vm3, %v20179_v19  ;;  %25702 = vst [vmem:[#allocation62_spill] sm:$0xff] %v23739_v49  ;;  %v20183_v19 = vld [vmem:[#allocation2 + $0x22c] sm:$0xff]   ;;  %v9391_v49 = vld [vmem:[#allocation2 + $0x3a8] sm:$0x7] }
 0x3d1   : > { %18291 = vmatprep.mubr.msk.bf16.mxu0 %vm1199_vm3, %v20180_v6  ;;  %v3837_v6 = vld [vmem:[#allocation2 + $0x454] sm:$0x7] }
 0x3d2   : > { %v4755_v5 = vrot.slane %v3837_v6, 7 }
 0x3d5   : > { %18144 = vmatmul.mubr.msk.bf16.gmra.mrb[4].mxu1 %vm1199_vm3, %v23444_v33  ;;  %v4752_v33 = vrot.slane %v3836_v60, 7  ;;  %v3838_v60 = vld [vmem:[#allocation2 + $0x46c] sm:$0x8] }
 0x3d6   : > { %18147 = vmatprep.mubr.msk.bf16.mxu1 %vm1199_vm3, %v23611_v58  ;;  %v3835_v58 = vld [vmem:[#allocation2 + $0x44c] sm:$0x8]  ;;  %v16454_v0 = vrot.slane %v3838_v60, 11 }
 0x3d7   : > { %v16453_v62 = vrot.slane %v3835_v58, 11  ;;  %v4754_v3 = vrot.slane %v4752_v33, 4  ;;  %v3840_v58 = vld [vmem:[#allocation2 + $0x474] sm:$0x7]  ;;  %v3847_v60 = vld [vmem:[#allocation2 + $0x4cc] sm:$0x8] }
 0x3d8   : > { %18292 = vmatmul.mubr.msk.bf16.gmra.mrb[80].mxu0 %vm1199_vm3, %v20181_v30  ;;  %v3842_v30 = vld [vmem:[#allocation2 + $0x490] sm:$0xf]  ;;  %v4762_v52 = vrot.slane %v3840_v58, 7  ;;  %v3849_v58 = vld [vmem:[#allocation2 + $0x4d4] sm:$0x7] }
 0x3d9   : > { %18295 = vmatprep.mubr.msk.bf16.mxu0 %vm1199_vm3, %v20182_v40  ;;  %v4756_v40 = vsel %vm22895_vm11, %v4754_v3, %v4755_v5  ;;  %v4766_v6 = vrot.slane %v3842_v30, 7  ;;  %v4773_v3 = vrot.slane %v3845_v1, 7  ;;  %v3844_v30 = vld [vmem:[#allocation2 + $0x4ac] sm:$0x8] }
 0x3dd   : > { %18148 = vmatmul.mubr.msk.bf16.gmra.mrb[8].mxu1 %vm1199_vm3, %v23639_v29  ;;  %v4759_v29 = vrot.slane %v3839_v54, 7  ;;  %v4768_v54 = vrot.slane %v4766_v6, 4 }
 0x3de   : > { %18151 = vmatprep.mubr.msk.bf16.mxu1 %vm1199_vm3, %v23641_v41  ;;  %v4753_v41 = vsel %vm22895_vm11, %v16453_v62, %v4752_v33  ;;  %v3848_v62 = vld [vmem:[#allocation2 + $0x4d0] sm:$0xf] }
 0x3df   : > { %v4761_v57 = vrot.slane %v4759_v29, 4  ;;  %v4760_v5 = vsel %vm22895_vm11, %v16454_v0, %v4759_v29  ;;  %v4770_v33 = vsel %vm22895_vm11, %v4768_v54, %v4769_v13  ;;  %v16456_v0 = vrot.slane %v3844_v30, 11  ;;  %v9309_v13 = vld [vmem:[#allocation2 + $0x4] sm:$0xf]  ;;  %v9308_v30 = vld [vmem:[#allocation2] sm:$0x8] }
 0x3e0   : > { %18296 = vmatmul.mubr.msk.bf16.gmra.mrb[84].mxu0 %vm1199_vm3, %v20183_v19  ;;  %v20185_v19 = vld [vmem:[#allocation2 + $0x26c] sm:$0xff]   ;;  %v4775_v29 = vrot.slane %v4773_v3, 4  ;;  %v4787_v54 = vrot.slane %v3851_v38, 7  ;;  %v9312_v38 = vld [vmem:[#allocation2 + $0x24] sm:$0xf] }
 0x3e1   : > { %18299 = vmatprep.mubr.msk.bf16.mxu0 %vm1199_vm3, %v20184_v7 }
 0x3e5   : > { %18152 = vmatmul.mubr.msk.bf16.gmra.mrb[12].mxu1 %vm1199_vm3, %v23665_v26  ;;  %v16459_v26 = vcombine.low %v4753_v41, %v4756_v40  ;;  %v4780_v41 = vrot.slane %v3848_v62, 7  ;;  %v23773_v40 = vld [vmem:[#allocation2 + $0x2ac] sm:$0xff]  }
 0x3e6   : > { %18155 = vmatprep.mubr.msk.bf16.mxu1 %vm1199_vm3, %v23667_v46  ;;  %v16455_v46 = vrot.slane %v3841_v56, 11  ;;  %v4763_v56 = vsel %vm22895_vm11, %v4761_v57, %v4762_v52  ;;  %v16457_v52 = vrot.slane %v3847_v60, 11  ;;  %v4783_v57 = vrot.slane %v3849_v58, 7 }
 0x3e7   : > { %v4782_v1 = vrot.slane %v4780_v41, 4  ;;  %v4789_v58 = vrot.slane %v4787_v54, 4 }
 0x3e8   : > { %18300 = vmatmul.mubr.msk.bf16.gmra.mrb[88].mxu0 %vm1199_vm3, %v20185_v19  ;;  %v4767_v36 = vsel %vm22895_vm11, %v16455_v46, %v4766_v6  ;;  %v4774_v6 = vsel %vm22895_vm11, %v16456_v0, %v4773_v3  ;;  %v4781_v62 = vsel %vm22895_vm11, %v16457_v52, %v4780_v41  ;;  %v7503_v41 = vsel %vm1248_vm2, %v23672_v63, 0  ;;  %v23791_v52 = vld [vmem:[#allocation12 + $0x4] sm:$0x3] }
 0x3e9   : > { %18303 = vmatprep.mubr.msk.bf16.mxu0 %vm1199_vm3, %v23757_v18  ;;  %v16461_v35 = vcombine.low %v4767_v36, %v4770_v33  ;;  %v3852_v36 = vld [vmem:[#allocation2 + $0x4f4] sm:$0x7]  ;;  %v9502_v33 = vrot.slane %v9309_v13, 7  ;;  %v9509_v13 = vrot.slane %v9312_v38, 7 }
 0x3ea   : > { %v4790_v3 = vrot.slane %v3852_v36, 7 }
 0x3eb   : > { %v9504_v0 = vrot.slane %v9502_v33, 4 }
 0x3ed   : > { %18156 = vmatmul.mubr.msk.bf16.gmra.mrb[16].mxu1 %vm1199_vm3, %v23693_v21  ;;  %v3846_v21 = vld [vmem:[#allocation2 + $0x4b4] sm:$0x7] }
 0x3ee   : > { %18159 = vmatprep.mubr.msk.bf16.mxu1 %vm1199_vm3, %v16459_v26  ;;  %v16460_v26 = vcombine.low %v4760_v5, %v4763_v56  ;;  %v4776_v45 = vrot.slane %v3846_v21, 7  ;;  %v4784_v5 = vsel %vm22895_vm11, %v4782_v1, %v4783_v57  ;;  %v3850_v56 = vld [vmem:[#allocation2 + $0x4ec] sm:$0x8]  ;;  %v4791_v57 = vsel %vm22895_vm11, %v4789_v58, %v4790_v3  ;;  %v9318_v58 = vld [vmem:[#allocation2 + $0x64] sm:$0xf] }
 0x3ef   : > { %v16458_v60 = vrot.slane %v3850_v56, 11  ;;  %v20188_v56 = vld [vmem:[#allocation2 + $0x2cc] sm:$0xff]   ;;  %v9321_v3 = vld [vmem:[#allocation2 + $0x84] sm:$0xf] }
 0x3f0   : > { %18304 = vmatmul.mubr.msk.bf16.gmra.mrb[92].mxu0 %vm1199_vm3, %v23773_v40  ;;  %v4777_v46 = vsel %vm22895_vm11, %v4775_v29, %v4776_v45  ;;  %v9315_v29 = vld [vmem:[#allocation2 + $0x44] sm:$0xf] }
 0x3f1   : > { %18309 = vmatprep.mubr.msk.bf16.mxu0 %vm1199_vm3, %v20184_v7  ;;  %v9310_v7 = vld [vmem:[#allocation2 + $0x8] sm:$0x7]  ;;  %v16462_v21 = vcombine.low %v4774_v6, %v4777_v46  ;;  %v4788_v1 = vsel %vm22895_vm11, %v16458_v60, %v4787_v54  ;;  %v9311_v6 = vld [vmem:[#allocation2 + $0x20] sm:$0x8] }
 0x3f2   : > { %v9505_v45 = vrot.slane %v9310_v7, 7  ;;  %v9313_v46 = vld [vmem:[#allocation2 + $0x28] sm:$0x7]  ;;  %v16464_v54 = vcombine.low %v4788_v1, %v4791_v57  ;;  %v9511_v7 = vrot.slane %v9509_v13, 4  ;;  %v9530_v1 = vrot.slane %v9321_v3, 7  ;;  %v20189_v57 = vld [vmem:[#allocation2 + $0x2ec] sm:$0xff]  }
 0x3f5   : > { %18160 = vmatmul.mubr.msk.bf16.gmra.mrb[20].mxu1 %vm1199_vm3, %v16460_v26  ;;  %v16825_v26 = vrot.slane %v9308_v30, 11  ;;  %v16826_v30 = vrot.slane %v9311_v6, 11 }
 0x3f6   : > { %18163 = vmatprep.mubr.msk.bf16.mxu1 %vm1199_vm3, %v16461_v35  ;;  %v16463_v35 = vcombine.low %v4781_v62, %v4784_v5  ;;  %v9516_v62 = vrot.slane %v9315_v29, 7  ;;  %v9316_v5 = vld [vmem:[#allocation2 + $0x48] sm:$0x7] }
 0x3f7   : > { %v9503_v63 = vsel %vm22895_vm11, %v16825_v26, %v9502_v33  ;;  %v9519_v33 = vrot.slane %v9316_v5, 7  ;;  %v9510_v26 = vsel %vm22895_vm11, %v16826_v30, %v9509_v13  ;;  %v9319_v29 = vld [vmem:[#allocation2 + $0x68] sm:$0x7] }
 0x3f8   : > { %18310 = vmatmul.mubr.msk.bf16.vlgmr.msra.gmra.mrb[64].mxu0 %vm1199_vm3, %v20185_v19  ;;  %v9506_v19 = vsel %vm22895_vm11, %v9504_v0, %v9505_v45  ;;  %v9518_v60 = vrot.slane %v9516_v62, 4  ;;  %v9523_v45 = vrot.slane %v9318_v58, 7 }
 0x3f9   : > { %18313 = vmatprep.mubr.msk.bf16.mxu0 %vm1199_vm3, %v23757_v18  ;;  %18342 = vmatpush3.bf16.msra.mxu0 %v7503_v41  ;;  %v9314_v18 = vld [vmem:[#allocation2 + $0x40] sm:$0x8]  ;;  %v16841_v36 = vcombine.low %v9503_v63, %v9506_v19  ;;  %v9322_v19 = vld [vmem:[#allocation2 + $0x88] sm:$0x7] }
 0x3fa   : > { %19951 = vmatprep.subr.msk.bf16.mxu0 %vm1248_vm2, %v23791_v52  ;;  %v9317_v41 = vld [vmem:[#allocation2 + $0x60] sm:$0x8]  ;;  %v9525_v5 = vrot.slane %v9523_v45, 4  ;;  %v9533_v30 = vrot.slane %v9322_v19, 7 }
 0x3fb   : > { %v9320_v63 = vld [vmem:[#allocation2 + $0x80] sm:$0x8]  ;;  %v16828_v13 = vrot.slane %v9317_v41, 11 }
 0x3fc   : > { %v9326_v41 = vld [vmem:[#allocation2 + $0xc0] sm:$0x8] }
 0x3fd   : > { %18164 = vmatmul.mubr.msk.bf16.gmra.mrb[24].mxu1 %vm1199_vm3, %v16462_v21  ;;  %v9512_v21 = vrot.slane %v9313_v46, 7  ;;  %v20190_v46 = vld [vmem:[#allocation2 + $0x30c] sm:$0xff]  }
 0x3fe   : > { %18167 = vmatprep.mubr.msk.bf16.mxu1 %vm1199_vm3, %v16463_v35  ;;  %v16827_v35 = vrot.slane %v9314_v18, 11 }
 0x3ff   : > { %v9513_v0 = vsel %vm22895_vm11, %v9511_v7, %v9512_v21  ;;  %v9324_v7 = vld [vmem:[#allocation2 + $0xa4] sm:$0xf] }
 0x400   : > { %18314 = vmatmul.mubr.msk.bf16.gmra.mrb[68].mxu0 %vm1199_vm3, %v23773_v40  ;;  %v9517_v38 = vsel %vm22895_vm11, %v16827_v35, %v9516_v62  ;;  %v9520_v40 = vsel %vm22895_vm11, %v9518_v60, %v9519_v33  ;;  %v16842_v6 = vcombine.low %v9510_v26, %v9513_v0  ;;  %v9532_v62 = vrot.slane %v9530_v1, 4  ;;  %v9327_v21 = vld [vmem:[#allocation2 + $0xc4] sm:$0xf]  ;;  %v23823_v35 = vld [vmem:[#allocation13 + $0xc] sm:$0x3] }
 0x401   : > { %18317 = vmatprep.mubr.msk.bf16.mxu0 %vm1199_vm3, %v20188_v56  ;;  %v16843_v18 = vcombine.low %v9517_v38, %v9520_v40  ;;  %v10165_v56 = vsel %vm1248_vm2, %v23712_v14, 0  ;;  %v9524_v60 = vsel %vm22895_vm11, %v16828_v13, %v9523_v45  ;;  %v9537_v33 = vrot.slane %v9324_v7, 7  ;;  %v9323_v26 = vld [vmem:[#allocation2 + $0xa0] sm:$0x8]  ;;  %v9325_v0 = vld [vmem:[#allocation2 + $0xa8] sm:$0x7] }
 0x402   : > { %v9534_v3 = vsel %vm22895_vm11, %v9532_v62, %v9533_v30  ;;  %v9544_v38 = vrot.slane %v9327_v21, 7  ;;  %v20191_v40 = vld [vmem:[#allocation2 + $0x32c] sm:$0xff]   ;;  %v16830_v19 = vrot.slane %v9323_v26, 11  ;;  %v9329_v21 = vld [vmem:[#allocation2 + $0xe0] sm:$0x8] }
 0x403   : > { %v9334_v26 = vld [vmem:[#allocation2 + $0x108] sm:$0x7] }
 0x405   : > { %18168 = vmatmul.mubr.msk.bf16.gmra.mrb[28].mxu1 %vm1199_vm3, %v16464_v54  ;;  %v9526_v54 = vrot.slane %v9319_v29, 7  ;;  %v9328_v29 = vld [vmem:[#allocation2 + $0xc8] sm:$0x7] }
 0x406   : > { %18479 = vmatprep.mubr.msk.bf16.mxu1 %vm1199_vm3, %v16841_v36  ;;  %v16829_v36 = vrot.slane %v9320_v63, 11  ;;  %v9547_v13 = vrot.slane %v9328_v29, 7 }
 0x407   : > { %v9527_v14 = vsel %vm22895_vm11, %v9525_v5, %v9526_v54  ;;  %v9330_v5 = vld [vmem:[#allocation2 + $0xe4] sm:$0xf] }
 0x408   : > { %18318 = vmatmul.mubr.msk.bf16.gmra.mrb[72].mxu0 %vm1199_vm3, %v20189_v57  ;;  %v9531_v58 = vsel %vm22895_vm11, %v16829_v36, %v9530_v1  ;;  %v16844_v45 = vcombine.low %v9524_v60, %v9527_v14  ;;  %v20192_v57 = vld [vmem:[#allocation2 + $0x34c] sm:$0xff]   ;;  %v9546_v1 = vrot.slane %v9544_v38, 4  ;;  %v9333_v54 = vld [vmem:[#allocation2 + $0x104] sm:$0xf]  ;;  %v9551_v62 = vrot.slane %v9330_v5, 7 }
 0x409   : > { %18321 = vmatprep.mubr.msk.bf16.mxu0 %vm1199_vm3, %v20190_v46  ;;  %v16845_v63 = vcombine.low %v9531_v58, %v9534_v3  ;;  %v9540_v46 = vrot.slane %v9325_v0, 7  ;;  %v9331_v60 = vld [vmem:[#allocation2 + $0xe8] sm:$0x7]  ;;  %v9558_v14 = vrot.slane %v9333_v54, 7  ;;  %v20193_v58 = vld [vmem:[#allocation2 + $0x36c] sm:$0xff]  }
 0x40a   : > { %v9548_v7 = vsel %vm22895_vm11, %v9546_v1, %v9547_v13  ;;  %v9332_v3 = vld [vmem:[#allocation2 + $0x100] sm:$0x8]  ;;  %v9553_v29 = vrot.slane %v9551_v62, 4 }
 0x40b   : > { %v9335_v54 = vld [vmem:[#allocation2 + $0x120] sm:$0x8] }
 0x40d   : > { %18480 = vmatmul.mubr.msk.bf16.vlgmr.msra.gmra.mrb[32].mxu1 %vm1199_vm3, %v16842_v6  ;;  %v9539_v6 = vrot.slane %v9537_v33, 4 }
 0x40e   : > { %18512 = vmatpush3.bf16.msra.mxu1 %v10165_v56  ;;  %18483 = vmatprep.mubr.msk.bf16.mxu1 %vm1199_vm3, %v16843_v18  ;;  %v16831_v18 = vrot.slane %v9326_v41, 11  ;;  %v9538_v56 = vsel %vm22895_vm11, %v16830_v19, %v9537_v33  ;;  %v16832_v33 = vrot.slane %v9329_v21, 11  ;;  %v9561_v19 = vrot.slane %v9334_v26, 7  ;;  %v9340_v21 = vld [vmem:[#allocation2 + $0x148] sm:$0x7] }
 0x40f   : > { %19956 = vmatprep.subr.msk.bf16.mxu1 %vm1248_vm2, %v23823_v35  ;;  %v9541_v36 = vsel %vm22895_vm11, %v9539_v6, %v9540_v46  ;;  %v9336_v6 = vld [vmem:[#allocation2 + $0x124] sm:$0xf] }
 0x410   : > { %18322 = vmatmul.mubr.msk.bf16.gmra.mrb[76].mxu0 %vm1199_vm3, %v20191_v40  ;;  %v9545_v30 = vsel %vm22895_vm11, %v16831_v18, %v9544_v38  ;;  %v16846_v0 = vcombine.low %v9538_v56, %v9541_v36  ;;  %v20194_v40 = vld [vmem:[#allocation2 + $0x38c] sm:$0xff]   ;;  %v9339_v38 = vld [vmem:[#allocation2 + $0x144] sm:$0xf]  ;;  %v9552_v46 = vsel %vm22895_vm11, %v16832_v33, %v9551_v62  ;;  %v9565_v1 = vrot.slane %v9336_v6, 7  ;;  %v9337_v56 = vld [vmem:[#allocation2 + $0x128] sm:$0x7] }
 0x411   : > { %18325 = vmatprep.mubr.msk.bf16.mxu0 %vm1199_vm3, %v20192_v57  ;;  %v16847_v41 = vcombine.low %v9545_v30, %v9548_v7  ;;  %v16833_v57 = vrot.slane %v9332_v3, 11  ;;  %v9572_v36 = vrot.slane %v9339_v38, 7  ;;  %v20195_v30 = vld [vmem:[#allocation2 + $0x3ac] sm:$0xff]   ;;  %v9338_v7 = vld [vmem:[#allocation2 + $0x140] sm:$0x8]  ;;  %v16834_v3 = vrot.slane %v9335_v54, 11 }
 0x412   : > { %v9567_v26 = vrot.slane %v9565_v1, 4  ;;  %v9575_v33 = vrot.slane %v9340_v21, 7  ;;  %v9341_v38 = vld [vmem:[#allocation2 + $0x160] sm:$0x8]  ;;  %v9346_v54 = vld [vmem:[#allocation2 + $0x188] sm:$0x7] }
 0x413   : > { %v9559_v13 = vsel %vm22895_vm11, %v16833_v57, %v9558_v14 }
 0x415   : > { %18484 = vmatmul.mubr.msk.bf16.gmra.mrb[36].mxu1 %vm1199_vm3, %v16844_v45  ;;  %v9554_v45 = vrot.slane %v9331_v60, 7 }
 0x416   : > { %18487 = vmatprep.mubr.msk.bf16.mxu1 %vm1199_vm3, %v16845_v63  ;;  %v9560_v63 = vrot.slane %v9558_v14, 4  ;;  %v9342_v14 = vld [vmem:[#allocation2 + $0x164] sm:$0xf] }
 0x417   : > { %v9555_v18 = vsel %vm22895_vm11, %v9553_v29, %v9554_v45  ;;  %v9345_v29 = vld [vmem:[#allocation2 + $0x184] sm:$0xf]  ;;  %v9566_v45 = vsel %vm22895_vm11, %v16834_v3, %v9565_v1 }
 0x418   : > { %18326 = vmatmul.mubr.msk.bf16.gmra.mrb[80].mxu0 %vm1199_vm3, %v20193_v58  ;;  %v9562_v5 = vsel %vm22895_vm11, %v9560_v63, %v9561_v19  ;;  %v16848_v60 = vcombine.low %v9552_v46, %v9555_v18  ;;  %v23862_v58 = vld [vmem:[#allocation2 + $0x3cc] sm:$0xff]   ;;  %v9579_v63 = vrot.slane %v9342_v14, 7  ;;  %v9343_v46 = vld [vmem:[#allocation2 + $0x168] sm:$0x7]  ;;  %v9586_v18 = vrot.slane %v9345_v29, 7 }
 0x419   : > { %18329 = vmatprep.mubr.msk.bf16.mxu0 %vm1199_vm3, %v20194_v40  ;;  %v16849_v62 = vcombine.low %v9559_v13, %v9562_v5  ;;  %v16835_v40 = vrot.slane %v9338_v7, 11  ;;  %v23877_v13 = vld [vmem:[#allocation2 + $0x3ec] sm:$0xff]   ;;  %v9344_v5 = vld [vmem:[#allocation2 + $0x180] sm:$0x8]  ;;  %v16836_v7 = vrot.slane %v9341_v38, 11 }
 0x41a   : > { %v9581_v21 = vrot.slane %v9579_v63, 4  ;;  %v9588_v3 = vrot.slane %v9586_v18, 4  ;;  %v9350_v38 = vld [vmem:[#allocation2 + $0x1c0] sm:$0x8] }
 0x41b   : > { %v9573_v19 = vsel %vm22895_vm11, %v16835_v40, %v9572_v36  ;;  %v9580_v40 = vsel %vm22895_vm11, %v16836_v7, %v9579_v63  ;;  %v16839_v7 = vrot.slane %v9350_v38, 11 }
 0x41d   : > { %18488 = vmatmul.mubr.msk.bf16.gmra.mrb[40].mxu1 %vm1199_vm3, %v16846_v0  ;;  %v9568_v0 = vrot.slane %v9337_v56, 7 }
 0x41e   : > { %18491 = vmatprep.mubr.msk.bf16.mxu1 %vm1199_vm3, %v16847_v41  ;;  %v9574_v41 = vrot.slane %v9572_v36, 4  ;;  %v9589_v36 = vrot.slane %v9346_v54, 7 }
 0x41f   : > { %v9569_v57 = vsel %vm22895_vm11, %v9567_v26, %v9568_v0  ;;  %v9348_v26 = vld [vmem:[#allocation2 + $0x1a4] sm:$0xf] }
 0x420   : > { %18330 = vmatmul.mubr.msk.bf16.gmra.mrb[84].mxu0 %vm1199_vm3, %v20195_v30  ;;  %v9576_v6 = vsel %vm22895_vm11, %v9574_v41, %v9575_v33  ;;  %v16850_v56 = vcombine.low %v9566_v45, %v9569_v57  ;;  %v23879_v30 = vld [vmem:[#allocation2 + $0x40c] sm:$0xff]   ;;  %v9351_v0 = vld [vmem:[#allocation2 + $0x1c4] sm:$0xf]  ;;  %v9593_v33 = vrot.slane %v9348_v26, 7  ;;  %v9590_v29 = vsel %vm22895_vm11, %v9588_v3, %v9589_v36  ;;  %v9347_v45 = vld [vmem:[#allocation2 + $0x1a0] sm:$0x8] }
 0x421   : > { %18333 = vmatprep.mubr.msk.bf16.mxu0 %vm1199_vm3, %v23862_v58  ;;  %v16851_v1 = vcombine.low %v9573_v19, %v9576_v6  ;;  %v9349_v57 = vld [vmem:[#allocation2 + $0x1a8] sm:$0x7]  ;;  %v9600_v19 = vrot.slane %v9351_v0, 7  ;;  %v23895_v6 = vld [vmem:[#allocation2 + $0x42c] sm:$0xff]   ;;  %v16838_v63 = vrot.slane %v9347_v45, 11 }
 0x422   : > { %v9354_v26 = vld [vmem:[#allocation2 + $0x1e4] sm:$0xf]  ;;  %v9356_v45 = vld [vmem:[#allocation2 + $0x240] sm:$0x8] }
 0x423   : > { %v9607_v36 = vrot.slane %v9354_v26, 7  ;;  %v9601_v0 = vsel %vm22895_vm11, %v16839_v7, %v9600_v19  ;;  %v9363_v7 = vld [vmem:[#allocation2 + $0x284] sm:$0xf] }
 0x425   : > { %18492 = vmatmul.mubr.msk.bf16.gmra.mrb[44].mxu1 %vm1199_vm3, %v16848_v60  ;;  %v9582_v60 = vrot.slane %v9343_v46, 7  ;;  %v9352_v46 = vld [vmem:[#allocation2 + $0x1c8] sm:$0x7] }
 0x426   : > { %18495 = vmatprep.mubr.msk.bf16.mxu1 %vm1199_vm3, %v16849_v62  ;;  %v16837_v62 = vrot.slane %v9344_v5, 11 }
 0x427   : > { %v9583_v41 = vsel %vm22895_vm11, %v9581_v21, %v9582_v60  ;;  %v9602_v21 = vrot.slane %v9600_v19, 4  ;;  %v9603_v60 = vrot.slane %v9352_v46, 7  ;;  %v8141_v19 = vsel %vm1248_vm2, %v23791_v52, 0 }
 0x428   : > { %18334 = vmatmul.mubr.msk.bf16.gmra.mrb[88].mxu0 %vm1199_vm3, %v23877_v13  ;;  %v9587_v14 = vsel %vm22895_vm11, %v16837_v62, %v9586_v18  ;;  %v16852_v5 = vcombine.low %v9580_v40, %v9583_v41  ;;  %v9357_v18 = vld [vmem:[#allocation2 + $0x244] sm:$0xf]  ;;  %v9594_v62 = vsel %vm22895_vm11, %v16838_v63, %v9593_v33  ;;  %v9353_v41 = vld [vmem:[#allocation2 + $0x1e0] sm:$0x8] }
 0x429   : > { %18337 = vmatprep.mubr.msk.bf16.mxu0 %vm1199_vm3, %v23879_v30  ;;  %v16853_v54 = vcombine.low %v9587_v14, %v9590_v29  ;;  %v9604_v40 = vsel %vm22895_vm11, %v9602_v21, %v9603_v60  ;;  %v9355_v14 = vld [vmem:[#allocation2 + $0x1e8] sm:$0x7]  ;;  %v9956_v29 = vrot.slane %v9357_v18, 7  ;;  %v16840_v46 = vrot.slane %v9353_v41, 11  ;;  %v23915_v21 = vld [vmem:[#allocation12 + $0xa] sm:$0x3] }
 0x42a   : > { %v16855_v38 = vcombine.low %v9601_v0, %v9604_v40  ;;  %v9970_v0 = vrot.slane %v9363_v7, 7  ;;  %v9364_v40 = vld [vmem:[#allocation2 + $0x288] sm:$0x7]  ;;  %v20200_v41 = vld [vmem:[#allocation2 + $0x44c] sm:$0xff]  }
 0x42b   : > { %v9958_v63 = vrot.slane %v9956_v29, 4  ;;  %v9608_v60 = vsel %vm22895_vm11, %v16840_v46, %v9607_v36  ;;  %v9367_v7 = vld [vmem:[#allocation2 + $0x2a8] sm:$0x7] }
 0x42c   : > { %v9972_v46 = vrot.slane %v9970_v0, 4 }
 0x42d   : > { %18496 = vmatmul.mubr.msk.bf16.gmra.mrb[48].mxu1 %vm1199_vm3, %v16850_v56  ;;  %v9595_v56 = vrot.slane %v9593_v33, 4  ;;  %v9610_v33 = vrot.slane %v9355_v14, 7 }
 0x42e   : > { %18499 = vmatprep.mubr.msk.bf16.mxu1 %vm1199_vm3, %v16851_v1  ;;  %v9596_v1 = vrot.slane %v9349_v57, 7 }
 0x430   : > { %18338 = vmatmul.mubr.msk.bf16.gmra.mrb[92].mxu0 %vm1199_vm3, %v23895_v6  ;;  %v9597_v3 = vsel %vm22895_vm11, %v9595_v56, %v9596_v1  ;;  %v9360_v1 = vld [vmem:[#allocation2 + $0x264] sm:$0xf] }
 0x431   : > { %18343 = vmatprep.mubr.msk.bf16.mxu0 %vm1199_vm3, %v23862_v58  ;;  %v9358_v58 = vld [vmem:[#allocation2 + $0x248] sm:$0x7]  ;;  %v16854_v57 = vcombine.low %v9594_v62, %v9597_v3  ;;  %v9963_v52 = vrot.slane %v9360_v1, 7  ;;  %v9359_v62 = vld [vmem:[#allocation2 + $0x260] sm:$0x8] }
 0x432   : > { %v9959_v56 = vrot.slane %v9358_v58, 7  ;;  %v9361_v3 = vld [vmem:[#allocation2 + $0x268] sm:$0x7] }
 0x433   : > { %v9965_v58 = vrot.slane %v9963_v52, 4 }
 0x434   : > { %v9960_v18 = vsel %vm22895_vm11, %v9958_v63, %v9959_v56 }
 0x435   : > { %18500 = vmatmul.mubr.msk.bf16.gmra.mrb[52].mxu1 %vm1199_vm3, %v16852_v5  ;;  %v9609_v5 = vrot.slane %v9607_v36, 4 }
 0x436   : > { %18503 = vmatprep.mubr.msk.bf16.mxu1 %vm1199_vm3, %v16853_v54  ;;  %v16873_v54 = vrot.slane %v9356_v45, 11  ;;  %v16874_v45 = vrot.slane %v9359_v62, 11 }
 0x437   : > { %v9611_v26 = vsel %vm22895_vm11, %v9609_v5, %v9610_v33  ;;  %v9366_v5 = vld [vmem:[#allocation2 + $0x2a4] sm:$0xf] }
 0x438   : > { %18344 = vmatmul.mubr.msk.bf16.vlgmr.msra.gmra.mrb[64].mxu0 %vm1199_vm3, %v23877_v13  ;;  %v9957_v13 = vsel %vm22895_vm11, %v16873_v54, %v9956_v29  ;;  %v16856_v36 = vcombine.low %v9608_v60, %v9611_v26  ;;  %v9973_v29 = vrot.slane %v9364_v40, 7  ;;  %v9369_v33 = vld [vmem:[#allocation2 + $0x2c4] sm:$0xf]  ;;  %v9964_v54 = vsel %vm22895_vm11, %v16874_v45, %v9963_v52  ;;  %v20201_v26 = vld [vmem:[#allocation2 + $0x46c] sm:$0xff]  }
 0x439   : > { %18347 = vmatprep.mubr.msk.bf16.mxu0 %vm1199_vm3, %v23879_v30  ;;  %18376 = vmatpush3.bf16.msra.mxu0 %v8141_v19  ;;  %v9362_v30 = vld [vmem:[#allocation2 + $0x280] sm:$0x8]  ;;  %v16889_v14 = vcombine.low %v9957_v13, %v9960_v18  ;;  %v9977_v56 = vrot.slane %v9366_v5, 7  ;;  %v9984_v60 = vrot.slane %v9369_v33, 7  ;;  %v9370_v18 = vld [vmem:[#allocation2 + $0x2c8] sm:$0x7] }
 0x43a   : > { %19952 = vmatprep.subr.msk.bf16.mxu0 %vm1248_vm2, %v23915_v21  ;;  %v9365_v19 = vld [vmem:[#allocation2 + $0x2a0] sm:$0x8]  ;;  %v9987_v45 = vrot.slane %v9370_v18, 7 }
 0x43b   : > { %v9368_v13 = vld [vmem:[#allocation2 + $0x2c0] sm:$0x8]  ;;  %v16876_v52 = vrot.slane %v9365_v19, 11  ;;  %v9979_v40 = vrot.slane %v9977_v56, 4 }
 0x43c   : > { %v9374_v19 = vld [vmem:[#allocation2 + $0x300] sm:$0x8] }
 0x43d   : > { %18504 = vmatmul.mubr.msk.bf16.gmra.mrb[56].mxu1 %vm1199_vm3, %v16854_v57  ;;  %v9966_v57 = vrot.slane %v9361_v3, 7  ;;  %v20202_v3 = vld [vmem:[#allocation2 + $0x48c] sm:$0xff]  }
 0x43e   : > { %18507 = vmatprep.mubr.msk.bf16.mxu1 %vm1199_vm3, %v16855_v38  ;;  %v16875_v38 = vrot.slane %v9362_v30, 11 }
 0x43f   : > { %v9967_v63 = vsel %vm22895_vm11, %v9965_v58, %v9966_v57  ;;  %v9372_v58 = vld [vmem:[#allocation2 + $0x2e4] sm:$0xf] }
 0x440   : > { %18348 = vmatmul.mubr.msk.bf16.gmra.mrb[68].mxu0 %vm1199_vm3, %v23895_v6  ;;  %v9971_v1 = vsel %vm22895_vm11, %v16875_v38, %v9970_v0  ;;  %v9974_v6 = vsel %vm22895_vm11, %v9972_v46, %v9973_v29  ;;  %v16890_v62 = vcombine.low %v9964_v54, %v9967_v63  ;;  %v9986_v0 = vrot.slane %v9984_v60, 4  ;;  %v9375_v57 = vld [vmem:[#allocation2 + $0x304] sm:$0xf]  ;;  %v23947_v38 = vld [vmem:[#allocation13 + $0x2] sm:$0x3] }
 0x441   : > { %18351 = vmatprep.mubr.msk.bf16.mxu0 %vm1199_vm3, %v20200_v41  ;;  %v16891_v30 = vcombine.low %v9971_v1, %v9974_v6  ;;  %v10683_v41 = vsel %vm1248_vm2, %v23823_v35, 0  ;;  %v9978_v46 = vsel %vm22895_vm11, %v16876_v52, %v9977_v56  ;;  %v9991_v29 = vrot.slane %v9372_v58, 7  ;;  %v9371_v54 = vld [vmem:[#allocation2 + $0x2e0] sm:$0x8]  ;;  %v9373_v63 = vld [vmem:[#allocation2 + $0x2e8] sm:$0x7] }
 0x442   : > { %v9988_v33 = vsel %vm22895_vm11, %v9986_v0, %v9987_v45  ;;  %v9998_v1 = vrot.slane %v9375_v57, 7  ;;  %v20203_v6 = vld [vmem:[#allocation2 + $0x4ac] sm:$0xff]   ;;  %v16878_v18 = vrot.slane %v9371_v54, 11  ;;  %v9377_v57 = vld [vmem:[#allocation2 + $0x320] sm:$0x8] }
 0x443   : > { %v9382_v54 = vld [vmem:[#allocation2 + $0x348] sm:$0x7] }
 0x445   : > { %18508 = vmatmul.mubr.msk.bf16.gmra.mrb[60].mxu1 %vm1199_vm3, %v16856_v36  ;;  %v9980_v36 = vrot.slane %v9367_v7, 7  ;;  %v9376_v7 = vld [vmem:[#allocation2 + $0x308] sm:$0x7] }
 0x446   : > { %18513 = vmatprep.mubr.msk.bf16.mxu1 %vm1199_vm3, %v16889_v14  ;;  %v16877_v14 = vrot.slane %v9368_v13, 11  ;;  %v10001_v52 = vrot.slane %v9376_v7, 7  ;;  %v16880_v7 = vrot.slane %v9377_v57, 11 }
 0x447   : > { %v9981_v35 = vsel %vm22895_vm11, %v9979_v40, %v9980_v36  ;;  %v9378_v40 = vld [vmem:[#allocation2 + $0x324] sm:$0xf] }
 0x448   : > { %18352 = vmatmul.mubr.msk.bf16.gmra.mrb[72].mxu0 %vm1199_vm3, %v20201_v26  ;;  %v9985_v5 = vsel %vm22895_vm11, %v16877_v14, %v9984_v60  ;;  %v16892_v56 = vcombine.low %v9978_v46, %v9981_v35  ;;  %v20204_v26 = vld [vmem:[#allocation2 + $0x4cc] sm:$0xff]   ;;  %v10000_v60 = vrot.slane %v9998_v1, 4  ;;  %v9381_v36 = vld [vmem:[#allocation2 + $0x344] sm:$0xf]  ;;  %v10005_v0 = vrot.slane %v9378_v40, 7 }
 0x449   : > { %18355 = vmatprep.mubr.msk.bf16.mxu0 %vm1199_vm3, %v20202_v3  ;;  %v16893_v13 = vcombine.low %v9985_v5, %v9988_v33  ;;  %v9994_v3 = vrot.slane %v9373_v63, 7  ;;  %v9379_v46 = vld [vmem:[#allocation2 + $0x328] sm:$0x7]  ;;  %v10012_v35 = vrot.slane %v9381_v36, 7  ;;  %v20205_v5 = vld [vmem:[#allocation2 + $0x4ec] sm:$0xff]  }
 0x44a   : > { %v10002_v58 = vsel %vm22895_vm11, %v10000_v60, %v10001_v52  ;;  %v9380_v33 = vld [vmem:[#allocation2 + $0x340] sm:$0x8]  ;;  %v9390_v36 = vld [vmem:[#allocation2 + $0x3a4] sm:$0xf] }
 0x44b   : > { %v9386_v52 = vld [vmem:[#allocation2 + $0x380] sm:$0x8] }
 0x44d   : > { %18514 = vmatmul.mubr.msk.bf16.vlgmr.msra.gmra.mrb[32].mxu1 %vm1199_vm3, %v16890_v62  ;;  %v9993_v62 = vrot.slane %v9991_v29, 4 }
 0x44e   : > { %18546 = vmatpush3.bf16.msra.mxu1 %v10683_v41  ;;  %18517 = vmatprep.mubr.msk.bf16.mxu1 %vm1199_vm3, %v16891_v30  ;;  %v16879_v30 = vrot.slane %v9374_v19, 11  ;;  %v9992_v41 = vsel %vm22895_vm11, %v16878_v18, %v9991_v29  ;;  %v9384_v19 = vld [vmem:[#allocation2 + $0x364] sm:$0xf]  ;;  %v16881_v18 = vrot.slane %v9380_v33, 11 }
 0x44f   : > { %19957 = vmatprep.subr.msk.bf16.mxu1 %vm1248_vm2, %v23947_v38  ;;  %v9995_v14 = vsel %vm22895_vm11, %v9993_v62, %v9994_v3  ;;  %v10014_v62 = vrot.slane %v10012_v35, 4  ;;  %v9383_v3 = vld [vmem:[#allocation2 + $0x360] sm:$0x8]  ;;  %v10019_v60 = vrot.slane %v9384_v19, 7  ;;  %v10033_v19 = vrot.slane %v9390_v36, 7 }
 0x450   : > { %18356 = vmatmul.mubr.msk.bf16.gmra.mrb[76].mxu0 %vm1199_vm3, %v20203_v6  ;;  %v9999_v45 = vsel %vm22895_vm11, %v16879_v30, %v9998_v1  ;;  %v16894_v63 = vcombine.low %v9992_v41, %v9995_v14  ;;  %v20206_v6 = vld [vmem:[#allocation2 + $0x50c] sm:$0xff]   ;;  %v10015_v1 = vrot.slane %v9382_v54, 7  ;;  %v9385_v30 = vld [vmem:[#allocation2 + $0x368] sm:$0x7]  ;;  %v10006_v41 = vsel %vm22895_vm11, %v16880_v7, %v10005_v0  ;;  %v9389_v7 = vld [vmem:[#allocation2 + $0x3a0] sm:$0x8] }
 0x451   : > { %18359 = vmatprep.mubr.msk.bf16.mxu0 %vm1199_vm3, %v20204_v26  ;;  %v16895_v29 = vcombine.low %v9999_v45, %v10002_v58  ;;  %v10008_v26 = vrot.slane %v9379_v46, 7  ;;  %v9388_v45 = vld [vmem:[#allocation2 + $0x388] sm:$0x7]  ;;  %v10013_v58 = vsel %vm22895_vm11, %v16881_v18, %v10012_v35  ;;  %v16882_v46 = vrot.slane %v9383_v3, 11 }
 0x452   : > { %v10016_v57 = vsel %vm22895_vm11, %v10014_v62, %v10015_v1  ;;  %v10021_v33 = vrot.slane %v10019_v60, 4  ;;  %v10022_v54 = vrot.slane %v9385_v30, 7  ;;  %v16884_v62 = vrot.slane %v9389_v7, 11  ;;  %v9396_v30 = vld [vmem:[#allocation2 + $0x3e4] sm:$0xf] }
 0x453   : > { %v10020_v35 = vsel %vm22895_vm11, %v16882_v46, %v10019_v60  ;;  %v10035_v1 = vrot.slane %v10033_v19, 4  ;;  %v10036_v3 = vrot.slane %v9391_v49, 7  ;;  %v9392_v60 = vld [vmem:[#allocation2 + $0x3c0] sm:$0x8]  ;;  %v9397_v46 = vld [vmem:[#allocation2 + $0x3e8] sm:$0x7] }
 0x454   : > { %v10023_v18 = vsel %vm22895_vm11, %v10021_v33, %v10022_v54  ;;  %v9395_v49 = vld [vmem:[#allocation2 + $0x3e0] sm:$0x8]  ;;  %v20209_v54 = vld [vmem:[#allocation2 + $0x56c] sm:$0xff]  }
 0x455   : > { %18518 = vmatmul.mubr.msk.bf16.gmra.mrb[36].mxu1 %vm1199_vm3, %v16892_v56  ;;  %v10007_v56 = vrot.slane %v10005_v0, 4  ;;  %v10029_v0 = vrot.slane %v9388_v45, 7  ;;  %v9394_v45 = vld [vmem:[#allocation2 + $0x3c8] sm:$0x7]  ;;  %v16898_v33 = vcombine.low %v10020_v35, %v10023_v18  ;;  %v10050_v35 = vrot.slane %v9397_v46, 7 }
 0x456   : > { %18521 = vmatprep.mubr.msk.bf16.mxu1 %vm1199_vm3, %v16893_v13  ;;  %v9387_v13 = vld [vmem:[#allocation2 + $0x384] sm:$0xf]  ;;  %v10043_v34 = vrot.slane %v9394_v45, 7 }
 0x457   : > { %v10026_v40 = vrot.slane %v9387_v13, 7  ;;  %v10009_v14 = vsel %vm22895_vm11, %v10007_v56, %v10008_v26  ;;  %v16897_v56 = vcombine.low %v10013_v58, %v10016_v57  ;;  %v9393_v26 = vld [vmem:[#allocation2 + $0x3c4] sm:$0xf]  ;;  %v7762_v58 = vld [vmem:[#allocation2 + $0xd0] sm:$0xc] }
 0x458   : > { %18360 = vmatmul.mubr.msk.bf16.gmra.mrb[80].mxu0 %vm1199_vm3, %v20205_v5  ;;  %v20207_v5 = vld [vmem:[#allocation2 + $0x52c] sm:$0xff]   ;;  %v7764_v57 = vld [vmem:[#allocation2 + $0xd8] sm:$0x3]  ;;  %v9399_v18 = vld [vmem:[#allocation2 + $0x404] sm:$0xf] }
 0x459   : > { %18363 = vmatprep.mubr.msk.bf16.mxu0 %vm1199_vm3, %v20206_v6  ;;  %v16883_v6 = vrot.slane %v9386_v52, 11  ;;  %v10028_v13 = vrot.slane %v10026_v40, 4  ;;  %v9402_v46 = vld [vmem:[#allocation2 + $0x424] sm:$0xf] }
 0x45b   : > { %v10027_v52 = vsel %vm22895_vm11, %v16883_v6, %v10026_v40  ;;  %v10030_v36 = vsel %vm22895_vm11, %v10028_v13, %v10029_v0  ;;  %v24000_v40 = vsel %vm22895_vm11, %v16884_v62, %v10033_v19  ;;  %v24004_v6 = vsel %vm22895_vm11, %v10035_v1, %v10036_v3  ;;  %v7769_v19 = vld [vmem:[#allocation2 + $0x114] sm:$0xf]  ;;  %v7767_v62 = vld [vmem:[#allocation2 + $0xf8] sm:$0x3]  ;;  %v9398_v1 = vld [vmem:[#allocation2 + $0x400] sm:$0x8] }
 0x45c   : > { %v16885_v13 = vrot.slane %v9392_v60, 11  ;;  %v16697_v0 = vrot.slane %v7762_v58, 10  ;;  %v9400_v3 = vld [vmem:[#allocation2 + $0x408] sm:$0x7]  ;;  %v16900_v60 = vcombine.low %v24000_v40, %v24004_v6 }
 0x45d   : > { %18522 = vmatmul.mubr.msk.bf16.gmra.mrb[40].mxu1 %vm1199_vm3, %v16894_v63  ;;  %v20208_v63 = vld [vmem:[#allocation2 + $0x54c] sm:$0xff]  }
 0x45e   : > { %18525 = vmatprep.mubr.msk.bf16.mxu1 %vm1199_vm3, %v16895_v29  ;;  %v16896_v29 = vcombine.low %v10006_v41, %v10009_v14  ;;  %v10040_v41 = vrot.slane %v9393_v26, 7  ;;  %v7932_v14 = vrot.slane %v7763_v31, 6  ;;  %v7766_v31 = vld [vmem:[#allocation2 + $0xf4] sm:$0xf] }
 0x45f   : > { %v7939_v50 = vrot.slane %v7766_v31, 6  ;;  %v7770_v31 = vld [vmem:[#allocation2 + $0x118] sm:$0x3] }
 0x460   : > { %18364 = vmatmul.mubr.msk.bf16.gmra.mrb[84].mxu0 %vm1199_vm3, %v20207_v5  ;;  %v10047_v5 = vrot.slane %v9396_v30, 7  ;;  %v7934_v7 = vrot.slane %v7932_v14, 4  ;;  %v10042_v26 = vrot.slane %v10040_v41, 4  ;;  %v16886_v30 = vrot.slane %v9395_v49, 11  ;;  %v9401_v49 = vld [vmem:[#allocation2 + $0x420] sm:$0x8] }
 0x461   : > { %18367 = vmatprep.mubr.msk.bf16.mxu0 %vm1199_vm3, %v20208_v63  ;;  %v16899_v63 = vcombine.low %v10027_v52, %v10030_v36  ;;  %v7765_v36 = vld [vmem:[#allocation2 + $0xf0] sm:$0xc]  ;;  %v7933_v45 = vsel %vm22399_vm8, %v16697_v0, %v7932_v14  ;;  %v7949_v24 = vrot.slane %v7770_v31, 6 }
 0x462   : > { %v10049_v52 = vrot.slane %v10047_v5, 4  ;;  %v10044_v40 = vsel %vm22895_vm11, %v10042_v26, %v10043_v34  ;;  %v24022_v6 = vsel %vm22895_vm11, %v16886_v30, %v10047_v5  ;;  %v7768_v14 = vld [vmem:[#allocation2 + $0x110] sm:$0xc]  ;;  %v16698_v0 = vrot.slane %v7765_v36, 10  ;;  %v9403_v34 = vld [vmem:[#allocation2 + $0x428] sm:$0x7] }
 0x463   : > { %v10061_v26 = vrot.slane %v9402_v46, 7  ;;  %v16888_v30 = vrot.slane %v9401_v49, 11  ;;  %v16699_v42 = vrot.slane %v7768_v14, 10  ;;  %v10474_v46 = vrot.slane %v9405_v39, 7  ;;  %v24040_v14 = vld [vmem:[#allocation2 + $0x4a0] sm:$0x8] }
 0x464   : > { %v7774_v31 = vld [vmem:[#allocation2 + $0x150] sm:$0xc] }
 0x465   : > { %18526 = vmatmul.mubr.msk.bf16.gmra.mrb[44].mxu1 %vm1199_vm3, %v16896_v29  ;;  %v20210_v29 = vld [vmem:[#allocation2 + $0x58c] sm:$0xff]  }
 0x466   : > { %18529 = vmatprep.mubr.msk.bf16.mxu1 %vm1199_vm3, %v16897_v56  ;;  %v7935_v56 = vrot.slane %v7764_v57, 6  ;;  %v10054_v57 = vrot.slane %v9399_v18, 7  ;;  %v16887_v18 = vrot.slane %v9398_v1, 11  ;;  %v7953_v1 = vrot.slane %v24024_v16, 6 }
 0x467   : > { %v10063_v16 = vrot.slane %v10061_v26, 4 }
 0x468   : > { %18368 = vmatmul.mubr.msk.bf16.gmra.mrb[88].mxu0 %vm1199_vm3, %v20209_v54  ;;  %v7936_v58 = vsel %vm22399_vm8, %v7934_v7, %v7935_v56  ;;  %v20211_v54 = vld [vmem:[#allocation2 + $0x5ac] sm:$0xff]   ;;  %v7941_v7 = vrot.slane %v7939_v50, 4  ;;  %v7942_v56 = vrot.slane %v7767_v62, 6  ;;  %v10056_v5 = vrot.slane %v10054_v57, 4  ;;  %v7773_v62 = vld [vmem:[#allocation2 + $0x138] sm:$0x3] }
 0x469   : > { %18371 = vmatprep.mubr.msk.bf16.mxu0 %vm1199_vm3, %v20210_v29  ;;  %v7946_v29 = vrot.slane %v7769_v19, 6  ;;  %v7771_v19 = vld [vmem:[#allocation2 + $0x130] sm:$0xc] }
 0x46a   : > { %v7943_v49 = vsel %vm22399_vm8, %v7941_v7, %v7942_v56  ;;  %v7955_v56 = vrot.slane %v7953_v1, 4 }
 0x46b   : > { %v7948_v53 = vrot.slane %v7946_v29, 4 }
 0x46d   : > { %18530 = vmatmul.mubr.msk.bf16.gmra.mrb[48].mxu1 %vm1199_vm3, %v16898_v33  ;;  %v10041_v33 = vsel %vm22895_vm11, %v16885_v13, %v10040_v41  ;;  %v16713_v41 = vcombine.low %v7933_v45, %v7936_v58  ;;  %v10057_v13 = vrot.slane %v9400_v3, 7  ;;  %v10064_v3 = vrot.slane %v9403_v34, 7  ;;  %v9404_v45 = vld [vmem:[#allocation2 + $0x480] sm:$0x8]  ;;  %v9406_v58 = vld [vmem:[#allocation2 + $0x488] sm:$0x7] }
 0x46e   : > { %18533 = vmatprep.mubr.msk.bf16.mxu1 %vm1199_vm3, %v16899_v63  ;;  %v24028_v63 = vsel %vm22895_vm11, %v10049_v52, %v10050_v35  ;;  %v16901_v36 = vcombine.low %v10041_v33, %v10044_v40  ;;  %v7940_v52 = vsel %vm22399_vm8, %v16698_v0, %v7939_v50  ;;  %v10055_v33 = vsel %vm22895_vm11, %v16887_v18, %v10054_v57  ;;  %v24050_v57 = vld [vmem:[#allocation2 + $0x174] sm:$0xf]  ;;  %v24060_v34 = vld [vmem:[#allocation2 + $0x4c4] sm:$0xf] }
 0x46f   : > { %v16902_v35 = vcombine.low %v24022_v6, %v24028_v63  ;;  %v16700_v40 = vrot.slane %v7771_v19, 10  ;;  %v24042_v6 = vld [vmem:[#allocation2 + $0x4a4] sm:$0xf]  ;;  %v10058_v39 = vsel %vm22895_vm11, %v10056_v5, %v10057_v13  ;;  %v7947_v50 = vsel %vm22399_vm8, %v16699_v42, %v7946_v29  ;;  %v7776_v63 = vld [vmem:[#allocation2 + $0x158] sm:$0x3] }
 0x470   : > { %18372 = vmatmul.mubr.msk.bf16.gmra.mrb[92].mxu0 %vm1199_vm3, %v20211_v54  ;;  %v7956_v54 = vrot.slane %v7773_v62, 6  ;;  %v7960_v0 = vrot.slane %v7775_v2, 6  ;;  %v7950_v7 = vsel %vm22399_vm8, %v7948_v53, %v7949_v24  ;;  %v10477_v18 = vrot.slane %v9406_v58, 7  ;;  %v9409_v29 = vld [vmem:[#allocation2 + $0x4a8] sm:$0x7] }
 0x471   : > { %18377 = vmatprep.mubr.msk.bf16.mxu0 %vm1199_vm3, %v16713_v41  ;;  %v16714_v41 = vcombine.low %v7940_v52, %v7943_v49  ;;  %v24057_v13 = vsel %vm22895_vm11, %v16888_v30, %v10061_v26  ;;  %v10476_v42 = vrot.slane %v10474_v46, 4  ;;  %v10481_v2 = vrot.slane %v24042_v6, 7  ;;  %v7777_v53 = vld [vmem:[#allocation2 + $0x170] sm:$0xc]  ;;  %v24068_v58 = vld [vmem:[#allocation2 + $0x4e4] sm:$0xf] }
 0x472   : > { %v16903_v5 = vcombine.low %v10055_v33, %v10058_v39  ;;  %v16922_v19 = vrot.slane %v24040_v14, 11  ;;  %v7967_v24 = vrot.slane %v24050_v57, 6  ;;  %v24066_v62 = vsel %vm22895_vm11, %v10063_v16, %v10064_v3  ;;  %v9410_v6 = vld [vmem:[#allocation2 + $0x4c0] sm:$0x8]  ;;  %v9412_v39 = vld [vmem:[#allocation2 + $0x4c8] sm:$0x7] }
 0x473   : > { %v16715_v52 = vcombine.low %v7947_v50, %v7950_v7  ;;  %v7962_v26 = vrot.slane %v7960_v0, 4  ;;  %v7963_v30 = vrot.slane %v7776_v63, 6  ;;  %v7954_v49 = vsel %vm22399_vm8, %v16700_v40, %v7953_v1  ;;  %v24083_v57 = vld [vmem:[#allocation2 + $0x4e0] sm:$0x8]  ;;  %v24085_v1 = vld [vmem:[#allocation2 + $0x194] sm:$0xf] }
 0x474   : > { %v10484_v14 = vrot.slane %v9409_v29, 7  ;;  %v7957_v3 = vsel %vm22399_vm8, %v7955_v56, %v7956_v54  ;;  %v24081_v16 = vsel %vm22895_vm11, %v10476_v42, %v10477_v18  ;;  %v10483_v50 = vrot.slane %v10481_v2, 4  ;;  %v24102_v42 = vld [vmem:[#allocation2 + $0x4e8] sm:$0x7] }
 0x475   : > { %18534 = vmatmul.mubr.msk.bf16.gmra.mrb[52].mxu1 %vm1199_vm3, %v16900_v60  ;;  %v16921_v60 = vrot.slane %v9404_v45, 11  ;;  %v7779_v45 = vld [vmem:[#allocation2 + $0x178] sm:$0x3]  ;;  %v24092_v40 = vsel %vm1248_vm2, %v23947_v38, 0  ;;  %v16702_v7 = vrot.slane %v7777_v53, 10  ;;  %v7969_v56 = vrot.slane %v7967_v24, 4 }
 0x476   : > { %18537 = vmatprep.mubr.msk.bf16.mxu1 %vm1199_vm3, %v16901_v36  ;;  %v16701_v36 = vrot.slane %v7774_v31, 10  ;;  %v10488_v31 = vrot.slane %v24060_v34, 7  ;;  %v7970_v18 = vrot.slane %v7779_v45, 6  ;;  %v16923_v63 = vrot.slane %v9410_v6, 11  ;;  %v9416_v6 = vld [vmem:[#allocation2 + $0x500] sm:$0x8] }
 0x477   : > { %v24074_v33 = vsel %vm22895_vm11, %v16921_v60, %v10474_v46  ;;  %v8595_v46 = vsel %vm1248_vm2, %v23915_v21, 0  ;;  %v24096_v60 = vld [vmem:[#allocation12 + $0x10] sm:$0x3]  ;;  %v7964_v21 = vsel %vm22399_vm8, %v7962_v26, %v7963_v30  ;;  %v10495_v29 = vrot.slane %v24068_v58, 7  ;;  %v7782_v26 = vld [vmem:[#allocation2 + $0x198] sm:$0x3] }
 0x478   : > { %18378 = vmatmul.mubr.msk.bf16.vlgmr.msra.gmra.mrb[64].mxu0 %vm1199_vm3, %v16714_v41  ;;  %v7961_v54 = vsel %vm22399_vm8, %v16701_v36, %v7960_v0  ;;  %v10491_v41 = vrot.slane %v9412_v39, 7  ;;  %v10490_v38 = vrot.slane %v10488_v31, 4  ;;  %v16924_v0 = vrot.slane %v24083_v57, 11  ;;  %v24112_v30 = vld [vmem:[#allocation2 + $0x504] sm:$0xf] }
 0x479   : > { %18381 = vmatprep.mubr.msk.bf16.mxu0 %vm1199_vm3, %v16715_v52  ;;  %v7974_v34 = vrot.slane %v24085_v1, 6  ;;  %18410 = vmatpush3.bf16.msra.mxu0 %v8595_v46  ;;  %v16904_v36 = vcombine.low %v24057_v13, %v24066_v62  ;;  %v16716_v53 = vcombine.low %v7954_v49, %v7957_v3  ;;  %v7780_v52 = vld [vmem:[#allocation2 + $0x190] sm:$0xc]  ;;  %v24120_v45 = vsel %vm22895_vm11, %v16922_v19, %v10481_v2  ;;  %v24130_v49 = vld [vmem:[#allocation2 + $0x1b8] sm:$0x3] }
 0x47a   : > { %19953 = vmatprep.subr.msk.bf16.mxu0 %vm1248_vm2, %v24096_v60  ;;  %v24124_v58 = vsel %vm22895_vm11, %v10483_v50, %v10484_v14  ;;  %v24128_v13 = vsel %vm22399_vm8, %v16702_v7, %v7967_v24  ;;  %v7783_v62 = vld [vmem:[#allocation2 + $0x1b0] sm:$0xc]  ;;  %v16717_v39 = vcombine.low %v7961_v54, %v7964_v21  ;;  %v10498_v2 = vrot.slane %v24102_v42, 7  ;;  %v24138_v3 = vld [vmem:[#allocation2 + $0x524] sm:$0xf] }
 0x47b   : > { %v24140_v14 = vld [vmem:[#allocation2 + $0x1d4] sm:$0xf]  ;;  %v7976_v24 = vrot.slane %v7974_v34, 4  ;;  %v7977_v50 = vrot.slane %v7782_v26, 6  ;;  %v9418_v57 = vld [vmem:[#allocation2 + $0x508] sm:$0x7]  ;;  %v24151_v42 = vsel %vm22895_vm11, %v10490_v38, %v10491_v41 }
 0x47c   : > { %v10502_v1 = vrot.slane %v24112_v30, 7  ;;  %v10497_v46 = vrot.slane %v10495_v29, 4  ;;  %v16704_v54 = vrot.slane %v7783_v62, 10  ;;  %v7984_v7 = vrot.slane %v24130_v49, 6  ;;  %v9419_v21 = vld [vmem:[#allocation2 + $0x520] sm:$0x8] }
 0x47d   : > { %18538 = vmatmul.mubr.msk.bf16.gmra.mrb[56].mxu1 %vm1199_vm3, %v16902_v35  ;;  %v24108_v35 = vld [vmem:[#allocation2 + $0x1b4] sm:$0xf]  ;;  %v7988_v26 = vrot.slane %v24140_v14, 6  ;;  %v10505_v41 = vrot.slane %v9418_v57, 7  ;;  %v7786_v38 = vld [vmem:[#allocation2 + $0x1d0] sm:$0xc] }
 0x47e   : > { %18541 = vmatprep.mubr.msk.bf16.mxu1 %vm1199_vm3, %v16903_v5  ;;  %v16937_v5 = vcombine.low %v24074_v33, %v24081_v16  ;;  %v24134_v33 = vsel %vm22399_vm8, %v7969_v56, %v7970_v18  ;;  %v7981_v19 = vrot.slane %v24108_v35, 6  ;;  %v16703_v16 = vrot.slane %v7780_v52, 10  ;;  %v9421_v35 = vld [vmem:[#allocation2 + $0x528] sm:$0x7]  ;;  %v24155_v30 = vld [vmem:[#allocation2 + $0x1f4] sm:$0xf] }
 0x47f   : > { %v16925_v56 = vrot.slane %v9416_v6, 11  ;;  %v24147_v18 = vsel %vm22895_vm11, %v16923_v63, %v10488_v31  ;;  %v10509_v52 = vrot.slane %v24138_v3, 7  ;;  %v16718_v31 = vcombine.low %v24128_v13, %v24134_v33  ;;  %v7788_v62 = vld [vmem:[#allocation2 + $0x1d8] sm:$0x3] }
 0x480   : > { %18382 = vmatmul.mubr.msk.bf16.gmra.mrb[68].mxu0 %vm1199_vm3, %v16716_v53  ;;  %v16938_v53 = vcombine.low %v24120_v45, %v24124_v58  ;;  %v7983_v63 = vrot.slane %v7981_v19, 4  ;;  %v7975_v49 = vsel %vm22399_vm8, %v16703_v16, %v7974_v34  ;;  %v10504_v6 = vrot.slane %v10502_v1, 4  ;;  %v7789_v45 = vld [vmem:[#allocation2 + $0x1f0] sm:$0xc]  ;;  %v24168_v58 = vld [vmem:[#allocation2 + $0x544] sm:$0xf] }
 0x481   : > { %18385 = vmatprep.mubr.msk.bf16.mxu0 %vm1199_vm3, %v16717_v39  ;;  %v16926_v3 = vrot.slane %v9419_v21, 11  ;;  %v16939_v13 = vcombine.low %v24147_v18, %v24151_v42  ;;  %v24174_v39 = vsel %vm22895_vm11, %v16924_v0, %v10495_v29  ;;  %v10512_v33 = vrot.slane %v9421_v35, 7  ;;  %v24177_v34 = vld [vmem:[#allocation2 + $0x564] sm:$0xf]  ;;  %v24179_v21 = vld [vmem:[#allocation2 + $0x214] sm:$0xf] }
 0x482   : > { %v7995_v14 = vrot.slane %v24155_v30, 6  ;;  %v10511_v16 = vrot.slane %v10509_v52, 4  ;;  %v7991_v57 = vrot.slane %v7788_v62, 6  ;;  %v24183_v59 = vsel %vm22895_vm11, %v10497_v46, %v10498_v2  ;;  %v9422_v0 = vld [vmem:[#allocation2 + $0x540] sm:$0x8] }
 0x483   : > { %v16706_v42 = vrot.slane %v7789_v45, 10  ;;  %v9424_v29 = vld [vmem:[#allocation2 + $0x548] sm:$0x7]  ;;  %v10516_v35 = vrot.slane %v24168_v58, 7  ;;  %v24188_v30 = vsel %vm22399_vm8, %v16704_v54, %v7981_v19  ;;  %v10523_v8 = vrot.slane %v24177_v34, 7 }
 0x484   : > { %v24195_v2 = vld [vmem:[#allocation2 + $0x234] sm:$0xf]  ;;  %v7985_v46 = vsel %vm22399_vm8, %v7983_v63, %v7984_v7  ;;  %v24203_v19 = vld [vmem:[#allocation2 + $0x568] sm:$0x7]  ;;  %v7792_v54 = vld [vmem:[#allocation2 + $0x210] sm:$0xc]  ;;  %v24213_v45 = vsel %vm22895_vm11, %v10511_v16, %v10512_v33 }
 0x485   : > { %18542 = vmatmul.mubr.msk.bf16.gmra.mrb[60].mxu1 %vm1199_vm3, %v16904_v36  ;;  %v7978_v36 = vsel %vm22399_vm8, %v7976_v24, %v7977_v50  ;;  %v16705_v24 = vrot.slane %v7786_v38, 10  ;;  %v7990_v50 = vrot.slane %v7988_v26, 4  ;;  %v24192_v38 = vsel %vm22895_vm11, %v16925_v56, %v10502_v1  ;;  %v24227_v16 = vld [vmem:[#allocation2 + $0x584] sm:$0xf] }
 0x486   : > { %18547 = vmatprep.mubr.msk.bf16.mxu1 %vm1199_vm3, %v16937_v5  ;;  %v7791_v5 = vld [vmem:[#allocation2 + $0x1f8] sm:$0x3]  ;;  %v16719_v18 = vcombine.low %v7975_v49, %v7978_v36  ;;  %v24201_v49 = vsel %vm22895_vm11, %v10504_v6, %v10505_v41  ;;  %v7997_v36 = vrot.slane %v7995_v14, 4  ;;  %v8002_v1 = vrot.slane %v24179_v21, 6  ;;  %v24219_v6 = vld [vmem:[#allocation13 + $0x8] sm:$0x3] }
 0x487   : > { %v7998_v62 = vrot.slane %v7791_v5, 6  ;;  %v24209_v56 = vsel %vm22895_vm11, %v16926_v3, %v10509_v52  ;;  %v7989_v7 = vsel %vm22399_vm8, %v16705_v24, %v7988_v26  ;;  %v7992_v63 = vsel %vm22399_vm8, %v7990_v50, %v7991_v57  ;;  %v7794_v41 = vld [vmem:[#allocation2 + $0x218] sm:$0x3]  ;;  %v24237_v21 = vld [vmem:[#allocation2 + $0x5a4] sm:$0xf] }
 0x488   : > { %18386 = vmatmul.mubr.msk.bf16.gmra.mrb[72].mxu0 %vm1199_vm3, %v16718_v31  ;;  %v16927_v31 = vrot.slane %v9422_v0, 11  ;;  %v10518_v52 = vrot.slane %v10516_v35, 4  ;;  %v10519_v3 = vrot.slane %v9424_v29, 7  ;;  %v8009_v58 = vrot.slane %v24195_v2, 6  ;;  %v7799_v0 = vld [vmem:[#allocation2 + $0x254] sm:$0xf] }
 0x489   : > { %18389 = vmatprep.mubr.msk.bf16.mxu0 %vm1199_vm3, %v16719_v18  ;;  %v16928_v26 = vrot.slane %v9425_v23, 11  ;;  %v10525_v33 = vrot.slane %v10523_v8, 4  ;;  %v10526_v5 = vrot.slane %v24203_v19, 7  ;;  %v16707_v34 = vrot.slane %v7792_v54, 10  ;;  %v7797_v18 = vld [vmem:[#allocation2 + $0x238] sm:$0x3] }
 0x48a   : > { %v24235_v24 = vsel %vm22399_vm8, %v7997_v36, %v7998_v62  ;;  %v8004_v50 = vrot.slane %v8002_v1, 4  ;;  %v8005_v57 = vrot.slane %v7794_v41, 6  ;;  %v16940_v23 = vcombine.low %v24174_v39, %v24183_v59  ;;  %v9430_v19 = vld [vmem:[#allocation2 + $0x588] sm:$0x7]  ;;  %v24251_v41 = vld [vmem:[#allocation2 + $0x274] sm:$0xf] }
 0x48b   : > { %v16721_v62 = vcombine.low %v7989_v7, %v7992_v63  ;;  %v8011_v36 = vrot.slane %v8009_v58, 4  ;;  %v10530_v54 = vrot.slane %v24227_v16, 7  ;;  %v24257_v39 = vsel %vm22895_vm11, %v16927_v31, %v10516_v35  ;;  %v7798_v29 = vld [vmem:[#allocation2 + $0x250] sm:$0xc]  ;;  %v9439_v2 = vld [vmem:[#allocation2 + $0x5e8] sm:$0x7] }
 0x48c   : > { %v24262_v7 = vsel %vm22895_vm11, %v10518_v52, %v10519_v3  ;;  %v24266_v63 = vsel %vm22895_vm11, %v16928_v26, %v10523_v8  ;;  %v8012_v16 = vrot.slane %v7797_v18, 6  ;;  %v8003_v35 = vsel %vm22399_vm8, %v16707_v34, %v8002_v1  ;;  %v24274_v3 = vld [vmem:[#allocation2 + $0x5c4] sm:$0xf] }
 0x48d   : > { %18548 = vmatmul.mubr.msk.bf16.vlgmr.msra.gmra.mrb[32].mxu1 %vm1199_vm3, %v16938_v53  ;;  %v24231_v53 = vsel %vm22399_vm8, %v16706_v42, %v7995_v14  ;;  %v16941_v14 = vcombine.low %v24192_v38, %v24201_v49  ;;  %v9428_v42 = vld [vmem:[#allocation2 + $0x580] sm:$0x8]  ;;  %v10537_v49 = vrot.slane %v24237_v21, 7  ;;  %v8006_v31 = vsel %vm22399_vm8, %v8004_v50, %v8005_v57  ;;  %v7801_v21 = vld [vmem:[#allocation2 + $0x270] sm:$0xc] }
 0x48e   : > { %18580 = vmatpush3.bf16.msra.mxu1 %v24092_v40  ;;  %18551 = vmatprep.mubr.msk.bf16.mxu1 %vm1199_vm3, %v16939_v13  ;;  %v7795_v40 = vld [vmem:[#allocation2 + $0x230] sm:$0xc]  ;;  %v16720_v13 = vcombine.low %v24188_v30, %v7985_v46  ;;  %v16722_v59 = vcombine.low %v24231_v53, %v24235_v24  ;;  %v9431_v38 = vld [vmem:[#allocation2 + $0x5a0] sm:$0x8]  ;;  %v9433_v46 = vld [vmem:[#allocation2 + $0x5a8] sm:$0x7]  ;;  %v16943_v1 = vcombine.low %v24257_v39, %v24262_v7 }
 0x48f   : > { %19958 = vmatprep.subr.msk.bf16.mxu1 %vm1248_vm2, %v24219_v6  ;;  %v16708_v30 = vrot.slane %v7795_v40, 10  ;;  %v7800_v53 = vld [vmem:[#allocation2 + $0x258] sm:$0x3]  ;;  %v8016_v24 = vrot.slane %v7799_v0, 6  ;;  %v16929_v40 = vrot.slane %v9428_v42, 11  ;;  %v8023_v52 = vrot.slane %v24251_v41, 6 }
 0x490   : > { %18390 = vmatmul.mubr.msk.bf16.gmra.mrb[76].mxu0 %vm1199_vm3, %v16720_v13  ;;  %v10532_v8 = vrot.slane %v10530_v54, 4  ;;  %v10533_v26 = vrot.slane %v9430_v19, 7  ;;  %v16930_v18 = vrot.slane %v9431_v38, 11  ;;  %v10540_v13 = vrot.slane %v9433_v46, 7  ;;  %v24278_v0 = vld [vmem:[#allocation2 + $0x5e4] sm:$0xf] }
 0x491   : > { %18393 = vmatprep.mubr.msk.bf16.mxu0 %vm1199_vm3, %v16721_v62  ;;  %v24285_v34 = vsel %vm22895_vm11, %v10525_v33, %v10526_v5  ;;  %v10539_v50 = vrot.slane %v10537_v49, 4  ;;  %v16709_v57 = vrot.slane %v7798_v29, 10  ;;  %v24287_v42 = vld [vmem:[#allocation2 + $0x294] sm:$0xf]  ;;  %v8018_v62 = vrot.slane %v8016_v24, 4 }
 0x492   : > { %v8019_v19 = vrot.slane %v7800_v53, 6  ;;  %v16710_v41 = vrot.slane %v7801_v21, 10  ;;  %v10544_v38 = vrot.slane %v24274_v3, 7  ;;  %v16723_v46 = vcombine.low %v8003_v35, %v8006_v31  ;;  %v9434_v33 = vld [vmem:[#allocation2 + $0x5c0] sm:$0x8] }
 0x493   : > { %v8025_v39 = vrot.slane %v8023_v52, 4  ;;  %v9436_v5 = vld [vmem:[#allocation2 + $0x5c8] sm:$0x7]  ;;  %v10551_v29 = vrot.slane %v24278_v0, 7  ;;  %v24299_v7 = vsel %vm22399_vm8, %v8011_v36, %v8012_v16  ;;  %v24303_v53 = vsel %vm22895_vm11, %v16929_v40, %v10530_v54  ;;  %v9437_v31 = vld [vmem:[#allocation2 + $0x5e0] sm:$0x8] }
 0x494   : > { %v8030_v21 = vrot.slane %v24287_v42, 6  ;;  %v24316_v36 = vsel %vm22895_vm11, %v10539_v50, %v10540_v13  ;;  %v8017_v54 = vsel %vm22399_vm8, %v16709_v57, %v8016_v24  ;;  %v7804_v16 = vld [vmem:[#allocation2 + $0x290] sm:$0xc]  ;;  %v7806_v40 = vld [vmem:[#allocation2 + $0x298] sm:$0x3]  ;;  %v8020_v3 = vsel %vm22399_vm8, %v8018_v62, %v8019_v19 }
 0x495   : > { %18552 = vmatmul.mubr.msk.bf16.gmra.mrb[36].mxu1 %vm1199_vm3, %v16940_v23  ;;  %v7803_v23 = vld [vmem:[#allocation2 + $0x278] sm:$0x3]  ;;  %v16931_v0 = vrot.slane %v9434_v33, 11  ;;  %v10553_v13 = vrot.slane %v10551_v29, 4  ;;  %v10554_v50 = vrot.slane %v9439_v2, 7  ;;  %v25703_v24 = vcombine.low %v24209_v56, %v24213_v45 }
 0x496   : > { %18555 = vmatprep.mubr.msk.bf16.mxu1 %vm1199_vm3, %v16941_v14  ;;  %v24294_v14 = vsel %vm22399_vm8, %v16708_v30, %v8009_v58  ;;  %v8026_v35 = vrot.slane %v7803_v23, 6  ;;  %v24308_v58 = vsel %vm22895_vm11, %v10532_v8, %v10533_v26  ;;  %v24312_v30 = vsel %vm22895_vm11, %v16930_v18, %v10537_v49  ;;  %v7808_v26 = vld [vmem:[#allocation2 + $0x2b4] sm:$0xf] }
 0x497   : > { %v10546_v23 = vrot.slane %v10544_v38, 4  ;;  %v10547_v8 = vrot.slane %v9436_v5, 7  ;;  %v8024_v49 = vsel %vm22399_vm8, %v16710_v41, %v8023_v52  ;;  %v16932_v18 = vrot.slane %v9437_v31, 11  ;;  %v24355_v5 = vld [vmem:[#allocation16 + $0x1] ss:$0 sm:$0xff] }
 0x498   : > { %18394 = vmatmul.mubr.msk.bf16.gmra.mrb[80].mxu0 %vm1199_vm3, %v16722_v59  ;;  %v8027_v57 = vsel %vm22399_vm8, %v8025_v39, %v8026_v35  ;;  %v16711_v42 = vrot.slane %v7804_v16, 10  ;;  %v8032_v62 = vrot.slane %v8030_v21, 4  ;;  %v8033_v19 = vrot.slane %v7806_v40, 6  ;;  %v7807_v59 = vld [vmem:[#allocation2 + $0x2b0] sm:$0xc] }
 0x499   : > { %18397 = vmatprep.mubr.msk.bf16.mxu0 %vm1199_vm3, %v16723_v46  ;;  %v16944_v52 = vcombine.low %v24266_v63, %v24285_v34  ;;  %v16724_v41 = vcombine.low %v24294_v14, %v24299_v7  ;;  %v16945_v56 = vcombine.low %v24303_v53, %v24308_v58  ;;  %v8037_v45 = vrot.slane %v7808_v26, 6  ;;  %v24339_v46 = vld [vmem:[#allocation2 + $0x604] sm:$0xf]  ;;  %v24368_v58 = vld [vmem:[#allocation18 + $0x1] ss:$0 sm:$0xff] }
 0x49a   : > { %v24343_v33 = vcombine.low %v8017_v54, %v8020_v3  ;;  %v24351_v63 = vsel %vm22895_vm11, %v10546_v23, %v10547_v8  ;;  %v24353_v34 = vld [vmem:[#allocation2 + $0x624] sm:$0xf]  ;;  %v24357_v7 = vcombine.low %v8024_v49, %v8027_v57  ;;  %v24361_v53 = vsel %vm22895_vm11, %v16932_v18, %v10551_v29  ;;  %v9440_v26 = vld [vmem:[#allocation2 + $0x600] sm:$0x8]  ;;  %v9442_v57 = vld [vmem:[#allocation2 + $0x608] sm:$0x7] }
 0x49b   : > { %v24365_v35 = vsel %vm22895_vm11, %v10553_v13, %v10554_v50  ;;  %v16712_v31 = vrot.slane %v7807_v59, 10  ;;  %v8031_v16 = vsel %vm22399_vm8, %v16711_v42, %v8030_v21  ;;  %v8034_v40 = vsel %vm22399_vm8, %v8032_v62, %v8033_v19  ;;  %v24375_v3 = vld [vmem:[#allocation2 + $0x644] sm:$0xf]  ;;  %v9443_v42 = vld [vmem:[#allocation2 + $0x620] sm:$0x8] }
 0x49c   : > { %v10558_v29 = vrot.slane %v24339_v46, 7  ;;  %v10565_v49 = vrot.slane %v24353_v34, 7  ;;  %v24387_v62 = vcombine.low %v8031_v16, %v8034_v40  ;;  %v9445_v59 = vld [vmem:[#allocation2 + $0x628] sm:$0x7]  ;;  %v10572_v46 = vrot.slane %v24375_v3, 7 }
 0x49d   : > { %18556 = vmatmul.mubr.msk.bf16.gmra.mrb[40].mxu1 %vm1199_vm3, %v25703_v24  ;;  %v8038_v19 = vsel %vm22399_vm8, %v16712_v31, %v8037_v45  ;;  %v10561_v31 = vrot.slane %v9442_v57, 7  ;;  %v9451_v39 = vld [vmem:[#allocation2 + $0x668] sm:$0x7] }
 0x49e   : > { %18559 = vmatprep.mubr.msk.bf16.mxu1 %vm1199_vm3, %v16943_v1  ;;  %v24347_v1 = vsel %vm22895_vm11, %v16931_v0, %v10544_v38  ;;  %v7809_v38 = vld [vmem:[#allocation2 + $0x2b8] sm:$0x3]  ;;  %v10567_v16 = vrot.slane %v10565_v49, 4 }
 0x49f   : > { %v8040_v24 = vrot.slane %v7809_v38, 6  ;;  %v9446_v38 = vld [vmem:[#allocation2 + $0x640] sm:$0x8] }
 0x4a0   : > { %v18141_v14 = vpop.f32.mrb[0].mxu1  ;;  %18398 = vmatmul.mubr.msk.bf16.gmra.mrb[84].mxu0 %vm1199_vm3, %v16724_v41  ;;  %v10560_v41 = vrot.slane %v10558_v29, 4 }
 0x4a1   : > { %v18975_v2 = vadd.f32 %v18141_v14, %v23551_v47  ;;  %v4867_v54 = vpop.f32.mrb[1].mxu1  ;;  %v8039_v47 = vrot.slane %v8037_v45, 4  ;;  %18401 = vmatprep.mubr.msk.bf16.mxu0 %vm1199_vm3, %v24343_v33 }
 0x4a2   : > { %v18976_v0 = vadd.f32 %v4867_v54, %v23567_v15  ;;  %v18142_v23 = vpop.f32.mrb[2].mxu1  ;;  %v16934_v54 = vrot.slane %v9443_v42, 11 }
 0x4a3   : > { %v14395_v18 = vmul.f32 %v18975_v2, %v24355_v5  ;;  %v18977_v21 = vadd.f32 %v18142_v23, %v23575_v61  ;;  %v4870_v13 = vpop.f32.mrb[3].mxu1  ;;  %v24392_v61 = vld [vmem:[#allocation2 + $0x664] sm:$0xf]  ;;  %v9448_v2 = vld [vmem:[#allocation2 + $0x648] sm:$0x7]  ;;  %v10568_v23 = vrot.slane %v9445_v59, 7 }
 0x4a4   : > { %v18978_v15 = vadd.f32 %v4870_v13, %v23577_v32  ;;  %v16933_v32 = vrot.slane %v9440_v26, 11  ;;  %v14393_v40 = vmul.f32 %v18976_v0, %v24355_v5  ;;  %v8041_v26 = vsel %vm22399_vm8, %v8039_v47, %v8040_v24 }
 0x4a5   : > { %v14432_v34 = vadd.f32 %v24368_v58, %v14395_v18  ;;  %v14396_v14 = vmul.f32 %v18977_v21, %v24355_v5  ;;  %18560 = vmatmul.mubr.msk.bf16.gmra.mrb[44].mxu1 %vm1199_vm3, %v16944_v52  ;;  %v10579_v52 = vrot.slane %v24392_v61, 7  ;;  %v16935_v21 = vrot.slane %v9446_v38, 11 }
 0x4a6   : > { %v14394_v45 = vmul.f32 %v18978_v15, %v24355_v5  ;;  %18563 = vmatprep.mubr.msk.bf16.mxu1 %vm1199_vm3, %v16945_v56  ;;  %v10574_v13 = vrot.slane %v10572_v46, 4  ;;  %v10575_v50 = vrot.slane %v9448_v2, 7  ;;  %v9449_v15 = vld [vmem:[#allocation2 + $0x660] sm:$0x8]  ;;  %v24411_v61 = vsel %vm22895_vm11, %v16933_v32, %v10558_v29  ;;  %v24429_v29 = vld [vmem:[#allocation2 + $0x2d4] sm:$0xf] }
 0x4a7   : > { %v14433_v3 = vadd.f32 %v24368_v58, %v14396_v14  ;;  %v14464_v8 = vmax.f32 %v14432_v34, 0.0  ;;  %v24415_v47 = vsel %vm22895_vm11, %v10560_v41, %v10561_v31  ;;  %v24419_v24 = vsel %vm22895_vm11, %v16934_v54, %v10565_v49 }
 0x4a8   : > { %v18145_v18 = vpop.f32.mrb[4].mxu1  ;;  %v14431_v57 = vadd.f32 %v24368_v58, %v14394_v45  ;;  %v14430_v34 = vadd.f32 %v24368_v58, %v14393_v40  ;;  %v24427_v2 = vsel %vm22895_vm11, %v10567_v16, %v10568_v23  ;;  %18402 = vmatmul.mubr.msk.bf16.gmra.mrb[88].mxu0 %vm1199_vm3, %v24357_v7  ;;  %v16936_v49 = vrot.slane %v9449_v15, 11 }
 0x4a9   : > { %v14465_v56 = vmax.f32 %v14433_v3, 0.0  ;;  %v18979_v42 = vadd.f32 %v18145_v18, %v23581_v51  ;;  %v4883_v0 = vpop.f32.mrb[5].mxu1  ;;  %v10581_v41 = vrot.slane %v10579_v52, 4  ;;  %v10582_v45 = vrot.slane %v9451_v39, 7  ;;  %18405 = vmatprep.mubr.msk.bf16.mxu0 %vm1199_vm3, %v24387_v62  ;;  %v24449_v39 = vld [vmem:[#allocation2 + $0x2f4] sm:$0xf] }
 0x4aa   : > { %v18980_v59 = vadd.f32 %v4883_v0, %v23593_v43  ;;  %v18146_v14 = vpop.f32.mrb[6].mxu1  ;;  %v14463_v31 = vmax.f32 %v14431_v57, 0.0  ;;  %v24447_v54 = vsel %vm22895_vm11, %v10574_v13, %v10575_v50  ;;  %v16949_v40 = vcombine.low %v24411_v61, %v24415_v47  ;;  %v7812_v13 = vld [vmem:[#allocation2 + $0x2d8] sm:$0x3] }
 0x4ab   : > { %v24422_v51 = vpack.c.bf16 %v14465_v56, %v14464_v8  ;;  %v18981_v38 = vadd.f32 %v18146_v14, %v23601_v22  ;;  %v4886_v43 = vpop.f32.mrb[7].mxu1  ;;  %v25704_v22 = vcombine.low %v24312_v30, %v24316_v36  ;;  %v25705_v30 = vcombine.low %v24347_v1, %v24351_v63 }
 0x4ac   : > { %v18982_v32 = vadd.f32 %v4886_v43, %v23607_v28  ;;  %v24443_v28 = vsel %vm22895_vm11, %v16935_v21, %v10572_v46  ;;  %v24456_v36 = vcombine.low %v8038_v19, %v8041_v26  ;;  %v8438_v46 = vrot.slane %v24429_v29, 6  ;;  %v7810_v21 = vld [vmem:[#allocation2 + $0x2d0] sm:$0xc] }
 0x4ad   : > { %v14400_v8 = vmul.f32 %v18981_v38, %v24355_v5  ;;  %18564 = vmatmul.mubr.msk.bf16.gmra.mrb[48].mxu1 %vm1199_vm3, %v25704_v22  ;;  %v14462_v3 = vmax.f32 %v14430_v34, 0.0  ;;  %v14399_v50 = vmul.f32 %v18979_v42, %v24355_v5  ;;  %v14397_v23 = vmul.f32 %v18980_v59, %v24355_v5  ;;  %v24479_v59 = vld [vmem:[#allocation2 + $0x2f0] sm:$0xc] }
 0x4ae   : > { %v14398_v16 = vmul.f32 %v18982_v32, %v24355_v5  ;;  %18567 = vmatprep.mubr.msk.bf16.mxu1 %vm1199_vm3, %v25705_v30  ;;  %v16950_v18 = vcombine.low %v24419_v24, %v24427_v2  ;;  %v16951_v63 = vcombine.low %v24443_v28, %v24447_v54  ;;  %v24469_v19 = vsel %vm22895_vm11, %v16936_v49, %v10579_v52  ;;  %v7817_v30 = vld [vmem:[#allocation2 + $0x314] sm:$0xf] }
 0x4af   : > { %v24473_v26 = vsel %vm22895_vm11, %v10581_v41, %v10582_v45  ;;  %v8445_v15 = vrot.slane %v24449_v39, 6  ;;  %v14437_v56 = vadd.f32 %v24368_v58, %v14400_v8  ;;  %v24481_v14 = vpack.c.bf16 %v14463_v31, %v14462_v3  ;;  %v20212_v39 = vld [vmem:[#allocation2 + $0xc] sm:$0xff]  }
 0x4b0   : > { %v18149_v1 = vpop.f32.mrb[8].mxu1  ;;  %v14435_v57 = vadd.f32 %v24368_v58, %v14398_v16  ;;  %v16745_v47 = vrot.slane %v7810_v21, 10  ;;  %v8440_v27 = vrot.slane %v8438_v46, 4  ;;  %v8441_v34 = vrot.slane %v7812_v13, 6  ;;  %18406 = vmatmul.mubr.msk.bf16.gmra.mrb[92].mxu0 %vm1199_vm3, %v24456_v36 }
 0x4b1   : > { %v18983_v42 = vadd.f32 %v18149_v1, %v23609_v20  ;;  %v4899_v0 = vpop.f32.mrb[9].mxu1  ;;  %v14436_v38 = vadd.f32 %v24368_v58, %v14399_v50  ;;  %v14434_v43 = vadd.f32 %v24368_v58, %v14397_v23  ;;  %v16746_v45 = vrot.slane %v24479_v59, 10  ;;  %18411 = vmatprep.mubr.msk.bf16.mxu0 %vm1199_vm3, %v24343_v33  ;;  %v24517_v1 = vld [vmem:[#allocation2 + $0x334] sm:$0xf] }
 0x4b2   : > { %v18984_v52 = vadd.f32 %v4899_v0, %v23621_v12  ;;  %v18150_v61 = vpop.f32.mrb[10].mxu1  ;;  %v16952_v12 = vcombine.low %v24469_v19, %v24473_v26  ;;  %v14469_v31 = vmax.f32 %v14437_v56, 0.0  ;;  %v14467_v8 = vmax.f32 %v14435_v57, 0.0 }
 0x4b3   : > { %v14403_v29 = vmul.f32 %v18983_v42, %v24355_v5  ;;  %v18985_v32 = vadd.f32 %v18150_v61, %v23629_v4  ;;  %v4902_v20 = vpop.f32.mrb[11].mxu1  ;;  %v25706_v4 = vcombine.low %v24361_v53, %v24365_v35  ;;  %v24508_v23 = vsel %vm22399_vm8, %v16745_v47, %v8438_v46  ;;  %v7816_v61 = vld [vmem:[#allocation2 + $0x310] sm:$0xc] }
 0x4b4   : > { %v14401_v49 = vmul.f32 %v18984_v52, %v24355_v5  ;;  %v18986_v41 = vadd.f32 %v4902_v20, %v23635_v25  ;;  %v7815_v25 = vld [vmem:[#allocation2 + $0x2f8] sm:$0x3]  ;;  %v8447_v53 = vrot.slane %v8445_v15, 4  ;;  %v14468_v35 = vmax.f32 %v14436_v38, 0.0 }
 0x4b5   : > { %v14440_v22 = vadd.f32 %v24368_v58, %v14403_v29  ;;  %v14404_v16 = vmul.f32 %v18985_v32, %v24355_v5  ;;  %18568 = vmatmul.mubr.msk.bf16.gmra.mrb[52].mxu1 %vm1199_vm3, %v25706_v4  ;;  %v14466_v21 = vmax.f32 %v14434_v43, 0.0  ;;  %v24515_v33 = vsel %vm22399_vm8, %v8440_v27, %v8441_v34 }
 0x4b6   : > { %v14438_v3 = vadd.f32 %v24368_v58, %v14401_v49  ;;  %v14402_v50 = vmul.f32 %v18986_v41, %v24355_v5  ;;  %18571 = vmatprep.mubr.msk.bf16.mxu1 %vm1199_vm3, %v16949_v40  ;;  %v8448_v42 = vrot.slane %v7815_v25, 6  ;;  %v8452_v46 = vrot.slane %v7817_v30, 6 }
 0x4b7   : > { %v14441_v13 = vadd.f32 %v24368_v58, %v14404_v16  ;;  %v14472_v56 = vmax.f32 %v14440_v22, 0.0  ;;  %v24521_v47 = vpack.c.bf16 %v14467_v8, %v14466_v21  ;;  %v24523_v38 = vpack.c.bf16 %v14469_v31, %v14468_v35  ;;  %v24531_v22 = vld [vmem:[#allocation15] sm:$0xff]   ;;  %v7823_v35 = vld [vmem:[#allocation2 + $0x354] sm:$0xf] }
 0x4b8   : > { %v14439_v40 = vadd.f32 %v24368_v58, %v14402_v50  ;;  %v18153_v57 = vpop.f32.mrb[12].mxu1  ;;  %v14470_v43 = vmax.f32 %v14438_v3, 0.0  ;;  %v8459_v32 = vrot.slane %v24517_v1, 6  ;;  %18412 = vmatmul.mubr.msk.bf16.vlgmr.msra.gmra.mrb[64].mxu0 %vm1199_vm3, %v24357_v7  ;;  %v16747_v4 = vrot.slane %v7816_v61, 10  ;;  %v20213_v1 = vld [vmem:[#allocation2 + $0x2c] sm:$0xff]  }
 0x4b9   : > { %v14473_v0 = vmax.f32 %v14441_v13, 0.0  ;;  %v18987_v59 = vadd.f32 %v18153_v57, %v23637_v9  ;;  %v4915_v52 = vpop.f32.mrb[13].mxu1  ;;  %v9049_v9 = vsel %vm1248_vm2, %v24096_v60, 0  ;;  %18415 = vmatprep.mubr.msk.bf16.mxu0 %vm1199_vm3, %v24387_v62  ;;  %v7819_v60 = vld [vmem:[#allocation2 + $0x330] sm:$0xc]  ;;  %v24561_v24 = vsel %vm22399_vm8, %v16746_v45, %v8445_v15 }
 0x4ba   : > { %v14471_v27 = vmax.f32 %v14439_v40, 0.0  ;;  %v18988_v34 = vadd.f32 %v4915_v52, %v23647_v11  ;;  %v18154_v29 = vpop.f32.mrb[14].mxu1  ;;  %v7818_v11 = vld [vmem:[#allocation2 + $0x318] sm:$0x3]  ;;  %18444 = vmatpush3.bf16.msra.mxu0 %v9049_v9  ;;  %v8454_v50 = vrot.slane %v8452_v46, 4  ;;  %v16748_v15 = vrot.slane %v7819_v60, 10 }
 0x4bb   : > { %v14407_v20 = vmul.f32 %v18987_v59, %v24355_v5  ;;  %v18989_v49 = vadd.f32 %v18154_v29, %v23655_v55  ;;  %v4918_v41 = vpop.f32.mrb[15].mxu1  ;;  %v24533_v8 = vpack.c.bf16 %v14473_v0, %v14472_v56  ;;  %v7821_v62 = vld [vmem:[#allocation2 + $0x338] sm:$0x3]  ;;  %18783 = vmatprep.subr.bf16.mxu0 %v24531_v22  ;;  %v8461_v45 = vrot.slane %v8459_v32, 4  ;;  %v24577_v40 = vld [vmem:[#allocation2 + $0x374] sm:$0xf] }
 0x4bc   : > { %v14405_v31 = vmul.f32 %v18988_v34, %v24355_v5  ;;  %v18990_v16 = vadd.f32 %v4918_v41, %v23661_v44  ;;  %v24539_v25 = vpack.c.bf16 %v14471_v27, %v14470_v43  ;;  %v16757_v44 = vcombine.low %v24508_v23, %v24515_v33  ;;  %v7822_v52 = vld [vmem:[#allocation2 + $0x350] sm:$0xc] }
 0x4bd   : > { %v14444_v55 = vadd.f32 %v24368_v58, %v14407_v20  ;;  %v14408_v30 = vmul.f32 %v18989_v49, %v24355_v5  ;;  %18572 = vmatmul.mubr.msk.bf16.gmra.mrb[56].mxu1 %vm1199_vm3, %v16950_v18  ;;  %v24566_v18 = vsel %vm22399_vm8, %v8447_v53, %v8448_v42  ;;  %v8455_v23 = vrot.slane %v7818_v11, 6  ;;  %v25707_v49 = vld [vmem:[#allocation50_spill] sm:$0xff] }
 0x4be   : > { %v14442_v7 = vadd.f32 %v24368_v58, %v14405_v31  ;;  %v14406_v3 = vmul.f32 %v18990_v16, %v24355_v5  ;;  %18575 = vmatprep.mubr.msk.bf16.mxu1 %vm1199_vm3, %v16951_v63  ;;  %v24572_v63 = vsel %vm22399_vm8, %v16747_v4, %v8452_v46  ;;  %v8462_v56 = vrot.slane %v7821_v62, 6  ;;  %v7827_v62 = vld [vmem:[#allocation2 + $0x378] sm:$0x3] }
 0x4bf   : > { %v14445_v2 = vadd.f32 %v24368_v58, %v14408_v30  ;;  %v14476_v21 = vmax.f32 %v14444_v55, 0.0  ;;  %v8466_v46 = vrot.slane %v7823_v35, 6  ;;  %v8456_v34 = vsel %vm22399_vm8, %v8454_v50, %v8455_v23  ;;  %v25708_v23 = vld [vmem:[#allocation51_spill] sm:$0xff] }
 0x4c0   : > { %v14443_v28 = vadd.f32 %v24368_v58, %v14406_v3  ;;  %v18157_v54 = vpop.f32.mrb[16].mxu1  ;;  %v14474_v57 = vmax.f32 %v14442_v7, 0.0  ;;  %18416 = vmatmul.mubr.msk.bf16.gmra.mrb[68].mxu0 %vm1199_vm3, %v24456_v36  ;;  %v16758_v16 = vcombine.low %v24561_v24, %v24566_v18  ;;  %v16749_v11 = vrot.slane %v7822_v52, 10  ;;  %v7825_v36 = vld [vmem:[#allocation2 + $0x370] sm:$0xc] }
 0x4c1   : > { %v14477_v53 = vmax.f32 %v14445_v2, 0.0  ;;  %v18991_v13 = vadd.f32 %v18157_v54, %v23663_v37  ;;  %v4931_v33 = vpop.f32.mrb[17].mxu1  ;;  %v7824_v37 = vld [vmem:[#allocation2 + $0x358] sm:$0x3]  ;;  %18419 = vmatprep.mubr.msk.bf16.mxu0 %vm1199_vm3, %v16757_v44  ;;  %v8468_v30 = vrot.slane %v8466_v46, 4  ;;  %v11559_v19 = vsel %vm1248_vm2, %v24219_v6, 0 }
 0x4c2   : > { %v14475_v42 = vmax.f32 %v14443_v28, 0.0  ;;  %v18992_v0 = vadd.f32 %v4931_v33, %v23677_v10  ;;  %v18158_v59 = vpop.f32.mrb[18].mxu1  ;;  %v8473_v10 = vrot.slane %v24577_v40, 6  ;;  %v8469_v60 = vrot.slane %v7824_v37, 6  ;;  %v24625_v54 = vld [vmem:[#allocation2 + $0x394] sm:$0xf] }
 0x4c3   : > { %v14411_v61 = vmul.f32 %v18991_v13, %v24355_v5  ;;  %v18993_v43 = vadd.f32 %v18158_v59, %v23685_v17  ;;  %v4934_v27 = vpop.f32.mrb[19].mxu1  ;;  %v24584_v29 = vpack.c.bf16 %v14477_v53, %v14476_v21  ;;  %v16759_v26 = vcombine.low %v24572_v63, %v8456_v34  ;;  %v20214_v53 = vld [vmem:[#allocation2 + $0x4c] sm:$0xff]  }
 0x4c4   : > { %v14409_v20 = vmul.f32 %v18992_v0, %v24355_v5  ;;  %v18994_v41 = vadd.f32 %v4934_v27, %v25707_v49  ;;  %v24591_v9 = vpack.c.bf16 %v14475_v42, %v14474_v57  ;;  %v24618_v24 = vsel %vm22399_vm8, %v8461_v45, %v8462_v56  ;;  %v25710_v56 = vld [vmem:[#allocation53_spill] sm:$0xff]  ;;  %v25711_v52 = vld [vmem:[#allocation54_spill] sm:$0xff] }
 0x4c5   : > { %v14448_v17 = vadd.f32 %v24368_v58, %v14411_v61  ;;  %v14412_v31 = vmul.f32 %v18993_v43, %v24355_v5  ;;  %18576 = vmatmul.mubr.msk.bf16.gmra.mrb[60].mxu1 %vm1199_vm3, %v16952_v12  ;;  %v24613_v12 = vsel %vm22399_vm8, %v16748_v15, %v8459_v32  ;;  %v16750_v2 = vrot.slane %v7825_v36, 10  ;;  %v25709_v15 = vld [vmem:[#allocation52_spill] sm:$0xff]  ;;  %v24638_v43 = vld [vmem:[#allocation13 + $0xe] sm:$0x3] }
 0x4c6   : > { %v14446_v4 = vadd.f32 %v24368_v58, %v14409_v20  ;;  %v14410_v55 = vmul.f32 %v18994_v41, %v24355_v5  ;;  %18581 = vmatprep.mubr.msk.bf16.mxu1 %vm1199_vm3, %v20212_v39  ;;  %v8475_v18 = vrot.slane %v8473_v10, 4  ;;  %v24623_v32 = vsel %vm22399_vm8, %v16749_v11, %v8466_v46  ;;  %v7828_v20 = vld [vmem:[#allocation2 + $0x390] sm:$0xc] }
 0x4c7   : > { %v14449_v7 = vadd.f32 %v24368_v58, %v14412_v31  ;;  %v14480_v50 = vmax.f32 %v14448_v17, 0.0  ;;  %v8470_v13 = vsel %vm22399_vm8, %v8468_v30, %v8469_v60  ;;  %v8476_v42 = vrot.slane %v7827_v62, 6  ;;  %v7830_v17 = vld [vmem:[#allocation2 + $0x398] sm:$0x3]  ;;  %v20215_v62 = vld [vmem:[#allocation2 + $0x6c] sm:$0xff]  }
 0x4c8   : > { %v14447_v44 = vadd.f32 %v24368_v58, %v14410_v55  ;;  %v18161_v3 = vpop.f32.mrb[20].mxu1  ;;  %v14478_v39 = vmax.f32 %v14446_v4, 0.0  ;;  %18420 = vmatmul.mubr.msk.bf16.gmra.mrb[72].mxu0 %vm1199_vm3, %v16758_v16  ;;  %v8480_v61 = vrot.slane %v24625_v54, 6  ;;  %v16760_v16 = vcombine.low %v24613_v12, %v24618_v24  ;;  %v7832_v4 = vld [vmem:[#allocation2 + $0x3b4] sm:$0xf] }
 0x4c9   : > { %v14481_v6 = vmax.f32 %v14449_v7, 0.0  ;;  %v18995_v35 = vadd.f32 %v18161_v3, %v25708_v23  ;;  %v4947_v28 = vpop.f32.mrb[21].mxu1  ;;  %18423 = vmatprep.mubr.msk.bf16.mxu0 %vm1199_vm3, %v16759_v26  ;;  %v16761_v11 = vcombine.low %v24623_v32, %v8470_v13  ;;  %v24655_v36 = vsel %vm22399_vm8, %v16750_v2, %v8473_v10  ;;  %v7831_v26 = vld [vmem:[#allocation2 + $0x3b0] sm:$0xc]  ;;  %v25712_v3 = vld [vmem:[#allocation55_spill] sm:$0xff] }
 0x4ca   : > { %v14479_v63 = vmax.f32 %v14447_v44, 0.0  ;;  %v18996_v45 = vadd.f32 %v4947_v28, %v25709_v15  ;;  %v18162_v21 = vpop.f32.mrb[22].mxu1  ;;  %v24662_v60 = vsel %vm22399_vm8, %v8475_v18, %v8476_v42  ;;  %v16751_v7 = vrot.slane %v7828_v20, 10  ;;  %v20216_v2 = vld [vmem:[#allocation2 + $0x8c] sm:$0xff]   ;;  %v7835_v54 = vld [vmem:[#allocation2 + $0x3d4] sm:$0xf] }
 0x4cb   : > { %v14415_v33 = vmul.f32 %v18995_v35, %v24355_v5  ;;  %v18997_v40 = vadd.f32 %v18162_v21, %v25710_v56  ;;  %v4950_v57 = vpop.f32.mrb[23].mxu1  ;;  %v24632_v0 = vpack.c.bf16 %v14481_v6, %v14480_v50  ;;  %v8483_v50 = vrot.slane %v7830_v17, 6  ;;  %v25713_v35 = vld [vmem:[#allocation56_spill] sm:$0xff]  ;;  %v25715_v13 = vld [vmem:[#allocation58_spill] sm:$0xff] }
 0x4cc   : > { %v14413_v59 = vmul.f32 %v18996_v45, %v24355_v5  ;;  %v18998_v46 = vadd.f32 %v4950_v57, %v25711_v52  ;;  %v24640_v27 = vpack.c.bf16 %v14479_v63, %v14478_v39  ;;  %v8487_v32 = vrot.slane %v7832_v4, 6  ;;  %v25714_v39 = vld [vmem:[#allocation57_spill] sm:$0xff] }
 0x4cd   : > { %v14452_v34 = vadd.f32 %v24368_v58, %v14415_v33  ;;  %v14416_v37 = vmul.f32 %v18997_v40, %v24355_v5  ;;  %18582 = vmatmul.mubr.msk.bf16.vlgmr.msra.gmra.mrb[32].mxu1 %vm1199_vm3, %v20213_v1  ;;  %v16752_v45 = vrot.slane %v7831_v26, 10  ;;  %v8481_v56 = vsel %vm22399_vm8, %v16751_v7, %v8480_v61  ;;  %v7833_v40 = vld [vmem:[#allocation2 + $0x3b8] sm:$0x3]  ;;  %v20217_v4 = vld [vmem:[#allocation2 + $0xac] sm:$0xff]  }
 0x4ce   : > { %v14450_v49 = vadd.f32 %v24368_v58, %v14413_v59  ;;  %v14414_v41 = vmul.f32 %v18998_v46, %v24355_v5  ;;  %18614 = vmatpush3.bf16.msra.mxu1 %v11559_v19  ;;  %18585 = vmatprep.mubr.msk.bf16.mxu1 %vm1199_vm3, %v20214_v53  ;;  %v8482_v19 = vrot.slane %v8480_v61, 4  ;;  %v7834_v46 = vld [vmem:[#allocation2 + $0x3d0] sm:$0xc]  ;;  %v8490_v17 = vrot.slane %v7833_v40, 6 }
 0x4cf   : > { %v14453_v31 = vadd.f32 %v24368_v58, %v14416_v37  ;;  %19959 = vmatprep.subr.msk.bf16.mxu1 %vm1248_vm2, %v24638_v43  ;;  %v14484_v12 = vmax.f32 %v14452_v34, 0.0  ;;  %v8494_v34 = vrot.slane %v7835_v54, 6  ;;  %v16753_v7 = vrot.slane %v7834_v46, 10 }
 0x4d0   : > { %v14451_v55 = vadd.f32 %v24368_v58, %v14414_v41  ;;  %v18165_v30 = vpop.f32.mrb[24].mxu1  ;;  %v14482_v6 = vmax.f32 %v14450_v49, 0.0  ;;  %18424 = vmatmul.mubr.msk.bf16.gmra.mrb[76].mxu0 %vm1199_vm3, %v16760_v16  ;;  %v8484_v52 = vsel %vm22399_vm8, %v8482_v19, %v8483_v50  ;;  %v16762_v49 = vcombine.low %v24655_v36, %v24662_v60 }
 0x4d1   : > { %v14485_v44 = vmax.f32 %v14453_v31, 0.0  ;;  %v18999_v24 = vadd.f32 %v18165_v30, %v25712_v3  ;;  %v4963_v10 = vpop.f32.mrb[25].mxu1  ;;  %18427 = vmatprep.mubr.msk.bf16.mxu0 %vm1199_vm3, %v16761_v11  ;;  %v8489_v41 = vrot.slane %v8487_v32, 4  ;;  %v7836_v31 = vld [vmem:[#allocation2 + $0x3d8] sm:$0x3]  ;;  %v8488_v30 = vsel %vm22399_vm8, %v16752_v45, %v8487_v32 }
 0x4d2   : > { %v14483_v23 = vmax.f32 %v14451_v55, 0.0  ;;  %v19000_v28 = vadd.f32 %v4963_v10, %v25713_v35  ;;  %v18166_v1 = vpop.f32.mrb[26].mxu1  ;;  %v16763_v55 = vcombine.low %v8481_v56, %v8484_v52  ;;  %v7838_v10 = vld [vmem:[#allocation2 + $0x3f4] sm:$0xf]  ;;  %v8495_v40 = vsel %vm22399_vm8, %v16753_v7, %v8494_v34  ;;  %v20219_v7 = vld [vmem:[#allocation2 + $0xec] sm:$0xff]  }
 0x4d3   : > { %v14419_v18 = vmul.f32 %v18999_v24, %v24355_v5  ;;  %v19001_v63 = vadd.f32 %v18166_v1, %v25714_v39  ;;  %v4966_v15 = vpop.f32.mrb[27].mxu1  ;;  %v24668_v21 = vpack.c.bf16 %v14485_v44, %v14484_v12  ;;  %v25716_v12 = vld [vmem:[#allocation59_spill] sm:$0xff]  ;;  %v8496_v24 = vrot.slane %v8494_v34, 4 }
 0x4d4   : > { %v14417_v53 = vmul.f32 %v19000_v28, %v24355_v5  ;;  %v19002_v33 = vadd.f32 %v4966_v15, %v25715_v13  ;;  %v24675_v57 = vpack.c.bf16 %v14483_v23, %v14482_v6  ;;  %v20218_v6 = vld [vmem:[#allocation2 + $0xcc] sm:$0xff]   ;;  %v8497_v23 = vrot.slane %v7836_v31, 6 }
 0x4d5   : > { %v14456_v42 = vadd.f32 %v24368_v58, %v14419_v18  ;;  %v14420_v59 = vmul.f32 %v19001_v63, %v24355_v5  ;;  %18586 = vmatmul.mubr.msk.bf16.gmra.mrb[36].mxu1 %vm1199_vm3, %v20215_v62  ;;  %v25717_v62 = vld [vmem:[#allocation60_spill] sm:$0xff]  ;;  %v25718_v28 = vld [vmem:[#allocation61_spill] sm:$0xff]  ;;  %v8491_v54 = vsel %vm22399_vm8, %v8489_v41, %v8490_v17  ;;  %v7841_v18 = vld [vmem:[#allocation2 + $0x414] sm:$0xf] }
 0x4d6   : > { %v14454_v37 = vadd.f32 %v24368_v58, %v14417_v53  ;;  %v14418_v61 = vmul.f32 %v19002_v33, %v24355_v5  ;;  %18589 = vmatprep.mubr.msk.bf16.mxu1 %vm1199_vm3, %v20216_v2  ;;  %v25719_v15 = vld [vmem:[#allocation62_spill] sm:$0xff]  ;;  %v8501_v53 = vrot.slane %v7838_v10, 6  ;;  %v16764_v41 = vcombine.low %v8488_v30, %v8491_v54  ;;  %v7842_v17 = vld [vmem:[#allocation2 + $0x418] sm:$0x3] }
 0x4d7   : > { %v14457_v20 = vadd.f32 %v24368_v58, %v14420_v59  ;;  %v14488_v19 = vmax.f32 %v14456_v42, 0.0  ;;  %v7837_v42 = vld [vmem:[#allocation2 + $0x3f0] sm:$0xc]  ;;  %v7839_v59 = vld [vmem:[#allocation2 + $0x3f8] sm:$0x3] }
 0x4d8   : > { %v14455_v16 = vadd.f32 %v24368_v58, %v14418_v61  ;;  %v18169_v11 = vpop.f32.mrb[28].mxu1  ;;  %v14486_v36 = vmax.f32 %v14454_v37, 0.0  ;;  %18428 = vmatmul.mubr.msk.bf16.gmra.mrb[80].mxu0 %vm1199_vm3, %v16762_v49  ;;  %v8498_v37 = vsel %vm22399_vm8, %v8496_v24, %v8497_v23  ;;  %v7840_v61 = vld [vmem:[#allocation2 + $0x410] sm:$0xc]  ;;  %v16754_v34 = vrot.slane %v7837_v42, 10 }
 0x4d9   : > { %v14489_v26 = vmax.f32 %v14457_v20, 0.0  ;;  %v19003_v44 = vadd.f32 %v18169_v11, %v25716_v12  ;;  %v4979_v3 = vpop.f32.mrb[29].mxu1  ;;  %18431 = vmatprep.mubr.msk.bf16.mxu0 %vm1199_vm3, %v16763_v55  ;;  %v8508_v20 = vrot.slane %v7841_v18, 6  ;;  %v8504_v11 = vrot.slane %v7839_v59, 6  ;;  %v7844_v10 = vld [vmem:[#allocation2 + $0x434] sm:$0xf] }
 0x4da   : > { %v14487_v60 = vmax.f32 %v14455_v16, 0.0  ;;  %v19004_v2 = vadd.f32 %v4979_v3, %v25717_v62  ;;  %v18170_v50 = vpop.f32.mrb[30].mxu1  ;;  %v8503_v16 = vrot.slane %v8501_v53, 4  ;;  %v8511_v24 = vrot.slane %v7842_v17, 6  ;;  %v7845_v23 = vld [vmem:[#allocation2 + $0x438] sm:$0x3] }
 0x4db   : > { %v14423_v35 = vmul.f32 %v19003_v44, %v24355_v5  ;;  %v19005_v1 = vadd.f32 %v18170_v50, %v25718_v28  ;;  %v4982_v32 = vpop.f32.mrb[31].mxu1  ;;  %v24698_v39 = vpack.c.bf16 %v14489_v26, %v14488_v19  ;;  %v16765_v19 = vcombine.low %v8495_v40, %v8498_v37  ;;  %v20221_v28 = vld [vmem:[#allocation2 + $0x12c] sm:$0xff]   ;;  %v7847_v40 = vld [vmem:[#allocation2 + $0x454] sm:$0xf] }
 0x4dc   : > { %v14421_v63 = vmul.f32 %v19004_v2, %v24355_v5  ;;  %v19006_v45 = vadd.f32 %v4982_v32, %v25719_v15  ;;  %v24703_v13 = vpack.c.bf16 %v14487_v60, %v14486_v36  ;;  %v16755_v26 = vrot.slane %v7840_v61, 10  ;;  %v7846_v59 = vld [vmem:[#allocation2 + $0x450] sm:$0xc]  ;;  %v7853_v17 = vld [vmem:[#allocation2 + $0x494] sm:$0xf] }
 0x4dd   : > { %v14460_v33 = vadd.f32 %v24368_v58, %v14423_v35  ;;  %v14424_v56 = vmul.f32 %v19005_v1, %v24355_v5  ;;  %18590 = vmatmul.mubr.msk.bf16.gmra.mrb[40].mxu1 %vm1199_vm3, %v20217_v4  ;;  %v8510_v3 = vrot.slane %v8508_v20, 4  ;;  %v8505_v60 = vsel %vm22399_vm8, %v8503_v16, %v8504_v11  ;;  %v20226_v37 = vld [vmem:[#allocation2 + $0x1cc] sm:$0xff]  }
 0x4de   : > { %v14458_v52 = vadd.f32 %v24368_v58, %v14421_v63  ;;  %v14422_v46 = vmul.f32 %v19006_v45, %v24355_v5  ;;  %18593 = vmatprep.mubr.msk.bf16.mxu1 %vm1199_vm3, %v20218_v6  ;;  %v20220_v5 = vld [vmem:[#allocation2 + $0x10c] sm:$0xff]   ;;  %v8515_v62 = vrot.slane %v7844_v10, 6  ;;  %v8509_v2 = vsel %vm22399_vm8, %v16755_v26, %v8508_v20 }
 0x4df   : > { %v14461_v49 = vadd.f32 %v24368_v58, %v14424_v56  ;;  %v14492_v4 = vmax.f32 %v14460_v33, 0.0  ;;  %v8512_v50 = vsel %vm22399_vm8, %v8510_v3, %v8511_v24  ;;  %v7843_v6 = vld [vmem:[#allocation2 + $0x430] sm:$0xc]  ;;  %v8518_v18 = vrot.slane %v7845_v23, 6  ;;  %v20238_v26 = vld [vmem:[#allocation15 + $0x10] sm:$0xff]  }
 0x4e0   : > { %v14459_v31 = vadd.f32 %v24368_v58, %v14422_v46  ;;  %v14490_v12 = vmax.f32 %v14458_v52, 0.0  ;;  %18432 = vmatmul.mubr.msk.bf16.gmra.mrb[84].mxu0 %vm1199_vm3, %v16764_v41  ;;  %v8502_v58 = vsel %vm22399_vm8, %v16754_v34, %v8501_v53  ;;  %v16767_v1 = vcombine.low %v8509_v2, %v8512_v50  ;;  %v20222_v63 = vld [vmem:[#allocation2 + $0x14c] sm:$0xff]   ;;  %v7848_v52 = vld [vmem:[#allocation2 + $0x458] sm:$0x3]  ;;  %v7850_v41 = vld [vmem:[#allocation2 + $0x474] sm:$0xf] }
 0x4e1   : > { %v14493_v55 = vmax.f32 %v14461_v49, 0.0  ;;  %18435 = vmatprep.mubr.msk.bf16.mxu0 %vm1199_vm3, %v16765_v19  ;;  %v16766_v35 = vcombine.low %v8502_v58, %v8505_v60  ;;  %v16756_v32 = vrot.slane %v7843_v6, 10  ;;  %v8517_v54 = vrot.slane %v8515_v62, 4  ;;  %v20223_v33 = vld [vmem:[#allocation2 + $0x16c] sm:$0xff]   ;;  %v7856_v50 = vld [vmem:[#allocation2 + $0x4b4] sm:$0xf] }
 0x4e2   : > { %v14491_v44 = vmax.f32 %v14459_v31, 0.0  ;;  %v20224_v56 = vld [vmem:[#allocation2 + $0x18c] sm:$0xff]   ;;  %v8892_v42 = vrot.slane %v7847_v40, 6  ;;  %v16785_v61 = vrot.slane %v7846_v59, 10  ;;  %v8895_v49 = vrot.slane %v7848_v52, 6  ;;  %v20237_v31 = vld [vmem:[#allocation15 + $0x8] sm:$0xff]  }
 0x4e3   : > { %v24718_v36 = vpack.c.bf16 %v14493_v55, %v14492_v4  ;;  %v8516_v15 = vsel %vm22399_vm8, %v16756_v32, %v8515_v62  ;;  %v8519_v45 = vsel %vm22399_vm8, %v8517_v54, %v8518_v18  ;;  %v20225_v46 = vld [vmem:[#allocation2 + $0x1ac] sm:$0xff]   ;;  %v8899_v34 = vrot.slane %v7850_v41, 6  ;;  %v7851_v55 = vld [vmem:[#allocation2 + $0x478] sm:$0x3]  ;;  %v7859_v6 = vld [vmem:[#allocation2 + $0x4d4] sm:$0xf] }
 0x4e4   : > { %v24721_v30 = vpack.c.bf16 %v14491_v44, %v14490_v12  ;;  %v16768_v53 = vcombine.low %v8516_v15, %v8519_v45  ;;  %v8894_v20 = vrot.slane %v8892_v42, 4  ;;  %v8893_v16 = vsel %vm22399_vm8, %v16785_v61, %v8892_v42  ;;  %v7849_v4 = vld [vmem:[#allocation2 + $0x470] sm:$0xc]  ;;  %v7857_v18 = vld [vmem:[#allocation2 + $0x4b8] sm:$0x3] }
 0x4e5   : > { %18594 = vmatmul.mubr.msk.bf16.gmra.mrb[44].mxu1 %vm1199_vm3, %v20219_v7  ;;  %v8906_v7 = vrot.slane %v7853_v17, 6  ;;  %v20227_v12 = vld [vmem:[#allocation2 + $0x1ec] sm:$0xff]   ;;  %v16786_v3 = vrot.slane %v7849_v4, 10  ;;  %v8901_v24 = vrot.slane %v8899_v34, 4  ;;  %v8902_v10 = vrot.slane %v7851_v55, 6 }
 0x4e6   : > { %18597 = vmatprep.mubr.msk.bf16.mxu1 %vm1199_vm3, %v20220_v5  ;;  %v8896_v11 = vsel %vm22399_vm8, %v8894_v20, %v8895_v49  ;;  %v7852_v5 = vld [vmem:[#allocation2 + $0x490] sm:$0xc]  ;;  %v7860_v45 = vld [vmem:[#allocation2 + $0x4d8] sm:$0x3]  ;;  %v8916_v52 = vrot.slane %v7857_v18, 6  ;;  %v11949_v41 = vsel %vm1248_vm2, %v24638_v43, 0 }
 0x4e7   : > { %v16797_v44 = vcombine.low %v8893_v16, %v8896_v11  ;;  %v20228_v58 = vld [vmem:[#allocation2 + $0x24c] sm:$0xff]   ;;  %v16787_v60 = vrot.slane %v7852_v5, 10  ;;  %v8908_v62 = vrot.slane %v8906_v7, 4  ;;  %v8923_v20 = vrot.slane %v7860_v45, 6  ;;  %v7862_v49 = vld [vmem:[#allocation2 + $0x4f4] sm:$0xf] }
 0x4e8   : > { %18436 = vmatmul.mubr.msk.bf16.gmra.mrb[88].mxu0 %vm1199_vm3, %v16766_v35  ;;  %v20241_v23 = vld [vmem:[#allocation15 + $0x18] sm:$0xff]   ;;  %v8927_v4 = vrot.slane %v7862_v49, 6 }
 0x4e9   : > { %18439 = vmatprep.mubr.msk.bf16.mxu0 %vm1199_vm3, %v16767_v1  ;;  %v7855_v54 = vld [vmem:[#allocation2 + $0x4b0] sm:$0xc]  ;;  %v7865_v17 = vld [vmem:[#allocation2 + $0x514] sm:$0xf]  ;;  %v7863_v5 = vld [vmem:[#allocation2 + $0x4f8] sm:$0x3] }
 0x4ea   : > { %v7858_v15 = vld [vmem:[#allocation2 + $0x4d0] sm:$0xc]  ;;  %v16788_v42 = vrot.slane %v7855_v54, 10  ;;  %v7869_v45 = vld [vmem:[#allocation2 + $0x538] sm:$0x3] }
 0x4ed   : > { %18598 = vmatmul.mubr.msk.bf16.gmra.mrb[48].mxu1 %vm1199_vm3, %v20221_v28  ;;  %v8913_v28 = vrot.slane %v7856_v50, 6 }
 0x4ee   : > { %18601 = vmatprep.mubr.msk.bf16.mxu1 %vm1199_vm3, %v20222_v63  ;;  %v8920_v63 = vrot.slane %v7859_v6, 6 }
 0x4ef   : > { %v8915_v59 = vrot.slane %v8913_v28, 4  ;;  %v8914_v16 = vsel %vm22399_vm8, %v16788_v42, %v8913_v28  ;;  %v20249_v28 = vld [vmem:[#allocation15 + $0x38] sm:$0xff]   ;;  %v24797_v42 = vld [vmem:[#allocation15 + $0x40] sm:$0xff]  }
 0x4f0   : > { %18440 = vmatmul.mubr.msk.bf16.gmra.mrb[92].mxu0 %vm1199_vm3, %v16768_v53  ;;  %v8922_v61 = vrot.slane %v8920_v63, 4 }
 0x4f1   : > { %18445 = vmatprep.mubr.msk.bf16.mxu0 %vm1199_vm3, %v16765_v19  ;;  %v7854_v19 = vld [vmem:[#allocation2 + $0x498] sm:$0x3]  ;;  %v8917_v11 = vsel %vm22399_vm8, %v8915_v59, %v8916_v52  ;;  %v20233_v59 = vld [vmem:[#allocation2 + $0x2ec] sm:$0xff]  }
 0x4f2   : > { %v8909_v2 = vrot.slane %v7854_v19, 6  ;;  %v8924_v55 = vsel %vm22399_vm8, %v8922_v61, %v8923_v20  ;;  %v8934_v19 = vrot.slane %v7865_v17, 6  ;;  %v8944_v61 = vrot.slane %v7869_v45, 6  ;;  %v20235_v20 = vld [vmem:[#allocation2 + $0x30c] sm:$0xff]  }
 0x4f3   : > { %v20240_v45 = vld [vmem:[#allocation2 + $0x36c] sm:$0xff]  }
 0x4f4   : > { %v8910_v32 = vsel %vm22399_vm8, %v8908_v62, %v8909_v2  ;;  %v8930_v62 = vrot.slane %v7863_v5, 6  ;;  %v20232_v2 = vld [vmem:[#allocation2 + $0x2cc] sm:$0xff]   ;;  %v8936_v6 = vrot.slane %v8934_v19, 4 }
 0x4f5   : > { %18602 = vmatmul.mubr.msk.bf16.gmra.mrb[52].mxu1 %vm1199_vm3, %v20223_v33  ;;  %v7873_v5 = vld [vmem:[#allocation2 + $0x570] sm:$0xc] }
 0x4f6   : > { %18605 = vmatprep.mubr.msk.bf16.mxu1 %vm1199_vm3, %v20224_v56  ;;  %v20229_v56 = vld [vmem:[#allocation2 + $0x26c] sm:$0xff]  }
 0x4f8   : > { %18446 = vmatmul.mubr.msk.bf16.vlgmr.msra.gmra.mrb[64].mxu0 %vm1199_vm3, %v16766_v35  ;;  %v8903_v35 = vsel %vm22399_vm8, %v8901_v24, %v8902_v10  ;;  %v20231_v24 = vld [vmem:[#allocation2 + $0x2ac] sm:$0xff]  }
 0x4f9   : > { %18449 = vmatprep.mubr.msk.bf16.mxu0 %vm1199_vm3, %v16767_v1  ;;  %18784 = vmatpush3.bf16.msra.mxu0 %v24531_v22  ;;  %v8900_v22 = vsel %vm22399_vm8, %v16786_v3, %v8899_v34  ;;  %v8907_v1 = vsel %vm22399_vm8, %v16787_v60, %v8906_v7  ;;  %v24770_v34 = vld [vmem:[#allocation13 + $0x4] sm:$0x3]  ;;  %v7861_v7 = vld [vmem:[#allocation2 + $0x4f0] sm:$0xc]  ;;  %v8929_v60 = vrot.slane %v8927_v4, 4 }
 0x4fa   : > { %18785 = vmatprep.subr.bf16.mxu0 %v20237_v31  ;;  %v16798_v33 = vcombine.low %v8900_v22, %v8903_v35  ;;  %v16799_v40 = vcombine.low %v8907_v1, %v8910_v32  ;;  %v20246_v3 = vld [vmem:[#allocation15 + $0x30] sm:$0xff]   ;;  %v7868_v22 = vld [vmem:[#allocation2 + $0x534] sm:$0xf] }
 0x4fb   : > { %v7871_v35 = vld [vmem:[#allocation2 + $0x554] sm:$0xf]  ;;  %v8931_v32 = vsel %vm22399_vm8, %v8929_v60, %v8930_v62  ;;  %v8941_v54 = vrot.slane %v7868_v22, 6 }
 0x4fc   : > { %v7880_v22 = vld [vmem:[#allocation2 + $0x5b4] sm:$0xf] }
 0x4fd   : > { %18606 = vmatmul.mubr.msk.bf16.gmra.mrb[56].mxu1 %vm1199_vm3, %v20225_v46  ;;  %18786 = vmatpush3.bf16.msra.mxu0 %v20237_v31  ;;  %v20230_v46 = vld [vmem:[#allocation2 + $0x28c] sm:$0xff]   ;;  %v20245_v31 = vld [vmem:[#allocation15 + $0x28] sm:$0xff]  }
 0x4fe   : > { %18609 = vmatprep.mubr.msk.bf16.mxu1 %vm1199_vm3, %v20226_v37  ;;  %18787 = vmatprep.subr.bf16.mxu0 %v20238_v26  ;;  %v16789_v37 = vrot.slane %v7858_v15, 10  ;;  %v7867_v15 = vld [vmem:[#allocation2 + $0x530] sm:$0xc] }
 0x500   : > { %18450 = vmatmul.mubr.msk.bf16.gmra.mrb[68].mxu0 %vm1199_vm3, %v16768_v53  ;;  %v20242_v53 = vld [vmem:[#allocation15 + $0x20] sm:$0xff]   ;;  %v8921_v43 = vsel %vm22399_vm8, %v16789_v37, %v8920_v63  ;;  %v8943_v37 = vrot.slane %v8941_v54, 4 }
 0x501   : > { %18453 = vmatprep.mubr.msk.bf16.mxu0 %vm1199_vm3, %v16797_v44  ;;  %18788 = vmatpush3.bf16.msra.mxu0 %v20238_v26  ;;  %v7864_v26 = vld [vmem:[#allocation2 + $0x510] sm:$0xc]  ;;  %v16800_v44 = vcombine.low %v8914_v16, %v8917_v11  ;;  %v16801_v10 = vcombine.low %v8921_v43, %v8924_v55  ;;  %v7877_v16 = vld [vmem:[#allocation2 + $0x594] sm:$0xf] }
 0x502   : > { %18789 = vmatprep.subr.bf16.mxu0 %v20241_v23  ;;  %v16791_v50 = vrot.slane %v7864_v26, 10  ;;  %v8962_v26 = vrot.slane %v7877_v16, 6  ;;  %v25721_v16 = vld [vmem:[#allocation35_spill] sm:$0xff] }
 0x504   : > { %v8935_v18 = vsel %vm22399_vm8, %v16791_v50, %v8934_v19  ;;  %v7875_v19 = vld [vmem:[#allocation2 + $0x578] sm:$0x3] }
 0x505   : > { %18610 = vmatmul.mubr.msk.bf16.gmra.mrb[60].mxu1 %vm1199_vm3, %v20227_v12  ;;  %18790 = vmatpush3.bf16.msra.mxu0 %v20241_v23  ;;  %v7866_v12 = vld [vmem:[#allocation2 + $0x518] sm:$0x3]  ;;  %v8958_v62 = vrot.slane %v7875_v19, 6  ;;  %v20266_v19 = vld [vmem:[#allocation15 + $0x60] sm:$0xff]  }
 0x506   : > { %18615 = vmatprep.mubr.msk.bf16.mxu1 %vm1199_vm3, %v20228_v58  ;;  %18791 = vmatprep.subr.bf16.mxu0 %v20242_v53  ;;  %v16790_v58 = vrot.slane %v7861_v7, 10  ;;  %v8937_v23 = vrot.slane %v7866_v12, 6  ;;  %v7876_v12 = vld [vmem:[#allocation2 + $0x590] sm:$0xc] }
 0x507   : > { %v16795_v50 = vrot.slane %v7876_v12, 10  ;;  %v12611_v12 = vsel %vm1248_vm2, %v24770_v34, 0 }
 0x508   : > { %18454 = vmatmul.mubr.msk.bf16.gmra.mrb[72].mxu0 %vm1199_vm3, %v16798_v33  ;;  %v8928_v1 = vsel %vm22399_vm8, %v16790_v58, %v8927_v4  ;;  %v8938_v63 = vsel %vm22399_vm8, %v8936_v6, %v8937_v23  ;;  %v7870_v33 = vld [vmem:[#allocation2 + $0x550] sm:$0xc]  ;;  %v8945_v4 = vsel %vm22399_vm8, %v8943_v37, %v8944_v61  ;;  %v16794_v58 = vrot.slane %v7873_v5, 10  ;;  %v25724_v5 = vld [vmem:[#allocation37_spill] sm:$0xff] }
 0x509   : > { %18457 = vmatprep.mubr.msk.bf16.mxu0 %vm1199_vm3, %v16799_v40  ;;  %18792 = vmatpush3.bf16.msra.mxu0 %v20242_v53  ;;  %v8948_v53 = vrot.slane %v7871_v35, 6  ;;  %v16802_v40 = vcombine.low %v8928_v1, %v8931_v32  ;;  %v16803_v52 = vcombine.low %v8935_v18, %v8938_v63  ;;  %v16793_v49 = vrot.slane %v7870_v33, 10  ;;  %v7879_v18 = vld [vmem:[#allocation2 + $0x5b0] sm:$0xc]  ;;  %v7881_v63 = vld [vmem:[#allocation2 + $0x5b8] sm:$0x3] }
 0x50a   : > { %18793 = vmatprep.subr.bf16.mxu0 %v20245_v31  ;;  %v8964_v6 = vrot.slane %v8962_v26, 4  ;;  %v8969_v1 = vrot.slane %v7880_v22, 6  ;;  %v8963_v32 = vsel %vm22399_vm8, %v16795_v50, %v8962_v26  ;;  %v16796_v33 = vrot.slane %v7879_v18, 10  ;;  %v20244_v61 = vld [vmem:[#allocation2 + $0x3ac] sm:$0xff]   ;;  %v25728_v50 = vld [vmem:[#allocation47_spill] sm:$0xff]  ;;  %v25732_v18 = vld [vmem:[#allocation48_spill] sm:$0xff] }
 0x50b   : > { %v8949_v55 = vsel %vm22399_vm8, %v16793_v49, %v8948_v53  ;;  %v25720_v49 = vld [vmem:[#allocation36_spill] sm:$0xff]  ;;  %v20253_v26 = vld [vmem:[#allocation2 + $0x4ac] sm:$0xff]  }
 0x50c   : > { %v20259_v22 = vld [vmem:[#allocation2 + $0x54c] sm:$0xff]  }
 0x50d   : > { %18616 = vmatmul.mubr.msk.bf16.vlgmr.msra.gmra.mrb[32].mxu1 %vm1199_vm3, %v20229_v56  ;;  %18794 = vmatpush3.bf16.msra.mxu0 %v20245_v31  ;;  %v7872_v56 = vld [vmem:[#allocation2 + $0x558] sm:$0x3]  ;;  %v7874_v31 = vld [vmem:[#allocation2 + $0x574] sm:$0xf] }
 0x50e   : > { %18648 = vmatpush3.bf16.msra.mxu1 %v11949_v41  ;;  %18619 = vmatprep.mubr.msk.bf16.mxu1 %vm1199_vm3, %v20230_v46  ;;  %v16792_v46 = vrot.slane %v7867_v15, 10  ;;  %v8950_v41 = vrot.slane %v8948_v53, 4  ;;  %v8951_v17 = vrot.slane %v7872_v56, 6  ;;  %v8955_v43 = vrot.slane %v7874_v31, 6  ;;  %v20261_v31 = vld [vmem:[#allocation15 + $0x48] sm:$0xff]  }
 0x50f   : > { %19960 = vmatprep.subr.msk.bf16.mxu1 %vm1248_vm2, %v24770_v34  ;;  %18795 = vmatprep.subr.bf16.mxu0 %v20246_v3  ;;  %v8971_v56 = vrot.slane %v8969_v1, 4  ;;  %v20255_v34 = vld [vmem:[#allocation2 + $0x4ec] sm:$0xff]  }
 0x510   : > { %18458 = vmatmul.mubr.msk.bf16.gmra.mrb[76].mxu0 %vm1199_vm3, %v16800_v44  ;;  %v8942_v11 = vsel %vm22399_vm8, %v16792_v46, %v8941_v54  ;;  %v8952_v7 = vsel %vm22399_vm8, %v8950_v41, %v8951_v17  ;;  %v7878_v44 = vld [vmem:[#allocation2 + $0x598] sm:$0x3]  ;;  %v8957_v60 = vrot.slane %v8955_v43, 4  ;;  %v8956_v35 = vsel %vm22399_vm8, %v16794_v58, %v8955_v43  ;;  %v20248_v41 = vld [vmem:[#allocation2 + $0x3ec] sm:$0xff]  }
 0x511   : > { %18461 = vmatprep.mubr.msk.bf16.mxu0 %vm1199_vm3, %v16801_v10  ;;  %18796 = vmatpush3.bf16.msra.mxu0 %v20246_v3  ;;  %v16804_v3 = vcombine.low %v8942_v11, %v8945_v4  ;;  %v16805_v10 = vcombine.low %v8949_v55, %v8952_v7  ;;  %v8965_v23 = vrot.slane %v7878_v44, 6  ;;  %v20250_v17 = vld [vmem:[#allocation2 + $0x40c] sm:$0xff]  }
 0x512   : > { %18797 = vmatprep.subr.bf16.mxu0 %v20249_v28  ;;  %v20262_v11 = vld [vmem:[#allocation15 + $0x50] sm:$0xff]   ;;  %v20265_v55 = vld [vmem:[#allocation15 + $0x58] sm:$0xff]  }
 0x513   : > { %v8966_v54 = vsel %vm22399_vm8, %v8964_v6, %v8965_v23  ;;  %v20251_v4 = vld [vmem:[#allocation2 + $0x42c] sm:$0xff]   ;;  %v20276_v6 = vld [vmem:[#allocation15 + $0x80] sm:$0xff]  }
 0x514   : > { %v16807_v53 = vcombine.low %v8963_v32, %v8966_v54  ;;  %v20252_v43 = vld [vmem:[#allocation2 + $0x48c] sm:$0xff]   ;;  %v25731_v54 = vld [vmem:[#allocation44_spill] sm:$0xff] }
 0x515   : > { %18620 = vmatmul.mubr.msk.bf16.gmra.mrb[36].mxu1 %vm1199_vm3, %v20231_v24  ;;  %18798 = vmatpush3.bf16.msra.mxu0 %v20249_v28  ;;  %v20236_v24 = vld [vmem:[#allocation2 + $0x32c] sm:$0xff]   ;;  %v8959_v28 = vsel %vm22399_vm8, %v8957_v60, %v8958_v62 }
 0x516   : > { %18623 = vmatprep.mubr.msk.bf16.mxu1 %vm1199_vm3, %v20232_v2  ;;  %18831 = vmatprep.subr.bf16.mxu0 %v24797_v42  ;;  %v20239_v2 = vld [vmem:[#allocation2 + $0x34c] sm:$0xff]   ;;  %v16806_v15 = vcombine.low %v8956_v35, %v8959_v28  ;;  %v25729_v35 = vld [vmem:[#allocation39_spill] sm:$0xff] }
 0x517   : > { %v25723_v7 = vld [vmem:[#allocation34_spill] sm:$0xff]  ;;  %v25730_v28 = vld [vmem:[#allocation43_spill] sm:$0xff] }
 0x518   : > { %18462 = vmatmul.mubr.msk.bf16.gmra.mrb[80].mxu0 %vm1199_vm3, %v16802_v40  ;;  %v8972_v40 = vrot.slane %v7881_v63, 6  ;;  %v25725_v44 = vld [vmem:[#allocation38_spill] sm:$0xff] }
 0x519   : > { %18465 = vmatprep.mubr.msk.bf16.mxu0 %vm1199_vm3, %v16803_v52  ;;  %v8970_v52 = vsel %vm22399_vm8, %v16796_v33, %v8969_v1  ;;  %v20270_v58 = vld [vmem:[#allocation15 + $0x70] sm:$0xff]  }
 0x51a   : > { %v8973_v46 = vsel %vm22399_vm8, %v8971_v56, %v8972_v40  ;;  %v20256_v60 = vld [vmem:[#allocation2 + $0x50c] sm:$0xff]  }
 0x51b   : > { %v16808_v37 = vcombine.low %v8970_v52, %v8973_v46  ;;  %v25727_v62 = vld [vmem:[#allocation42_spill] sm:$0xff]  ;;  %v25735_v40 = vld [vmem:[#allocation49_spill] sm:$0xff] }
 0x51c   : > { %v20257_v23 = vld [vmem:[#allocation2 + $0x52c] sm:$0xff]   ;;  %v12208_v46 = vld [vmem:[#allocation2 + $0x14] sm:$0xe] }
 0x51d   : > { %18624 = vmatmul.mubr.msk.bf16.gmra.mrb[40].mxu1 %vm1199_vm3, %v20233_v59  ;;  %v20243_v59 = vld [vmem:[#allocation2 + $0x38c] sm:$0xff]  }
 0x51e   : > { %18627 = vmatprep.mubr.msk.bf16.mxu1 %vm1199_vm3, %v20235_v20  ;;  %v20247_v20 = vld [vmem:[#allocation2 + $0x3cc] sm:$0xff]  }
 0x51f   : > { %v20260_v1 = vld [vmem:[#allocation2 + $0x56c] sm:$0xff]  }
 0x520   : > { %18466 = vmatmul.mubr.msk.bf16.gmra.mrb[84].mxu0 %vm1199_vm3, %v16804_v3  ;;  %v20269_v3 = vld [vmem:[#allocation15 + $0x68] sm:$0xff]   ;;  %v20263_v32 = vld [vmem:[#allocation2 + $0x58c] sm:$0xff]  }
 0x521   : > { %18469 = vmatprep.mubr.msk.bf16.mxu0 %vm1199_vm3, %v16805_v10  ;;  %v25726_v10 = vld [vmem:[#allocation41_spill] sm:$0xff] }
 0x522   : > { %v20264_v63 = vld [vmem:[#allocation2 + $0x5ac] sm:$0xff]  }
 0x523   : > { %v20268_v33 = vld [vmem:[#allocation2 + $0x5ec] sm:$0xff]  }
 0x524   : > { %v20271_v56 = vld [vmem:[#allocation2 + $0x60c] sm:$0xff]  }
 0x525   : > { %18628 = vmatmul.mubr.msk.bf16.gmra.mrb[44].mxu1 %vm1199_vm3, %v20236_v24  ;;  %v24848_v24 = vld [vmem:[#allocation13 + $0xa] sm:$0x3] }
 0x526   : > { %18631 = vmatprep.mubr.msk.bf16.mxu1 %vm1199_vm3, %v20239_v2  ;;  %v20273_v2 = vld [vmem:[#allocation15 + $0x78] sm:$0xff]  }
 0x528   : > { %18470 = vmatmul.mubr.msk.bf16.gmra.mrb[88].mxu0 %vm1199_vm3, %v16806_v15  ;;  %v20267_v15 = vld [vmem:[#allocation2 + $0x5cc] sm:$0xff]  }
 0x529   : > { %18473 = vmatprep.mubr.msk.bf16.mxu0 %vm1199_vm3, %v16807_v53  ;;  %v25734_v53 = vld [vmem:[#allocation46_spill] sm:$0xff] }
 0x52d   : > { %18632 = vmatmul.mubr.msk.bf16.gmra.mrb[48].mxu1 %vm1199_vm3, %v20240_v45  ;;  %v25733_v45 = vld [vmem:[#allocation45_spill] sm:$0xff] }
 0x52e   : > { %18635 = vmatprep.mubr.msk.bf16.mxu1 %vm1199_vm3, %v20243_v59  ;;  %v12209_v59 = vld [vmem:[#allocation2 + $0x18] sm:$0xf] }
 0x52f   : > { %v12402_v52 = vrot.slane %v12209_v59, 5 }
 0x530   : > { %18474 = vmatmul.mubr.msk.bf16.gmra.mrb[92].mxu0 %vm1199_vm3, %v16808_v37  ;;  %v12210_v37 = vld [vmem:[#allocation2 + $0x1c] sm:$0x1] }
 0x531   : > { %18799 = vmatprep.mubr.bf16.mxu0 %v25720_v49  ;;  %v17065_v49 = vrot.slane %v12208_v46, 9  ;;  %v12227_v46 = vld [vmem:[#allocation2 + $0xd8] sm:$0xf] }
 0x535   : > { %18636 = vmatmul.mubr.msk.bf16.gmra.mrb[52].mxu1 %vm1199_vm3, %v20244_v61  ;;  %v20272_v61 = vld [vmem:[#allocation2 + $0x62c] sm:$0xff]  }
 0x536   : > { %18639 = vmatprep.mubr.msk.bf16.mxu1 %vm1199_vm3, %v20247_v20  ;;  %v20274_v20 = vld [vmem:[#allocation2 + $0x64c] sm:$0xff]  }
 0x538   : > { %18800 = vmatmul.mubr.bf16.vlgmr.msra.gmra.mrb[96].mxu0 %v25721_v16  ;;  %v20277_v16 = vld [vmem:[#allocation15 + $0x88] sm:$0xff]  }
 0x539   : > { %18803 = vmatprep.mubr.bf16.mxu0 %v25722_v48  ;;  %18832 = vmatpush3.bf16.msra.mxu0 %v24797_v42  ;;  %v20254_v42 = vld [vmem:[#allocation2 + $0x4cc] sm:$0xff]   ;;  %v12215_v48 = vld [vmem:[#allocation2 + $0x58] sm:$0xf] }
 0x53a   : > { %18833 = vmatprep.subr.bf16.mxu0 %v20261_v31 }
 0x53d   : > { %18640 = vmatmul.mubr.msk.bf16.gmra.mrb[56].mxu1 %vm1199_vm3, %v20248_v41  ;;  %18834 = vmatpush3.bf16.msra.mxu0 %v20261_v31  ;;  %v12404_v41 = vrot.slane %v12402_v52, 4  ;;  %v12212_v31 = vld [vmem:[#allocation2 + $0x38] sm:$0xf] }
 0x53e   : > { %18643 = vmatprep.mubr.msk.bf16.mxu1 %vm1199_vm3, %v20250_v17  ;;  %18835 = vmatprep.subr.bf16.mxu0 %v20262_v11  ;;  %v12405_v17 = vrot.slane %v12210_v37, 5  ;;  %v24898_v37 = vld [vmem:[#allocation13 + $0x10] sm:$0x3] }
 0x540   : > { %18804 = vmatmul.mubr.bf16.gmra.mrb[100].mxu0 %v25723_v7  ;;  %v12213_v7 = vld [vmem:[#allocation2 + $0x3c] sm:$0x1] }
 0x541   : > { %18807 = vmatprep.mubr.bf16.mxu0 %v25724_v5  ;;  %18836 = vmatpush3.bf16.msra.mxu0 %v20262_v11  ;;  %v12416_v5 = vrot.slane %v12215_v48, 5  ;;  %v12228_v48 = vld [vmem:[#allocation2 + $0xdc] sm:$0x1] }
 0x542   : > { %18837 = vmatprep.subr.bf16.mxu0 %v20265_v55 }
 0x545   : > { %18644 = vmatmul.mubr.msk.bf16.gmra.mrb[60].mxu1 %vm1199_vm3, %v20251_v4  ;;  %18838 = vmatpush3.bf16.msra.mxu0 %v20265_v55  ;;  %v12403_v4 = vsel %vm22029_vm6, %v17065_v49, %v12402_v52  ;;  %v12211_v55 = vld [vmem:[#allocation2 + $0x34] sm:$0xe]  ;;  %v12224_v52 = vld [vmem:[#allocation2 + $0xb8] sm:$0xf] }
 0x546   : > { %18649 = vmatprep.mubr.msk.bf16.mxu1 %vm1199_vm3, %v20252_v43  ;;  %18839 = vmatprep.subr.bf16.mxu0 %v20266_v19  ;;  %v12406_v43 = vsel %vm22029_vm6, %v12404_v41, %v12405_v17  ;;  %v12437_v49 = vrot.slane %v12224_v52, 5  ;;  %v12223_v17 = vld [vmem:[#allocation2 + $0xb4] sm:$0xe] }
 0x548   : > { %18808 = vmatmul.mubr.bf16.gmra.mrb[104].mxu0 %v25725_v44 }
 0x549   : > { %18811 = vmatprep.mubr.bf16.mxu0 %v25726_v10  ;;  %18840 = vmatpush3.bf16.msra.mxu0 %v20266_v19  ;;  %v12214_v19 = vld [vmem:[#allocation2 + $0x54] sm:$0xe] }
 0x54a   : > { %18841 = vmatprep.subr.bf16.mxu0 %v20269_v3  ;;  %v17067_v10 = vrot.slane %v12214_v19, 9 }
 0x54d   : > { %18650 = vmatmul.mubr.msk.bf16.vlgmr.msra.gmra.mrb[32].mxu1 %vm1199_vm3, %v20253_v26  ;;  %18842 = vmatpush3.bf16.msra.mxu0 %v20269_v3  ;;  %v12216_v26 = vld [vmem:[#allocation2 + $0x5c] sm:$0x1]  ;;  %v12412_v3 = vrot.slane %v12213_v7, 5  ;;  %v12439_v7 = vrot.slane %v12437_v49, 4 }
 0x54e   : > { %18682 = vmatpush3.bf16.msra.mxu1 %v12611_v12  ;;  %18653 = vmatprep.mubr.msk.bf16.mxu1 %vm1199_vm3, %v20254_v42  ;;  %v20275_v42 = vld [vmem:[#allocation2 + $0x66c] sm:$0xff]   ;;  %v17081_v12 = vcombine.low %v12403_v4, %v12406_v43 }
 0x54f   : > { %19961 = vmatprep.subr.msk.bf16.mxu1 %vm1248_vm2, %v24848_v24  ;;  %18843 = vmatprep.subr.bf16.mxu0 %v20270_v58 }
 0x550   : > { %18812 = vmatmul.mubr.bf16.gmra.mrb[108].mxu0 %v25727_v62  ;;  %v20279_v62 = vld [vmem:[#allocation15 + $0x98] sm:$0xff]  }
 0x551   : > { %18815 = vmatprep.mubr.bf16.mxu0 %v25728_v50  ;;  %18844 = vmatpush3.bf16.msra.mxu0 %v20270_v58  ;;  %v12418_v58 = vrot.slane %v12416_v5, 4 }
 0x552   : > { %18845 = vmatprep.subr.bf16.mxu0 %v20273_v2 }
 0x555   : > { %18654 = vmatmul.mubr.msk.bf16.gmra.mrb[36].mxu1 %vm1199_vm3, %v20255_v34  ;;  %18846 = vmatpush3.bf16.msra.mxu0 %v20273_v2  ;;  %v12419_v34 = vrot.slane %v12216_v26, 5  ;;  %v12221_v2 = vld [vmem:[#allocation2 + $0x98] sm:$0xf]  ;;  %v12447_v26 = vrot.slane %v12228_v48, 5  ;;  %v12241_v48 = vld [vmem:[#allocation2 + $0x174] sm:$0xe] }
 0x556   : > { %18657 = vmatprep.mubr.msk.bf16.mxu1 %vm1199_vm3, %v20256_v60  ;;  %18879 = vmatprep.subr.bf16.mxu0 %v20276_v6  ;;  %v12218_v60 = vld [vmem:[#allocation2 + $0x78] sm:$0xf] }
 0x558   : > { %18816 = vmatmul.mubr.bf16.gmra.mrb[112].mxu0 %v25729_v35  ;;  %v12217_v35 = vld [vmem:[#allocation2 + $0x74] sm:$0xe] }
 0x559   : > { %18819 = vmatprep.mubr.bf16.mxu0 %v25730_v28  ;;  %v12219_v28 = vld [vmem:[#allocation2 + $0x7c] sm:$0x1] }
 0x55d   : > { %18658 = vmatmul.mubr.msk.bf16.gmra.mrb[40].mxu1 %vm1199_vm3, %v20257_v23  ;;  %v12423_v23 = vrot.slane %v12218_v60, 5  ;;  %v12231_v60 = vld [vmem:[#allocation2 + $0xfc] sm:$0x1] }
 0x55e   : > { %18661 = vmatprep.mubr.msk.bf16.mxu1 %vm1199_vm3, %v20259_v22  ;;  %v12417_v22 = vsel %vm22029_vm6, %v17067_v10, %v12416_v5 }
 0x560   : > { %18820 = vmatmul.mubr.bf16.gmra.mrb[116].mxu0 %v25731_v54  ;;  %v12222_v54 = vld [vmem:[#allocation2 + $0x9c] sm:$0x1] }
 0x561   : > { %18823 = vmatprep.mubr.bf16.mxu0 %v25732_v18  ;;  %v12433_v59 = vrot.slane %v12222_v54, 5 }
 0x565   : > { %18662 = vmatmul.mubr.msk.bf16.gmra.mrb[44].mxu1 %vm1199_vm3, %v20260_v1  ;;  %v12430_v1 = vrot.slane %v12221_v2, 5  ;;  %v12234_v2 = vld [vmem:[#allocation2 + $0x11c] sm:$0x1] }
 0x566   : > { %18665 = vmatprep.mubr.msk.bf16.mxu1 %vm1199_vm3, %v20263_v32  ;;  %v12220_v32 = vld [vmem:[#allocation2 + $0x94] sm:$0xe] }
 0x568   : > { %18824 = vmatmul.mubr.bf16.gmra.mrb[120].mxu0 %v25733_v45  ;;  %v12425_v45 = vrot.slane %v12423_v23, 4 }
 0x569   : > { %18827 = vmatprep.mubr.bf16.mxu0 %v25734_v53  ;;  %v12426_v53 = vrot.slane %v12219_v28, 5 }
 0x56d   : > { %18666 = vmatmul.mubr.msk.bf16.gmra.mrb[48].mxu1 %vm1199_vm3, %v20264_v63 }
 0x56e   : > { %18669 = vmatprep.mubr.msk.bf16.mxu1 %vm1199_vm3, %v20267_v15  ;;  %v17068_v15 = vrot.slane %v12217_v35, 9 }
 0x570   : > { %18828 = vmatmul.mubr.bf16.gmra.mrb[124].mxu0 %v25735_v40  ;;  %v12432_v40 = vrot.slane %v12430_v1, 4 }
 0x571   : > { %18847 = vmatprep.mubr.bf16.mxu0 %v24481_v14  ;;  %v12409_v14 = vrot.slane %v12212_v31, 5  ;;  %v12225_v31 = vld [vmem:[#allocation2 + $0xbc] sm:$0x1] }
 0x572   : > { %v12434_v41 = vsel %vm22029_vm6, %v12432_v40, %v12433_v59  ;;  %v12440_v5 = vrot.slane %v12225_v31, 5 }
 0x573   : > { %v12411_v44 = vrot.slane %v12409_v14, 4 }
 0x575   : > { %18670 = vmatmul.mubr.msk.bf16.gmra.mrb[52].mxu1 %vm1199_vm3, %v20268_v33  ;;  %v13129_v33 = vsel %vm1248_vm2, %v24848_v24, 0  ;;  %v12424_v24 = vsel %vm22029_vm6, %v17068_v15, %v12423_v23 }
 0x576   : > { %18673 = vmatprep.mubr.msk.bf16.mxu1 %vm1199_vm3, %v20271_v56  ;;  %v17069_v56 = vrot.slane %v12220_v32, 9  ;;  %v12239_v32 = vld [vmem:[#allocation2 + $0x158] sm:$0xf] }
 0x578   : > { %18848 = vmatmul.mubr.bf16.vlgmr.msra.gmra.mrb[96].mxu0 %v24422_v51  ;;  %v20278_v51 = vld [vmem:[#allocation15 + $0x90] sm:$0xff]  }
 0x579   : > { %18851 = vmatprep.mubr.bf16.mxu0 %v24521_v47  ;;  %18880 = vmatpush3.bf16.msra.mxu0 %v20276_v6  ;;  %v17066_v47 = vrot.slane %v12211_v55, 9  ;;  %v12413_v6 = vsel %vm22029_vm6, %v12411_v44, %v12412_v3  ;;  %v17070_v55 = vrot.slane %v12223_v17, 9  ;;  %v12441_v3 = vsel %vm22029_vm6, %v12439_v7, %v12440_v5 }
 0x57a   : > { %18881 = vmatprep.subr.bf16.mxu0 %v20277_v16  ;;  %v17076_v5 = vrot.slane %v12241_v48, 9 }
 0x57b   : > { %v12410_v50 = vsel %vm22029_vm6, %v17066_v47, %v12409_v14  ;;  %v20282_v14 = vld [vmem:[#allocation15 + $0xb0] sm:$0xff]   ;;  %v20283_v47 = vld [vmem:[#allocation15 + $0xb8] sm:$0xff]   ;;  %v12438_v44 = vsel %vm22029_vm6, %v17070_v55, %v12437_v49 }
 0x57c   : > { %v17082_v18 = vcombine.low %v12410_v50, %v12413_v6  ;;  %v17086_v50 = vcombine.low %v12438_v44, %v12441_v3  ;;  %v12251_v44 = vld [vmem:[#allocation2 + $0x1d8] sm:$0xf] }
 0x57d   : > { %18674 = vmatmul.mubr.msk.bf16.gmra.mrb[56].mxu1 %vm1199_vm3, %v20272_v61  ;;  %18882 = vmatpush3.bf16.msra.mxu0 %v20277_v16  ;;  %v20281_v61 = vld [vmem:[#allocation15 + $0xa8] sm:$0xff]   ;;  %v12444_v16 = vrot.slane %v12227_v46, 5 }
 0x57e   : > { %18677 = vmatprep.mubr.msk.bf16.mxu1 %vm1199_vm3, %v20274_v20  ;;  %18883 = vmatprep.subr.bf16.mxu0 %v20278_v51  ;;  %v12427_v20 = vsel %vm22029_vm6, %v12425_v45, %v12426_v53  ;;  %v12235_v45 = vld [vmem:[#allocation2 + $0x134] sm:$0xe]  ;;  %v12237_v53 = vld [vmem:[#allocation2 + $0x13c] sm:$0x1] }
 0x57f   : > { %v17084_v4 = vcombine.low %v12424_v24, %v12427_v20  ;;  %v12446_v19 = vrot.slane %v12444_v16, 4  ;;  %v17074_v52 = vrot.slane %v12235_v45, 9 }
 0x580   : > { %18852 = vmatmul.mubr.bf16.gmra.mrb[100].mxu0 %v24523_v38  ;;  %v12420_v38 = vsel %vm22029_vm6, %v12418_v58, %v12419_v34  ;;  %v12229_v34 = vld [vmem:[#allocation2 + $0xf4] sm:$0xe] }
 0x581   : > { %18855 = vmatprep.mubr.bf16.mxu0 %v24539_v25  ;;  %18884 = vmatpush3.bf16.msra.mxu0 %v20278_v51  ;;  %v20280_v25 = vld [vmem:[#allocation15 + $0xa0] sm:$0xff]   ;;  %v17083_v63 = vcombine.low %v12417_v22, %v12420_v38  ;;  %v17072_v23 = vrot.slane %v12229_v34, 9  ;;  %v12454_v38 = vrot.slane %v12231_v60, 5  ;;  %v12247_v34 = vld [vmem:[#allocation2 + $0x1b4] sm:$0xe] }
 0x582   : > { %18885 = vmatprep.subr.bf16.mxu0 %v20279_v62  ;;  %v12249_v60 = vld [vmem:[#allocation2 + $0x1bc] sm:$0x1] }
 0x585   : > { %18678 = vmatmul.mubr.msk.bf16.gmra.mrb[60].mxu1 %vm1199_vm3, %v20275_v42  ;;  %18886 = vmatpush3.bf16.msra.mxu0 %v20279_v62  ;;  %v12230_v42 = vld [vmem:[#allocation2 + $0xf8] sm:$0xf] }
 0x586   : > { %18683 = vmatprep.mubr.msk.bf16.mxu1 %vm1199_vm3, %v17081_v12  ;;  %18887 = vmatprep.subr.bf16.mxu0 %v20280_v25  ;;  %v12233_v12 = vld [vmem:[#allocation2 + $0x118] sm:$0xf]  ;;  %v12451_v10 = vrot.slane %v12230_v42, 5 }
 0x587   : > { %v12458_v62 = vrot.slane %v12233_v12, 5 }
 0x588   : > { %18856 = vmatmul.mubr.bf16.gmra.mrb[104].mxu0 %v24533_v8  ;;  %v12431_v8 = vsel %vm22029_vm6, %v17069_v56, %v12430_v1  ;;  %v12453_v22 = vrot.slane %v12451_v10, 4  ;;  %v12461_v1 = vrot.slane %v12234_v2, 5  ;;  %v12452_v54 = vsel %vm22029_vm6, %v17072_v23, %v12451_v10  ;;  %v12238_v56 = vld [vmem:[#allocation2 + $0x154] sm:$0xe] }
 0x589   : > { %18859 = vmatprep.mubr.bf16.mxu0 %v24591_v9  ;;  %18888 = vmatpush3.bf16.msra.mxu0 %v20280_v25  ;;  %v12226_v9 = vld [vmem:[#allocation2 + $0xd4] sm:$0xe]  ;;  %v17085_v43 = vcombine.low %v12431_v8, %v12434_v41  ;;  %v12460_v28 = vrot.slane %v12458_v62, 4  ;;  %v12236_v25 = vld [vmem:[#allocation2 + $0x138] sm:$0xf]  ;;  %v17075_v24 = vrot.slane %v12238_v56, 9 }
 0x58a   : > { %18889 = vmatprep.subr.bf16.mxu0 %v20281_v61  ;;  %v17071_v51 = vrot.slane %v12226_v9, 9  ;;  %v12242_v8 = vld [vmem:[#allocation2 + $0x178] sm:$0xf] }
 0x58b   : > { %v12245_v41 = vld [vmem:[#allocation2 + $0x198] sm:$0xf] }
 0x58c   : > { %v12445_v58 = vsel %vm22029_vm6, %v17071_v51, %v12444_v16  ;;  %v12479_v16 = vrot.slane %v12242_v8, 5 }
 0x58d   : > { %18684 = vmatmul.mubr.msk.bf16.vlgmr.msra.gmra.mrb[32].mxu1 %vm1199_vm3, %v17082_v18  ;;  %18890 = vmatpush3.bf16.msra.mxu0 %v20281_v61  ;;  %v12455_v18 = vsel %vm22029_vm6, %v12453_v22, %v12454_v38  ;;  %v12468_v61 = vrot.slane %v12237_v53, 5  ;;  %v12496_v22 = vrot.slane %v12249_v60, 5  ;;  %v12256_v53 = vld [vmem:[#allocation2 + $0x254] sm:$0xe] }
 0x58e   : > { %18716 = vmatpush3.bf16.msra.mxu1 %v13129_v33  ;;  %18687 = vmatprep.mubr.msk.bf16.mxu1 %vm1199_vm3, %v17083_v63  ;;  %v12465_v63 = vrot.slane %v12236_v25, 5  ;;  %v12472_v33 = vrot.slane %v12239_v32, 5  ;;  %v17088_v40 = vcombine.low %v12452_v54, %v12455_v18  ;;  %v12481_v51 = vrot.slane %v12479_v16, 4  ;;  %v12257_v25 = vld [vmem:[#allocation2 + $0x258] sm:$0xf] }
 0x58f   : > { %19962 = vmatprep.subr.msk.bf16.mxu1 %vm1248_vm2, %v24898_v37  ;;  %18891 = vmatprep.subr.bf16.mxu0 %v20282_v14  ;;  %v12480_v3 = vsel %vm22029_vm6, %v17076_v5, %v12479_v16  ;;  %v12920_v45 = vrot.slane %v12257_v25, 5  ;;  %v12275_v25 = vld [vmem:[#allocation2 + $0x318] sm:$0xf] }
 0x590   : > { %18860 = vmatmul.mubr.bf16.gmra.mrb[108].mxu0 %v24584_v29  ;;  %v12448_v29 = vsel %vm22029_vm6, %v12446_v19, %v12447_v26  ;;  %v12467_v46 = vrot.slane %v12465_v63, 4  ;;  %v12474_v20 = vrot.slane %v12472_v33, 4  ;;  %v12466_v17 = vsel %vm22029_vm6, %v17074_v52, %v12465_v63 }
 0x591   : > { %18863 = vmatprep.mubr.bf16.mxu0 %v24640_v27  ;;  %18892 = vmatpush3.bf16.msra.mxu0 %v20282_v14  ;;  %v12232_v27 = vld [vmem:[#allocation2 + $0x114] sm:$0xe]  ;;  %v17087_v6 = vcombine.low %v12445_v58, %v12448_v29  ;;  %v12473_v9 = vsel %vm22029_vm6, %v17075_v24, %v12472_v33  ;;  %v12243_v14 = vld [vmem:[#allocation2 + $0x17c] sm:$0x1] }
 0x592   : > { %18893 = vmatprep.subr.bf16.mxu0 %v20283_v47  ;;  %v17073_v35 = vrot.slane %v12232_v27, 9  ;;  %v12469_v31 = vsel %vm22029_vm6, %v12467_v46, %v12468_v61  ;;  %v12482_v19 = vrot.slane %v12243_v14, 5  ;;  %v12250_v27 = vld [vmem:[#allocation2 + $0x1d4] sm:$0xe]  ;;  %v12258_v33 = vld [vmem:[#allocation2 + $0x25c] sm:$0x1] }
 0x593   : > { %v17090_v55 = vcombine.low %v12466_v17, %v12469_v31  ;;  %v17079_v38 = vrot.slane %v12250_v27, 9  ;;  %v17113_v46 = vrot.slane %v12256_v53, 9  ;;  %v12922_v61 = vrot.slane %v12920_v45, 4  ;;  %v12262_v14 = vld [vmem:[#allocation2 + $0x294] sm:$0xe] }
 0x594   : > { %v12459_v15 = vsel %vm22029_vm6, %v17073_v35, %v12458_v62  ;;  %v12483_v10 = vsel %vm22029_vm6, %v12481_v51, %v12482_v19  ;;  %v12500_v62 = vrot.slane %v12251_v44, 5  ;;  %v12923_v24 = vrot.slane %v12258_v33, 5  ;;  %v12266_v51 = vld [vmem:[#allocation2 + $0x2b8] sm:$0xf]  ;;  %v12270_v27 = vld [vmem:[#allocation2 + $0x2dc] sm:$0x1] }
 0x595   : > { %18688 = vmatmul.mubr.msk.bf16.gmra.mrb[36].mxu1 %vm1199_vm3, %v17084_v4  ;;  %18894 = vmatpush3.bf16.msra.mxu0 %v20283_v47  ;;  %v12486_v4 = vrot.slane %v12245_v41, 5  ;;  %v12248_v47 = vld [vmem:[#allocation2 + $0x1b8] sm:$0xf]  ;;  %v17092_v2 = vcombine.low %v12480_v3, %v12483_v10  ;;  %v12921_v31 = vsel %vm22029_vm6, %v17113_v46, %v12920_v45  ;;  %v17115_v19 = vrot.slane %v12262_v14, 9  ;;  %v12274_v33 = vld [vmem:[#allocation2 + $0x314] sm:$0xe] }
 0x596   : > { %18691 = vmatprep.mubr.msk.bf16.mxu1 %vm1199_vm3, %v17085_v43  ;;  %v12244_v43 = vld [vmem:[#allocation2 + $0x194] sm:$0xe]  ;;  %v12493_v58 = vrot.slane %v12248_v47, 5  ;;  %v12502_v35 = vrot.slane %v12500_v62, 4  ;;  %v12501_v63 = vsel %vm22029_vm6, %v17079_v38, %v12500_v62  ;;  %v12924_v16 = vsel %vm22029_vm6, %v12922_v61, %v12923_v24  ;;  %v24983_v44 = vld [vmem:[#allocation15 + $0xc0] sm:$0xff]  }
 0x597   : > { %v17077_v26 = vrot.slane %v12244_v43, 9  ;;  %v12488_v42 = vrot.slane %v12486_v4, 4  ;;  %v12941_v47 = vrot.slane %v12266_v51, 5  ;;  %18927 = vmatprep.subr.bf16.mxu0 %v24983_v44  ;;  %v12268_v62 = vld [vmem:[#allocation2 + $0x2d4] sm:$0xe]  ;;  %v13647_v38 = vsel %vm1248_vm2, %v24898_v37, 0 }
 0x598   : > { %18864 = vmatmul.mubr.bf16.gmra.mrb[112].mxu0 %v24632_v0  ;;  %v12462_v0 = vsel %vm22029_vm6, %v12460_v28, %v12461_v1  ;;  %v12495_v23 = vrot.slane %v12493_v58, 4  ;;  %v12254_v1 = vld [vmem:[#allocation2 + $0x1f8] sm:$0xf]  ;;  %v12273_v37 = vld [vmem:[#allocation2 + $0x2fc] sm:$0x1] }
 0x599   : > { %18867 = vmatprep.mubr.bf16.mxu0 %v24675_v57  ;;  %v12240_v57 = vld [vmem:[#allocation2 + $0x15c] sm:$0x1]  ;;  %v17089_v59 = vcombine.low %v12459_v15, %v12462_v0  ;;  %v12487_v29 = vsel %vm22029_vm6, %v17077_v26, %v12486_v4  ;;  %v12507_v18 = vrot.slane %v12254_v1, 5  ;;  %v12253_v0 = vld [vmem:[#allocation2 + $0x1f4] sm:$0xe]  ;;  %v12951_v1 = vrot.slane %v12270_v27, 5 }
 0x59a   : > { %v12475_v49 = vrot.slane %v12240_v57, 5  ;;  %v12497_v54 = vsel %vm22029_vm6, %v12495_v23, %v12496_v22  ;;  %v12264_v4 = vld [vmem:[#allocation2 + $0x29c] sm:$0x1]  ;;  %v12272_v22 = vld [vmem:[#allocation2 + $0x2f8] sm:$0xf] }
 0x59b   : > { %v12277_v51 = vld [vmem:[#allocation2 + $0x334] sm:$0xe] }
 0x59d   : > { %18692 = vmatmul.mubr.msk.bf16.gmra.mrb[40].mxu1 %vm1199_vm3, %v17086_v50 }
 0x59e   : > { %18695 = vmatprep.mubr.msk.bf16.mxu1 %vm1199_vm3, %v17087_v6  ;;  %v17078_v6 = vrot.slane %v12247_v34, 9 }
 0x5a0   : > { %18868 = vmatmul.mubr.bf16.gmra.mrb[116].mxu0 %v24668_v21  ;;  %v12476_v21 = vsel %vm22029_vm6, %v12474_v20, %v12475_v49  ;;  %v12494_v32 = vsel %vm22029_vm6, %v17078_v6, %v12493_v58  ;;  %v12260_v20 = vld [vmem:[#allocation2 + $0x278] sm:$0xf]  ;;  %v12265_v58 = vld [vmem:[#allocation2 + $0x2b4] sm:$0xe] }
 0x5a1   : > { %18871 = vmatprep.mubr.bf16.mxu0 %v24703_v13  ;;  %v12246_v13 = vld [vmem:[#allocation2 + $0x19c] sm:$0x1]  ;;  %v17091_v7 = vcombine.low %v12473_v9, %v12476_v21  ;;  %v17094_v56 = vcombine.low %v12494_v32, %v12497_v54  ;;  %v12263_v49 = vld [vmem:[#allocation2 + $0x298] sm:$0xf]  ;;  %v12927_v17 = vrot.slane %v12260_v20, 5 }
 0x5a2   : > { %v12489_v12 = vrot.slane %v12246_v13, 5  ;;  %v12259_v9 = vld [vmem:[#allocation2 + $0x274] sm:$0xe]  ;;  %v12261_v21 = vld [vmem:[#allocation2 + $0x27c] sm:$0x1]  ;;  %v12934_v48 = vrot.slane %v12263_v49, 5  ;;  %v17129_v13 = vcombine.low %v12921_v31, %v12924_v16 }
 0x5a3   : > { %v12930_v5 = vrot.slane %v12261_v21, 5  ;;  %v24998_v32 = vld [vmem:[#allocation16 + $0x2] ss:$0 sm:$0xff]  ;;  %v12958_v49 = vrot.slane %v12273_v37, 5  ;;  %v17119_v16 = vrot.slane %v12274_v33, 9 }
 0x5a4   : > { %v12936_v26 = vrot.slane %v12934_v48, 4 }
 0x5a5   : > { %18696 = vmatmul.mubr.msk.bf16.gmra.mrb[44].mxu1 %vm1199_vm3, %v17088_v40  ;;  %v17080_v40 = vrot.slane %v12253_v0, 9 }
 0x5a6   : > { %18699 = vmatprep.mubr.msk.bf16.mxu1 %vm1199_vm3, %v17089_v59  ;;  %v12509_v59 = vrot.slane %v12507_v18, 4 }
 0x5a7   : > { %v12508_v8 = vsel %vm22029_vm6, %v17080_v40, %v12507_v18 }
 0x5a8   : > { %18872 = vmatmul.mubr.bf16.gmra.mrb[120].mxu0 %v24698_v39  ;;  %v12490_v39 = vsel %vm22029_vm6, %v12488_v42, %v12489_v12  ;;  %v12937_v42 = vrot.slane %v12264_v4, 5  ;;  %v12269_v12 = vld [vmem:[#allocation2 + $0x2d8] sm:$0xf] }
 0x5a9   : > { %18875 = vmatprep.mubr.bf16.mxu0 %v24721_v30  ;;  %v12252_v30 = vld [vmem:[#allocation2 + $0x1dc] sm:$0x1]  ;;  %v17093_v50 = vcombine.low %v12487_v29, %v12490_v39  ;;  %v12935_v39 = vsel %vm22029_vm6, %v17115_v19, %v12934_v48  ;;  %v12948_v60 = vrot.slane %v12269_v12, 5 }
 0x5aa   : > { %v12503_v28 = vrot.slane %v12252_v30, 5  ;;  %v12267_v29 = vld [vmem:[#allocation2 + $0x2bc] sm:$0x1]  ;;  %v12938_v34 = vsel %vm22029_vm6, %v12936_v26, %v12937_v42 }
 0x5ab   : > { %v12944_v6 = vrot.slane %v12267_v29, 5  ;;  %v17131_v23 = vcombine.low %v12935_v39, %v12938_v34  ;;  %v12280_v39 = vld [vmem:[#allocation2 + $0x354] sm:$0xe] }
 0x5ac   : > { %v12504_v15 = vsel %vm22029_vm6, %v12502_v35, %v12503_v28  ;;  %v17117_v35 = vrot.slane %v12268_v62, 9  ;;  %v12950_v28 = vrot.slane %v12948_v60, 4 }
 0x5ad   : > { %18700 = vmatmul.mubr.msk.bf16.gmra.mrb[48].mxu1 %vm1199_vm3, %v17090_v55  ;;  %v17095_v57 = vcombine.low %v12501_v63, %v12504_v15  ;;  %v17114_v55 = vrot.slane %v12259_v9, 9  ;;  %v12955_v63 = vrot.slane %v12272_v22, 5  ;;  %v12271_v15 = vld [vmem:[#allocation2 + $0x2f4] sm:$0xe]  ;;  %v12278_v9 = vld [vmem:[#allocation2 + $0x338] sm:$0xf] }
 0x5ae   : > { %18703 = vmatprep.mubr.msk.bf16.mxu1 %vm1199_vm3, %v17091_v7  ;;  %v12929_v7 = vrot.slane %v12927_v17, 4  ;;  %v12949_v45 = vsel %vm22029_vm6, %v17117_v35, %v12948_v60  ;;  %v12952_v53 = vsel %vm22029_vm6, %v12950_v28, %v12951_v1  ;;  %v17118_v24 = vrot.slane %v12271_v15, 9  ;;  %v20285_v15 = vld [vmem:[#allocation15 + $0xc8] sm:$0xff]  }
 0x5af   : > { %v12928_v3 = vsel %vm22029_vm6, %v17114_v55, %v12927_v17  ;;  %v12957_v20 = vrot.slane %v12955_v63, 4  ;;  %v17133_v31 = vcombine.low %v12949_v45, %v12952_v53  ;;  %v12969_v19 = vrot.slane %v12278_v9, 5  ;;  %v12286_v9 = vld [vmem:[#allocation2 + $0x394] sm:$0xe] }
 0x5b0   : > { %18876 = vmatmul.mubr.bf16.gmra.mrb[124].mxu0 %v24718_v36  ;;  %v12255_v36 = vld [vmem:[#allocation2 + $0x1fc] sm:$0x1]  ;;  %v12931_v10 = vsel %vm22029_vm6, %v12929_v7, %v12930_v5  ;;  %v12956_v7 = vsel %vm22029_vm6, %v17118_v24, %v12955_v63  ;;  %v12284_v63 = vld [vmem:[#allocation2 + $0x378] sm:$0xf] }
 0x5b1   : > { %v12510_v52 = vrot.slane %v12255_v36, 5  ;;  %v17130_v30 = vcombine.low %v12928_v3, %v12931_v10  ;;  %v25005_v36 = vld [vmem:[#allocation18 + $0x2] ss:$0 sm:$0xff]  ;;  %v12959_v5 = vsel %vm22029_vm6, %v12957_v20, %v12958_v49  ;;  %v12285_v49 = vld [vmem:[#allocation2 + $0x37c] sm:$0x1] }
 0x5b3   : > { %v12511_v41 = vsel %vm22029_vm6, %v12509_v59, %v12510_v52  ;;  %v12276_v52 = vld [vmem:[#allocation2 + $0x31c] sm:$0x1] }
 0x5b4   : > { %v17096_v43 = vcombine.low %v12508_v8, %v12511_v41  ;;  %v12965_v4 = vrot.slane %v12276_v52, 5  ;;  %v12283_v52 = vld [vmem:[#allocation2 + $0x374] sm:$0xe] }
 0x5b5   : > { %18704 = vmatmul.mubr.msk.bf16.gmra.mrb[52].mxu1 %vm1199_vm3, %v17092_v2  ;;  %v17116_v2 = vrot.slane %v12265_v58, 9 }
 0x5b6   : > { %18707 = vmatprep.mubr.msk.bf16.mxu1 %vm1199_vm3, %v17093_v50  ;;  %v12943_v50 = vrot.slane %v12941_v47, 4 }
 0x5b7   : > { %v12942_v54 = vsel %vm22029_vm6, %v17116_v2, %v12941_v47  ;;  %v12279_v47 = vld [vmem:[#allocation2 + $0x33c] sm:$0x1]  ;;  %v17120_v2 = vrot.slane %v12277_v51, 9 }
 0x5b8   : > { %v12945_v18 = vsel %vm22029_vm6, %v12943_v50, %v12944_v6  ;;  %v12282_v50 = vld [vmem:[#allocation2 + $0x35c] sm:$0x1]  ;;  %v12972_v35 = vrot.slane %v12279_v47, 5 }
 0x5b9   : > { %v17132_v59 = vcombine.low %v12942_v54, %v12945_v18  ;;  %v17121_v18 = vrot.slane %v12280_v39, 9  ;;  %v12979_v53 = vrot.slane %v12282_v50, 5 }
 0x5bd   : > { %18708 = vmatmul.mubr.msk.bf16.gmra.mrb[56].mxu1 %vm1199_vm3, %v17094_v56  ;;  %v12962_v56 = vrot.slane %v12275_v25, 5 }
 0x5be   : > { %18711 = vmatprep.mubr.msk.bf16.mxu1 %vm1199_vm3, %v17095_v57 }
 0x5bf   : > { %v12964_v14 = vrot.slane %v12962_v56, 4  ;;  %v12963_v12 = vsel %vm22029_vm6, %v17119_v16, %v12962_v56  ;;  %v12287_v56 = vld [vmem:[#allocation2 + $0x398] sm:$0xf] }
 0x5c1   : > { %v12966_v29 = vsel %vm22029_vm6, %v12964_v14, %v12965_v4 }
 0x5c2   : > { %v17135_v54 = vcombine.low %v12963_v12, %v12966_v29 }
 0x5c5   : > { %18712 = vmatmul.mubr.msk.bf16.gmra.mrb[60].mxu1 %vm1199_vm3, %v17096_v43 }
 0x5c6   : > { %18717 = vmatprep.mubr.msk.bf16.mxu1 %vm1199_vm3, %v17129_v13  ;;  %v12281_v13 = vld [vmem:[#allocation2 + $0x358] sm:$0xf] }
 0x5c7   : > { %v12976_v34 = vrot.slane %v12281_v13, 5  ;;  %v12288_v13 = vld [vmem:[#allocation2 + $0x39c] sm:$0x1] }
 0x5c9   : > { %v12978_v45 = vrot.slane %v12976_v34, 4  ;;  %v12977_v20 = vsel %vm22029_vm6, %v17121_v18, %v12976_v34 }
 0x5cb   : > { %v18447_v0 = vpop.f32.mrb[64].mxu0  ;;  %v12980_v16 = vsel %vm22029_vm6, %v12978_v45, %v12979_v53 }
 0x5cc   : > { %v14871_v57 = vmul.f32 %v18447_v0, %v24998_v32  ;;  %v9085_v40 = vpop.f32.mrb[65].mxu0  ;;  %v17137_v47 = vcombine.low %v12977_v20, %v12980_v16 }
 0x5cd   : > { %18718 = vmatmul.mubr.msk.bf16.vlgmr.msra.gmra.mrb[32].mxu1 %vm1199_vm3, %v17130_v30  ;;  %v14869_v46 = vmul.f32 %v24998_v32, %v9085_v40  ;;  %v18448_v61 = vpop.f32.mrb[66].mxu0  ;;  %v17134_v30 = vcombine.low %v12956_v7, %v12959_v5  ;;  %v12970_v40 = vsel %vm22029_vm6, %v17120_v2, %v12969_v19 }
 0x5ce   : > { %18750 = vmatpush3.bf16.msra.mxu1 %v13647_v38  ;;  %18721 = vmatprep.mubr.msk.bf16.mxu1 %vm1199_vm3, %v17131_v23  ;;  %v14908_v8 = vadd.f32 %v25005_v36, %v14871_v57  ;;  %v14872_v41 = vmul.f32 %v18448_v61, %v24998_v32  ;;  %v9088_v17 = vpop.f32.mrb[67].mxu0  ;;  %v12971_v38 = vrot.slane %v12969_v19, 4  ;;  %v12986_v19 = vrot.slane %v12285_v49, 5 }
 0x5cf   : > { %v14906_v21 = vadd.f32 %v25005_v36, %v14869_v46  ;;  %v14870_v48 = vmul.f32 %v24998_v32, %v9088_v17  ;;  %v12983_v46 = vrot.slane %v12284_v63, 5 }
 0x5d0   : > { %v14909_v43 = vadd.f32 %v25005_v36, %v14872_v41  ;;  %v14940_v26 = vmax.f32 %v14908_v8, 0.0  ;;  %v20286_v8 = vld [vmem:[#allocation15 + $0xd0] sm:$0xff]  }
 0x5d1   : > { %v14907_v55 = vadd.f32 %v25005_v36, %v14870_v48  ;;  %v14938_v3 = vmax.f32 %v14906_v21, 0.0  ;;  %v12990_v21 = vrot.slane %v12287_v56, 5  ;;  %v12985_v51 = vrot.slane %v12983_v46, 4 }
 0x5d2   : > { %v14941_v42 = vmax.f32 %v14909_v43, 0.0  ;;  %v17122_v43 = vrot.slane %v12283_v52, 9 }
 0x5d3   : > { %v14939_v10 = vmax.f32 %v14907_v55, 0.0  ;;  %v18451_v58 = vpop.f32.mrb[68].mxu0  ;;  %v12992_v34 = vrot.slane %v12990_v21, 4  ;;  %v12987_v50 = vsel %vm22029_vm6, %v12985_v51, %v12986_v19 }
 0x5d4   : > { %v14971_v60 = vpack.c.bf16 %v14941_v42, %v14940_v26  ;;  %v14875_v62 = vmul.f32 %v18451_v58, %v24998_v32  ;;  %v9101_v27 = vpop.f32.mrb[69].mxu0  ;;  %v20287_v58 = vld [vmem:[#allocation15 + $0xd8] sm:$0xff]   ;;  %v12984_v2 = vsel %vm22029_vm6, %v17122_v43, %v12983_v46 }
 0x5d5   : > { %18722 = vmatmul.mubr.msk.bf16.gmra.mrb[36].mxu1 %vm1199_vm3, %v17132_v59  ;;  %v14873_v6 = vmul.f32 %v24998_v32, %v9101_v27  ;;  %v18452_v23 = vpop.f32.mrb[70].mxu0  ;;  %v14970_v22 = vpack.c.bf16 %v14939_v10, %v14938_v3  ;;  %v12973_v59 = vsel %vm22029_vm6, %v12971_v38, %v12972_v35  ;;  %v17123_v3 = vrot.slane %v12286_v9, 9  ;;  %v25052_v10 = vld [vmem:[#allocation2 + $0x3b8] sm:$0xf] }
 0x5d6   : > { %18725 = vmatprep.mubr.msk.bf16.mxu1 %vm1199_vm3, %v17133_v31  ;;  %v14912_v28 = vadd.f32 %v25005_v36, %v14875_v62  ;;  %v14876_v1 = vmul.f32 %v18452_v23, %v24998_v32  ;;  %v9104_v25 = vpop.f32.mrb[71].mxu0  ;;  %v17136_v14 = vcombine.low %v12970_v40, %v12973_v59  ;;  %v12293_v27 = vld [vmem:[#allocation2 + $0x3d8] sm:$0xf]  ;;  %v12997_v23 = vrot.slane %v25052_v10, 5 }
 0x5d7   : > { %v14910_v37 = vadd.f32 %v25005_v36, %v14873_v6  ;;  %v14874_v0 = vmul.f32 %v24998_v32, %v9104_v25  ;;  %18895 = vmatprep.mubr.bf16.mxu0 %v14970_v22  ;;  %v12289_v6 = vld [vmem:[#allocation2 + $0x3b4] sm:$0xe]  ;;  %v12991_v35 = vsel %vm22029_vm6, %v17123_v3, %v12990_v21  ;;  %v17138_v53 = vcombine.low %v12984_v2, %v12987_v50 }
 0x5d8   : > { %v14913_v33 = vadd.f32 %v25005_v36, %v14876_v1  ;;  %18896 = vmatmul.mubr.bf16.vlgmr.msra.gmra.mrb[96].mxu0 %v14971_v60  ;;  %v14944_v61 = vmax.f32 %v14912_v28, 0.0  ;;  %v12993_v60 = vrot.slane %v12288_v13, 5  ;;  %v12291_v28 = vld [vmem:[#allocation2 + $0x3bc] sm:$0x1]  ;;  %v17124_v56 = vrot.slane %v12289_v6, 9 }
 0x5d9   : > { %v14911_v57 = vadd.f32 %v25005_v36, %v14874_v0  ;;  %18928 = vmatpush3.bf16.msra.mxu0 %v24983_v44  ;;  %v14942_v41 = vmax.f32 %v14910_v37, 0.0  ;;  %v20288_v1 = vld [vmem:[#allocation15 + $0xe0] sm:$0xff]   ;;  %v13004_v37 = vrot.slane %v12293_v27, 5  ;;  %v12999_v46 = vrot.slane %v12997_v23, 4 }
 0x5da   : > { %v14945_v24 = vmax.f32 %v14913_v33, 0.0  ;;  %18929 = vmatprep.subr.bf16.mxu0 %v20285_v15  ;;  %v12994_v63 = vsel %vm22029_vm6, %v12992_v34, %v12993_v60  ;;  %v12998_v43 = vsel %vm22029_vm6, %v17124_v56, %v12997_v23 }
 0x5db   : > { %v14943_v17 = vmax.f32 %v14911_v57, 0.0  ;;  %v18455_v31 = vpop.f32.mrb[72].mxu0  ;;  %v12294_v57 = vld [vmem:[#allocation2 + $0x3dc] sm:$0x1]  ;;  %v13006_v21 = vrot.slane %v13004_v37, 4 }
 0x5dc   : > { %v14879_v44 = vmul.f32 %v18455_v31, %v24998_v32  ;;  %v9117_v48 = vpop.f32.mrb[73].mxu0  ;;  %v14973_v4 = vpack.c.bf16 %v14945_v24, %v14944_v61  ;;  %v13000_v61 = vrot.slane %v12291_v28, 5  ;;  %v20289_v31 = vld [vmem:[#allocation15 + $0xe8] sm:$0xff]  }
 0x5dd   : > { %18726 = vmatmul.mubr.msk.bf16.gmra.mrb[40].mxu1 %vm1199_vm3, %v17134_v30  ;;  %v14877_v55 = vmul.f32 %v24998_v32, %v9117_v48  ;;  %v18456_v7 = vpop.f32.mrb[74].mxu0  ;;  %v14972_v5 = vpack.c.bf16 %v14943_v17, %v14942_v41  ;;  %18930 = vmatpush3.bf16.msra.mxu0 %v20285_v15  ;;  %v12292_v15 = vld [vmem:[#allocation2 + $0x3d4] sm:$0xe]  ;;  %v12296_v17 = vld [vmem:[#allocation2 + $0x3f8] sm:$0xf] }
 0x5de   : > { %18729 = vmatprep.mubr.msk.bf16.mxu1 %vm1199_vm3, %v17135_v54  ;;  %v14916_v26 = vadd.f32 %v25005_v36, %v14879_v44  ;;  %v14880_v42 = vmul.f32 %v18456_v7, %v24998_v32  ;;  %v9120_v12 = vpop.f32.mrb[75].mxu0  ;;  %18931 = vmatprep.subr.bf16.mxu0 %v20286_v8  ;;  %v17125_v41 = vrot.slane %v12292_v15, 9  ;;  %v13007_v44 = vrot.slane %v12294_v57, 5  ;;  %v12301_v57 = vld [vmem:[#allocation2 + $0x434] sm:$0xe] }
 0x5df   : > { %v14914_v29 = vadd.f32 %v25005_v36, %v14877_v55  ;;  %v14878_v39 = vmul.f32 %v24998_v32, %v9120_v12  ;;  %18899 = vmatprep.mubr.bf16.mxu0 %v14972_v5  ;;  %v13001_v13 = vsel %vm22029_vm6, %v12999_v46, %v13000_v61  ;;  %v12295_v55 = vld [vmem:[#allocation2 + $0x3f4] sm:$0xe]  ;;  %v13011_v7 = vrot.slane %v12296_v17, 5  ;;  %v12303_v61 = vld [vmem:[#allocation2 + $0x43c] sm:$0x1] }
 0x5e0   : > { %v14917_v62 = vadd.f32 %v25005_v36, %v14880_v42  ;;  %18900 = vmatmul.mubr.bf16.gmra.mrb[100].mxu0 %v14973_v4  ;;  %v14948_v22 = vmax.f32 %v14916_v26, 0.0  ;;  %v13005_v19 = vsel %vm22029_vm6, %v17125_v41, %v13004_v37  ;;  %v12297_v26 = vld [vmem:[#allocation2 + $0x3fc] sm:$0x1]  ;;  %v20290_v42 = vld [vmem:[#allocation15 + $0xf0] sm:$0xff]   ;;  %v13008_v10 = vsel %vm22029_vm6, %v13006_v21, %v13007_v44  ;;  %v12304_v41 = vld [vmem:[#allocation2 + $0x494] sm:$0xe] }
 0x5e1   : > { %v14915_v30 = vadd.f32 %v25005_v36, %v14878_v39  ;;  %18932 = vmatpush3.bf16.msra.mxu0 %v20286_v8  ;;  %v14946_v25 = vmax.f32 %v14914_v29, 0.0  ;;  %v17139_v8 = vcombine.low %v12991_v35, %v12994_v63  ;;  %v17140_v60 = vcombine.low %v12998_v43, %v13001_v13 }
 0x5e2   : > { %v14949_v38 = vmax.f32 %v14917_v62, 0.0  ;;  %18933 = vmatprep.subr.bf16.mxu0 %v20287_v58  ;;  %v17126_v27 = vrot.slane %v12295_v55, 9  ;;  %v13013_v23 = vrot.slane %v13011_v7, 4  ;;  %v17128_v44 = vrot.slane %v12301_v57, 9 }
 0x5e3   : > { %v14947_v54 = vmax.f32 %v14915_v30, 0.0  ;;  %v18459_v18 = vpop.f32.mrb[76].mxu0  ;;  %v12300_v30 = vld [vmem:[#allocation2 + $0x41c] sm:$0x1]  ;;  %v13028_v55 = vrot.slane %v12303_v61, 5 }
 0x5e4   : > { %v14883_v0 = vmul.f32 %v18459_v18, %v24998_v32  ;;  %v9133_v45 = vpop.f32.mrb[77].mxu0  ;;  %v14975_v33 = vpack.c.bf16 %v14949_v38, %v14948_v22  ;;  %v13014_v22 = vrot.slane %v12297_v26, 5  ;;  %v13021_v37 = vrot.slane %v12300_v30, 5  ;;  %v12314_v61 = vld [vmem:[#allocation2 + $0x4f8] sm:$0xf] }
 0x5e5   : > { %18730 = vmatmul.mubr.msk.bf16.gmra.mrb[44].mxu1 %vm1199_vm3, %v17136_v14  ;;  %v14881_v40 = vmul.f32 %v24998_v32, %v9133_v45  ;;  %v18460_v59 = vpop.f32.mrb[78].mxu0  ;;  %v14974_v52 = vpack.c.bf16 %v14947_v54, %v14946_v25  ;;  %18934 = vmatpush3.bf16.msra.mxu0 %v20287_v58  ;;  %v12299_v14 = vld [vmem:[#allocation2 + $0x418] sm:$0xf]  ;;  %v12298_v58 = vld [vmem:[#allocation2 + $0x414] sm:$0xe]  ;;  %v17161_v26 = vrot.slane %v12304_v41, 9 }
 0x5e6   : > { %18733 = vmatprep.mubr.msk.bf16.mxu1 %vm1199_vm3, %v17137_v47  ;;  %v14920_v24 = vadd.f32 %v25005_v36, %v14883_v0  ;;  %v14884_v20 = vmul.f32 %v18460_v59, %v24998_v32  ;;  %v9136_v49 = vpop.f32.mrb[79].mxu0  ;;  %18935 = vmatprep.subr.bf16.mxu0 %v20288_v1  ;;  %v13018_v29 = vrot.slane %v12299_v14, 5  ;;  %v17127_v25 = vrot.slane %v12298_v58, 9  ;;  %v12302_v54 = vld [vmem:[#allocation2 + $0x438] sm:$0xf] }
 0x5e7   : > { %v14918_v16 = vadd.f32 %v25005_v36, %v14881_v40  ;;  %v14882_v9 = vmul.f32 %v24998_v32, %v9136_v49  ;;  %18903 = vmatprep.mubr.bf16.mxu0 %v14974_v52  ;;  %v12305_v45 = vld [vmem:[#allocation2 + $0x498] sm:$0xf]  ;;  %v13015_v56 = vsel %vm22029_vm6, %v13013_v23, %v13014_v22  ;;  %v13025_v40 = vrot.slane %v12302_v54, 5 }
 0x5e8   : > { %v14921_v48 = vadd.f32 %v25005_v36, %v14884_v20  ;;  %18904 = vmatmul.mubr.bf16.gmra.mrb[104].mxu0 %v14975_v33  ;;  %v14952_v5 = vmax.f32 %v14920_v24, 0.0  ;;  %v13020_v15 = vrot.slane %v13018_v29, 4  ;;  %v13012_v33 = vsel %vm22029_vm6, %v17126_v27, %v13011_v7 }
 0x5e9   : > { %v14919_v4 = vadd.f32 %v25005_v36, %v14882_v9  ;;  %18936 = vmatpush3.bf16.msra.mxu0 %v20288_v1  ;;  %v14950_v12 = vmax.f32 %v14918_v16, 0.0  ;;  %v17141_v1 = vcombine.low %v13005_v19, %v13008_v10  ;;  %v13019_v46 = vsel %vm22029_vm6, %v17127_v25, %v13018_v29  ;;  %v12311_v29 = vld [vmem:[#allocation2 + $0x4d8] sm:$0xf] }
 0x5ea   : > { %v14953_v51 = vmax.f32 %v14921_v48, 0.0  ;;  %18937 = vmatprep.subr.bf16.mxu0 %v20289_v31  ;;  %v13438_v17 = vrot.slane %v12305_v45, 5  ;;  %v17142_v9 = vcombine.low %v13012_v33, %v13015_v56  ;;  %v12306_v48 = vld [vmem:[#allocation2 + $0x49c] sm:$0x1]  ;;  %v13027_v13 = vrot.slane %v13025_v40, 4 }
 0x5eb   : > { %v14951_v47 = vmax.f32 %v14919_v4, 0.0  ;;  %v18463_v3 = vpop.f32.mrb[80].mxu0  ;;  %v13441_v10 = vrot.slane %v12306_v48, 5 }
 0x5ec   : > { %v14887_v39 = vmul.f32 %v18463_v3, %v24998_v32  ;;  %v9149_v34 = vpop.f32.mrb[81].mxu0  ;;  %v14977_v62 = vpack.c.bf16 %v14953_v51, %v14952_v5  ;;  %v13440_v3 = vrot.slane %v13438_v17, 4 }
 0x5ed   : > { %18734 = vmatmul.mubr.msk.bf16.gmra.mrb[48].mxu1 %vm1199_vm3, %v17138_v53  ;;  %v14885_v2 = vmul.f32 %v24998_v32, %v9149_v34  ;;  %v18464_v50 = vpop.f32.mrb[82].mxu0  ;;  %v14976_v6 = vpack.c.bf16 %v14951_v47, %v14950_v12  ;;  %18938 = vmatpush3.bf16.msra.mxu0 %v20289_v31  ;;  %v13026_v34 = vsel %vm22029_vm6, %v17128_v44, %v13025_v40  ;;  %v13459_v44 = vrot.slane %v12314_v61, 5 }
 0x5ee   : > { %18737 = vmatprep.mubr.msk.bf16.mxu1 %vm1199_vm3, %v17139_v8  ;;  %v14924_v38 = vadd.f32 %v25005_v36, %v14887_v39  ;;  %v14888_v35 = vmul.f32 %v18464_v50, %v24998_v32  ;;  %v9152_v28 = vpop.f32.mrb[83].mxu0  ;;  %18939 = vmatprep.subr.bf16.mxu0 %v20290_v42  ;;  %v13022_v8 = vsel %vm22029_vm6, %v13020_v15, %v13021_v37  ;;  %v12312_v37 = vld [vmem:[#allocation2 + $0x4dc] sm:$0x1] }
 0x5ef   : > { %v14922_v18 = vadd.f32 %v25005_v36, %v14885_v2  ;;  %v14886_v63 = vmul.f32 %v24998_v32, %v9152_v28  ;;  %18907 = vmatprep.mubr.bf16.mxu0 %v14976_v6  ;;  %v17143_v19 = vcombine.low %v13019_v46, %v13022_v8  ;;  %v13439_v50 = vsel %vm22029_vm6, %v17161_v26, %v13438_v17  ;;  %v12309_v6 = vld [vmem:[#allocation2 + $0x4bc] sm:$0x1]  ;;  %v12310_v28 = vld [vmem:[#allocation2 + $0x4d4] sm:$0xe]  ;;  %v12317_v17 = vld [vmem:[#allocation2 + $0x518] sm:$0xf] }
 0x5f0   : > { %v14925_v0 = vadd.f32 %v25005_v36, %v14888_v35  ;;  %18908 = vmatmul.mubr.bf16.gmra.mrb[108].mxu0 %v14977_v62  ;;  %v14956_v59 = vmax.f32 %v14924_v38, 0.0  ;;  %v12307_v62 = vld [vmem:[#allocation2 + $0x4b4] sm:$0xe]  ;;  %v13442_v35 = vsel %vm22029_vm6, %v13440_v3, %v13441_v10  ;;  %v13448_v56 = vrot.slane %v12309_v6, 5  ;;  %v12318_v10 = vld [vmem:[#allocation2 + $0x51c] sm:$0x1] }
 0x5f1   : > { %v14923_v53 = vadd.f32 %v25005_v36, %v14886_v63  ;;  %18940 = vmatpush3.bf16.msra.mxu0 %v20290_v42  ;;  %v14954_v24 = vmax.f32 %v14922_v18, 0.0  ;;  %v12308_v42 = vld [vmem:[#allocation2 + $0x4b8] sm:$0xf]  ;;  %v17162_v15 = vrot.slane %v12307_v62, 9  ;;  %v17163_v46 = vrot.slane %v12310_v28, 9 }
 0x5f2   : > { %v14957_v52 = vmax.f32 %v14925_v0, 0.0  ;;  %v13445_v27 = vrot.slane %v12308_v42, 5  ;;  %v13455_v8 = vrot.slane %v12312_v37, 5  ;;  %v12319_v37 = vld [vmem:[#allocation2 + $0x534] sm:$0xe] }
 0x5f3   : > { %v14955_v20 = vmax.f32 %v14923_v53, 0.0  ;;  %v18467_v49 = vpop.f32.mrb[84].mxu0 }
 0x5f4   : > { %v14891_v31 = vmul.f32 %v18467_v49, %v24998_v32  ;;  %v9165_v16 = vpop.f32.mrb[85].mxu0  ;;  %v14979_v21 = vpack.c.bf16 %v14957_v52, %v14956_v59  ;;  %v13447_v33 = vrot.slane %v13445_v27, 4  ;;  %v17177_v52 = vcombine.low %v13439_v50, %v13442_v35  ;;  %v12320_v35 = vld [vmem:[#allocation2 + $0x538] sm:$0xf] }
 0x5f5   : > { %18738 = vmatmul.mubr.msk.bf16.gmra.mrb[52].mxu1 %vm1199_vm3, %v17140_v60  ;;  %v14889_v14 = vmul.f32 %v24998_v32, %v9165_v16  ;;  %v18468_v4 = vpop.f32.mrb[86].mxu0  ;;  %v14978_v43 = vpack.c.bf16 %v14955_v20, %v14954_v24  ;;  %v13029_v60 = vsel %vm22029_vm6, %v13027_v13, %v13028_v55  ;;  %v13446_v16 = vsel %vm22029_vm6, %v17162_v15, %v13445_v27 }
 0x5f6   : > { %18741 = vmatprep.mubr.msk.bf16.mxu1 %vm1199_vm3, %v17141_v1  ;;  %v14928_v7 = vadd.f32 %v25005_v36, %v14891_v31  ;;  %v14892_v5 = vmul.f32 %v18468_v4, %v24998_v32  ;;  %v9168_v51 = vpop.f32.mrb[87].mxu0  ;;  %v13452_v1 = vrot.slane %v12311_v29, 5  ;;  %v17144_v18 = vcombine.low %v13026_v34, %v13029_v60 }
 0x5f7   : > { %v14926_v12 = vadd.f32 %v25005_v36, %v14889_v14  ;;  %v14890_v47 = vmul.f32 %v24998_v32, %v9168_v51  ;;  %18911 = vmatprep.mubr.bf16.mxu0 %v14978_v43  ;;  %v12315_v43 = vld [vmem:[#allocation2 + $0x4fc] sm:$0x1]  ;;  %v12316_v51 = vld [vmem:[#allocation2 + $0x514] sm:$0xe]  ;;  %v13461_v34 = vrot.slane %v13459_v44, 4 }
 0x5f8   : > { %v14929_v58 = vadd.f32 %v25005_v36, %v14892_v5  ;;  %18912 = vmatmul.mubr.bf16.gmra.mrb[112].mxu0 %v14979_v21  ;;  %v14960_v30 = vmax.f32 %v14928_v7, 0.0  ;;  %v13454_v49 = vrot.slane %v13452_v1, 4  ;;  %v12313_v21 = vld [vmem:[#allocation2 + $0x4f4] sm:$0xe]  ;;  %v13453_v4 = vsel %vm22029_vm6, %v17163_v46, %v13452_v1  ;;  %v12323_v1 = vld [vmem:[#allocation2 + $0x558] sm:$0xf] }
 0x5f9   : > { %v14927_v39 = vadd.f32 %v25005_v36, %v14890_v47  ;;  %v14958_v23 = vmax.f32 %v14926_v12, 0.0  ;;  %v17164_v3 = vrot.slane %v12313_v21, 9  ;;  %v13462_v60 = vrot.slane %v12315_v43, 5  ;;  %v12327_v43 = vld [vmem:[#allocation2 + $0x57c] sm:$0x1] }
 0x5fa   : > { %v14961_v2 = vmax.f32 %v14929_v58, 0.0  ;;  %v13456_v5 = vsel %vm22029_vm6, %v13454_v49, %v13455_v8  ;;  %v17165_v50 = vrot.slane %v12316_v51, 9 }
 0x5fb   : > { %v14959_v22 = vmax.f32 %v14927_v39, 0.0  ;;  %v18471_v38 = vpop.f32.mrb[88].mxu0 }
 0x5fc   : > { %v14895_v25 = vmul.f32 %v18471_v38, %v24998_v32  ;;  %v9181_v54 = vpop.f32.mrb[89].mxu0  ;;  %v14981_v63 = vpack.c.bf16 %v14961_v2, %v14960_v30  ;;  %v17179_v2 = vcombine.low %v13453_v4, %v13456_v5  ;;  %v13469_v38 = vrot.slane %v12318_v10, 5  ;;  %v12325_v4 = vld [vmem:[#allocation2 + $0x574] sm:$0xe]  ;;  %v12332_v10 = vld [vmem:[#allocation2 + $0x5b8] sm:$0xf] }
 0x5fd   : > { %18742 = vmatmul.mubr.msk.bf16.gmra.mrb[56].mxu1 %vm1199_vm3, %v17142_v9  ;;  %v14893_v0 = vmul.f32 %v24998_v32, %v9181_v54  ;;  %v18472_v45 = vpop.f32.mrb[90].mxu0  ;;  %v14980_v53 = vpack.c.bf16 %v14959_v22, %v14958_v23  ;;  %v13449_v9 = vsel %vm22029_vm6, %v13447_v33, %v13448_v56  ;;  %v13460_v54 = vsel %vm22029_vm6, %v17164_v3, %v13459_v44  ;;  %v12321_v33 = vld [vmem:[#allocation2 + $0x53c] sm:$0x1] }
 0x5fe   : > { %18745 = vmatprep.mubr.msk.bf16.mxu1 %vm1199_vm3, %v17143_v19  ;;  %v14932_v57 = vadd.f32 %v25005_v36, %v14895_v25  ;;  %v14896_v40 = vmul.f32 %v18472_v45, %v24998_v32  ;;  %v9184_v59 = vpop.f32.mrb[91].mxu0  ;;  %v13466_v19 = vrot.slane %v12317_v17, 5  ;;  %v17178_v12 = vcombine.low %v13446_v16, %v13449_v9  ;;  %v12329_v16 = vld [vmem:[#allocation2 + $0x598] sm:$0xf] }
 0x5ff   : > { %v14930_v24 = vadd.f32 %v25005_v36, %v14893_v0  ;;  %v14894_v20 = vmul.f32 %v24998_v32, %v9184_v59  ;;  %18915 = vmatprep.mubr.bf16.mxu0 %v14980_v53  ;;  %v13473_v0 = vrot.slane %v12320_v35, 5  ;;  %v13480_v56 = vrot.slane %v12323_v1, 5  ;;  %v12324_v59 = vld [vmem:[#allocation2 + $0x55c] sm:$0x1] }
 0x600   : > { %v14933_v41 = vadd.f32 %v25005_v36, %v14896_v40  ;;  %18916 = vmatmul.mubr.bf16.gmra.mrb[116].mxu0 %v14981_v63  ;;  %v14964_v48 = vmax.f32 %v14932_v57, 0.0  ;;  %v13468_v22 = vrot.slane %v13466_v19, 4  ;;  %v13467_v15 = vsel %vm22029_vm6, %v17165_v50, %v13466_v19  ;;  %v12322_v40 = vld [vmem:[#allocation2 + $0x554] sm:$0xe] }
 0x601   : > { %v14931_v31 = vadd.f32 %v25005_v36, %v14894_v20  ;;  %v14962_v13 = vmax.f32 %v14930_v24, 0.0  ;;  %v17166_v24 = vrot.slane %v12319_v37, 9  ;;  %v13475_v20 = vrot.slane %v13473_v0, 4  ;;  %v12334_v50 = vld [vmem:[#allocation2 + $0x5d4] sm:$0xe] }
 0x602   : > { %v14965_v14 = vmax.f32 %v14933_v41, 0.0  ;;  %v13476_v49 = vrot.slane %v12321_v33, 5  ;;  %v17167_v8 = vrot.slane %v12322_v40, 9  ;;  %v13482_v41 = vrot.slane %v13480_v56, 4 }
 0x603   : > { %v14963_v55 = vmax.f32 %v14931_v31, 0.0  ;;  %v18475_v7 = vpop.f32.mrb[92].mxu0  ;;  %v13483_v17 = vrot.slane %v12324_v59, 5  ;;  %v12326_v31 = vld [vmem:[#allocation2 + $0x578] sm:$0xf]  ;;  %v13474_v9 = vsel %vm22029_vm6, %v17166_v24, %v13473_v0  ;;  %v17168_v19 = vrot.slane %v12325_v4, 9 }
 0x604   : > { %v14899_v26 = vmul.f32 %v18475_v7, %v24998_v32  ;;  %v9197_v42 = vpop.f32.mrb[93].mxu0  ;;  %v14983_v47 = vpack.c.bf16 %v14965_v14, %v14964_v48  ;;  %v13477_v21 = vsel %vm22029_vm6, %v13475_v20, %v13476_v49  ;;  %v13487_v44 = vrot.slane %v12326_v31, 5  ;;  %v12330_v7 = vld [vmem:[#allocation2 + $0x59c] sm:$0x1]  ;;  %v12346_v4 = vld [vmem:[#allocation2 + $0x654] sm:$0xe] }
 0x605   : > { %18746 = vmatmul.mubr.msk.bf16.gmra.mrb[60].mxu1 %vm1199_vm3, %v17144_v18  ;;  %v14897_v58 = vmul.f32 %v24998_v32, %v9197_v42  ;;  %v18476_v29 = vpop.f32.mrb[94].mxu0  ;;  %v14982_v39 = vpack.c.bf16 %v14963_v55, %v14962_v13  ;;  %v13463_v18 = vsel %vm22029_vm6, %v13461_v34, %v13462_v60  ;;  %v13481_v48 = vsel %vm22029_vm6, %v17167_v8, %v13480_v56  ;;  %v12328_v55 = vld [vmem:[#allocation2 + $0x594] sm:$0xe]  ;;  %v12344_v8 = vld [vmem:[#allocation2 + $0x638] sm:$0xf] }
 0x606   : > { %18751 = vmatprep.mubr.msk.bf16.mxu1 %vm1199_vm3, %v17177_v52  ;;  %v14936_v62 = vadd.f32 %v25005_v36, %v14899_v26  ;;  %v14900_v27 = vmul.f32 %v18476_v29, %v24998_v32  ;;  %v9200_v30 = vpop.f32.mrb[95].mxu0  ;;  %v17180_v52 = vcombine.low %v13460_v54, %v13463_v18  ;;  %v13484_v14 = vsel %vm22029_vm6, %v13482_v41, %v13483_v17  ;;  %v12338_v18 = vld [vmem:[#allocation2 + $0x5f8] sm:$0xf]  ;;  %v12340_v56 = vld [vmem:[#allocation2 + $0x614] sm:$0xe] }
 0x607   : > { %v14934_v6 = vadd.f32 %v25005_v36, %v14897_v58  ;;  %v14898_v23 = vmul.f32 %v24998_v32, %v9200_v30  ;;  %18919 = vmatprep.mubr.bf16.mxu0 %v14982_v39  ;;  %v13494_v13 = vrot.slane %v12329_v16, 5  ;;  %v17182_v5 = vcombine.low %v13474_v9, %v13477_v21  ;;  %v12335_v58 = vld [vmem:[#allocation2 + $0x5d8] sm:$0xf]  ;;  %v12333_v30 = vld [vmem:[#allocation2 + $0x5bc] sm:$0x1] }
 0x608   : > { %v14937_v28 = vadd.f32 %v25005_v36, %v14900_v27  ;;  %18920 = vmatmul.mubr.bf16.gmra.mrb[120].mxu0 %v14983_v47  ;;  %v14968_v63 = vmax.f32 %v14936_v62, 0.0  ;;  %v17183_v51 = vcombine.low %v13481_v48, %v13484_v14  ;;  %v13489_v26 = vrot.slane %v13487_v44, 4  ;;  %v12331_v27 = vld [vmem:[#allocation2 + $0x5b4] sm:$0xe]  ;;  %v12347_v41 = vld [vmem:[#allocation2 + $0x658] sm:$0xf] }
 0x609   : > { %v14935_v25 = vadd.f32 %v25005_v36, %v14898_v23  ;;  %v14966_v45 = vmax.f32 %v14934_v6, 0.0  ;;  %v13470_v36 = vsel %vm22029_vm6, %v13468_v22, %v13469_v38  ;;  %v13490_v42 = vrot.slane %v12327_v43, 5  ;;  %v12336_v6 = vld [vmem:[#allocation2 + $0x5dc] sm:$0x1] }
 0x60a   : > { %v14969_v32 = vmax.f32 %v14937_v28, 0.0  ;;  %v17181_v61 = vcombine.low %v13467_v15, %v13470_v36  ;;  %v13496_v47 = vrot.slane %v13494_v13, 4  ;;  %v13497_v3 = vrot.slane %v12330_v7, 5  ;;  %v12339_v36 = vld [vmem:[#allocation2 + $0x5fc] sm:$0x1] }
 0x60b   : > { %v14967_v53 = vmax.f32 %v14935_v25, 0.0  ;;  %v13488_v29 = vsel %vm22029_vm6, %v17168_v19, %v13487_v44  ;;  %v13491_v39 = vsel %vm22029_vm6, %v13489_v26, %v13490_v42  ;;  %v13501_v34 = vrot.slane %v12332_v10, 5  ;;  %v12343_v44 = vld [vmem:[#allocation2 + $0x634] sm:$0xe]  ;;  %v12345_v48 = vld [vmem:[#allocation2 + $0x63c] sm:$0x1] }
 0x60c   : > { %v14985_v57 = vpack.c.bf16 %v14969_v32, %v14968_v63  ;;  %v13498_v62 = vsel %vm22029_vm6, %v13496_v47, %v13497_v3  ;;  %v17184_v23 = vcombine.low %v13488_v29, %v13491_v39  ;;  %v17170_v38 = vrot.slane %v12331_v27, 9  ;;  %v12341_v63 = vld [vmem:[#allocation2 + $0x618] sm:$0xf]  ;;  %v12348_v43 = vld [vmem:[#allocation2 + $0x65c] sm:$0x1] }
 0x60d   : > { %18752 = vmatmul.mubr.msk.bf16.vlgmr.msra.gmra.mrb[32].mxu1 %vm1199_vm3, %v17178_v12  ;;  %v14984_v46 = vpack.c.bf16 %v14967_v53, %v14966_v45  ;;  %v17169_v12 = vrot.slane %v12328_v55, 9  ;;  %v13503_v35 = vrot.slane %v13501_v34, 4  ;;  %v13504_v28 = vrot.slane %v12333_v30, 5  ;;  %v12337_v53 = vld [vmem:[#allocation2 + $0x5f4] sm:$0xe] }
 0x60e   : > { %18755 = vmatprep.mubr.msk.bf16.mxu1 %vm1199_vm3, %v17179_v2  ;;  %v13508_v2 = vrot.slane %v12335_v58, 5  ;;  %v17171_v1 = vrot.slane %v12334_v50, 9  ;;  %v13511_v54 = vrot.slane %v12336_v6, 5  ;;  %v13502_v32 = vsel %vm22029_vm6, %v17170_v38, %v13501_v34  ;;  %v12349_v39 = vld [vmem:[#allocation2 + $0x674] sm:$0xe] }
 0x60f   : > { %18923 = vmatprep.mubr.bf16.mxu0 %v14984_v46  ;;  %v13495_v60 = vsel %vm22029_vm6, %v17169_v12, %v13494_v13  ;;  %v13505_v15 = vsel %vm22029_vm6, %v13503_v35, %v13504_v28  ;;  %v13515_v37 = vrot.slane %v12338_v18, 5  ;;  %v13522_v33 = vrot.slane %v12341_v63, 5  ;;  %v12350_v12 = vld [vmem:[#allocation2 + $0x678] sm:$0xf]  ;;  %v12351_v34 = vld [vmem:[#allocation2 + $0x67c] sm:$0x1] }
 0x610   : > { %18924 = vmatmul.mubr.bf16.gmra.mrb[124].mxu0 %v14985_v57  ;;  %v17185_v22 = vcombine.low %v13495_v60, %v13498_v62  ;;  %v13510_v25 = vrot.slane %v13508_v2, 4  ;;  %v13509_v0 = vsel %vm22029_vm6, %v17171_v1, %v13508_v2  ;;  %v12342_v57 = vld [vmem:[#allocation2 + $0x61c] sm:$0x1]  ;;  %v17186_v40 = vcombine.low %v13502_v32, %v13505_v15  ;;  %v25216_v38 = vld [vmem:[#allocation16 + $0x3] ss:$0 sm:$0xff] }
 0x611   : > { %v13517_v46 = vrot.slane %v13515_v37, 4  ;;  %v17173_v24 = vrot.slane %v12340_v56, 9  ;;  %v13524_v20 = vrot.slane %v13522_v33, 4  ;;  %v13525_v49 = vrot.slane %v12342_v57, 5  ;;  %v25218_v28 = vld [vmem:[#allocation18 + $0x3] ss:$0 sm:$0xff] }
 0x612   : > { %v13512_v45 = vsel %vm22029_vm6, %v13510_v25, %v13511_v54  ;;  %v13529_v16 = vrot.slane %v12344_v8, 5  ;;  %v13536_v14 = vrot.slane %v12347_v41, 5  ;;  %v17174_v7 = vrot.slane %v12343_v44, 9 }
 0x613   : > { %v17187_v59 = vcombine.low %v13509_v0, %v13512_v45  ;;  %v13523_v9 = vsel %vm22029_vm6, %v17173_v24, %v13522_v33  ;;  %v13526_v21 = vsel %vm22029_vm6, %v13524_v20, %v13525_v49  ;;  %v17175_v19 = vrot.slane %v12346_v4, 9 }
 0x614   : > { %v17189_v55 = vcombine.low %v13523_v9, %v13526_v21  ;;  %v13538_v26 = vrot.slane %v13536_v14, 4  ;;  %v13539_v42 = vrot.slane %v12348_v43, 5  ;;  %v13530_v47 = vsel %vm22029_vm6, %v17174_v7, %v13529_v16 }
 0x615   : > { %18756 = vmatmul.mubr.msk.bf16.gmra.mrb[36].mxu1 %vm1199_vm3, %v17180_v52  ;;  %v17172_v52 = vrot.slane %v12337_v53, 9  ;;  %v13543_v10 = vrot.slane %v12350_v12, 5  ;;  %v13537_v58 = vsel %vm22029_vm6, %v17175_v19, %v13536_v14  ;;  %v17176_v27 = vrot.slane %v12349_v39, 9 }
 0x616   : > { %18759 = vmatprep.mubr.msk.bf16.mxu1 %vm1199_vm3, %v17181_v61  ;;  %v13518_v61 = vrot.slane %v12339_v36, 5  ;;  %v13540_v29 = vsel %vm22029_vm6, %v13538_v26, %v13539_v42  ;;  %v13546_v2 = vrot.slane %v12351_v34, 5 }
 0x617   : > { %v13516_v17 = vsel %vm22029_vm6, %v17172_v52, %v13515_v37  ;;  %v17191_v62 = vcombine.low %v13537_v58, %v13540_v29  ;;  %v13545_v30 = vrot.slane %v13543_v10, 4  ;;  %v13544_v50 = vsel %vm22029_vm6, %v17176_v27, %v13543_v10 }
 0x618   : > { %v13519_v31 = vsel %vm22029_vm6, %v13517_v46, %v13518_v61 }
 0x619   : > { %v17188_v13 = vcombine.low %v13516_v17, %v13519_v31  ;;  %v13547_v6 = vsel %vm22029_vm6, %v13545_v30, %v13546_v2 }
 0x61d   : > { %18760 = vmatmul.mubr.msk.bf16.gmra.mrb[40].mxu1 %vm1199_vm3, %v17182_v5  ;;  %v13531_v5 = vrot.slane %v13529_v16, 4 }
 0x61e   : > { %18763 = vmatprep.mubr.msk.bf16.mxu1 %vm1199_vm3, %v17183_v51  ;;  %v13532_v51 = vrot.slane %v12345_v48, 5 }
 0x620   : > { %v13533_v3 = vsel %vm22029_vm6, %v13531_v5, %v13532_v51 }
 0x621   : > { %v17190_v60 = vcombine.low %v13530_v47, %v13533_v3 }
 0x625   : > { %18764 = vmatmul.mubr.msk.bf16.gmra.mrb[44].mxu1 %vm1199_vm3, %v17184_v23  ;;  %v17192_v23 = vcombine.low %v13544_v50, %v13547_v6 }
 0x626   : > { %18767 = vmatprep.mubr.msk.bf16.mxu1 %vm1199_vm3, %v17185_v22  ;;  %v20291_v22 = vld [vmem:[#allocation15 + $0xf8] sm:$0xff]  }
 0x627   : > { %18941 = vmatprep.subr.bf16.mxu0 %v20291_v22 }
 0x628   : > { %18942 = vmatpush3.bf16.msra.mxu0 %v20291_v22 }
 0x62d   : > { %18768 = vmatmul.mubr.msk.bf16.gmra.mrb[48].mxu1 %vm1199_vm3, %v17186_v40 }
 0x62e   : > { %18771 = vmatprep.mubr.msk.bf16.mxu1 %vm1199_vm3, %v17187_v59 }
 0x635   : > { %18772 = vmatmul.mubr.msk.bf16.gmra.mrb[52].mxu1 %vm1199_vm3, %v17188_v13 }
 0x636   : > { %18775 = vmatprep.mubr.msk.bf16.mxu1 %vm1199_vm3, %v17189_v55 }
 0x63d   : > { %18776 = vmatmul.mubr.msk.bf16.gmra.mrb[56].mxu1 %vm1199_vm3, %v17190_v60 }
 0x63e   : > { %18779 = vmatprep.mubr.msk.bf16.mxu1 %vm1199_vm3, %v17191_v62 }
 0x645   : > { %18780 = vmatmul.mubr.msk.bf16.gmra.mrb[60].mxu1 %vm1199_vm3, %v17192_v23 }
 0x6e0   : > { %v18753_v35 = vpop.f32.mrb[32].mxu1 }
 0x6e1   : > { %v15347_v1 = vmul.f32 %v18753_v35, %v25216_v38  ;;  %v13683_v25 = vpop.f32.mrb[33].mxu1 }
 0x6e2   : > { %v15345_v54 = vmul.f32 %v25216_v38, %v13683_v25  ;;  %v18754_v18 = vpop.f32.mrb[34].mxu1 }
 0x6e3   : > { %v15384_v11 = vadd.f32 %v25218_v28, %v15347_v1  ;;  %v15348_v63 = vmul.f32 %v18754_v18, %v25216_v38  ;;  %v13686_v32 = vpop.f32.mrb[35].mxu1 }
 0x6e4   : > { %v15382_v15 = vadd.f32 %v25218_v28, %v15345_v54  ;;  %v15346_v37 = vmul.f32 %v25216_v38, %v13686_v32 }
 0x6e5   : > { %v15385_v0 = vadd.f32 %v25218_v28, %v15348_v63  ;;  %v15416_v53 = vmax.f32 %v15384_v11, 0.0 }
 0x6e6   : > { %v15383_v45 = vadd.f32 %v25218_v28, %v15346_v37  ;;  %v15414_v33 = vmax.f32 %v15382_v15, 0.0 }
 0x6e7   : > { %v15417_v36 = vmax.f32 %v15385_v0, 0.0 }
 0x6e8   : > { %v15415_v56 = vmax.f32 %v15383_v45, 0.0  ;;  %v18757_v57 = vpop.f32.mrb[36].mxu1 }
 0x6e9   : > { %v15447_v40 = vpack.c.bf16 %v15417_v36, %v15416_v53  ;;  %v15351_v59 = vmul.f32 %v18757_v57, %v25216_v38  ;;  %v13699_v52 = vpop.f32.mrb[37].mxu1 }
 0x6ea   : > { %v15349_v46 = vmul.f32 %v25216_v38, %v13699_v52  ;;  %v18758_v61 = vpop.f32.mrb[38].mxu1  ;;  %v15446_v24 = vpack.c.bf16 %v15415_v56, %v15414_v33 }
 0x6eb   : > { %v15388_v20 = vadd.f32 %v25218_v28, %v15351_v59  ;;  %v15352_v49 = vmul.f32 %v18758_v61, %v25216_v38  ;;  %v13702_v8 = vpop.f32.mrb[39].mxu1 }
 0x6ec   : > { %v15386_v41 = vadd.f32 %v25218_v28, %v15349_v46  ;;  %v15350_v17 = vmul.f32 %v25216_v38, %v13702_v8  ;;  %18943 = vmatprep.mubr.bf16.mxu0 %v15446_v24 }
 0x6ed   : > { %v15389_v31 = vadd.f32 %v25218_v28, %v15352_v49  ;;  %18944 = vmatmul.mubr.bf16.vlgmr.msra.gmra.mrb[96].mxu0 %v15447_v40  ;;  %v15420_v9 = vmax.f32 %v15388_v20, 0.0 }
 0x6ee   : > { %v15387_v16 = vadd.f32 %v25218_v28, %v15350_v17  ;;  %v15418_v44 = vmax.f32 %v15386_v41, 0.0 }
 0x6ef   : > { %v15421_v21 = vmax.f32 %v15389_v31, 0.0 }
 0x6f0   : > { %v15419_v48 = vmax.f32 %v15387_v16, 0.0  ;;  %v18761_v14 = vpop.f32.mrb[40].mxu1 }
 0x6f1   : > { %v15355_v4 = vmul.f32 %v18761_v14, %v25216_v38  ;;  %v13715_v43 = vpop.f32.mrb[41].mxu1  ;;  %v15449_v13 = vpack.c.bf16 %v15421_v21, %v15420_v9 }
 0x6f2   : > { %v15353_v55 = vmul.f32 %v25216_v38, %v13715_v43  ;;  %v18762_v7 = vpop.f32.mrb[42].mxu1  ;;  %v15448_v5 = vpack.c.bf16 %v15419_v48, %v15418_v44 }
 0x6f3   : > { %v15392_v51 = vadd.f32 %v25218_v28, %v15355_v4  ;;  %v15356_v19 = vmul.f32 %v18762_v7, %v25216_v38  ;;  %v13718_v26 = vpop.f32.mrb[43].mxu1 }
 0x6f4   : > { %v15390_v42 = vadd.f32 %v25218_v28, %v15353_v55  ;;  %v15354_v12 = vmul.f32 %v25216_v38, %v13718_v26  ;;  %18947 = vmatprep.mubr.bf16.mxu0 %v15448_v5 }
 0x6f5   : > { %v15393_v47 = vadd.f32 %v25218_v28, %v15356_v19  ;;  %18948 = vmatmul.mubr.bf16.gmra.mrb[100].mxu0 %v15449_v13  ;;  %v15424_v10 = vmax.f32 %v15392_v51, 0.0 }
 0x6f6   : > { %v15391_v3 = vadd.f32 %v25218_v28, %v15354_v12  ;;  %v15422_v29 = vmax.f32 %v15390_v42, 0.0 }
 0x6f7   : > { %v15425_v58 = vmax.f32 %v15393_v47, 0.0 }
 0x6f8   : > { %v15423_v39 = vmax.f32 %v15391_v3, 0.0  ;;  %v18765_v34 = vpop.f32.mrb[44].mxu1 }
 0x6f9   : > { %v15359_v60 = vmul.f32 %v18765_v34, %v25216_v38  ;;  %v13731_v62 = vpop.f32.mrb[45].mxu1  ;;  %v15451_v27 = vpack.c.bf16 %v15425_v58, %v15424_v10 }
 0x6fa   : > { %v15357_v30 = vmul.f32 %v25216_v38, %v13731_v62  ;;  %v18766_v2 = vpop.f32.mrb[46].mxu1  ;;  %v15450_v50 = vpack.c.bf16 %v15423_v39, %v15422_v29 }
 0x6fb   : > { %v15396_v6 = vadd.f32 %v25218_v28, %v15359_v60  ;;  %v15360_v23 = vmul.f32 %v18766_v2, %v25216_v38  ;;  %v13734_v22 = vpop.f32.mrb[47].mxu1 }
 0x6fc   : > { %v15394_v35 = vadd.f32 %v25218_v28, %v15357_v30  ;;  %v15358_v1 = vmul.f32 %v25216_v38, %v13734_v22  ;;  %18951 = vmatprep.mubr.bf16.mxu0 %v15450_v50 }
 0x6fd   : > { %v15397_v25 = vadd.f32 %v25218_v28, %v15360_v23  ;;  %18952 = vmatmul.mubr.bf16.gmra.mrb[104].mxu0 %v15451_v27  ;;  %v15428_v18 = vmax.f32 %v15396_v6, 0.0 }
 0x6fe   : > { %v15395_v54 = vadd.f32 %v25218_v28, %v15358_v1  ;;  %v15426_v63 = vmax.f32 %v15394_v35, 0.0 }
 0x6ff   : > { %v15429_v11 = vmax.f32 %v15397_v25, 0.0 }
 0x700   : > { %v15427_v32 = vmax.f32 %v15395_v54, 0.0  ;;  %v18769_v15 = vpop.f32.mrb[48].mxu1 }
 0x701   : > { %v15363_v37 = vmul.f32 %v18769_v15, %v25216_v38  ;;  %v13747_v0 = vpop.f32.mrb[49].mxu1  ;;  %v15453_v45 = vpack.c.bf16 %v15429_v11, %v15428_v18 }
 0x702   : > { %v15361_v53 = vmul.f32 %v25216_v38, %v13747_v0  ;;  %v18770_v36 = vpop.f32.mrb[50].mxu1  ;;  %v15452_v33 = vpack.c.bf16 %v15427_v32, %v15426_v63 }
 0x703   : > { %v15400_v56 = vadd.f32 %v25218_v28, %v15363_v37  ;;  %v15364_v57 = vmul.f32 %v18770_v36, %v25216_v38  ;;  %v13750_v40 = vpop.f32.mrb[51].mxu1 }
 0x704   : > { %v15398_v59 = vadd.f32 %v25218_v28, %v15361_v53  ;;  %v15362_v52 = vmul.f32 %v25216_v38, %v13750_v40  ;;  %18955 = vmatprep.mubr.bf16.mxu0 %v15452_v33 }
 0x705   : > { %v15401_v46 = vadd.f32 %v25218_v28, %v15364_v57  ;;  %18956 = vmatmul.mubr.bf16.gmra.mrb[108].mxu0 %v15453_v45  ;;  %v15432_v24 = vmax.f32 %v15400_v56, 0.0 }
 0x706   : > { %v15399_v61 = vadd.f32 %v25218_v28, %v15362_v52  ;;  %v15430_v49 = vmax.f32 %v15398_v59, 0.0 }
 0x707   : > { %v15433_v20 = vmax.f32 %v15401_v46, 0.0  ;;  %v25286_v46 = vld [vmem:[%s523_s29] ss:$0 sm:$0xff] }
 0x708   : > { %v15431_v8 = vmax.f32 %v15399_v61, 0.0  ;;  %v18773_v41 = vpop.f32.mrb[52].mxu1 }
 0x709   : > { %v15367_v17 = vmul.f32 %v18773_v41, %v25216_v38  ;;  %v13763_v31 = vpop.f32.mrb[53].mxu1  ;;  %v15455_v16 = vpack.c.bf16 %v15433_v20, %v15432_v24 }
 0x70a   : > { %v15365_v9 = vmul.f32 %v25216_v38, %v13763_v31  ;;  %v18774_v21 = vpop.f32.mrb[54].mxu1  ;;  %v15454_v44 = vpack.c.bf16 %v15431_v8, %v15430_v49  ;;  %v25291_v49 = vld [vmem:[#allocation21] ss:$0 sm:$0xff] }
 0x70b   : > { %v15404_v48 = vadd.f32 %v25218_v28, %v15367_v17  ;;  %v15368_v14 = vmul.f32 %v18774_v21, %v25216_v38  ;;  %v13766_v4 = vpop.f32.mrb[55].mxu1 }
 0x70c   : > { %v15402_v43 = vadd.f32 %v25218_v28, %v15365_v9  ;;  %v15366_v13 = vmul.f32 %v25216_v38, %v13766_v4  ;;  %18959 = vmatprep.mubr.bf16.mxu0 %v15454_v44 }
 0x70d   : > { %v15405_v55 = vadd.f32 %v25218_v28, %v15368_v14  ;;  %18960 = vmatmul.mubr.bf16.gmra.mrb[112].mxu0 %v15455_v16  ;;  %v15436_v5 = vmax.f32 %v15404_v48, 0.0 }
 0x70e   : > { %v15403_v7 = vadd.f32 %v25218_v28, %v15366_v13  ;;  %v15434_v19 = vmax.f32 %v15402_v43, 0.0 }
 0x70f   : > { %v15437_v51 = vmax.f32 %v15405_v55, 0.0 }
 0x710   : > { %v15435_v26 = vmax.f32 %v15403_v7, 0.0  ;;  %v18777_v42 = vpop.f32.mrb[56].mxu1 }
 0x711   : > { %v15371_v12 = vmul.f32 %v18777_v42, %v25216_v38  ;;  %v13779_v47 = vpop.f32.mrb[57].mxu1  ;;  %v15457_v3 = vpack.c.bf16 %v15437_v51, %v15436_v5 }
 0x712   : > { %v15369_v10 = vmul.f32 %v25216_v38, %v13779_v47  ;;  %v18778_v58 = vpop.f32.mrb[58].mxu1  ;;  %v15456_v29 = vpack.c.bf16 %v15435_v26, %v15434_v19 }
 0x713   : > { %v15408_v39 = vadd.f32 %v25218_v28, %v15371_v12  ;;  %v15372_v34 = vmul.f32 %v18778_v58, %v25216_v38  ;;  %v13782_v60 = vpop.f32.mrb[59].mxu1 }
 0x714   : > { %v15406_v62 = vadd.f32 %v25218_v28, %v15369_v10  ;;  %v15370_v27 = vmul.f32 %v25216_v38, %v13782_v60  ;;  %18963 = vmatprep.mubr.bf16.mxu0 %v15456_v29 }
 0x715   : > { %v15409_v30 = vadd.f32 %v25218_v28, %v15372_v34  ;;  %18964 = vmatmul.mubr.bf16.gmra.mrb[116].mxu0 %v15457_v3  ;;  %v15440_v50 = vmax.f32 %v15408_v39, 0.0 }
 0x716   : > { %v15407_v2 = vadd.f32 %v25218_v28, %v15370_v27  ;;  %v15438_v23 = vmax.f32 %v15406_v62, 0.0 }
 0x717   : > { %v15441_v6 = vmax.f32 %v15409_v30, 0.0 }
 0x718   : > { %v15439_v22 = vmax.f32 %v15407_v2, 0.0  ;;  %v18781_v35 = vpop.f32.mrb[60].mxu1 }
 0x719   : > { %v15375_v1 = vmul.f32 %v18781_v35, %v25216_v38  ;;  %v13795_v25 = vpop.f32.mrb[61].mxu1  ;;  %v15459_v54 = vpack.c.bf16 %v15441_v6, %v15440_v50 }
 0x71a   : > { %v15373_v18 = vmul.f32 %v25216_v38, %v13795_v25  ;;  %v18782_v11 = vpop.f32.mrb[62].mxu1  ;;  %v15458_v63 = vpack.c.bf16 %v15439_v22, %v15438_v23 }
 0x71b   : > { %v15412_v32 = vadd.f32 %v25218_v28, %v15375_v1  ;;  %v15376_v15 = vmul.f32 %v18782_v11, %v25216_v38  ;;  %v13798_v37 = vpop.f32.mrb[63].mxu1 }
 0x71c   : > { %v15410_v0 = vadd.f32 %v25218_v28, %v15373_v18  ;;  %v15374_v45 = vmul.f32 %v25216_v38, %v13798_v37  ;;  %18967 = vmatprep.mubr.bf16.mxu0 %v15458_v63  ;;  %v25288_v38 = vld [vmem:[#allocation19] ss:$0 sm:$0xff] }
 0x71d   : > { %v15413_v53 = vadd.f32 %v25218_v28, %v15376_v15  ;;  %18968 = vmatmul.mubr.bf16.gmra.mrb[120].mxu0 %v15459_v54  ;;  %v15444_v33 = vmax.f32 %v15412_v32, 0.0 }
 0x71e   : > { %v15411_v36 = vadd.f32 %v25218_v28, %v15374_v45  ;;  %v15442_v57 = vmax.f32 %v15410_v0, 0.0 }
 0x71f   : > { %v15445_v56 = vmax.f32 %v15413_v53, 0.0 }
 0x720   : > { %v15443_v40 = vmax.f32 %v15411_v36, 0.0 }
 0x721   : > { %v15461_v59 = vpack.c.bf16 %v15445_v56, %v15444_v33 }
 0x722   : > { %v15460_v52 = vpack.c.bf16 %v15443_v40, %v15442_v57 }
 0x724   : > { %18971 = vmatprep.mubr.bf16.mxu0 %v15460_v52 }
 0x725   : > { %18972 = vmatmul.mubr.bf16.gmra.mrb[124].mxu0 %v15461_v59 }
 0x7c0   : > { %v18945_v61 = vpop.f32.mrb[96].mxu0 }
 0x7c1   : > { %v19009_v24 = vadd.f32 %v18945_v61, %v25286_v46  ;;  %v15561_v20 = vpop.f32.mrb[97].mxu0 }
 0x7c2   : > { %v19012_v28 = vadd.f32 %v25286_v46, %v15561_v20  ;;  %v18946_v8 = vpop.f32.mrb[98].mxu0 }
 0x7c3   : > { %v15793_v41 = vmul.f32 %v19009_v24, %v25288_v38  ;;  %v19015_v17 = vadd.f32 %v18946_v8, %v25286_v46  ;;  %v15564_v31 = vpop.f32.mrb[99].mxu0 }
 0x7c4   : > { %v15791_v16 = vmul.f32 %v19012_v28, %v25288_v38  ;;  %v19018_v9 = vadd.f32 %v25286_v46, %v15564_v31 }
 0x7c5   : > { %v15832_v21 = vadd.f32 %v25291_v49, %v15793_v41  ;;  %v15794_v44 = vmul.f32 %v19015_v17, %v25288_v38 }
 0x7c6   : > { %v15830_v48 = vadd.f32 %v25291_v49, %v15791_v16  ;;  %v15792_v14 = vmul.f32 %v19018_v9, %v25288_v38 }
 0x7c7   : > { %v15864_v4 = vmax.f32 %v15832_v21, 0.0  ;;  %v15833_v43 = vadd.f32 %v25291_v49, %v15794_v44 }
 0x7c8   : > { %v15862_v13 = vmax.f32 %v15830_v48, 0.0  ;;  %v15831_v55 = vadd.f32 %v25291_v49, %v15792_v14  ;;  %v18949_v7 = vpop.f32.mrb[100].mxu0 }
 0x7c9   : > { %15896 = vst [vmem:[%s25305_s30 + $0x10] sm:$0xff] %v15864_v4  ;;  %v15865_v5 = vmax.f32 %v15833_v43, 0.0  ;;  %v19021_v51 = vadd.f32 %v18949_v7, %v25286_v46  ;;  %v15577_v19 = vpop.f32.mrb[101].mxu0 }
 0x7ca   : > { %15894 = vst [vmem:[%s25305_s30] sm:$0xff] %v15862_v13  ;;  %v15863_v26 = vmax.f32 %v15831_v55, 0.0  ;;  %v19024_v42 = vadd.f32 %v25286_v46, %v15577_v19  ;;  %v18950_v12 = vpop.f32.mrb[102].mxu0 }
 0x7cb   : > { %15897 = vst [vmem:[%s25305_s30 + $0x18] sm:$0xff] %v15865_v5  ;;  %v15797_v47 = vmul.f32 %v19021_v51, %v25288_v38  ;;  %v19027_v3 = vadd.f32 %v18950_v12, %v25286_v46  ;;  %v15580_v10 = vpop.f32.mrb[103].mxu0 }
 0x7cc   : > { %15895 = vst [vmem:[%s25305_s30 + $0x8] sm:$0xff] %v15863_v26  ;;  %v15795_v58 = vmul.f32 %v19024_v42, %v25288_v38  ;;  %v19030_v29 = vadd.f32 %v25286_v46, %v15580_v10 }
 0x7cd   : > { %v15836_v39 = vadd.f32 %v25291_v49, %v15797_v47  ;;  %v15798_v34 = vmul.f32 %v19027_v3, %v25288_v38 }
 0x7ce   : > { %v15834_v60 = vadd.f32 %v25291_v49, %v15795_v58  ;;  %v15796_v62 = vmul.f32 %v19030_v29, %v25288_v38 }
 0x7cf   : > { %v15868_v27 = vmax.f32 %v15836_v39, 0.0  ;;  %v15837_v30 = vadd.f32 %v25291_v49, %v15798_v34 }
 0x7d0   : > { %v15866_v2 = vmax.f32 %v15834_v60, 0.0  ;;  %v15835_v50 = vadd.f32 %v25291_v49, %v15796_v62  ;;  %v18953_v6 = vpop.f32.mrb[104].mxu0 }
 0x7d1   : > { %15900 = vst [vmem:[%s25305_s30 + $0x30] sm:$0xff] %v15868_v27  ;;  %v15869_v23 = vmax.f32 %v15837_v30, 0.0  ;;  %v19033_v22 = vadd.f32 %v18953_v6, %v25286_v46  ;;  %v15593_v35 = vpop.f32.mrb[105].mxu0 }
 0x7d2   : > { %15898 = vst [vmem:[%s25305_s30 + $0x20] sm:$0xff] %v15866_v2  ;;  %v15867_v1 = vmax.f32 %v15835_v50, 0.0  ;;  %v19036_v25 = vadd.f32 %v25286_v46, %v15593_v35  ;;  %v18954_v54 = vpop.f32.mrb[106].mxu0 }
 0x7d3   : > { %15901 = vst [vmem:[%s25305_s30 + $0x38] sm:$0xff] %v15869_v23  ;;  %v15801_v18 = vmul.f32 %v19033_v22, %v25288_v38  ;;  %v19039_v11 = vadd.f32 %v18954_v54, %v25286_v46  ;;  %v15596_v63 = vpop.f32.mrb[107].mxu0 }
 0x7d4   : > { %15899 = vst [vmem:[%s25305_s30 + $0x28] sm:$0xff] %v15867_v1  ;;  %v15799_v32 = vmul.f32 %v19036_v25, %v25288_v38  ;;  %v19042_v15 = vadd.f32 %v25286_v46, %v15596_v63 }
 0x7d5   : > { %v15840_v37 = vadd.f32 %v25291_v49, %v15801_v18  ;;  %v15802_v0 = vmul.f32 %v19039_v11, %v25288_v38 }
 0x7d6   : > { %v15838_v45 = vadd.f32 %v25291_v49, %v15799_v32  ;;  %v15800_v53 = vmul.f32 %v19042_v15, %v25288_v38 }
 0x7d7   : > { %v15872_v36 = vmax.f32 %v15840_v37, 0.0  ;;  %v15841_v33 = vadd.f32 %v25291_v49, %v15802_v0 }
 0x7d8   : > { %v15870_v56 = vmax.f32 %v15838_v45, 0.0  ;;  %v15839_v57 = vadd.f32 %v25291_v49, %v15800_v53  ;;  %v18957_v40 = vpop.f32.mrb[108].mxu0 }
 0x7d9   : > { %15904 = vst [vmem:[%s25305_s30 + $0x50] sm:$0xff] %v15872_v36  ;;  %v15873_v59 = vmax.f32 %v15841_v33, 0.0  ;;  %v19045_v52 = vadd.f32 %v18957_v40, %v25286_v46  ;;  %v15609_v61 = vpop.f32.mrb[109].mxu0 }
 0x7da   : > { %15902 = vst [vmem:[%s25305_s30 + $0x40] sm:$0xff] %v15870_v56  ;;  %v15871_v24 = vmax.f32 %v15839_v57, 0.0  ;;  %v19048_v20 = vadd.f32 %v25286_v46, %v15609_v61  ;;  %v18958_v28 = vpop.f32.mrb[110].mxu0 }
 0x7db   : > { %15905 = vst [vmem:[%s25305_s30 + $0x58] sm:$0xff] %v15873_v59  ;;  %v15805_v8 = vmul.f32 %v19045_v52, %v25288_v38  ;;  %v19051_v41 = vadd.f32 %v18958_v28, %v25286_v46  ;;  %v15612_v17 = vpop.f32.mrb[111].mxu0 }
 0x7dc   : > { %15903 = vst [vmem:[%s25305_s30 + $0x48] sm:$0xff] %v15871_v24  ;;  %v15803_v31 = vmul.f32 %v19048_v20, %v25288_v38  ;;  %v19054_v16 = vadd.f32 %v25286_v46, %v15612_v17 }
 0x7dd   : > { %v15844_v9 = vadd.f32 %v25291_v49, %v15805_v8  ;;  %v15806_v21 = vmul.f32 %v19051_v41, %v25288_v38 }
 0x7de   : > { %v15842_v44 = vadd.f32 %v25291_v49, %v15803_v31  ;;  %v15804_v48 = vmul.f32 %v19054_v16, %v25288_v38 }
 0x7df   : > { %v15876_v14 = vmax.f32 %v15844_v9, 0.0  ;;  %v15845_v4 = vadd.f32 %v25291_v49, %v15806_v21 }
 0x7e0   : > { %v15874_v43 = vmax.f32 %v15842_v44, 0.0  ;;  %v15843_v13 = vadd.f32 %v25291_v49, %v15804_v48  ;;  %v18961_v55 = vpop.f32.mrb[112].mxu0 }
 0x7e1   : > { %15908 = vst [vmem:[%s25305_s30 + $0x70] sm:$0xff] %v15876_v14  ;;  %v15877_v7 = vmax.f32 %v15845_v4, 0.0  ;;  %v19057_v5 = vadd.f32 %v18961_v55, %v25286_v46  ;;  %v15625_v51 = vpop.f32.mrb[113].mxu0 }
 0x7e2   : > { %15906 = vst [vmem:[%s25305_s30 + $0x60] sm:$0xff] %v15874_v43  ;;  %v15875_v19 = vmax.f32 %v15843_v13, 0.0  ;;  %v19060_v26 = vadd.f32 %v25286_v46, %v15625_v51  ;;  %v18962_v42 = vpop.f32.mrb[114].mxu0 }
 0x7e3   : > { %15909 = vst [vmem:[%s25305_s30 + $0x78] sm:$0xff] %v15877_v7  ;;  %v15809_v12 = vmul.f32 %v19057_v5, %v25288_v38  ;;  %v19063_v47 = vadd.f32 %v18962_v42, %v25286_v46  ;;  %v15628_v3 = vpop.f32.mrb[115].mxu0 }
 0x7e4   : > { %15907 = vst [vmem:[%s25305_s30 + $0x68] sm:$0xff] %v15875_v19  ;;  %v15807_v10 = vmul.f32 %v19060_v26, %v25288_v38  ;;  %v19066_v58 = vadd.f32 %v25286_v46, %v15628_v3 }
 0x7e5   : > { %v15848_v29 = vadd.f32 %v25291_v49, %v15809_v12  ;;  %v15810_v39 = vmul.f32 %v19063_v47, %v25288_v38 }
 0x7e6   : > { %v15846_v34 = vadd.f32 %v25291_v49, %v15807_v10  ;;  %v15808_v60 = vmul.f32 %v19066_v58, %v25288_v38 }
 0x7e7   : > { %v15880_v62 = vmax.f32 %v15848_v29, 0.0  ;;  %v15849_v27 = vadd.f32 %v25291_v49, %v15810_v39 }
 0x7e8   : > { %v15878_v30 = vmax.f32 %v15846_v34, 0.0  ;;  %v15847_v2 = vadd.f32 %v25291_v49, %v15808_v60  ;;  %v18965_v50 = vpop.f32.mrb[116].mxu0 }
 0x7e9   : > { %15912 = vst [vmem:[%s25305_s30 + $0x90] sm:$0xff] %v15880_v62  ;;  %v15881_v6 = vmax.f32 %v15849_v27, 0.0  ;;  %v19069_v23 = vadd.f32 %v18965_v50, %v25286_v46  ;;  %v15641_v22 = vpop.f32.mrb[117].mxu0 }
 0x7ea   : > { %15910 = vst [vmem:[%s25305_s30 + $0x80] sm:$0xff] %v15878_v30  ;;  %v15879_v35 = vmax.f32 %v15847_v2, 0.0  ;;  %v19072_v1 = vadd.f32 %v25286_v46, %v15641_v22  ;;  %v18966_v25 = vpop.f32.mrb[118].mxu0 }
 0x7eb   : > { %15913 = vst [vmem:[%s25305_s30 + $0x98] sm:$0xff] %v15881_v6  ;;  %v15813_v54 = vmul.f32 %v19069_v23, %v25288_v38  ;;  %v19075_v18 = vadd.f32 %v18966_v25, %v25286_v46  ;;  %v15644_v11 = vpop.f32.mrb[119].mxu0 }
 0x7ec   : > { %15911 = vst [vmem:[%s25305_s30 + $0x88] sm:$0xff] %v15879_v35  ;;  %v15811_v63 = vmul.f32 %v19072_v1, %v25288_v38  ;;  %v19078_v32 = vadd.f32 %v25286_v46, %v15644_v11 }
 0x7ed   : > { %v15852_v15 = vadd.f32 %v25291_v49, %v15813_v54  ;;  %v15814_v37 = vmul.f32 %v19075_v18, %v25288_v38 }
 0x7ee   : > { %v15850_v0 = vadd.f32 %v25291_v49, %v15811_v63  ;;  %v15812_v45 = vmul.f32 %v19078_v32, %v25288_v38 }
 0x7ef   : > { %v15884_v53 = vmax.f32 %v15852_v15, 0.0  ;;  %v15853_v36 = vadd.f32 %v25291_v49, %v15814_v37 }
 0x7f0   : > { %v15882_v33 = vmax.f32 %v15850_v0, 0.0  ;;  %v15851_v56 = vadd.f32 %v25291_v49, %v15812_v45  ;;  %v18969_v57 = vpop.f32.mrb[120].mxu0 }
 0x7f1   : > { %15916 = vst [vmem:[%s25305_s30 + $0xb0] sm:$0xff] %v15884_v53  ;;  %v15885_v40 = vmax.f32 %v15853_v36, 0.0  ;;  %v19081_v59 = vadd.f32 %v18969_v57, %v25286_v46  ;;  %v15657_v52 = vpop.f32.mrb[121].mxu0 }
 0x7f2   : > { %15914 = vst [vmem:[%s25305_s30 + $0xa0] sm:$0xff] %v15882_v33  ;;  %v15883_v61 = vmax.f32 %v15851_v56, 0.0  ;;  %v19084_v24 = vadd.f32 %v25286_v46, %v15657_v52  ;;  %v18970_v20 = vpop.f32.mrb[122].mxu0 }
 0x7f3   : > { %15917 = vst [vmem:[%s25305_s30 + $0xb8] sm:$0xff] %v15885_v40  ;;  %v15817_v28 = vmul.f32 %v19081_v59, %v25288_v38  ;;  %v19087_v8 = vadd.f32 %v18970_v20, %v25286_v46  ;;  %v15660_v41 = vpop.f32.mrb[123].mxu0 }
 0x7f4   : > { %15915 = vst [vmem:[%s25305_s30 + $0xa8] sm:$0xff] %v15883_v61  ;;  %v15815_v17 = vmul.f32 %v19084_v24, %v25288_v38  ;;  %v19090_v31 = vadd.f32 %v25286_v46, %v15660_v41 }
 0x7f5   : > { %v15856_v16 = vadd.f32 %v25291_v49, %v15817_v28  ;;  %v15818_v9 = vmul.f32 %v19087_v8, %v25288_v38 }
 0x7f6   : > { %v15854_v21 = vadd.f32 %v25291_v49, %v15815_v17  ;;  %v15816_v44 = vmul.f32 %v19090_v31, %v25288_v38 }
 0x7f7   : > { %v15888_v48 = vmax.f32 %v15856_v16, 0.0  ;;  %v15857_v14 = vadd.f32 %v25291_v49, %v15818_v9 }
 0x7f8   : > { %v15886_v4 = vmax.f32 %v15854_v21, 0.0  ;;  %v15855_v43 = vadd.f32 %v25291_v49, %v15816_v44  ;;  %v18973_v13 = vpop.f32.mrb[124].mxu0 }
 0x7f9   : > { %15920 = vst [vmem:[%s25305_s30 + $0xd0] sm:$0xff] %v15888_v48  ;;  %v15889_v55 = vmax.f32 %v15857_v14, 0.0  ;;  %v19093_v7 = vadd.f32 %v18973_v13, %v25286_v46  ;;  %v15673_v5 = vpop.f32.mrb[125].mxu0 }
 0x7fa   : > { %15918 = vst [vmem:[%s25305_s30 + $0xc0] sm:$0xff] %v15886_v4  ;;  %v15887_v51 = vmax.f32 %v15855_v43, 0.0  ;;  %v19096_v19 = vadd.f32 %v25286_v46, %v15673_v5  ;;  %v18974_v26 = vpop.f32.mrb[126].mxu0 }
 0x7fb   : > { %15921 = vst [vmem:[%s25305_s30 + $0xd8] sm:$0xff] %v15889_v55  ;;  %v15821_v42 = vmul.f32 %v19093_v7, %v25288_v38  ;;  %v19099_v12 = vadd.f32 %v18974_v26, %v25286_v46  ;;  %v15676_v47 = vpop.f32.mrb[127].mxu0 }
 0x7fc   : > { %15919 = vst [vmem:[%s25305_s30 + $0xc8] sm:$0xff] %v15887_v51  ;;  %v15819_v3 = vmul.f32 %v19096_v19, %v25288_v38  ;;  %v19102_v10 = vadd.f32 %v25286_v46, %v15676_v47 }
 0x7fd   : > { %v15860_v58 = vadd.f32 %v25291_v49, %v15821_v42  ;;  %v15822_v29 = vmul.f32 %v19099_v12, %v25288_v38 }
 0x7fe   : > { %v15858_v39 = vadd.f32 %v25291_v49, %v15819_v3  ;;  %v15820_v34 = vmul.f32 %v19102_v10, %v25288_v38 }
 0x7ff   : > { %v15892_v60 = vmax.f32 %v15860_v58, 0.0  ;;  %v15861_v62 = vadd.f32 %v25291_v49, %v15822_v29 }
 0x800   : > { %v15890_v27 = vmax.f32 %v15858_v39, 0.0  ;;  %v15859_v46 = vadd.f32 %v25291_v49, %v15820_v34 }
 0x801   : > { %15924 = vst [vmem:[%s25305_s30 + $0xf0] sm:$0xff] %v15892_v60  ;;  %v15893_v30 = vmax.f32 %v15861_v62, 0.0 }
 0x802   : > { %15922 = vst [vmem:[%s25305_s30 + $0xe0] sm:$0xff] %v15890_v27  ;;  %v15891_v38 = vmax.f32 %v15859_v46, 0.0 }
 0x803   : > { %15925 = vst [vmem:[%s25305_s30 + $0xf8] sm:$0xff] %v15893_v30 }
 0x804   : > { %15923 = vst [vmem:[%s25305_s30 + $0xe8] sm:$0xff] %v15891_v38 }
 0x805   : > { %20617 = shalt.err (!%p20614_p8)
}
 0x806   : > { %s20618_s0 = scalar_lea.hbm %s25425_s25, 4096  ;;  %s20622_s23 = scalar_lea.hbm %s25738_s11, 8192 }
 0x807   : > { %p20619_p9 = scmp.ne.s32.totalorder %s25425_s25, %s20618_s0  ;;  %p20623_p10 = scmp.lt.u32.totalorder %s25425_s25, %s25738_s11 }
 0x808   : > { %p20624_p13 = scmp.lt.u32.totalorder %s20622_s23, %s20618_s0  ;;  %p20626_p11 = scmp.lt.u32.totalorder %s20618_s0, %s25425_s25 }
 0x809   : > { %p20620_p1 = pnand %p20619_p9, %p25739_p12 }
 0x80a   : > { %p20625_p2 = por %p20624_p13, %p20623_p10 }
 0x80b   : > { %p20621_p3 = pneg %p20620_p1 }
 0x80c   : > { %p20627_p4 = por %p20626_p11, %p20625_p2 }
 0x80e   : > { %p20628_p6 = pnand %p20627_p4, %p20621_p3 }
 0x810   : > { %20631 = shalt.err (!%p20628_p6)
}
 0x811   : > { %s20729_s26 = smov 128   ;;  %s20730_s27 = smov 8  }
 0x812   : > { %20003 = dma.vmem_to_hbm [thread:$0]  (%p25739_p12), %s25427_s12, 4096, %s25425_s25, %s15927_s15, %s20729_s26, %s20729_s26, %s20730_s27  }
 0x813 PF: > { %s15955_s5 = sand.u32 1, %s20690_s17   ;;  %p25740_p5 = scmp.ne.s32.totalorder %s25548_s13, 0 }
 0x814   : > { %p25741_p7 = scmp.ge.s32.totalorder %s20710_s22, 2  ;;  %s15956_s7 = scalar_lea.sflag [#allocation6], %s15955_s5 }
 0x816   : > { %p20041_p0 = pnand %p25741_p7, %p25740_p5 }
 0x818   : > { %20685 = dma.done.wait (!%p20041_p0), %s15956_s7, 4096  }
 0x819   : > { %20687 = vsyncadd (!%p20041_p0), %s15956_s7, 4294963200  ;;  %s34_s22 = sadd.s32 1, %s20710_s22   ;;  %s25742_s17 = smov %s20694_s18 }
 0x81a   : > { %p31_p8 = scmp.ge.s32.totalorder %s34_s22, 4   ;;  %s25743_s18 = smov %s20698_s19 }
 0x81b   : > { %s25744_s19 = smov %s21059_s16  ;;  %s25745_s20 = smov %s20706_s21 }
 0x81c   : > { %s25746_s21 = smov %s25748_s1  ;;  %33 = sbr.rel (!%p31_p8) target bundleno = 22 (0x16), region = 195 }
 0x823   :  { %15961 = vsyncpa [#allocation5], 1 }
 0x824   :  { %15963 = vsyncpa [#allocation5 + $0x1], 1 }
 0x825   :  { %15964 = vsyncpa [#allocation8], 1 }
 0x826   :  { %15966 = vsyncpa [#allocation8 + $0x1], 1 }
 0x827   :  { %15967 = vsyncpa [#allocation11], 1 }
 0x828   :  { %15968 = vsyncpa [#allocation14], 1 }
 0x829   :  { %15969 = vsyncpa [#allocation17], 1 }
 0x82a   :  { %15970 = vsyncpa [#allocation20], 1 }
 0x82b   :  { %15971 = vsyncpa [#allocation6], 1 }
 0x82c   :  { %15973 = vsyncpa [#allocation6 + $0x1], 1 }

</bundles_post_ra>
